<compile_context>
chip_gen: v5e
topology: v5e:2x2
jax: 0.10.0
libtpu: 0.0.40
codegen_flags: <defaults>
</compile_context>

<pallas_src>
import functools
import math

import jax
import jax.numpy as jnp
import numpy as np
from jax.experimental import pallas as pl
from jax.experimental.pallas import tpu as pltpu


@functools.lru_cache(maxsize=None)
def _dft_mats(n):
    """rfft / irfft (norm='ortho') as real matrices (numpy, cached per N)."""
    f = n // 2 + 1
    eye_n = np.eye(n)
    fwd = np.fft.rfft(eye_n, axis=0, norm="ortho")          # (f, n): rfft(x) = fwd @ x
    ar = fwd.real.astype(np.float32)
    ai = fwd.imag.astype(np.float32)
    eye_f = np.eye(f)
    gr = np.fft.irfft(eye_f, n=n, axis=0, norm="ortho").astype(np.float32)       # (n, f)
    gi = np.fft.irfft(1j * eye_f, n=n, axis=0, norm="ortho").astype(np.float32)  # (n, f)
    return ar, ai, gr, gi


def _encoder_kernel(eps, n_seq, x_ref, w_ref, w1t_ref, b1t_ref, w2t_ref, b2t_ref,
                    ln1w_ref, ln1b_ref, ln2w_ref, ln2b_ref, o_ref, ybuf_ref):
    x = x_ref[...]                                # (D, M) f32, lane index = seq*tb + batch
    d_model, m = x.shape
    tb = m // n_seq
    depth = w1t_ref.shape[0]
    inv_sqrt2 = 1.0 / math.sqrt(2.0)

    def layernorm(v, w, b):
        # Normalize over channels (sublane axis); reuse the centered tensor.
        u = jnp.mean(v, axis=0, keepdims=True)               # (1, M)
        c = v - u
        s = jnp.mean(c * c, axis=0, keepdims=True)           # (1, M)
        return c * jax.lax.rsqrt(s + eps) * w + b            # w, b: (D, 1)

    for l in range(depth):                                   # depth is small -> unrolled
        # ---- FilterLayer: fused per-channel (irfft o diag(k) o rfft) operator ----
        wl = w_ref[l]                                        # (D, N*N) f32, [d, i*N+j]
        cols = [x[:, j * tb:(j + 1) * tb] for j in range(n_seq)]   # N x (D, tb)
        for i in range(n_seq):
            acc = cols[0] * wl[:, i * n_seq:i * n_seq + 1]
            for j in range(1, n_seq):
                k = i * n_seq + j
                acc = acc + cols[j] * wl[:, k:k + 1]
            ybuf_ref[:, i * tb:(i + 1) * tb] = acc
        y = ybuf_ref[...]                                    # (D, M)
        # dropout(p=0.5) is an identity in eval mode.
        x = layernorm(y + x, ln1w_ref[l], ln1b_ref[l])

        # ---- FFN: Linear -> erf GELU -> Linear -> residual LayerNorm ----
        h = jnp.dot(w1t_ref[l], x.astype(jnp.bfloat16),
                    preferred_element_type=jnp.float32) + b1t_ref[l]      # (4D, M)
        h = h * 0.5 * (1.0 + jax.lax.erf(h * inv_sqrt2))
        y2 = jnp.dot(w2t_ref[l], h.astype(jnp.bfloat16),
                     preferred_element_type=jnp.float32) + b2t_ref[l]     # (D, M)
        x = layernorm(y2 + x, ln2w_ref[l], ln2b_ref[l])

    o_ref[...] = x


def encoder_forward(x, params, eps=1e-12):
    """Pallas forward for Encoder.  Each param carries a leading depth axis."""
    kr, ki, w1, b1, w2, b2, ln1w, ln1b, ln2w, ln2b = params
    B, N, D = x.shape
    depth = kr.shape[0]
    hp = jax.lax.Precision.HIGHEST

    # ---- grid / row-group selection: ~512 rows per step, >=2 parallel steps ----
    tb = max(1, 512 // N)
    if B >= 2:
        tb = min(tb, (B + 1) // 2)      # at least 2 grid steps -> both v7x TCs busy
    else:
        tb = 1
    G = (B + tb - 1) // tb
    Bp = G * tb                         # pad batch instead of degrading tb
    M = tb * N

    # ---- fold rfft -> complex filter -> irfft into per-channel (N, N) operators ----
    ar, ai, gr, gi = (jnp.asarray(a) for a in _dft_mats(N))
    # br/bi[l, f, j, d] = Re / Im of (diag(k_d) @ rfft_matrix)[f, j]
    br = kr[:, :, None, :] * ar[None, :, :, None] - ki[:, :, None, :] * ai[None, :, :, None]
    bi = kr[:, :, None, :] * ai[None, :, :, None] + ki[:, :, None, :] * ar[None, :, :, None]
    w_op = (jnp.einsum("if,lfjd->lijd", gr, br, precision=hp)
            + jnp.einsum("if,lfjd->lijd", gi, bi, precision=hp))        # (depth, N_i, N_j, D)
    w_op = jnp.transpose(w_op, (0, 3, 1, 2)).reshape(depth, D, N * N)   # (depth, D, N*N) f32

    # ---- transpose params to the channel-major layout used in the kernel ----
    w1t = jnp.transpose(w1, (0, 2, 1)).astype(jnp.bfloat16)   # (depth, 4D, D)
    w2t = jnp.transpose(w2, (0, 2, 1)).astype(jnp.bfloat16)   # (depth, D, 4D)
    b1t = jnp.transpose(b1, (0, 2, 1))                        # (depth, 4D, 1)
    b2t = jnp.transpose(b2, (0, 2, 1))                        # (depth, D, 1)
    ln1wt = jnp.transpose(ln1w, (0, 2, 1))
    ln1bt = jnp.transpose(ln1b, (0, 2, 1))
    ln2wt = jnp.transpose(ln2w, (0, 2, 1))
    ln2bt = jnp.transpose(ln2b, (0, 2, 1))

    # ---- pack activations: (B, N, D) -> (G, D, tb*N), lane = seq*tb + batch ----
    xp = jnp.pad(x, ((0, Bp - B), (0, 0), (0, 0)))
    xt = xp.reshape(G, tb, N, D).transpose(0, 3, 2, 1).reshape(G, D, M)

    def const_spec(shape):
        return pl.BlockSpec(tuple(shape), lambda g: (0,) * len(shape))

    out = pl.pallas_call(
        functools.partial(_encoder_kernel, eps, N),
        out_shape=jax.ShapeDtypeStruct((G, D, M), jnp.float32),
        grid=(G,),
        in_specs=[
            pl.BlockSpec((None, D, M), lambda g: (g, 0, 0)),   # activations
            const_spec(w_op.shape),
            const_spec(w1t.shape), const_spec(b1t.shape),
            const_spec(w2t.shape), const_spec(b2t.shape),
            const_spec(ln1wt.shape), const_spec(ln1bt.shape),
            const_spec(ln2wt.shape), const_spec(ln2bt.shape),
        ],
        out_specs=pl.BlockSpec((None, D, M), lambda g: (g, 0, 0)),
        scratch_shapes=[pltpu.VMEM((D, M), jnp.float32)],
        compiler_params=pltpu.CompilerParams(
            dimension_semantics=("parallel",)),
    )(xt, w_op, w1t, b1t, w2t, b2t, ln1wt, ln1bt, ln2wt, ln2bt)

    # ---- unpack back to (B, N, D) ----
    y = out.reshape(G, D, N, tb).transpose(0, 3, 2, 1).reshape(Bp, N, D)
    return y[:B]


# -----------------------------------------------------------------------------
# Pure-JAX reference (mirrors the PyTorch module in eval mode).
# -----------------------------------------------------------------------------
def encoder_reference(x, params, eps=1e-12):
    kr, ki, w1, b1, w2, b2, ln1w, ln1b, ln2w, ln2b = params
    depth = kr.shape[0]
    N = x.shape[1]
    hp = jax.lax.Precision.HIGHEST

    def layernorm(v, w, b):
        u = jnp.mean(v, axis=-1, keepdims=True)
        s = jnp.mean((v - u) ** 2, axis=-1, keepdims=True)
        return (v - u) / jnp.sqrt(s + eps) * w + b

    def gelu(v):
        return v * 0.5 * (1.0 + jax.lax.erf(v / math.sqrt(2.0)))

    for l in range(depth):
        cker = kr[l] + 1j * ki[l]
        y = jnp.fft.rfft(x, axis=1, norm="ortho") * cker[None]
        y = jnp.fft.irfft(y, n=N, axis=1, norm="ortho")
        x = layernorm(y + x, ln1w[l], ln1b[l])
        h = gelu(jnp.einsum("bnd,de->bne", x, w1[l], precision=hp) + b1[l])
        y2 = jnp.einsum("bne,ed->bnd", h, w2[l], precision=hp) + b2[l]
        x = layernorm(y2 + x, ln2w[l], ln2b[l])
    return x


# -----------------------------------------------------------------------------
if __name__ == "__main__":
    # Small shapes consistent with the module: d_model=32, max_len=8, depth=2.
    B, N, D, DEPTH = 2, 8, 32, 2
    F = N // 2 + 1

    key = jax.random.PRNGKey(0)
    k_x, k_f, k_w1, k_b1, k_w2, k_b2 = jax.random.split(key, 6)

    x = jax.random.normal(k_x, (B, N, D), dtype=jnp.float32)

    # One BasicLayer's parameters; Encoder deepcopies it `depth` times, so the
    # per-layer stacks below are identical copies (distinct values also work).
    filt = jax.random.normal(k_f, (F, D, 2), dtype=jnp.float32) * 0.02
    kr1, ki1 = filt[..., 0], filt[..., 1]
    w1_ = jax.random.normal(k_w1, (D, 4 * D), dtype=jnp.float32) / math.sqrt(D)
    b1_ = jax.random.normal(k_b1, (1, 4 * D), dtype=jnp.float32) * 0.01
    w2_ = jax.random.normal(k_w2, (4 * D, D), dtype=jnp.float32) / math.sqrt(4 * D)
    b2_ = jax.random.normal(k_b2, (1, D), dtype=jnp.float32) * 0.01
    ln1w_ = jnp.ones((1, D), jnp.float32); ln1b_ = jnp.zeros((1, D), jnp.float32)
    ln2w_ = jnp.ones((1, D), jnp.float32); ln2b_ = jnp.zeros((1, D), jnp.float32)

    def stack(p):
        return jnp.stack([p] * DEPTH, axis=0)

    params = tuple(stack(p) for p in
                   (kr1, ki1, w1_, b1_, w2_, b2_, ln1w_, ln1b_, ln2w_, ln2b_))

    fwd = jax.jit(encoder_forward)
    out = jax.block_until_ready(fwd(x, params))
    ref = jax.block_until_ready(encoder_reference(x, params))

    np.testing.assert_allclose(np.asarray(out), np.asarray(ref),
                               rtol=2e-2, atol=2e-2)
    print("KERNEL_OK")
</pallas_src>

<mosaic_0001>
module attributes {stable_mosaic.version = 11 : i64} {
  func.func @_encoder_kernel(%arg0: i32, %arg1: memref<1x32x8xf32, #tpu.memory_space<vmem>>, %arg2: memref<2x32x64xf32, #tpu.memory_space<vmem>>, %arg3: memref<2x128x32xbf16, #tpu.memory_space<vmem>>, %arg4: memref<2x128x1xf32, #tpu.memory_space<vmem>>, %arg5: memref<2x32x128xbf16, #tpu.memory_space<vmem>>, %arg6: memref<2x32x1xf32, #tpu.memory_space<vmem>>, %arg7: memref<2x32x1xf32, #tpu.memory_space<vmem>>, %arg8: memref<2x32x1xf32, #tpu.memory_space<vmem>>, %arg9: memref<2x32x1xf32, #tpu.memory_space<vmem>>, %arg10: memref<2x32x1xf32, #tpu.memory_space<vmem>>, %arg11: memref<1x32x8xf32, #tpu.memory_space<vmem>>, %arg12: memref<32x8xf32, #tpu.memory_space<vmem>>) attributes {dimension_semantics = [#tpu.dimension_semantics<parallel>], iteration_bounds = array<i64: 2>, scalar_prefetch = 0 : i64, scratch_operands = 1 : i64, tpu.core_type = #tpu.core_type<tc>, window_params = [{transform_indices = @transform_0, window_bounds = array<i64: 1, 32, 8>}, {pipeline_mode = #tpu.pipeline_mode<synchronous>, transform_indices = @transform_1, window_bounds = array<i64: 2, 32, 64>}, {pipeline_mode = #tpu.pipeline_mode<synchronous>, transform_indices = @transform_2, window_bounds = array<i64: 2, 128, 32>}, {pipeline_mode = #tpu.pipeline_mode<synchronous>, transform_indices = @transform_3, window_bounds = array<i64: 2, 128, 1>}, {pipeline_mode = #tpu.pipeline_mode<synchronous>, transform_indices = @transform_4, window_bounds = array<i64: 2, 32, 128>}, {pipeline_mode = #tpu.pipeline_mode<synchronous>, transform_indices = @transform_5, window_bounds = array<i64: 2, 32, 1>}, {pipeline_mode = #tpu.pipeline_mode<synchronous>, transform_indices = @transform_6, window_bounds = array<i64: 2, 32, 1>}, {pipeline_mode = #tpu.pipeline_mode<synchronous>, transform_indices = @transform_7, window_bounds = array<i64: 2, 32, 1>}, {pipeline_mode = #tpu.pipeline_mode<synchronous>, transform_indices = @transform_8, window_bounds = array<i64: 2, 32, 1>}, {pipeline_mode = #tpu.pipeline_mode<synchronous>, transform_indices = @transform_9, window_bounds = array<i64: 2, 32, 1>}, {transform_indices = @transform_10, window_bounds = array<i64: 1, 32, 8>}]} {
    %c0 = arith.constant 0 : index
    %c0_0 = arith.constant 0 : index
    %c0_1 = arith.constant 0 : index
    %0 = vector.load %arg1[%c0, %c0_0, %c0_1] : memref<1x32x8xf32, #tpu.memory_space<vmem>>, vector<1x32x8xf32>
    %1 = vector.shape_cast %0 : vector<1x32x8xf32> to vector<32x8xf32>
    %c0_2 = arith.constant 0 : index
    %c0_3 = arith.constant 0 : index
    %c0_4 = arith.constant 0 : index
    %2 = vector.load %arg2[%c0_2, %c0_3, %c0_4] : memref<2x32x64xf32, #tpu.memory_space<vmem>>, vector<1x32x64xf32>
    %3 = vector.shape_cast %2 : vector<1x32x64xf32> to vector<32x64xf32>
    %4 = vector.extract_strided_slice %1 {offsets = [0, 0], sizes = [32, 1], strides = [1, 1]} : vector<32x8xf32> to vector<32x1xf32>
    %5 = vector.extract_strided_slice %1 {offsets = [0, 1], sizes = [32, 1], strides = [1, 1]} : vector<32x8xf32> to vector<32x1xf32>
    %6 = vector.extract_strided_slice %1 {offsets = [0, 2], sizes = [32, 1], strides = [1, 1]} : vector<32x8xf32> to vector<32x1xf32>
    %7 = vector.extract_strided_slice %1 {offsets = [0, 3], sizes = [32, 1], strides = [1, 1]} : vector<32x8xf32> to vector<32x1xf32>
    %8 = vector.extract_strided_slice %1 {offsets = [0, 4], sizes = [32, 1], strides = [1, 1]} : vector<32x8xf32> to vector<32x1xf32>
    %9 = vector.extract_strided_slice %1 {offsets = [0, 5], sizes = [32, 1], strides = [1, 1]} : vector<32x8xf32> to vector<32x1xf32>
    %10 = vector.extract_strided_slice %1 {offsets = [0, 6], sizes = [32, 1], strides = [1, 1]} : vector<32x8xf32> to vector<32x1xf32>
    %11 = vector.extract_strided_slice %1 {offsets = [0, 7], sizes = [32, 1], strides = [1, 1]} : vector<32x8xf32> to vector<32x1xf32>
    %12 = vector.extract_strided_slice %3 {offsets = [0, 0], sizes = [32, 1], strides = [1, 1]} : vector<32x64xf32> to vector<32x1xf32>
    %13 = arith.mulf %4, %12 : vector<32x1xf32>
    %14 = vector.extract_strided_slice %3 {offsets = [0, 1], sizes = [32, 1], strides = [1, 1]} : vector<32x64xf32> to vector<32x1xf32>
    %15 = arith.mulf %5, %14 : vector<32x1xf32>
    %16 = arith.addf %13, %15 : vector<32x1xf32>
    %17 = vector.extract_strided_slice %3 {offsets = [0, 2], sizes = [32, 1], strides = [1, 1]} : vector<32x64xf32> to vector<32x1xf32>
    %18 = arith.mulf %6, %17 : vector<32x1xf32>
    %19 = arith.addf %16, %18 : vector<32x1xf32>
    %20 = vector.extract_strided_slice %3 {offsets = [0, 3], sizes = [32, 1], strides = [1, 1]} : vector<32x64xf32> to vector<32x1xf32>
    %21 = arith.mulf %7, %20 : vector<32x1xf32>
    %22 = arith.addf %19, %21 : vector<32x1xf32>
    %23 = vector.extract_strided_slice %3 {offsets = [0, 4], sizes = [32, 1], strides = [1, 1]} : vector<32x64xf32> to vector<32x1xf32>
    %24 = arith.mulf %8, %23 : vector<32x1xf32>
    %25 = arith.addf %22, %24 : vector<32x1xf32>
    %26 = vector.extract_strided_slice %3 {offsets = [0, 5], sizes = [32, 1], strides = [1, 1]} : vector<32x64xf32> to vector<32x1xf32>
    %27 = arith.mulf %9, %26 : vector<32x1xf32>
    %28 = arith.addf %25, %27 : vector<32x1xf32>
    %29 = vector.extract_strided_slice %3 {offsets = [0, 6], sizes = [32, 1], strides = [1, 1]} : vector<32x64xf32> to vector<32x1xf32>
    %30 = arith.mulf %10, %29 : vector<32x1xf32>
    %31 = arith.addf %28, %30 : vector<32x1xf32>
    %32 = vector.extract_strided_slice %3 {offsets = [0, 7], sizes = [32, 1], strides = [1, 1]} : vector<32x64xf32> to vector<32x1xf32>
    %33 = arith.mulf %11, %32 : vector<32x1xf32>
    %34 = arith.addf %31, %33 : vector<32x1xf32>
    %c0_5 = arith.constant 0 : index
    %c0_6 = arith.constant 0 : index
    %35 = vector.load %arg12[%c0_5, %c0_6] : memref<32x8xf32, #tpu.memory_space<vmem>>, vector<32x1xf32>
    tpu.vector_store %arg12[%c0_5, %c0_6], %34 {strides = array<i32>} : memref<32x8xf32, #tpu.memory_space<vmem>>, vector<32x1xf32>,
    %36 = vector.extract_strided_slice %3 {offsets = [0, 8], sizes = [32, 1], strides = [1, 1]} : vector<32x64xf32> to vector<32x1xf32>
    %37 = arith.mulf %4, %36 : vector<32x1xf32>
    %38 = vector.extract_strided_slice %3 {offsets = [0, 9], sizes = [32, 1], strides = [1, 1]} : vector<32x64xf32> to vector<32x1xf32>
    %39 = arith.mulf %5, %38 : vector<32x1xf32>
    %40 = arith.addf %37, %39 : vector<32x1xf32>
    %41 = vector.extract_strided_slice %3 {offsets = [0, 10], sizes = [32, 1], strides = [1, 1]} : vector<32x64xf32> to vector<32x1xf32>
    %42 = arith.mulf %6, %41 : vector<32x1xf32>
    %43 = arith.addf %40, %42 : vector<32x1xf32>
    %44 = vector.extract_strided_slice %3 {offsets = [0, 11], sizes = [32, 1], strides = [1, 1]} : vector<32x64xf32> to vector<32x1xf32>
    %45 = arith.mulf %7, %44 : vector<32x1xf32>
    %46 = arith.addf %43, %45 : vector<32x1xf32>
    %47 = vector.extract_strided_slice %3 {offsets = [0, 12], sizes = [32, 1], strides = [1, 1]} : vector<32x64xf32> to vector<32x1xf32>
    %48 = arith.mulf %8, %47 : vector<32x1xf32>
    %49 = arith.addf %46, %48 : vector<32x1xf32>
    %50 = vector.extract_strided_slice %3 {offsets = [0, 13], sizes = [32, 1], strides = [1, 1]} : vector<32x64xf32> to vector<32x1xf32>
    %51 = arith.mulf %9, %50 : vector<32x1xf32>
    %52 = arith.addf %49, %51 : vector<32x1xf32>
    %53 = vector.extract_strided_slice %3 {offsets = [0, 14], sizes = [32, 1], strides = [1, 1]} : vector<32x64xf32> to vector<32x1xf32>
    %54 = arith.mulf %10, %53 : vector<32x1xf32>
    %55 = arith.addf %52, %54 : vector<32x1xf32>
    %56 = vector.extract_strided_slice %3 {offsets = [0, 15], sizes = [32, 1], strides = [1, 1]} : vector<32x64xf32> to vector<32x1xf32>
    %57 = arith.mulf %11, %56 : vector<32x1xf32>
    %58 = arith.addf %55, %57 : vector<32x1xf32>
    %c0_7 = arith.constant 0 : index
    %c1 = arith.constant 1 : index
    %59 = vector.load %arg12[%c0_7, %c1] : memref<32x8xf32, #tpu.memory_space<vmem>>, vector<32x1xf32>
    tpu.vector_store %arg12[%c0_7, %c1], %58 {strides = array<i32>} : memref<32x8xf32, #tpu.memory_space<vmem>>, vector<32x1xf32>,
    %60 = vector.extract_strided_slice %3 {offsets = [0, 16], sizes = [32, 1], strides = [1, 1]} : vector<32x64xf32> to vector<32x1xf32>
    %61 = arith.mulf %4, %60 : vector<32x1xf32>
    %62 = vector.extract_strided_slice %3 {offsets = [0, 17], sizes = [32, 1], strides = [1, 1]} : vector<32x64xf32> to vector<32x1xf32>
    %63 = arith.mulf %5, %62 : vector<32x1xf32>
    %64 = arith.addf %61, %63 : vector<32x1xf32>
    %65 = vector.extract_strided_slice %3 {offsets = [0, 18], sizes = [32, 1], strides = [1, 1]} : vector<32x64xf32> to vector<32x1xf32>
    %66 = arith.mulf %6, %65 : vector<32x1xf32>
    %67 = arith.addf %64, %66 : vector<32x1xf32>
    %68 = vector.extract_strided_slice %3 {offsets = [0, 19], sizes = [32, 1], strides = [1, 1]} : vector<32x64xf32> to vector<32x1xf32>
    %69 = arith.mulf %7, %68 : vector<32x1xf32>
    %70 = arith.addf %67, %69 : vector<32x1xf32>
    %71 = vector.extract_strided_slice %3 {offsets = [0, 20], sizes = [32, 1], strides = [1, 1]} : vector<32x64xf32> to vector<32x1xf32>
    %72 = arith.mulf %8, %71 : vector<32x1xf32>
    %73 = arith.addf %70, %72 : vector<32x1xf32>
    %74 = vector.extract_strided_slice %3 {offsets = [0, 21], sizes = [32, 1], strides = [1, 1]} : vector<32x64xf32> to vector<32x1xf32>
    %75 = arith.mulf %9, %74 : vector<32x1xf32>
    %76 = arith.addf %73, %75 : vector<32x1xf32>
    %77 = vector.extract_strided_slice %3 {offsets = [0, 22], sizes = [32, 1], strides = [1, 1]} : vector<32x64xf32> to vector<32x1xf32>
    %78 = arith.mulf %10, %77 : vector<32x1xf32>
    %79 = arith.addf %76, %78 : vector<32x1xf32>
    %80 = vector.extract_strided_slice %3 {offsets = [0, 23], sizes = [32, 1], strides = [1, 1]} : vector<32x64xf32> to vector<32x1xf32>
    %81 = arith.mulf %11, %80 : vector<32x1xf32>
    %82 = arith.addf %79, %81 : vector<32x1xf32>
    %c0_8 = arith.constant 0 : index
    %c2 = arith.constant 2 : index
    %83 = vector.load %arg12[%c0_8, %c2] : memref<32x8xf32, #tpu.memory_space<vmem>>, vector<32x1xf32>
    tpu.vector_store %arg12[%c0_8, %c2], %82 {strides = array<i32>} : memref<32x8xf32, #tpu.memory_space<vmem>>, vector<32x1xf32>,
    %84 = vector.extract_strided_slice %3 {offsets = [0, 24], sizes = [32, 1], strides = [1, 1]} : vector<32x64xf32> to vector<32x1xf32>
    %85 = arith.mulf %4, %84 : vector<32x1xf32>
    %86 = vector.extract_strided_slice %3 {offsets = [0, 25], sizes = [32, 1], strides = [1, 1]} : vector<32x64xf32> to vector<32x1xf32>
    %87 = arith.mulf %5, %86 : vector<32x1xf32>
    %88 = arith.addf %85, %87 : vector<32x1xf32>
    %89 = vector.extract_strided_slice %3 {offsets = [0, 26], sizes = [32, 1], strides = [1, 1]} : vector<32x64xf32> to vector<32x1xf32>
    %90 = arith.mulf %6, %89 : vector<32x1xf32>
    %91 = arith.addf %88, %90 : vector<32x1xf32>
    %92 = vector.extract_strided_slice %3 {offsets = [0, 27], sizes = [32, 1], strides = [1, 1]} : vector<32x64xf32> to vector<32x1xf32>
    %93 = arith.mulf %7, %92 : vector<32x1xf32>
    %94 = arith.addf %91, %93 : vector<32x1xf32>
    %95 = vector.extract_strided_slice %3 {offsets = [0, 28], sizes = [32, 1], strides = [1, 1]} : vector<32x64xf32> to vector<32x1xf32>
    %96 = arith.mulf %8, %95 : vector<32x1xf32>
    %97 = arith.addf %94, %96 : vector<32x1xf32>
    %98 = vector.extract_strided_slice %3 {offsets = [0, 29], sizes = [32, 1], strides = [1, 1]} : vector<32x64xf32> to vector<32x1xf32>
    %99 = arith.mulf %9, %98 : vector<32x1xf32>
    %100 = arith.addf %97, %99 : vector<32x1xf32>
    %101 = vector.extract_strided_slice %3 {offsets = [0, 30], sizes = [32, 1], strides = [1, 1]} : vector<32x64xf32> to vector<32x1xf32>
    %102 = arith.mulf %10, %101 : vector<32x1xf32>
    %103 = arith.addf %100, %102 : vector<32x1xf32>
    %104 = vector.extract_strided_slice %3 {offsets = [0, 31], sizes = [32, 1], strides = [1, 1]} : vector<32x64xf32> to vector<32x1xf32>
    %105 = arith.mulf %11, %104 : vector<32x1xf32>
    %106 = arith.addf %103, %105 : vector<32x1xf32>
    %c0_9 = arith.constant 0 : index
    %c3 = arith.constant 3 : index
    %107 = vector.load %arg12[%c0_9, %c3] : memref<32x8xf32, #tpu.memory_space<vmem>>, vector<32x1xf32>
    tpu.vector_store %arg12[%c0_9, %c3], %106 {strides = array<i32>} : memref<32x8xf32, #tpu.memory_space<vmem>>, vector<32x1xf32>,
    %108 = vector.extract_strided_slice %3 {offsets = [0, 32], sizes = [32, 1], strides = [1, 1]} : vector<32x64xf32> to vector<32x1xf32>
    %109 = arith.mulf %4, %108 : vector<32x1xf32>
    %110 = vector.extract_strided_slice %3 {offsets = [0, 33], sizes = [32, 1], strides = [1, 1]} : vector<32x64xf32> to vector<32x1xf32>
    %111 = arith.mulf %5, %110 : vector<32x1xf32>
    %112 = arith.addf %109, %111 : vector<32x1xf32>
    %113 = vector.extract_strided_slice %3 {offsets = [0, 34], sizes = [32, 1], strides = [1, 1]} : vector<32x64xf32> to vector<32x1xf32>
    %114 = arith.mulf %6, %113 : vector<32x1xf32>
    %115 = arith.addf %112, %114 : vector<32x1xf32>
    %116 = vector.extract_strided_slice %3 {offsets = [0, 35], sizes = [32, 1], strides = [1, 1]} : vector<32x64xf32> to vector<32x1xf32>
    %117 = arith.mulf %7, %116 : vector<32x1xf32>
    %118 = arith.addf %115, %117 : vector<32x1xf32>
    %119 = vector.extract_strided_slice %3 {offsets = [0, 36], sizes = [32, 1], strides = [1, 1]} : vector<32x64xf32> to vector<32x1xf32>
    %120 = arith.mulf %8, %119 : vector<32x1xf32>
    %121 = arith.addf %118, %120 : vector<32x1xf32>
    %122 = vector.extract_strided_slice %3 {offsets = [0, 37], sizes = [32, 1], strides = [1, 1]} : vector<32x64xf32> to vector<32x1xf32>
    %123 = arith.mulf %9, %122 : vector<32x1xf32>
    %124 = arith.addf %121, %123 : vector<32x1xf32>
    %125 = vector.extract_strided_slice %3 {offsets = [0, 38], sizes = [32, 1], strides = [1, 1]} : vector<32x64xf32> to vector<32x1xf32>
    %126 = arith.mulf %10, %125 : vector<32x1xf32>
    %127 = arith.addf %124, %126 : vector<32x1xf32>
    %128 = vector.extract_strided_slice %3 {offsets = [0, 39], sizes = [32, 1], strides = [1, 1]} : vector<32x64xf32> to vector<32x1xf32>
    %129 = arith.mulf %11, %128 : vector<32x1xf32>
    %130 = arith.addf %127, %129 : vector<32x1xf32>
    %c0_10 = arith.constant 0 : index
    %c4 = arith.constant 4 : index
    %131 = vector.load %arg12[%c0_10, %c4] : memref<32x8xf32, #tpu.memory_space<vmem>>, vector<32x1xf32>
    tpu.vector_store %arg12[%c0_10, %c4], %130 {strides = array<i32>} : memref<32x8xf32, #tpu.memory_space<vmem>>, vector<32x1xf32>,
    %132 = vector.extract_strided_slice %3 {offsets = [0, 40], sizes = [32, 1], strides = [1, 1]} : vector<32x64xf32> to vector<32x1xf32>
    %133 = arith.mulf %4, %132 : vector<32x1xf32>
    %134 = vector.extract_strided_slice %3 {offsets = [0, 41], sizes = [32, 1], strides = [1, 1]} : vector<32x64xf32> to vector<32x1xf32>
    %135 = arith.mulf %5, %134 : vector<32x1xf32>
    %136 = arith.addf %133, %135 : vector<32x1xf32>
    %137 = vector.extract_strided_slice %3 {offsets = [0, 42], sizes = [32, 1], strides = [1, 1]} : vector<32x64xf32> to vector<32x1xf32>
    %138 = arith.mulf %6, %137 : vector<32x1xf32>
    %139 = arith.addf %136, %138 : vector<32x1xf32>
    %140 = vector.extract_strided_slice %3 {offsets = [0, 43], sizes = [32, 1], strides = [1, 1]} : vector<32x64xf32> to vector<32x1xf32>
    %141 = arith.mulf %7, %140 : vector<32x1xf32>
    %142 = arith.addf %139, %141 : vector<32x1xf32>
    %143 = vector.extract_strided_slice %3 {offsets = [0, 44], sizes = [32, 1], strides = [1, 1]} : vector<32x64xf32> to vector<32x1xf32>
    %144 = arith.mulf %8, %143 : vector<32x1xf32>
    %145 = arith.addf %142, %144 : vector<32x1xf32>
    %146 = vector.extract_strided_slice %3 {offsets = [0, 45], sizes = [32, 1], strides = [1, 1]} : vector<32x64xf32> to vector<32x1xf32>
    %147 = arith.mulf %9, %146 : vector<32x1xf32>
    %148 = arith.addf %145, %147 : vector<32x1xf32>
    %149 = vector.extract_strided_slice %3 {offsets = [0, 46], sizes = [32, 1], strides = [1, 1]} : vector<32x64xf32> to vector<32x1xf32>
    %150 = arith.mulf %10, %149 : vector<32x1xf32>
    %151 = arith.addf %148, %150 : vector<32x1xf32>
    %152 = vector.extract_strided_slice %3 {offsets = [0, 47], sizes = [32, 1], strides = [1, 1]} : vector<32x64xf32> to vector<32x1xf32>
    %153 = arith.mulf %11, %152 : vector<32x1xf32>
    %154 = arith.addf %151, %153 : vector<32x1xf32>
    %c0_11 = arith.constant 0 : index
    %c5 = arith.constant 5 : index
    %155 = vector.load %arg12[%c0_11, %c5] : memref<32x8xf32, #tpu.memory_space<vmem>>, vector<32x1xf32>
    tpu.vector_store %arg12[%c0_11, %c5], %154 {strides = array<i32>} : memref<32x8xf32, #tpu.memory_space<vmem>>, vector<32x1xf32>,
    %156 = vector.extract_strided_slice %3 {offsets = [0, 48], sizes = [32, 1], strides = [1, 1]} : vector<32x64xf32> to vector<32x1xf32>
    %157 = arith.mulf %4, %156 : vector<32x1xf32>
    %158 = vector.extract_strided_slice %3 {offsets = [0, 49], sizes = [32, 1], strides = [1, 1]} : vector<32x64xf32> to vector<32x1xf32>
    %159 = arith.mulf %5, %158 : vector<32x1xf32>
    %160 = arith.addf %157, %159 : vector<32x1xf32>
    %161 = vector.extract_strided_slice %3 {offsets = [0, 50], sizes = [32, 1], strides = [1, 1]} : vector<32x64xf32> to vector<32x1xf32>
    %162 = arith.mulf %6, %161 : vector<32x1xf32>
    %163 = arith.addf %160, %162 : vector<32x1xf32>
    %164 = vector.extract_strided_slice %3 {offsets = [0, 51], sizes = [32, 1], strides = [1, 1]} : vector<32x64xf32> to vector<32x1xf32>
    %165 = arith.mulf %7, %164 : vector<32x1xf32>
    %166 = arith.addf %163, %165 : vector<32x1xf32>
    %167 = vector.extract_strided_slice %3 {offsets = [0, 52], sizes = [32, 1], strides = [1, 1]} : vector<32x64xf32> to vector<32x1xf32>
    %168 = arith.mulf %8, %167 : vector<32x1xf32>
    %169 = arith.addf %166, %168 : vector<32x1xf32>
    %170 = vector.extract_strided_slice %3 {offsets = [0, 53], sizes = [32, 1], strides = [1, 1]} : vector<32x64xf32> to vector<32x1xf32>
    %171 = arith.mulf %9, %170 : vector<32x1xf32>
    %172 = arith.addf %169, %171 : vector<32x1xf32>
    %173 = vector.extract_strided_slice %3 {offsets = [0, 54], sizes = [32, 1], strides = [1, 1]} : vector<32x64xf32> to vector<32x1xf32>
    %174 = arith.mulf %10, %173 : vector<32x1xf32>
    %175 = arith.addf %172, %174 : vector<32x1xf32>
    %176 = vector.extract_strided_slice %3 {offsets = [0, 55], sizes = [32, 1], strides = [1, 1]} : vector<32x64xf32> to vector<32x1xf32>
    %177 = arith.mulf %11, %176 : vector<32x1xf32>
    %178 = arith.addf %175, %177 : vector<32x1xf32>
    %c0_12 = arith.constant 0 : index
    %c6 = arith.constant 6 : index
    %179 = vector.load %arg12[%c0_12, %c6] : memref<32x8xf32, #tpu.memory_space<vmem>>, vector<32x1xf32>
    tpu.vector_store %arg12[%c0_12, %c6], %178 {strides = array<i32>} : memref<32x8xf32, #tpu.memory_space<vmem>>, vector<32x1xf32>,
    %180 = vector.extract_strided_slice %3 {offsets = [0, 56], sizes = [32, 1], strides = [1, 1]} : vector<32x64xf32> to vector<32x1xf32>
    %181 = arith.mulf %4, %180 : vector<32x1xf32>
    %182 = vector.extract_strided_slice %3 {offsets = [0, 57], sizes = [32, 1], strides = [1, 1]} : vector<32x64xf32> to vector<32x1xf32>
    %183 = arith.mulf %5, %182 : vector<32x1xf32>
    %184 = arith.addf %181, %183 : vector<32x1xf32>
    %185 = vector.extract_strided_slice %3 {offsets = [0, 58], sizes = [32, 1], strides = [1, 1]} : vector<32x64xf32> to vector<32x1xf32>
    %186 = arith.mulf %6, %185 : vector<32x1xf32>
    %187 = arith.addf %184, %186 : vector<32x1xf32>
    %188 = vector.extract_strided_slice %3 {offsets = [0, 59], sizes = [32, 1], strides = [1, 1]} : vector<32x64xf32> to vector<32x1xf32>
    %189 = arith.mulf %7, %188 : vector<32x1xf32>
    %190 = arith.addf %187, %189 : vector<32x1xf32>
    %191 = vector.extract_strided_slice %3 {offsets = [0, 60], sizes = [32, 1], strides = [1, 1]} : vector<32x64xf32> to vector<32x1xf32>
    %192 = arith.mulf %8, %191 : vector<32x1xf32>
    %193 = arith.addf %190, %192 : vector<32x1xf32>
    %194 = vector.extract_strided_slice %3 {offsets = [0, 61], sizes = [32, 1], strides = [1, 1]} : vector<32x64xf32> to vector<32x1xf32>
    %195 = arith.mulf %9, %194 : vector<32x1xf32>
    %196 = arith.addf %193, %195 : vector<32x1xf32>
    %197 = vector.extract_strided_slice %3 {offsets = [0, 62], sizes = [32, 1], strides = [1, 1]} : vector<32x64xf32> to vector<32x1xf32>
    %198 = arith.mulf %10, %197 : vector<32x1xf32>
    %199 = arith.addf %196, %198 : vector<32x1xf32>
    %200 = vector.extract_strided_slice %3 {offsets = [0, 63], sizes = [32, 1], strides = [1, 1]} : vector<32x64xf32> to vector<32x1xf32>
    %201 = arith.mulf %11, %200 : vector<32x1xf32>
    %202 = arith.addf %199, %201 : vector<32x1xf32>
    %c0_13 = arith.constant 0 : index
    %c7 = arith.constant 7 : index
    %203 = vector.load %arg12[%c0_13, %c7] : memref<32x8xf32, #tpu.memory_space<vmem>>, vector<32x1xf32>
    tpu.vector_store %arg12[%c0_13, %c7], %202 {strides = array<i32>} : memref<32x8xf32, #tpu.memory_space<vmem>>, vector<32x1xf32>,
    %c0_14 = arith.constant 0 : index
    %c0_15 = arith.constant 0 : index
    %204 = vector.load %arg12[%c0_14, %c0_15] : memref<32x8xf32, #tpu.memory_space<vmem>>, vector<32x8xf32>
    %205 = arith.addf %204, %1 : vector<32x8xf32>
    %c0_16 = arith.constant 0 : index
    %c0_17 = arith.constant 0 : index
    %c0_18 = arith.constant 0 : index
    %206 = vector.load %arg7[%c0_16, %c0_17, %c0_18] : memref<2x32x1xf32, #tpu.memory_space<vmem>>, vector<1x32x1xf32>
    %207 = vector.shape_cast %206 : vector<1x32x1xf32> to vector<32x1xf32>
    %c0_19 = arith.constant 0 : index
    %c0_20 = arith.constant 0 : index
    %c0_21 = arith.constant 0 : index
    %208 = vector.load %arg8[%c0_19, %c0_20, %c0_21] : memref<2x32x1xf32, #tpu.memory_space<vmem>>, vector<1x32x1xf32>
    %209 = vector.shape_cast %208 : vector<1x32x1xf32> to vector<32x1xf32>
    %cst = arith.constant dense<0.000000e+00> : vector<8xf32>
    %210 = vector.multi_reduction <add>, %205, %cst [0] : vector<32x8xf32> to vector<8xf32>
    %211 = vector.shape_cast %210 : vector<8xf32> to vector<1x8xf32>
    %cst_22 = arith.constant 3.200000e+01 : f32
    %212 = vector.broadcast %cst_22 : f32 to vector<1x8xf32>
    %213 = arith.divf %211, %212 : vector<1x8xf32>
    %214 = vector.broadcast %213 : vector<1x8xf32> to vector<32x8xf32>
    %215 = arith.subf %205, %214 : vector<32x8xf32>
    %216 = arith.mulf %215, %215 : vector<32x8xf32>
    %cst_23 = arith.constant dense<0.000000e+00> : vector<8xf32>
    %217 = vector.multi_reduction <add>, %216, %cst_23 [0] : vector<32x8xf32> to vector<8xf32>
    %218 = vector.shape_cast %217 : vector<8xf32> to vector<1x8xf32>
    %cst_24 = arith.constant 3.200000e+01 : f32
    %219 = vector.broadcast %cst_24 : f32 to vector<1x8xf32>
    %220 = arith.divf %218, %219 : vector<1x8xf32>
    %cst_25 = arith.constant 9.99999996E-13 : f32
    %221 = vector.broadcast %cst_25 : f32 to vector<1x8xf32>
    %222 = arith.addf %220, %221 : vector<1x8xf32>
    %223 = math.rsqrt %222 : vector<1x8xf32>
    %224 = vector.broadcast %223 : vector<1x8xf32> to vector<32x8xf32>
    %225 = arith.mulf %215, %224 : vector<32x8xf32>
    %226 = vector.broadcast %207 : vector<32x1xf32> to vector<32x8xf32>
    %227 = arith.mulf %225, %226 : vector<32x8xf32>
    %228 = vector.broadcast %209 : vector<32x1xf32> to vector<32x8xf32>
    %229 = arith.addf %227, %228 : vector<32x8xf32>
    %c0_26 = arith.constant 0 : index
    %c0_27 = arith.constant 0 : index
    %c0_28 = arith.constant 0 : index
    %230 = vector.load %arg3[%c0_26, %c0_27, %c0_28] : memref<2x128x32xbf16, #tpu.memory_space<vmem>>, vector<1x128x32xbf16>
    %231 = vector.shape_cast %230 : vector<1x128x32xbf16> to vector<128x32xbf16>
    %232 = arith.truncf %229 : vector<32x8xf32> to vector<32x8xbf16>
    %cst_29 = arith.constant dense<0.000000e+00> : vector<128x8xf32>
    %233 = tpu.matmul %231, %232, %cst_29 {dimension_numbers = #tpu.dot_dimension_numbers<[1], [0], [0], [1], [0, 0, 1, 1], [], []>} : vector<128x32xbf16>, vector<32x8xbf16>, vector<128x8xf32> -> vector<128x8xf32>
    %c0_30 = arith.constant 0 : index
    %c0_31 = arith.constant 0 : index
    %c0_32 = arith.constant 0 : index
    %234 = vector.load %arg4[%c0_30, %c0_31, %c0_32] : memref<2x128x1xf32, #tpu.memory_space<vmem>>, vector<1x128x1xf32>
    %235 = vector.shape_cast %234 : vector<1x128x1xf32> to vector<128x1xf32>
    %236 = vector.broadcast %235 : vector<128x1xf32> to vector<128x8xf32>
    %237 = arith.addf %233, %236 : vector<128x8xf32>
    %cst_33 = arith.constant 5.000000e-01 : f32
    %238 = vector.broadcast %cst_33 : f32 to vector<128x8xf32>
    %239 = arith.mulf %237, %238 : vector<128x8xf32>
    %cst_34 = arith.constant 0.707106769 : f32
    %240 = vector.broadcast %cst_34 : f32 to vector<128x8xf32>
    %241 = arith.mulf %237, %240 : vector<128x8xf32>
    %242 = math.erf %241 : vector<128x8xf32>
    %cst_35 = arith.constant 1.000000e+00 : f32
    %243 = vector.broadcast %cst_35 : f32 to vector<128x8xf32>
    %244 = arith.addf %243, %242 : vector<128x8xf32>
    %245 = arith.mulf %239, %244 : vector<128x8xf32>
    %c0_36 = arith.constant 0 : index
    %c0_37 = arith.constant 0 : index
    %c0_38 = arith.constant 0 : index
    %246 = vector.load %arg5[%c0_36, %c0_37, %c0_38] : memref<2x32x128xbf16, #tpu.memory_space<vmem>>, vector<1x32x128xbf16>
    %247 = vector.shape_cast %246 : vector<1x32x128xbf16> to vector<32x128xbf16>
    %248 = arith.truncf %245 : vector<128x8xf32> to vector<128x8xbf16>
    %cst_39 = arith.constant dense<0.000000e+00> : vector<32x8xf32>
    %249 = tpu.matmul %247, %248, %cst_39 {dimension_numbers = #tpu.dot_dimension_numbers<[1], [0], [0], [1], [0, 0, 1, 1], [], []>} : vector<32x128xbf16>, vector<128x8xbf16>, vector<32x8xf32> -> vector<32x8xf32>
    %c0_40 = arith.constant 0 : index
    %c0_41 = arith.constant 0 : index
    %c0_42 = arith.constant 0 : index
    %250 = vector.load %arg6[%c0_40, %c0_41, %c0_42] : memref<2x32x1xf32, #tpu.memory_space<vmem>>, vector<1x32x1xf32>
    %251 = vector.shape_cast %250 : vector<1x32x1xf32> to vector<32x1xf32>
    %252 = vector.broadcast %251 : vector<32x1xf32> to vector<32x8xf32>
    %253 = arith.addf %249, %252 : vector<32x8xf32>
    %254 = arith.addf %253, %229 : vector<32x8xf32>
    %c0_43 = arith.constant 0 : index
    %c0_44 = arith.constant 0 : index
    %c0_45 = arith.constant 0 : index
    %255 = vector.load %arg9[%c0_43, %c0_44, %c0_45] : memref<2x32x1xf32, #tpu.memory_space<vmem>>, vector<1x32x1xf32>
    %256 = vector.shape_cast %255 : vector<1x32x1xf32> to vector<32x1xf32>
    %c0_46 = arith.constant 0 : index
    %c0_47 = arith.constant 0 : index
    %c0_48 = arith.constant 0 : index
    %257 = vector.load %arg10[%c0_46, %c0_47, %c0_48] : memref<2x32x1xf32, #tpu.memory_space<vmem>>, vector<1x32x1xf32>
    %258 = vector.shape_cast %257 : vector<1x32x1xf32> to vector<32x1xf32>
    %cst_49 = arith.constant dense<0.000000e+00> : vector<8xf32>
    %259 = vector.multi_reduction <add>, %254, %cst_49 [0] : vector<32x8xf32> to vector<8xf32>
    %260 = vector.shape_cast %259 : vector<8xf32> to vector<1x8xf32>
    %cst_50 = arith.constant 3.200000e+01 : f32
    %261 = vector.broadcast %cst_50 : f32 to vector<1x8xf32>
    %262 = arith.divf %260, %261 : vector<1x8xf32>
    %263 = vector.broadcast %262 : vector<1x8xf32> to vector<32x8xf32>
    %264 = arith.subf %254, %263 : vector<32x8xf32>
    %265 = arith.mulf %264, %264 : vector<32x8xf32>
    %cst_51 = arith.constant dense<0.000000e+00> : vector<8xf32>
    %266 = vector.multi_reduction <add>, %265, %cst_51 [0] : vector<32x8xf32> to vector<8xf32>
    %267 = vector.shape_cast %266 : vector<8xf32> to vector<1x8xf32>
    %cst_52 = arith.constant 3.200000e+01 : f32
    %268 = vector.broadcast %cst_52 : f32 to vector<1x8xf32>
    %269 = arith.divf %267, %268 : vector<1x8xf32>
    %cst_53 = arith.constant 9.99999996E-13 : f32
    %270 = vector.broadcast %cst_53 : f32 to vector<1x8xf32>
    %271 = arith.addf %269, %270 : vector<1x8xf32>
    %272 = math.rsqrt %271 : vector<1x8xf32>
    %273 = vector.broadcast %272 : vector<1x8xf32> to vector<32x8xf32>
    %274 = arith.mulf %264, %273 : vector<32x8xf32>
    %275 = vector.broadcast %256 : vector<32x1xf32> to vector<32x8xf32>
    %276 = arith.mulf %274, %275 : vector<32x8xf32>
    %277 = vector.broadcast %258 : vector<32x1xf32> to vector<32x8xf32>
    %278 = arith.addf %276, %277 : vector<32x8xf32>
    %c1_54 = arith.constant 1 : index
    %c0_55 = arith.constant 0 : index
    %c0_56 = arith.constant 0 : index
    %279 = vector.load %arg2[%c1_54, %c0_55, %c0_56] : memref<2x32x64xf32, #tpu.memory_space<vmem>>, vector<1x32x64xf32>
    %280 = vector.shape_cast %279 : vector<1x32x64xf32> to vector<32x64xf32>
    %281 = vector.extract_strided_slice %278 {offsets = [0, 0], sizes = [32, 1], strides = [1, 1]} : vector<32x8xf32> to vector<32x1xf32>
    %282 = vector.extract_strided_slice %278 {offsets = [0, 1], sizes = [32, 1], strides = [1, 1]} : vector<32x8xf32> to vector<32x1xf32>
    %283 = vector.extract_strided_slice %278 {offsets = [0, 2], sizes = [32, 1], strides = [1, 1]} : vector<32x8xf32> to vector<32x1xf32>
    %284 = vector.extract_strided_slice %278 {offsets = [0, 3], sizes = [32, 1], strides = [1, 1]} : vector<32x8xf32> to vector<32x1xf32>
    %285 = vector.extract_strided_slice %278 {offsets = [0, 4], sizes = [32, 1], strides = [1, 1]} : vector<32x8xf32> to vector<32x1xf32>
    %286 = vector.extract_strided_slice %278 {offsets = [0, 5], sizes = [32, 1], strides = [1, 1]} : vector<32x8xf32> to vector<32x1xf32>
    %287 = vector.extract_strided_slice %278 {offsets = [0, 6], sizes = [32, 1], strides = [1, 1]} : vector<32x8xf32> to vector<32x1xf32>
    %288 = vector.extract_strided_slice %278 {offsets = [0, 7], sizes = [32, 1], strides = [1, 1]} : vector<32x8xf32> to vector<32x1xf32>
    %289 = vector.extract_strided_slice %280 {offsets = [0, 0], sizes = [32, 1], strides = [1, 1]} : vector<32x64xf32> to vector<32x1xf32>
    %290 = arith.mulf %281, %289 : vector<32x1xf32>
    %291 = vector.extract_strided_slice %280 {offsets = [0, 1], sizes = [32, 1], strides = [1, 1]} : vector<32x64xf32> to vector<32x1xf32>
    %292 = arith.mulf %282, %291 : vector<32x1xf32>
    %293 = arith.addf %290, %292 : vector<32x1xf32>
    %294 = vector.extract_strided_slice %280 {offsets = [0, 2], sizes = [32, 1], strides = [1, 1]} : vector<32x64xf32> to vector<32x1xf32>
    %295 = arith.mulf %283, %294 : vector<32x1xf32>
    %296 = arith.addf %293, %295 : vector<32x1xf32>
    %297 = vector.extract_strided_slice %280 {offsets = [0, 3], sizes = [32, 1], strides = [1, 1]} : vector<32x64xf32> to vector<32x1xf32>
    %298 = arith.mulf %284, %297 : vector<32x1xf32>
    %299 = arith.addf %296, %298 : vector<32x1xf32>
    %300 = vector.extract_strided_slice %280 {offsets = [0, 4], sizes = [32, 1], strides = [1, 1]} : vector<32x64xf32> to vector<32x1xf32>
    %301 = arith.mulf %285, %300 : vector<32x1xf32>
    %302 = arith.addf %299, %301 : vector<32x1xf32>
    %303 = vector.extract_strided_slice %280 {offsets = [0, 5], sizes = [32, 1], strides = [1, 1]} : vector<32x64xf32> to vector<32x1xf32>
    %304 = arith.mulf %286, %303 : vector<32x1xf32>
    %305 = arith.addf %302, %304 : vector<32x1xf32>
    %306 = vector.extract_strided_slice %280 {offsets = [0, 6], sizes = [32, 1], strides = [1, 1]} : vector<32x64xf32> to vector<32x1xf32>
    %307 = arith.mulf %287, %306 : vector<32x1xf32>
    %308 = arith.addf %305, %307 : vector<32x1xf32>
    %309 = vector.extract_strided_slice %280 {offsets = [0, 7], sizes = [32, 1], strides = [1, 1]} : vector<32x64xf32> to vector<32x1xf32>
    %310 = arith.mulf %288, %309 : vector<32x1xf32>
    %311 = arith.addf %308, %310 : vector<32x1xf32>
    %c0_57 = arith.constant 0 : index
    %c0_58 = arith.constant 0 : index
    %312 = vector.load %arg12[%c0_57, %c0_58] : memref<32x8xf32, #tpu.memory_space<vmem>>, vector<32x1xf32>
    tpu.vector_store %arg12[%c0_57, %c0_58], %311 {strides = array<i32>} : memref<32x8xf32, #tpu.memory_space<vmem>>, vector<32x1xf32>,
    %313 = vector.extract_strided_slice %280 {offsets = [0, 8], sizes = [32, 1], strides = [1, 1]} : vector<32x64xf32> to vector<32x1xf32>
    %314 = arith.mulf %281, %313 : vector<32x1xf32>
    %315 = vector.extract_strided_slice %280 {offsets = [0, 9], sizes = [32, 1], strides = [1, 1]} : vector<32x64xf32> to vector<32x1xf32>
    %316 = arith.mulf %282, %315 : vector<32x1xf32>
    %317 = arith.addf %314, %316 : vector<32x1xf32>
    %318 = vector.extract_strided_slice %280 {offsets = [0, 10], sizes = [32, 1], strides = [1, 1]} : vector<32x64xf32> to vector<32x1xf32>
    %319 = arith.mulf %283, %318 : vector<32x1xf32>
    %320 = arith.addf %317, %319 : vector<32x1xf32>
    %321 = vector.extract_strided_slice %280 {offsets = [0, 11], sizes = [32, 1], strides = [1, 1]} : vector<32x64xf32> to vector<32x1xf32>
    %322 = arith.mulf %284, %321 : vector<32x1xf32>
    %323 = arith.addf %320, %322 : vector<32x1xf32>
    %324 = vector.extract_strided_slice %280 {offsets = [0, 12], sizes = [32, 1], strides = [1, 1]} : vector<32x64xf32> to vector<32x1xf32>
    %325 = arith.mulf %285, %324 : vector<32x1xf32>
    %326 = arith.addf %323, %325 : vector<32x1xf32>
    %327 = vector.extract_strided_slice %280 {offsets = [0, 13], sizes = [32, 1], strides = [1, 1]} : vector<32x64xf32> to vector<32x1xf32>
    %328 = arith.mulf %286, %327 : vector<32x1xf32>
    %329 = arith.addf %326, %328 : vector<32x1xf32>
    %330 = vector.extract_strided_slice %280 {offsets = [0, 14], sizes = [32, 1], strides = [1, 1]} : vector<32x64xf32> to vector<32x1xf32>
    %331 = arith.mulf %287, %330 : vector<32x1xf32>
    %332 = arith.addf %329, %331 : vector<32x1xf32>
    %333 = vector.extract_strided_slice %280 {offsets = [0, 15], sizes = [32, 1], strides = [1, 1]} : vector<32x64xf32> to vector<32x1xf32>
    %334 = arith.mulf %288, %333 : vector<32x1xf32>
    %335 = arith.addf %332, %334 : vector<32x1xf32>
    %c0_59 = arith.constant 0 : index
    %c1_60 = arith.constant 1 : index
    %336 = vector.load %arg12[%c0_59, %c1_60] : memref<32x8xf32, #tpu.memory_space<vmem>>, vector<32x1xf32>
    tpu.vector_store %arg12[%c0_59, %c1_60], %335 {strides = array<i32>} : memref<32x8xf32, #tpu.memory_space<vmem>>, vector<32x1xf32>,
    %337 = vector.extract_strided_slice %280 {offsets = [0, 16], sizes = [32, 1], strides = [1, 1]} : vector<32x64xf32> to vector<32x1xf32>
    %338 = arith.mulf %281, %337 : vector<32x1xf32>
    %339 = vector.extract_strided_slice %280 {offsets = [0, 17], sizes = [32, 1], strides = [1, 1]} : vector<32x64xf32> to vector<32x1xf32>
    %340 = arith.mulf %282, %339 : vector<32x1xf32>
    %341 = arith.addf %338, %340 : vector<32x1xf32>
    %342 = vector.extract_strided_slice %280 {offsets = [0, 18], sizes = [32, 1], strides = [1, 1]} : vector<32x64xf32> to vector<32x1xf32>
    %343 = arith.mulf %283, %342 : vector<32x1xf32>
    %344 = arith.addf %341, %343 : vector<32x1xf32>
    %345 = vector.extract_strided_slice %280 {offsets = [0, 19], sizes = [32, 1], strides = [1, 1]} : vector<32x64xf32> to vector<32x1xf32>
    %346 = arith.mulf %284, %345 : vector<32x1xf32>
    %347 = arith.addf %344, %346 : vector<32x1xf32>
    %348 = vector.extract_strided_slice %280 {offsets = [0, 20], sizes = [32, 1], strides = [1, 1]} : vector<32x64xf32> to vector<32x1xf32>
    %349 = arith.mulf %285, %348 : vector<32x1xf32>
    %350 = arith.addf %347, %349 : vector<32x1xf32>
    %351 = vector.extract_strided_slice %280 {offsets = [0, 21], sizes = [32, 1], strides = [1, 1]} : vector<32x64xf32> to vector<32x1xf32>
    %352 = arith.mulf %286, %351 : vector<32x1xf32>
    %353 = arith.addf %350, %352 : vector<32x1xf32>
    %354 = vector.extract_strided_slice %280 {offsets = [0, 22], sizes = [32, 1], strides = [1, 1]} : vector<32x64xf32> to vector<32x1xf32>
    %355 = arith.mulf %287, %354 : vector<32x1xf32>
    %356 = arith.addf %353, %355 : vector<32x1xf32>
    %357 = vector.extract_strided_slice %280 {offsets = [0, 23], sizes = [32, 1], strides = [1, 1]} : vector<32x64xf32> to vector<32x1xf32>
    %358 = arith.mulf %288, %357 : vector<32x1xf32>
    %359 = arith.addf %356, %358 : vector<32x1xf32>
    %c0_61 = arith.constant 0 : index
    %c2_62 = arith.constant 2 : index
    %360 = vector.load %arg12[%c0_61, %c2_62] : memref<32x8xf32, #tpu.memory_space<vmem>>, vector<32x1xf32>
    tpu.vector_store %arg12[%c0_61, %c2_62], %359 {strides = array<i32>} : memref<32x8xf32, #tpu.memory_space<vmem>>, vector<32x1xf32>,
    %361 = vector.extract_strided_slice %280 {offsets = [0, 24], sizes = [32, 1], strides = [1, 1]} : vector<32x64xf32> to vector<32x1xf32>
    %362 = arith.mulf %281, %361 : vector<32x1xf32>
    %363 = vector.extract_strided_slice %280 {offsets = [0, 25], sizes = [32, 1], strides = [1, 1]} : vector<32x64xf32> to vector<32x1xf32>
    %364 = arith.mulf %282, %363 : vector<32x1xf32>
    %365 = arith.addf %362, %364 : vector<32x1xf32>
    %366 = vector.extract_strided_slice %280 {offsets = [0, 26], sizes = [32, 1], strides = [1, 1]} : vector<32x64xf32> to vector<32x1xf32>
    %367 = arith.mulf %283, %366 : vector<32x1xf32>
    %368 = arith.addf %365, %367 : vector<32x1xf32>
    %369 = vector.extract_strided_slice %280 {offsets = [0, 27], sizes = [32, 1], strides = [1, 1]} : vector<32x64xf32> to vector<32x1xf32>
    %370 = arith.mulf %284, %369 : vector<32x1xf32>
    %371 = arith.addf %368, %370 : vector<32x1xf32>
    %372 = vector.extract_strided_slice %280 {offsets = [0, 28], sizes = [32, 1], strides = [1, 1]} : vector<32x64xf32> to vector<32x1xf32>
    %373 = arith.mulf %285, %372 : vector<32x1xf32>
    %374 = arith.addf %371, %373 : vector<32x1xf32>
    %375 = vector.extract_strided_slice %280 {offsets = [0, 29], sizes = [32, 1], strides = [1, 1]} : vector<32x64xf32> to vector<32x1xf32>
    %376 = arith.mulf %286, %375 : vector<32x1xf32>
    %377 = arith.addf %374, %376 : vector<32x1xf32>
    %378 = vector.extract_strided_slice %280 {offsets = [0, 30], sizes = [32, 1], strides = [1, 1]} : vector<32x64xf32> to vector<32x1xf32>
    %379 = arith.mulf %287, %378 : vector<32x1xf32>
    %380 = arith.addf %377, %379 : vector<32x1xf32>
    %381 = vector.extract_strided_slice %280 {offsets = [0, 31], sizes = [32, 1], strides = [1, 1]} : vector<32x64xf32> to vector<32x1xf32>
    %382 = arith.mulf %288, %381 : vector<32x1xf32>
    %383 = arith.addf %380, %382 : vector<32x1xf32>
    %c0_63 = arith.constant 0 : index
    %c3_64 = arith.constant 3 : index
    %384 = vector.load %arg12[%c0_63, %c3_64] : memref<32x8xf32, #tpu.memory_space<vmem>>, vector<32x1xf32>
    tpu.vector_store %arg12[%c0_63, %c3_64], %383 {strides = array<i32>} : memref<32x8xf32, #tpu.memory_space<vmem>>, vector<32x1xf32>,
    %385 = vector.extract_strided_slice %280 {offsets = [0, 32], sizes = [32, 1], strides = [1, 1]} : vector<32x64xf32> to vector<32x1xf32>
    %386 = arith.mulf %281, %385 : vector<32x1xf32>
    %387 = vector.extract_strided_slice %280 {offsets = [0, 33], sizes = [32, 1], strides = [1, 1]} : vector<32x64xf32> to vector<32x1xf32>
    %388 = arith.mulf %282, %387 : vector<32x1xf32>
    %389 = arith.addf %386, %388 : vector<32x1xf32>
    %390 = vector.extract_strided_slice %280 {offsets = [0, 34], sizes = [32, 1], strides = [1, 1]} : vector<32x64xf32> to vector<32x1xf32>
    %391 = arith.mulf %283, %390 : vector<32x1xf32>
    %392 = arith.addf %389, %391 : vector<32x1xf32>
    %393 = vector.extract_strided_slice %280 {offsets = [0, 35], sizes = [32, 1], strides = [1, 1]} : vector<32x64xf32> to vector<32x1xf32>
    %394 = arith.mulf %284, %393 : vector<32x1xf32>
    %395 = arith.addf %392, %394 : vector<32x1xf32>
    %396 = vector.extract_strided_slice %280 {offsets = [0, 36], sizes = [32, 1], strides = [1, 1]} : vector<32x64xf32> to vector<32x1xf32>
    %397 = arith.mulf %285, %396 : vector<32x1xf32>
    %398 = arith.addf %395, %397 : vector<32x1xf32>
    %399 = vector.extract_strided_slice %280 {offsets = [0, 37], sizes = [32, 1], strides = [1, 1]} : vector<32x64xf32> to vector<32x1xf32>
    %400 = arith.mulf %286, %399 : vector<32x1xf32>
    %401 = arith.addf %398, %400 : vector<32x1xf32>
    %402 = vector.extract_strided_slice %280 {offsets = [0, 38], sizes = [32, 1], strides = [1, 1]} : vector<32x64xf32> to vector<32x1xf32>
    %403 = arith.mulf %287, %402 : vector<32x1xf32>
    %404 = arith.addf %401, %403 : vector<32x1xf32>
    %405 = vector.extract_strided_slice %280 {offsets = [0, 39], sizes = [32, 1], strides = [1, 1]} : vector<32x64xf32> to vector<32x1xf32>
    %406 = arith.mulf %288, %405 : vector<32x1xf32>
    %407 = arith.addf %404, %406 : vector<32x1xf32>
    %c0_65 = arith.constant 0 : index
    %c4_66 = arith.constant 4 : index
    %408 = vector.load %arg12[%c0_65, %c4_66] : memref<32x8xf32, #tpu.memory_space<vmem>>, vector<32x1xf32>
    tpu.vector_store %arg12[%c0_65, %c4_66], %407 {strides = array<i32>} : memref<32x8xf32, #tpu.memory_space<vmem>>, vector<32x1xf32>,
    %409 = vector.extract_strided_slice %280 {offsets = [0, 40], sizes = [32, 1], strides = [1, 1]} : vector<32x64xf32> to vector<32x1xf32>
    %410 = arith.mulf %281, %409 : vector<32x1xf32>
    %411 = vector.extract_strided_slice %280 {offsets = [0, 41], sizes = [32, 1], strides = [1, 1]} : vector<32x64xf32> to vector<32x1xf32>
    %412 = arith.mulf %282, %411 : vector<32x1xf32>
    %413 = arith.addf %410, %412 : vector<32x1xf32>
    %414 = vector.extract_strided_slice %280 {offsets = [0, 42], sizes = [32, 1], strides = [1, 1]} : vector<32x64xf32> to vector<32x1xf32>
    %415 = arith.mulf %283, %414 : vector<32x1xf32>
    %416 = arith.addf %413, %415 : vector<32x1xf32>
    %417 = vector.extract_strided_slice %280 {offsets = [0, 43], sizes = [32, 1], strides = [1, 1]} : vector<32x64xf32> to vector<32x1xf32>
    %418 = arith.mulf %284, %417 : vector<32x1xf32>
    %419 = arith.addf %416, %418 : vector<32x1xf32>
    %420 = vector.extract_strided_slice %280 {offsets = [0, 44], sizes = [32, 1], strides = [1, 1]} : vector<32x64xf32> to vector<32x1xf32>
    %421 = arith.mulf %285, %420 : vector<32x1xf32>
    %422 = arith.addf %419, %421 : vector<32x1xf32>
    %423 = vector.extract_strided_slice %280 {offsets = [0, 45], sizes = [32, 1], strides = [1, 1]} : vector<32x64xf32> to vector<32x1xf32>
    %424 = arith.mulf %286, %423 : vector<32x1xf32>
    %425 = arith.addf %422, %424 : vector<32x1xf32>
    %426 = vector.extract_strided_slice %280 {offsets = [0, 46], sizes = [32, 1], strides = [1, 1]} : vector<32x64xf32> to vector<32x1xf32>
    %427 = arith.mulf %287, %426 : vector<32x1xf32>
    %428 = arith.addf %425, %427 : vector<32x1xf32>
    %429 = vector.extract_strided_slice %280 {offsets = [0, 47], sizes = [32, 1], strides = [1, 1]} : vector<32x64xf32> to vector<32x1xf32>
    %430 = arith.mulf %288, %429 : vector<32x1xf32>
    %431 = arith.addf %428, %430 : vector<32x1xf32>
    %c0_67 = arith.constant 0 : index
    %c5_68 = arith.constant 5 : index
    %432 = vector.load %arg12[%c0_67, %c5_68] : memref<32x8xf32, #tpu.memory_space<vmem>>, vector<32x1xf32>
    tpu.vector_store %arg12[%c0_67, %c5_68], %431 {strides = array<i32>} : memref<32x8xf32, #tpu.memory_space<vmem>>, vector<32x1xf32>,
    %433 = vector.extract_strided_slice %280 {offsets = [0, 48], sizes = [32, 1], strides = [1, 1]} : vector<32x64xf32> to vector<32x1xf32>
    %434 = arith.mulf %281, %433 : vector<32x1xf32>
    %435 = vector.extract_strided_slice %280 {offsets = [0, 49], sizes = [32, 1], strides = [1, 1]} : vector<32x64xf32> to vector<32x1xf32>
    %436 = arith.mulf %282, %435 : vector<32x1xf32>
    %437 = arith.addf %434, %436 : vector<32x1xf32>
    %438 = vector.extract_strided_slice %280 {offsets = [0, 50], sizes = [32, 1], strides = [1, 1]} : vector<32x64xf32> to vector<32x1xf32>
    %439 = arith.mulf %283, %438 : vector<32x1xf32>
    %440 = arith.addf %437, %439 : vector<32x1xf32>
    %441 = vector.extract_strided_slice %280 {offsets = [0, 51], sizes = [32, 1], strides = [1, 1]} : vector<32x64xf32> to vector<32x1xf32>
    %442 = arith.mulf %284, %441 : vector<32x1xf32>
    %443 = arith.addf %440, %442 : vector<32x1xf32>
    %444 = vector.extract_strided_slice %280 {offsets = [0, 52], sizes = [32, 1], strides = [1, 1]} : vector<32x64xf32> to vector<32x1xf32>
    %445 = arith.mulf %285, %444 : vector<32x1xf32>
    %446 = arith.addf %443, %445 : vector<32x1xf32>
    %447 = vector.extract_strided_slice %280 {offsets = [0, 53], sizes = [32, 1], strides = [1, 1]} : vector<32x64xf32> to vector<32x1xf32>
    %448 = arith.mulf %286, %447 : vector<32x1xf32>
    %449 = arith.addf %446, %448 : vector<32x1xf32>
    %450 = vector.extract_strided_slice %280 {offsets = [0, 54], sizes = [32, 1], strides = [1, 1]} : vector<32x64xf32> to vector<32x1xf32>
    %451 = arith.mulf %287, %450 : vector<32x1xf32>
    %452 = arith.addf %449, %451 : vector<32x1xf32>
    %453 = vector.extract_strided_slice %280 {offsets = [0, 55], sizes = [32, 1], strides = [1, 1]} : vector<32x64xf32> to vector<32x1xf32>
    %454 = arith.mulf %288, %453 : vector<32x1xf32>
    %455 = arith.addf %452, %454 : vector<32x1xf32>
    %c0_69 = arith.constant 0 : index
    %c6_70 = arith.constant 6 : index
    %456 = vector.load %arg12[%c0_69, %c6_70] : memref<32x8xf32, #tpu.memory_space<vmem>>, vector<32x1xf32>
    tpu.vector_store %arg12[%c0_69, %c6_70], %455 {strides = array<i32>} : memref<32x8xf32, #tpu.memory_space<vmem>>, vector<32x1xf32>,
    %457 = vector.extract_strided_slice %280 {offsets = [0, 56], sizes = [32, 1], strides = [1, 1]} : vector<32x64xf32> to vector<32x1xf32>
    %458 = arith.mulf %281, %457 : vector<32x1xf32>
    %459 = vector.extract_strided_slice %280 {offsets = [0, 57], sizes = [32, 1], strides = [1, 1]} : vector<32x64xf32> to vector<32x1xf32>
    %460 = arith.mulf %282, %459 : vector<32x1xf32>
    %461 = arith.addf %458, %460 : vector<32x1xf32>
    %462 = vector.extract_strided_slice %280 {offsets = [0, 58], sizes = [32, 1], strides = [1, 1]} : vector<32x64xf32> to vector<32x1xf32>
    %463 = arith.mulf %283, %462 : vector<32x1xf32>
    %464 = arith.addf %461, %463 : vector<32x1xf32>
    %465 = vector.extract_strided_slice %280 {offsets = [0, 59], sizes = [32, 1], strides = [1, 1]} : vector<32x64xf32> to vector<32x1xf32>
    %466 = arith.mulf %284, %465 : vector<32x1xf32>
    %467 = arith.addf %464, %466 : vector<32x1xf32>
    %468 = vector.extract_strided_slice %280 {offsets = [0, 60], sizes = [32, 1], strides = [1, 1]} : vector<32x64xf32> to vector<32x1xf32>
    %469 = arith.mulf %285, %468 : vector<32x1xf32>
    %470 = arith.addf %467, %469 : vector<32x1xf32>
    %471 = vector.extract_strided_slice %280 {offsets = [0, 61], sizes = [32, 1], strides = [1, 1]} : vector<32x64xf32> to vector<32x1xf32>
    %472 = arith.mulf %286, %471 : vector<32x1xf32>
    %473 = arith.addf %470, %472 : vector<32x1xf32>
    %474 = vector.extract_strided_slice %280 {offsets = [0, 62], sizes = [32, 1], strides = [1, 1]} : vector<32x64xf32> to vector<32x1xf32>
    %475 = arith.mulf %287, %474 : vector<32x1xf32>
    %476 = arith.addf %473, %475 : vector<32x1xf32>
    %477 = vector.extract_strided_slice %280 {offsets = [0, 63], sizes = [32, 1], strides = [1, 1]} : vector<32x64xf32> to vector<32x1xf32>
    %478 = arith.mulf %288, %477 : vector<32x1xf32>
    %479 = arith.addf %476, %478 : vector<32x1xf32>
    %c0_71 = arith.constant 0 : index
    %c7_72 = arith.constant 7 : index
    %480 = vector.load %arg12[%c0_71, %c7_72] : memref<32x8xf32, #tpu.memory_space<vmem>>, vector<32x1xf32>
    tpu.vector_store %arg12[%c0_71, %c7_72], %479 {strides = array<i32>} : memref<32x8xf32, #tpu.memory_space<vmem>>, vector<32x1xf32>,
    %c0_73 = arith.constant 0 : index
    %c0_74 = arith.constant 0 : index
    %481 = vector.load %arg12[%c0_73, %c0_74] : memref<32x8xf32, #tpu.memory_space<vmem>>, vector<32x8xf32>
    %482 = arith.addf %481, %278 : vector<32x8xf32>
    %c1_75 = arith.constant 1 : index
    %c0_76 = arith.constant 0 : index
    %c0_77 = arith.constant 0 : index
    %483 = vector.load %arg7[%c1_75, %c0_76, %c0_77] : memref<2x32x1xf32, #tpu.memory_space<vmem>>, vector<1x32x1xf32>
    %484 = vector.shape_cast %483 : vector<1x32x1xf32> to vector<32x1xf32>
    %c1_78 = arith.constant 1 : index
    %c0_79 = arith.constant 0 : index
    %c0_80 = arith.constant 0 : index
    %485 = vector.load %arg8[%c1_78, %c0_79, %c0_80] : memref<2x32x1xf32, #tpu.memory_space<vmem>>, vector<1x32x1xf32>
    %486 = vector.shape_cast %485 : vector<1x32x1xf32> to vector<32x1xf32>
    %cst_81 = arith.constant dense<0.000000e+00> : vector<8xf32>
    %487 = vector.multi_reduction <add>, %482, %cst_81 [0] : vector<32x8xf32> to vector<8xf32>
    %488 = vector.shape_cast %487 : vector<8xf32> to vector<1x8xf32>
    %cst_82 = arith.constant 3.200000e+01 : f32
    %489 = vector.broadcast %cst_82 : f32 to vector<1x8xf32>
    %490 = arith.divf %488, %489 : vector<1x8xf32>
    %491 = vector.broadcast %490 : vector<1x8xf32> to vector<32x8xf32>
    %492 = arith.subf %482, %491 : vector<32x8xf32>
    %493 = arith.mulf %492, %492 : vector<32x8xf32>
    %cst_83 = arith.constant dense<0.000000e+00> : vector<8xf32>
    %494 = vector.multi_reduction <add>, %493, %cst_83 [0] : vector<32x8xf32> to vector<8xf32>
    %495 = vector.shape_cast %494 : vector<8xf32> to vector<1x8xf32>
    %cst_84 = arith.constant 3.200000e+01 : f32
    %496 = vector.broadcast %cst_84 : f32 to vector<1x8xf32>
    %497 = arith.divf %495, %496 : vector<1x8xf32>
    %cst_85 = arith.constant 9.99999996E-13 : f32
    %498 = vector.broadcast %cst_85 : f32 to vector<1x8xf32>
    %499 = arith.addf %497, %498 : vector<1x8xf32>
    %500 = math.rsqrt %499 : vector<1x8xf32>
    %501 = vector.broadcast %500 : vector<1x8xf32> to vector<32x8xf32>
    %502 = arith.mulf %492, %501 : vector<32x8xf32>
    %503 = vector.broadcast %484 : vector<32x1xf32> to vector<32x8xf32>
    %504 = arith.mulf %502, %503 : vector<32x8xf32>
    %505 = vector.broadcast %486 : vector<32x1xf32> to vector<32x8xf32>
    %506 = arith.addf %504, %505 : vector<32x8xf32>
    %c1_86 = arith.constant 1 : index
    %c0_87 = arith.constant 0 : index
    %c0_88 = arith.constant 0 : index
    %507 = vector.load %arg3[%c1_86, %c0_87, %c0_88] : memref<2x128x32xbf16, #tpu.memory_space<vmem>>, vector<1x128x32xbf16>
    %508 = vector.shape_cast %507 : vector<1x128x32xbf16> to vector<128x32xbf16>
    %509 = arith.truncf %506 : vector<32x8xf32> to vector<32x8xbf16>
    %cst_89 = arith.constant dense<0.000000e+00> : vector<128x8xf32>
    %510 = tpu.matmul %508, %509, %cst_89 {dimension_numbers = #tpu.dot_dimension_numbers<[1], [0], [0], [1], [0, 0, 1, 1], [], []>} : vector<128x32xbf16>, vector<32x8xbf16>, vector<128x8xf32> -> vector<128x8xf32>
    %c1_90 = arith.constant 1 : index
    %c0_91 = arith.constant 0 : index
    %c0_92 = arith.constant 0 : index
    %511 = vector.load %arg4[%c1_90, %c0_91, %c0_92] : memref<2x128x1xf32, #tpu.memory_space<vmem>>, vector<1x128x1xf32>
    %512 = vector.shape_cast %511 : vector<1x128x1xf32> to vector<128x1xf32>
    %513 = vector.broadcast %512 : vector<128x1xf32> to vector<128x8xf32>
    %514 = arith.addf %510, %513 : vector<128x8xf32>
    %cst_93 = arith.constant 5.000000e-01 : f32
    %515 = vector.broadcast %cst_93 : f32 to vector<128x8xf32>
    %516 = arith.mulf %514, %515 : vector<128x8xf32>
    %cst_94 = arith.constant 0.707106769 : f32
    %517 = vector.broadcast %cst_94 : f32 to vector<128x8xf32>
    %518 = arith.mulf %514, %517 : vector<128x8xf32>
    %519 = math.erf %518 : vector<128x8xf32>
    %cst_95 = arith.constant 1.000000e+00 : f32
    %520 = vector.broadcast %cst_95 : f32 to vector<128x8xf32>
    %521 = arith.addf %520, %519 : vector<128x8xf32>
    %522 = arith.mulf %516, %521 : vector<128x8xf32>
    %c1_96 = arith.constant 1 : index
    %c0_97 = arith.constant 0 : index
    %c0_98 = arith.constant 0 : index
    %523 = vector.load %arg5[%c1_96, %c0_97, %c0_98] : memref<2x32x128xbf16, #tpu.memory_space<vmem>>, vector<1x32x128xbf16>
    %524 = vector.shape_cast %523 : vector<1x32x128xbf16> to vector<32x128xbf16>
    %525 = arith.truncf %522 : vector<128x8xf32> to vector<128x8xbf16>
    %cst_99 = arith.constant dense<0.000000e+00> : vector<32x8xf32>
    %526 = tpu.matmul %524, %525, %cst_99 {dimension_numbers = #tpu.dot_dimension_numbers<[1], [0], [0], [1], [0, 0, 1, 1], [], []>} : vector<32x128xbf16>, vector<128x8xbf16>, vector<32x8xf32> -> vector<32x8xf32>
    %c1_100 = arith.constant 1 : index
    %c0_101 = arith.constant 0 : index
    %c0_102 = arith.constant 0 : index
    %527 = vector.load %arg6[%c1_100, %c0_101, %c0_102] : memref<2x32x1xf32, #tpu.memory_space<vmem>>, vector<1x32x1xf32>
    %528 = vector.shape_cast %527 : vector<1x32x1xf32> to vector<32x1xf32>
    %529 = vector.broadcast %528 : vector<32x1xf32> to vector<32x8xf32>
    %530 = arith.addf %526, %529 : vector<32x8xf32>
    %531 = arith.addf %530, %506 : vector<32x8xf32>
    %c1_103 = arith.constant 1 : index
    %c0_104 = arith.constant 0 : index
    %c0_105 = arith.constant 0 : index
    %532 = vector.load %arg9[%c1_103, %c0_104, %c0_105] : memref<2x32x1xf32, #tpu.memory_space<vmem>>, vector<1x32x1xf32>
    %533 = vector.shape_cast %532 : vector<1x32x1xf32> to vector<32x1xf32>
    %c1_106 = arith.constant 1 : index
    %c0_107 = arith.constant 0 : index
    %c0_108 = arith.constant 0 : index
    %534 = vector.load %arg10[%c1_106, %c0_107, %c0_108] : memref<2x32x1xf32, #tpu.memory_space<vmem>>, vector<1x32x1xf32>
    %535 = vector.shape_cast %534 : vector<1x32x1xf32> to vector<32x1xf32>
    %cst_109 = arith.constant dense<0.000000e+00> : vector<8xf32>
    %536 = vector.multi_reduction <add>, %531, %cst_109 [0] : vector<32x8xf32> to vector<8xf32>
    %537 = vector.shape_cast %536 : vector<8xf32> to vector<1x8xf32>
    %cst_110 = arith.constant 3.200000e+01 : f32
    %538 = vector.broadcast %cst_110 : f32 to vector<1x8xf32>
    %539 = arith.divf %537, %538 : vector<1x8xf32>
    %540 = vector.broadcast %539 : vector<1x8xf32> to vector<32x8xf32>
    %541 = arith.subf %531, %540 : vector<32x8xf32>
    %542 = arith.mulf %541, %541 : vector<32x8xf32>
    %cst_111 = arith.constant dense<0.000000e+00> : vector<8xf32>
    %543 = vector.multi_reduction <add>, %542, %cst_111 [0] : vector<32x8xf32> to vector<8xf32>
    %544 = vector.shape_cast %543 : vector<8xf32> to vector<1x8xf32>
    %cst_112 = arith.constant 3.200000e+01 : f32
    %545 = vector.broadcast %cst_112 : f32 to vector<1x8xf32>
    %546 = arith.divf %544, %545 : vector<1x8xf32>
    %cst_113 = arith.constant 9.99999996E-13 : f32
    %547 = vector.broadcast %cst_113 : f32 to vector<1x8xf32>
    %548 = arith.addf %546, %547 : vector<1x8xf32>
    %549 = math.rsqrt %548 : vector<1x8xf32>
    %550 = vector.broadcast %549 : vector<1x8xf32> to vector<32x8xf32>
    %551 = arith.mulf %541, %550 : vector<32x8xf32>
    %552 = vector.broadcast %533 : vector<32x1xf32> to vector<32x8xf32>
    %553 = arith.mulf %551, %552 : vector<32x8xf32>
    %554 = vector.broadcast %535 : vector<32x1xf32> to vector<32x8xf32>
    %555 = arith.addf %553, %554 : vector<32x8xf32>
    %c0_114 = arith.constant 0 : index
    %c0_115 = arith.constant 0 : index
    %c0_116 = arith.constant 0 : index
    %556 = vector.load %arg11[%c0_114, %c0_115, %c0_116] : memref<1x32x8xf32, #tpu.memory_space<vmem>>, vector<1x32x8xf32>
    %557 = vector.shape_cast %556 : vector<1x32x8xf32> to vector<32x8xf32>
    %558 = vector.shape_cast %555 : vector<32x8xf32> to vector<1x32x8xf32>
    tpu.vector_store %arg11[%c0_114, %c0_115, %c0_116], %558 {strides = array<i32>} : memref<1x32x8xf32, #tpu.memory_space<vmem>>, vector<1x32x8xf32>,
    return
  }
  func.func @transform_0(%arg0: i32) -> (i32, i32, i32) {
    %c0_i32 = arith.constant 0 : i32
    %c0_i32_0 = arith.constant 0 : i32
    %c0_i32_1 = arith.constant 0 : i32
    return %arg0, %c0_i32, %c0_i32_0 : i32, i32, i32
  }
  func.func @transform_1(%arg0: i32) -> (i32, i32, i32) {
    %c0_i32 = arith.constant 0 : i32
    %c0_i32_0 = arith.constant 0 : i32
    %c0_i32_1 = arith.constant 0 : i32
    %c0_i32_2 = arith.constant 0 : i32
    return %c0_i32, %c0_i32_0, %c0_i32_1 : i32, i32, i32
  }
  func.func @transform_2(%arg0: i32) -> (i32, i32, i32) {
    %c0_i32 = arith.constant 0 : i32
    %c0_i32_0 = arith.constant 0 : i32
    %c0_i32_1 = arith.constant 0 : i32
    %c0_i32_2 = arith.constant 0 : i32
    return %c0_i32, %c0_i32_0, %c0_i32_1 : i32, i32, i32
  }
  func.func @transform_3(%arg0: i32) -> (i32, i32, i32) {
    %c0_i32 = arith.constant 0 : i32
    %c0_i32_0 = arith.constant 0 : i32
    %c0_i32_1 = arith.constant 0 : i32
    %c0_i32_2 = arith.constant 0 : i32
    return %c0_i32, %c0_i32_0, %c0_i32_1 : i32, i32, i32
  }
  func.func @transform_4(%arg0: i32) -> (i32, i32, i32) {
    %c0_i32 = arith.constant 0 : i32
    %c0_i32_0 = arith.constant 0 : i32
    %c0_i32_1 = arith.constant 0 : i32
    %c0_i32_2 = arith.constant 0 : i32
    return %c0_i32, %c0_i32_0, %c0_i32_1 : i32, i32, i32
  }
  func.func @transform_5(%arg0: i32) -> (i32, i32, i32) {
    %c0_i32 = arith.constant 0 : i32
    %c0_i32_0 = arith.constant 0 : i32
    %c0_i32_1 = arith.constant 0 : i32
    %c0_i32_2 = arith.constant 0 : i32
    return %c0_i32, %c0_i32_0, %c0_i32_1 : i32, i32, i32
  }
  func.func @transform_6(%arg0: i32) -> (i32, i32, i32) {
    %c0_i32 = arith.constant 0 : i32
    %c0_i32_0 = arith.constant 0 : i32
    %c0_i32_1 = arith.constant 0 : i32
    %c0_i32_2 = arith.constant 0 : i32
    return %c0_i32, %c0_i32_0, %c0_i32_1 : i32, i32, i32
  }
  func.func @transform_7(%arg0: i32) -> (i32, i32, i32) {
    %c0_i32 = arith.constant 0 : i32
    %c0_i32_0 = arith.constant 0 : i32
    %c0_i32_1 = arith.constant 0 : i32
    %c0_i32_2 = arith.constant 0 : i32
    return %c0_i32, %c0_i32_0, %c0_i32_1 : i32, i32, i32
  }
  func.func @transform_8(%arg0: i32) -> (i32, i32, i32) {
    %c0_i32 = arith.constant 0 : i32
    %c0_i32_0 = arith.constant 0 : i32
    %c0_i32_1 = arith.constant 0 : i32
    %c0_i32_2 = arith.constant 0 : i32
    return %c0_i32, %c0_i32_0, %c0_i32_1 : i32, i32, i32
  }
  func.func @transform_9(%arg0: i32) -> (i32, i32, i32) {
    %c0_i32 = arith.constant 0 : i32
    %c0_i32_0 = arith.constant 0 : i32
    %c0_i32_1 = arith.constant 0 : i32
    %c0_i32_2 = arith.constant 0 : i32
    return %c0_i32, %c0_i32_0, %c0_i32_1 : i32, i32, i32
  }
  func.func @transform_10(%arg0: i32) -> (i32, i32, i32) {
    %c0_i32 = arith.constant 0 : i32
    %c0_i32_0 = arith.constant 0 : i32
    %c0_i32_1 = arith.constant 0 : i32
    return %arg0, %c0_i32, %c0_i32_0 : i32, i32, i32
  }
}

</mosaic_0001>

<bundles_post_ra>
// kernel: encoder_forward.1
= control target key start
LH: loop header
LB: loop body
LE: loop exit
PB: predicated region body
PF: predicated region fallthrough
CT: control target
= control target key end

     0   :  { %s5717_s13 = smov 0   ;;  %s9207_s0 = inlined_call_operand.vmem [shape: f32[2,32,8], index: 0, kind: input, shape index: {}]   ;;  %s9208_s1 = inlined_call_operand.vmem [shape: f32[2,32,64], index: 1, kind: input, shape index: {}]   ;;  %s9209_s2 = inlined_call_operand.vmem [shape: bf16[2,128,32], index: 2, kind: input, shape index: {}]   ;;  %s9210_s3 = inlined_call_operand.vmem [shape: f32[2,128,1], index: 3, kind: input, shape index: {}]   ;;  %s9211_s4 = inlined_call_operand.vmem [shape: bf16[2,32,128], index: 4, kind: input, shape index: {}]   ;;  %s9212_s5 = inlined_call_operand.vmem [shape: f32[2,32,1], index: 5, kind: input, shape index: {}]   ;;  %s9213_s6 = inlined_call_operand.vmem [shape: f32[2,32,1], index: 6, kind: input, shape index: {}]   ;;  %s9214_s7 = inlined_call_operand.vmem [shape: f32[2,32,1], index: 7, kind: input, shape index: {}]   ;;  %s9215_s8 = inlined_call_operand.vmem [shape: f32[2,32,1], index: 8, kind: input, shape index: {}]   ;;  %s9216_s9 = inlined_call_operand.vmem [shape: f32[2,32,1], index: 9, kind: input, shape index: {}]   ;;  %s9217_s10 = inlined_call_operand.vmem [shape: f32[2,32,8], index: 10, kind: output, shape index: {}]  }
   0x1 LB: > { %s5290_s14 = sadd.s32 4294967295, %s5637_s13   ;;  %p5294_p0 = scmp.ge.s32.totalorder %s5637_s13, 1  ;;  %s5637_s13 = sphi %s5717_s13, %s20_s13  }
   0x2   : > { %p312_p1 = scmp.lt.s32.totalorder %s5637_s13, 3 }
   0x4   : > { %p313_p2 = pnand %p5294_p0, %p312_p1 }
   0x6   : > { %316 = sbr.rel (%p313_p2) target bundleno = 4652 (0x122c), region = 60 }
   0xb   : > { %p350_p3 = scmp.lt.s32.totalorder %s5290_s14, 1  ;;  %v5731_v0 = vld [vmem:[%s9208_s1 + $0x10] sm:$0xff]  ;;  %v5736_v1 = vld [vmem:[%s9208_s1] sm:$0xff]  ;;  %s5639_s23 = smov 127   ;;  %v5766_v6 = vld [vmem:[%s9208_s1 + $0x18] sm:$0xff]  ;;  %vm489_vm0 = vcmask 7168  }
   0xc   : > { %s5640_s24 = smov 126   ;;  %v5779_v9 = vld [vmem:[%s9208_s1 + $0x8] sm:$0xff]  ;;  %s5641_s29 = smov 125   ;;  %vm646_vm1 = vcmask 15368   ;;  %vm799_vm2 = vcmask 23568   ;;  %vm952_vm3 = vcmask 31768  }
   0xd   : > { %s9476_s14 = smov (!%p350_p3, %s5290_s14), 1  ;;  %s5642_s30 = smov 124   ;;  %vm1105_vm4 = vcmask 39968   ;;  %vm1258_vm5 = vcmask 48168   ;;  %vm9264_vm6 = vcmask 56368   ;;  %vm9263_vm7 = vcmask 64568  }
   0xe   : > { %s9218_s15 = sshll.u32 %s9476_s14, 5  ;;  %s5643_s11 = smov 123   ;;  %vm1585_vm8 = vcmask 64512   ;;  %vm9257_vm13 = vcmask 261120  }
   0xf   : > { %s5743_s22 = scalar_lea.vmem %s9207_s0, %s9218_s15  ;;  %s5644_s12 = smov 122  }
  0x10   : > { %v5746_v2 = vld [vmem:[%s5743_s22 + $0x10] sm:$0xff]  ;;  %v5749_v3 = vld [vmem:[%s5743_s22] sm:$0xff]  ;;  %v5771_v7 = vld [vmem:[%s5743_s22 + $0x18] sm:$0xff]  ;;  %s5645_s16 = smov 121   ;;  %s5646_s17 = smov 120  }
  0x11   : > { %v5753_v4 = vmul.f32 %v5731_v0, %v5746_v2  ;;  %v5757_v5 = vmul.f32 %v5736_v1, %v5749_v3  ;;  %v5774_v8 = vld [vmem:[%s5743_s22 + $0x8] sm:$0xff]  ;;  %v5783_v10 = vmul.f32 %v5766_v6, %v5771_v7  ;;  %s9241_s18 = smov 112   ;;  %s9227_s19 = smov 1  }
  0x12   : > { %v370_v11 = vmul.f32 %v5779_v9, %v5774_v8  ;;  %s9225_s20 = smov 2   ;;  %s9223_s21 = smov 104  }
  0x13   : > { %381 = vrot.lane.b32.xlu1 %v5753_v4, %s5639_s23  ;;  %393 = vrot.lane.b32.xlu2 %v5757_v5, %s5640_s24  ;;  %s9219_s25 = smov 3   ;;  %s9221_s26 = smov 96  }
  0x14   : > { %377 = vrot.lane.b32.xlu0 %v5757_v5, %s5639_s23  ;;  %s9233_s27 = smov 4   ;;  %s9342_s15 = smov 88  }
  0x15   : > { %s9343_s28 = smov 80  }
  0x1b   : > { %383 = vrot.lane.b32.xlu1 %v5783_v10, %s5639_s23  ;;  %395 = vrot.lane.b32.xlu2 %v370_v11, %s5640_s24 }
  0x1c   : > { %379 = vrot.lane.b32.xlu0 %v370_v11, %s5639_s23 }
  0x23   : > { %399 = vrot.lane.b32.xlu1 %v5783_v10, %s5640_s24  ;;  %409 = vrot.lane.b32.xlu2 %v5757_v5, %s5641_s29 }
  0x24   : > { %397 = vrot.lane.b32.xlu0 %v5753_v4, %s5640_s24 }
  0x2b   : > { %413 = vrot.lane.b32.xlu1 %v5753_v4, %s5641_s29  ;;  %415 = vrot.lane.b32.xlu2 %v5783_v10, %s5641_s29 }
  0x2c   : > { %411 = vrot.lane.b32.xlu0 %v370_v11, %s5641_s29 }
  0x33   : > { %427 = vrot.lane.b32.xlu1 %v370_v11, %s5642_s30  ;;  %429 = vrot.lane.b32.xlu2 %v5753_v4, %s5642_s30 }
  0x34   : > { %425 = vrot.lane.b32.xlu0 %v5757_v5, %s5642_s30 }
  0x3b   : > { %441 = vrot.lane.b32.xlu1 %v5757_v5, %s5643_s11  ;;  %443 = vrot.lane.b32.xlu2 %v370_v11, %s5643_s11 }
  0x3c   : > { %431 = vrot.lane.b32.xlu0 %v5783_v10, %s5642_s30 }
  0x43   : > { %447 = vrot.lane.b32.xlu1 %v5783_v10, %s5643_s11  ;;  %457 = vrot.lane.b32.xlu2 %v5757_v5, %s5644_s12 }
  0x44   : > { %445 = vrot.lane.b32.xlu0 %v5753_v4, %s5643_s11 }
  0x4b   : > { %461 = vrot.lane.b32.xlu1 %v5753_v4, %s5644_s12  ;;  %463 = vrot.lane.b32.xlu2 %v5783_v10, %s5644_s12 }
  0x4c   : > { %459 = vrot.lane.b32.xlu0 %v370_v11, %s5644_s12 }
  0x53   : > { %475 = vrot.lane.b32.xlu1 %v370_v11, %s5645_s16  ;;  %477 = vrot.lane.b32.xlu2 %v5753_v4, %s5645_s16 }
  0x54   : > { %473 = vrot.lane.b32.xlu0 %v5757_v5, %s5645_s16 }
  0x5b   : > { %498 = vrot.lane.b32.xlu1 %v5736_v1, %s5646_s17  ;;  %500 = vrot.lane.b32.xlu2 %v5779_v9, %s5646_s17 }
  0x5c   : > { %479 = vrot.lane.b32.xlu0 %v5783_v10, %s5645_s16 }
  0x63   : > { %504 = vrot.lane.b32.xlu1 %v5766_v6, %s5646_s17 }
  0x64   : > { %502 = vrot.lane.b32.xlu0 %v5731_v0, %s5646_s17 }
  0x6d   : > { %v394_v12 = vpop.permute.xlu2 %393 }
  0x75   : > { %v396_v13 = vpop.permute.xlu2 %395 }
  0x7d   : > { %v410_v14 = vpop.permute.xlu2 %409 }
  0x85   : > { %v382_v15 = vpop.permute.xlu1 %381  ;;  %v416_v16 = vpop.permute.xlu2 %415 }
  0x86   : > { %v378_v17 = vpop.permute.xlu0 %377  ;;  %v391_v33 = vadd.f32 %v382_v15, %v5753_v4 }
  0x87   : > { %v389_v35 = vadd.f32 %v378_v17, %v5757_v5 }
  0x89   : > { %v405_v42 = vadd.f32 %v394_v12, %v389_v35 }
  0x8b   : > { %v421_v48 = vadd.f32 %v410_v14, %v405_v42 }
  0x8d   : > { %v384_v18 = vpop.permute.xlu1 %383  ;;  %v430_v19 = vpop.permute.xlu2 %429 }
  0x8e   : > { %v380_v20 = vpop.permute.xlu0 %379  ;;  %v392_v47 = vadd.f32 %v384_v18, %v5783_v10 }
  0x8f   : > { %v390_v38 = vadd.f32 %v380_v20, %v370_v11 }
  0x91   : > { %v406_v43 = vadd.f32 %v396_v13, %v390_v38 }
  0x95   : > { %v400_v21 = vpop.permute.xlu1 %399  ;;  %v444_v22 = vpop.permute.xlu2 %443 }
  0x96   : > { %v398_v23 = vpop.permute.xlu0 %397  ;;  %v408_v55 = vadd.f32 %v400_v21, %v392_v47 }
  0x97   : > { %v407_v34 = vadd.f32 %v398_v23, %v391_v33 }
  0x98   : > { %v424_v59 = vadd.f32 %v416_v16, %v408_v55 }
  0x9d   : > { %v414_v24 = vpop.permute.xlu1 %413  ;;  %v458_v25 = vpop.permute.xlu2 %457 }
  0x9e   : > { %v412_v26 = vpop.permute.xlu0 %411  ;;  %v423_v39 = vadd.f32 %v414_v24, %v407_v34 }
  0x9f   : > { %v422_v45 = vadd.f32 %v412_v26, %v406_v43 }
  0xa0   : > { %v439_v44 = vadd.f32 %v430_v19, %v423_v39 }
  0xa5   : > { %v428_v27 = vpop.permute.xlu1 %427  ;;  %v464_v28 = vpop.permute.xlu2 %463 }
  0xa6   : > { %v426_v29 = vpop.permute.xlu0 %425  ;;  %v438_v50 = vadd.f32 %v428_v27, %v422_v45 }
  0xa7   : > { %v437_v53 = vadd.f32 %v426_v29, %v421_v48 }
  0xa8   : > { %v454_v57 = vadd.f32 %v444_v22, %v438_v50 }
  0xad   : > { %v442_v30 = vpop.permute.xlu1 %441  ;;  %v478_v31 = vpop.permute.xlu2 %477 }
  0xae   : > { %v432_v32 = vpop.permute.xlu0 %431  ;;  %v453_v56 = vadd.f32 %v442_v30, %v437_v53 }
  0xaf   : > { %v440_v4 = vadd.f32 %v432_v32, %v424_v59 }
  0xb0   : > { %v469_v61 = vadd.f32 %v458_v25, %v453_v56 }
  0xb5   : > { %v448_v36 = vpop.permute.xlu1 %447  ;;  %v501_v37 = vpop.permute.xlu2 %500 }
  0xb6   : > { %v5841_v40 = vmul.f32 %v501_v37, %v5774_v8  ;;  %v446_v41 = vpop.permute.xlu0 %445  ;;  %v456_v10 = vadd.f32 %v448_v36, %v440_v4 }
  0xb7   : > { %v455_v46 = vadd.f32 %v446_v41, %v439_v44 }
  0xb8   : > { %520 = vrot.lane.b32.xlu0 %v5841_v40, %s5639_s23  ;;  %v472_v12 = vadd.f32 %v464_v28, %v456_v10 }
  0xbd   : > { %v462_v49 = vpop.permute.xlu1 %461 }
  0xbe   : > { %v471_v51 = vadd.f32 %v462_v49, %v455_v46  ;;  %v460_v52 = vpop.permute.xlu0 %459 }
  0xbf   : > { %v470_v58 = vadd.f32 %v460_v52, %v454_v57 }
  0xc0   : > { %v487_v54 = vadd.f32 %v478_v31, %v471_v51 }
  0xc2   : > { %492 = vst.msk [vmem:[#allocation2 + $0x10] sm:$0xff] %vm489_vm0, %v487_v54 }
  0xc5   : > { %v476_v60 = vpop.permute.xlu1 %475 }
  0xc6   : > { %v486_v62 = vadd.f32 %v476_v60, %v470_v58  ;;  %v474_v63 = vpop.permute.xlu0 %473 }
  0xc7   : > { %v485_v5 = vadd.f32 %v474_v63, %v469_v61 }
  0xc8   : > { %491 = vst.msk [vmem:[#allocation2 + $0x8] sm:$0xff] %vm489_vm0, %v486_v62 }
  0xc9   : > { %490 = vst.msk [vmem:[#allocation2] sm:$0xff] %vm489_vm0, %v485_v5 }
  0xcd   : > { %v499_v11 = vpop.permute.xlu1 %498 }
  0xce   : > { %v5850_v13 = vmul.f32 %v499_v11, %v5749_v3  ;;  %v480_v14 = vpop.permute.xlu0 %479 }
  0xcf   : > { %v488_v15 = vadd.f32 %v480_v14, %v472_v12 }
  0xd0   : > { %518 = vrot.lane.b32.xlu2 %v5850_v13, %s5639_s23  ;;  %534 = vrot.lane.b32.xlu0 %v5850_v13, %s5640_s24 }
  0xd1   : > { %493 = vst.msk [vmem:[#allocation2 + $0x18] sm:$0xff] %vm489_vm0, %v488_v15 }
  0xd5   : > { %v505_v16 = vpop.permute.xlu1 %504 }
  0xd6   : > { %v5858_v17 = vmul.f32 %v505_v16, %v5771_v7  ;;  %v503_v18 = vpop.permute.xlu0 %502 }
  0xd7   : > { %v5861_v19 = vmul.f32 %v503_v18, %v5746_v2 }
  0xd8   : > { %524 = vrot.lane.b32.xlu2 %v5858_v17, %s5639_s23  ;;  %540 = vrot.lane.b32.xlu0 %v5858_v17, %s5640_s24 }
  0xd9   : > { %522 = vrot.lane.b32.xlu1 %v5861_v19, %s5639_s23 }
  0xe0   : > { %554 = vrot.lane.b32.xlu0 %v5861_v19, %s5641_s29  ;;  %538 = vrot.lane.b32.xlu2 %v5861_v19, %s5640_s24 }
  0xe1   : > { %536 = vrot.lane.b32.xlu1 %v5841_v40, %s5640_s24 }
  0xe8   : > { %568 = vrot.lane.b32.xlu0 %v5841_v40, %s5642_s30  ;;  %552 = vrot.lane.b32.xlu2 %v5841_v40, %s5641_s29 }
  0xe9   : > { %550 = vrot.lane.b32.xlu1 %v5850_v13, %s5641_s29 }
  0xf0   : > { %582 = vrot.lane.b32.xlu0 %v5850_v13, %s5643_s11  ;;  %566 = vrot.lane.b32.xlu2 %v5850_v13, %s5642_s30 }
  0xf1   : > { %556 = vrot.lane.b32.xlu1 %v5858_v17, %s5641_s29 }
  0xf8   : > { %588 = vrot.lane.b32.xlu0 %v5858_v17, %s5643_s11  ;;  %572 = vrot.lane.b32.xlu2 %v5858_v17, %s5642_s30 }
  0xf9   : > { %570 = vrot.lane.b32.xlu1 %v5861_v19, %s5642_s30 }
 0x100   : > { %602 = vrot.lane.b32.xlu0 %v5861_v19, %s5644_s12  ;;  %586 = vrot.lane.b32.xlu2 %v5861_v19, %s5643_s11 }
 0x101   : > { %584 = vrot.lane.b32.xlu1 %v5841_v40, %s5643_s11 }
 0x108   : > { %616 = vrot.lane.b32.xlu0 %v5841_v40, %s5645_s16  ;;  %600 = vrot.lane.b32.xlu2 %v5841_v40, %s5644_s12 }
 0x109   : > { %598 = vrot.lane.b32.xlu1 %v5850_v13, %s5644_s12 }
 0x110   : > { %655 = vrot.lane.b32.xlu0 %v5731_v0, %s9241_s18  ;;  %614 = vrot.lane.b32.xlu2 %v5850_v13, %s5645_s16 }
 0x111   : > { %604 = vrot.lane.b32.xlu1 %v5858_v17, %s5644_s12 }
 0x118   : > { %620 = vrot.lane.b32.xlu2 %v5858_v17, %s5645_s16 }
 0x119   : > { %618 = vrot.lane.b32.xlu1 %v5861_v19, %s5645_s16 }
 0x120   : > { %653 = vrot.lane.b32.xlu2 %v5779_v9, %s9241_s18 }
 0x121   : > { %651 = vrot.lane.b32.xlu1 %v5736_v1, %s9241_s18 }
 0x129   : > { %657 = vrot.lane.b32.xlu1 %v5766_v6, %s9241_s18  ;;  %s9344_s18 = smov 72  }
 0x12a   : > { %v519_v20 = vpop.permute.xlu2 %518  ;;  %v521_v22 = vpop.permute.xlu0 %520 }
 0x12b   : > { %v531_v57 = vadd.f32 %v521_v22, %v5841_v40  ;;  %v530_v60 = vadd.f32 %v519_v20, %v5850_v13 }
 0x132   : > { %v5921_v21 = vpop.permute.xlu2 %524 }
 0x133   : > { %v533_v5 = vadd.f32 %v5921_v21, %v5858_v17 }
 0x13a   : > { %v5923_v23 = vpop.permute.xlu2 %538 }
 0x142   : > { %v553_v24 = vpop.permute.xlu2 %552  ;;  %v535_v25 = vpop.permute.xlu0 %534 }
 0x143   : > { %v546_v62 = vadd.f32 %v535_v25, %v530_v60 }
 0x14a   : > { %v567_v26 = vpop.permute.xlu2 %566  ;;  %v541_v27 = vpop.permute.xlu0 %540 }
 0x14b   : > { %v5925_v28 = vpop.permute.xlu1 %522  ;;  %v549_v12 = vadd.f32 %v541_v27, %v533_v5 }
 0x14c   : > { %v532_v16 = vadd.f32 %v5925_v28, %v5861_v19 }
 0x14e   : > { %v548_v21 = vadd.f32 %v5923_v23, %v532_v16 }
 0x152   : > { %v5927_v29 = vpop.permute.xlu2 %572  ;;  %v5929_v30 = vpop.permute.xlu0 %554 }
 0x153   : > { %v537_v31 = vpop.permute.xlu1 %536 }
 0x154   : > { %v547_v58 = vadd.f32 %v537_v31, %v531_v57 }
 0x156   : > { %v563_v59 = vadd.f32 %v553_v24, %v547_v58  ;;  %v564_v24 = vadd.f32 %v5929_v30, %v548_v21 }
 0x15a   : > { %v5931_v32 = vpop.permute.xlu2 %586  ;;  %v569_v33 = vpop.permute.xlu0 %568 }
 0x15b   : > { %v551_v34 = vpop.permute.xlu1 %550  ;;  %v579_v61 = vadd.f32 %v569_v33, %v563_v59 }
 0x15c   : > { %v562_v63 = vadd.f32 %v551_v34, %v546_v62 }
 0x15e   : > { %v578_v10 = vadd.f32 %v567_v26, %v562_v63 }
 0x162   : > { %v601_v35 = vpop.permute.xlu2 %600  ;;  %v583_v36 = vpop.permute.xlu0 %582 }
 0x163   : > { %v557_v37 = vpop.permute.xlu1 %556  ;;  %v594_v13 = vadd.f32 %v583_v36, %v578_v10 }
 0x164   : > { %v565_v14 = vadd.f32 %v557_v37, %v549_v12 }
 0x166   : > { %v581_v17 = vadd.f32 %v5927_v29, %v565_v14 }
 0x16a   : > { %v615_v38 = vpop.permute.xlu2 %614  ;;  %v589_v39 = vpop.permute.xlu0 %588 }
 0x16b   : > { %v5933_v41 = vpop.permute.xlu1 %570  ;;  %v597_v20 = vadd.f32 %v589_v39, %v581_v17 }
 0x16c   : > { %v580_v25 = vadd.f32 %v5933_v41, %v564_v24 }
 0x16e   : > { %v596_v26 = vadd.f32 %v5931_v32, %v580_v25 }
 0x172   : > { %v5935_v42 = vpop.permute.xlu2 %620  ;;  %v5937_v43 = vpop.permute.xlu0 %602 }
 0x173   : > { %v585_v44 = vpop.permute.xlu1 %584  ;;  %v612_v27 = vadd.f32 %v5937_v43, %v596_v26 }
 0x174   : > { %v595_v40 = vadd.f32 %v585_v44, %v579_v61 }
 0x176   : > { %v611_v4 = vadd.f32 %v601_v35, %v595_v40 }
 0x17a   : > { %v654_v45 = vpop.permute.xlu2 %653  ;;  %v617_v46 = vpop.permute.xlu0 %616 }
 0x17b   : > { %v5940_v47 = vmul.f32 %v654_v45, %v5774_v8  ;;  %v599_v48 = vpop.permute.xlu1 %598  ;;  %v627_v11 = vadd.f32 %v617_v46, %v611_v4 }
 0x17c   : > { %v610_v15 = vadd.f32 %v599_v48, %v594_v13 }
 0x17d   : > { %673 = vrot.lane.b32.xlu0 %v5940_v47, %s5639_s23 }
 0x17e   : > { %v626_v18 = vadd.f32 %v615_v38, %v610_v15 }
 0x182   : > { %v656_v49 = vpop.permute.xlu0 %655 }
 0x183   : > { %v605_v50 = vpop.permute.xlu1 %604  ;;  %v5945_v51 = vmul.f32 %v656_v49, %v5746_v2 }
 0x184   : > { %v613_v22 = vadd.f32 %v605_v50, %v597_v20 }
 0x185   : > { %675 = vrot.lane.b32.xlu1 %v5945_v51, %s5639_s23 }
 0x186   : > { %v629_v19 = vadd.f32 %v5935_v42, %v613_v22 }
 0x18b   : > { %v619_v52 = vpop.permute.xlu1 %618 }
 0x18c   : > { %v628_v28 = vadd.f32 %v619_v52, %v612_v27 }
 0x18d   : > { %689 = vrot.lane.b32.xlu1 %v5940_v47, %s5640_s24 }
 0x193   : > { %v652_v53 = vpop.permute.xlu1 %651 }
 0x194   : > { %v5952_v54 = vmul.f32 %v652_v53, %v5749_v3 }
 0x196   : > { %687 = vrot.lane.b32.xlu0 %v5952_v54, %s5640_s24  ;;  %671 = vrot.lane.b32.xlu2 %v5952_v54, %s5639_s23 }
 0x197   : > { %703 = vrot.lane.b32.xlu1 %v5952_v54, %s5641_s29 }
 0x19b   : > { %v658_v55 = vpop.permute.xlu1 %657 }
 0x19c   : > { %v5961_v56 = vmul.f32 %v658_v55, %v5771_v7 }
 0x19e   : > { %693 = vrot.lane.b32.xlu0 %v5961_v56, %s5640_s24  ;;  %677 = vrot.lane.b32.xlu2 %v5961_v56, %s5639_s23 }
 0x19f   : > { %709 = vrot.lane.b32.xlu1 %v5961_v56, %s5641_s29 }
 0x1a6   : > { %707 = vrot.lane.b32.xlu0 %v5945_v51, %s5641_s29  ;;  %691 = vrot.lane.b32.xlu2 %v5945_v51, %s5640_s24 }
 0x1a7   : > { %723 = vrot.lane.b32.xlu1 %v5945_v51, %s5642_s30 }
 0x1ae   : > { %721 = vrot.lane.b32.xlu0 %v5940_v47, %s5642_s30  ;;  %705 = vrot.lane.b32.xlu2 %v5940_v47, %s5641_s29 }
 0x1af   : > { %737 = vrot.lane.b32.xlu1 %v5940_v47, %s5643_s11 }
 0x1b6   : > { %735 = vrot.lane.b32.xlu0 %v5952_v54, %s5643_s11  ;;  %719 = vrot.lane.b32.xlu2 %v5952_v54, %s5642_s30 }
 0x1b7   : > { %751 = vrot.lane.b32.xlu1 %v5952_v54, %s5644_s12 }
 0x1be   : > { %741 = vrot.lane.b32.xlu0 %v5961_v56, %s5643_s11  ;;  %725 = vrot.lane.b32.xlu2 %v5961_v56, %s5642_s30 }
 0x1bf   : > { %757 = vrot.lane.b32.xlu1 %v5961_v56, %s5644_s12 }
 0x1c6   : > { %755 = vrot.lane.b32.xlu0 %v5945_v51, %s5644_s12  ;;  %739 = vrot.lane.b32.xlu2 %v5945_v51, %s5643_s11 }
 0x1c7   : > { %636 = vrot.lane.b32.xlu1 %v627_v11, %s9227_s19 }
 0x1ce   : > { %634 = vrot.lane.b32.xlu0 %v626_v18, %s9227_s19  ;;  %753 = vrot.lane.b32.xlu2 %v5940_v47, %s5644_s12 }
 0x1cf   : > { %771 = vrot.lane.b32.xlu1 %v5945_v51, %s5645_s16 }
 0x1d6   : > { %640 = vrot.lane.b32.xlu0 %v629_v19, %s9227_s19  ;;  %767 = vrot.lane.b32.xlu2 %v5952_v54, %s5645_s16 }
 0x1de   : > { %769 = vrot.lane.b32.xlu0 %v5940_v47, %s5645_s16  ;;  %638 = vrot.lane.b32.xlu2 %v628_v28, %s9227_s19  ;;  %s9237_s19 = smov 80  }
 0x1e6   : > { %773 = vrot.lane.b32.xlu2 %v5961_v56, %s5645_s16 }
 0x1ef   : > { %v674_v33 = vpop.permute.xlu0 %673 }
 0x1f0   : > { %v672_v23 = vpop.permute.xlu2 %671  ;;  %v684_v19 = vadd.f32 %v674_v33, %v5940_v47 }
 0x1f1   : > { %v683_v46 = vadd.f32 %v672_v23, %v5952_v54 }
 0x1f7   : > { %v676_v29 = vpop.permute.xlu1 %675 }
 0x1f8   : > { %v678_v30 = vpop.permute.xlu2 %677  ;;  %v685_v54 = vadd.f32 %v676_v29, %v5945_v51 }
 0x1f9   : > { %v686_v62 = vadd.f32 %v678_v30, %v5961_v56 }
 0x1ff   : > { %v690_v31 = vpop.permute.xlu1 %689 }
 0x200   : > { %v692_v34 = vpop.permute.xlu2 %691  ;;  %v700_v26 = vadd.f32 %v690_v31, %v684_v19 }
 0x201   : > { %v701_v5 = vadd.f32 %v692_v34, %v685_v54 }
 0x208   : > { %v706_v35 = vpop.permute.xlu2 %705  ;;  %v688_v36 = vpop.permute.xlu0 %687 }
 0x209   : > { %v704_v32 = vpop.permute.xlu1 %703  ;;  %v699_v49 = vadd.f32 %v688_v36, %v683_v46  ;;  %v716_v27 = vadd.f32 %v706_v35, %v700_v26 }
 0x20b   : > { %v715_v50 = vadd.f32 %v704_v32, %v699_v49 }
 0x210   : > { %v720_v37 = vpop.permute.xlu2 %719  ;;  %v694_v38 = vpop.permute.xlu0 %693 }
 0x211   : > { %v710_v39 = vpop.permute.xlu1 %709  ;;  %v731_v55 = vadd.f32 %v720_v37, %v715_v50  ;;  %v702_v4 = vadd.f32 %v694_v38, %v686_v62 }
 0x213   : > { %v718_v10 = vadd.f32 %v710_v39, %v702_v4 }
 0x218   : > { %v726_v41 = vpop.permute.xlu2 %725  ;;  %v708_v42 = vpop.permute.xlu0 %707 }
 0x219   : > { %v724_v43 = vpop.permute.xlu1 %723  ;;  %v717_v11 = vadd.f32 %v708_v42, %v701_v5  ;;  %v734_v14 = vadd.f32 %v726_v41, %v718_v10 }
 0x21b   : > { %v733_v16 = vadd.f32 %v724_v43, %v717_v11 }
 0x220   : > { %v740_v44 = vpop.permute.xlu2 %739  ;;  %v722_v45 = vpop.permute.xlu0 %721 }
 0x221   : > { %v738_v48 = vpop.permute.xlu1 %737  ;;  %v749_v17 = vadd.f32 %v740_v44, %v733_v16  ;;  %v732_v23 = vadd.f32 %v722_v45, %v716_v27 }
 0x223   : > { %v748_v29 = vadd.f32 %v738_v48, %v732_v23 }
 0x228   : > { %v754_v52 = vpop.permute.xlu2 %753  ;;  %v736_v53 = vpop.permute.xlu0 %735 }
 0x229   : > { %v752_v57 = vpop.permute.xlu1 %751  ;;  %v747_v58 = vadd.f32 %v736_v53, %v731_v55  ;;  %v764_v30 = vadd.f32 %v754_v52, %v748_v29 }
 0x22b   : > { %v763_v59 = vadd.f32 %v752_v57, %v747_v58 }
 0x230   : > { %v768_v60 = vpop.permute.xlu2 %767  ;;  %v742_v61 = vpop.permute.xlu0 %741 }
 0x231   : > { %v779_v40 = vadd.f32 %v768_v60, %v763_v59  ;;  %v758_v63 = vpop.permute.xlu1 %757  ;;  %v750_v56 = vadd.f32 %v742_v61, %v734_v14 }
 0x233   : > { %787 = vrot.lane.b32.xlu0 %v779_v40, %s9225_s20  ;;  %v766_v18 = vadd.f32 %v758_v63, %v750_v56 }
 0x238   : > { %v639_v12 = vpop.permute.xlu2 %638  ;;  %v756_v13 = vpop.permute.xlu0 %755 }
 0x239   : > { %649 = vst.msk [vmem:[#allocation2 + $0x10] sm:$0xff] %vm646_vm1, %v639_v12  ;;  %v637_v15 = vpop.permute.xlu1 %636  ;;  %v765_v20 = vadd.f32 %v756_v13, %v749_v17 }
 0x23a   : > { %648 = vst.msk [vmem:[#allocation2 + $0x8] sm:$0xff] %vm646_vm1, %v637_v15 }
 0x240   : > { %v774_v21 = vpop.permute.xlu2 %773  ;;  %v635_v22 = vpop.permute.xlu0 %634 }
 0x241   : > { %v782_v51 = vadd.f32 %v774_v21, %v766_v18  ;;  %v772_v24 = vpop.permute.xlu1 %771  ;;  %647 = vst.msk [vmem:[#allocation2] sm:$0xff] %vm646_vm1, %v635_v22 }
 0x242   : > { %v781_v25 = vadd.f32 %v772_v24, %v765_v20 }
 0x243   : > { %793 = vrot.lane.b32.xlu0 %v782_v51, %s9225_s20 }
 0x244   : > { %791 = vrot.lane.b32.xlu2 %v781_v25, %s9225_s20 }
 0x248   : > { %v641_v28 = vpop.permute.xlu0 %640 }
 0x249   : > { %650 = vst.msk [vmem:[#allocation2 + $0x18] sm:$0xff] %vm646_vm1, %v641_v28 }
 0x24b   : > { %808 = vrot.lane.b32.xlu0 %v5731_v0, %s9223_s21 }
 0x24c   : > { %806 = vrot.lane.b32.xlu2 %v5779_v9, %s9223_s21 }
 0x250   : > { %v770_v47 = vpop.permute.xlu0 %769 }
 0x251   : > { %v780_v33 = vadd.f32 %v770_v47, %v764_v30 }
 0x253   : > { %789 = vrot.lane.b32.xlu1 %v780_v33, %s9225_s20  ;;  %s9235_s20 = smov 72  }
 0x25b   : > { %804 = vrot.lane.b32.xlu1 %v5736_v1, %s9223_s21 }
 0x263   : > { %810 = vrot.lane.b32.xlu1 %v5766_v6, %s9223_s21  ;;  %s9245_s21 = smov 6  }
 0x29e   : > { %v792_v31 = vpop.permute.xlu2 %791 }
 0x29f   : > { %802 = vst.msk [vmem:[#allocation2 + $0x10] sm:$0xff] %vm799_vm2, %v792_v31 }
 0x2a5   : > { %v788_v34 = vpop.permute.xlu0 %787 }
 0x2a6   : > { %v807_v35 = vpop.permute.xlu2 %806  ;;  %800 = vst.msk [vmem:[#allocation2] sm:$0xff] %vm799_vm2, %v788_v34 }
 0x2a7   : > { %v6047_v36 = vmul.f32 %v807_v35, %v5774_v8 }
 0x2a9   : > { %826 = vrot.lane.b32.xlu0 %v6047_v36, %s5639_s23 }
 0x2b5   : > { %v794_v32 = vpop.permute.xlu0 %793 }
 0x2b6   : > { %803 = vst.msk [vmem:[#allocation2 + $0x18] sm:$0xff] %vm799_vm2, %v794_v32 }
 0x2bd   : > { %v809_v37 = vpop.permute.xlu0 %808 }
 0x2be   : > { %v818_v38 = vmul.f32 %v809_v37, %v5746_v2 }
 0x2c0   : > { %828 = vrot.lane.b32.xlu1 %v818_v38, %s5639_s23 }
 0x2c5   : > { %v790_v39 = vpop.permute.xlu1 %789 }
 0x2c6   : > { %801 = vst.msk [vmem:[#allocation2 + $0x8] sm:$0xff] %vm799_vm2, %v790_v39 }
 0x2c8   : > { %842 = vrot.lane.b32.xlu1 %v6047_v36, %s5640_s24 }
 0x2cd   : > { %v805_v41 = vpop.permute.xlu1 %804 }
 0x2ce   : > { %v816_v42 = vmul.f32 %v805_v41, %v5749_v3 }
 0x2d0   : > { %840 = vrot.lane.b32.xlu0 %v816_v42, %s5640_s24  ;;  %824 = vrot.lane.b32.xlu2 %v816_v42, %s5639_s23 }
 0x2d1   : > { %856 = vrot.lane.b32.xlu1 %v816_v42, %s5641_s29 }
 0x2d5   : > { %v811_v43 = vpop.permute.xlu1 %810 }
 0x2d6   : > { %v819_v44 = vmul.f32 %v811_v43, %v5771_v7 }
 0x2d8   : > { %846 = vrot.lane.b32.xlu0 %v819_v44, %s5640_s24  ;;  %830 = vrot.lane.b32.xlu2 %v819_v44, %s5639_s23 }
 0x2d9   : > { %862 = vrot.lane.b32.xlu1 %v819_v44, %s5641_s29 }
 0x2e0   : > { %860 = vrot.lane.b32.xlu0 %v818_v38, %s5641_s29  ;;  %844 = vrot.lane.b32.xlu2 %v818_v38, %s5640_s24 }
 0x2e1   : > { %876 = vrot.lane.b32.xlu1 %v818_v38, %s5642_s30 }
 0x2e8   : > { %874 = vrot.lane.b32.xlu0 %v6047_v36, %s5642_s30  ;;  %858 = vrot.lane.b32.xlu2 %v6047_v36, %s5641_s29 }
 0x2e9   : > { %890 = vrot.lane.b32.xlu1 %v6047_v36, %s5643_s11 }
 0x2f0   : > { %888 = vrot.lane.b32.xlu0 %v816_v42, %s5643_s11  ;;  %872 = vrot.lane.b32.xlu2 %v816_v42, %s5642_s30 }
 0x2f1   : > { %904 = vrot.lane.b32.xlu1 %v816_v42, %s5644_s12 }
 0x2f8   : > { %894 = vrot.lane.b32.xlu0 %v819_v44, %s5643_s11  ;;  %878 = vrot.lane.b32.xlu2 %v819_v44, %s5642_s30 }
 0x2f9   : > { %910 = vrot.lane.b32.xlu1 %v819_v44, %s5644_s12 }
 0x300   : > { %908 = vrot.lane.b32.xlu0 %v818_v38, %s5644_s12  ;;  %892 = vrot.lane.b32.xlu2 %v818_v38, %s5643_s11 }
 0x301   : > { %924 = vrot.lane.b32.xlu1 %v818_v38, %s5645_s16 }
 0x308   : > { %922 = vrot.lane.b32.xlu0 %v6047_v36, %s5645_s16  ;;  %906 = vrot.lane.b32.xlu2 %v6047_v36, %s5644_s12 }
 0x310   : > { %920 = vrot.lane.b32.xlu2 %v816_v42, %s5645_s16 }
 0x318   : > { %926 = vrot.lane.b32.xlu2 %v819_v44, %s5645_s16 }
 0x31b   : > { %v827_v49 = vpop.permute.xlu0 %826 }
 0x31c   : > { %v837_v28 = vadd.f32 %v827_v49, %v6047_v36 }
 0x32a   : > { %v825_v45 = vpop.permute.xlu2 %824 }
 0x32b   : > { %v836_v54 = vadd.f32 %v825_v45, %v816_v42 }
 0x332   : > { %v831_v46 = vpop.permute.xlu2 %830  ;;  %v829_v48 = vpop.permute.xlu1 %828 }
 0x333   : > { %v839_v14 = vadd.f32 %v831_v46, %v819_v44  ;;  %v838_v18 = vadd.f32 %v829_v48, %v818_v38 }
 0x33a   : > { %v845_v50 = vpop.permute.xlu2 %844  ;;  %v843_v52 = vpop.permute.xlu1 %842 }
 0x33b   : > { %v854_v20 = vadd.f32 %v845_v50, %v838_v18  ;;  %v853_v29 = vadd.f32 %v843_v52, %v837_v28 }
 0x342   : > { %v859_v53 = vpop.permute.xlu2 %858  ;;  %v841_v55 = vpop.permute.xlu0 %840 }
 0x343   : > { %v857_v57 = vpop.permute.xlu1 %856  ;;  %v852_v10 = vadd.f32 %v841_v55, %v836_v54  ;;  %v869_v47 = vadd.f32 %v859_v53, %v853_v29 }
 0x345   : > { %v868_v11 = vadd.f32 %v857_v57, %v852_v10 }
 0x34a   : > { %v873_v58 = vpop.permute.xlu2 %872  ;;  %v847_v59 = vpop.permute.xlu0 %846 }
 0x34b   : > { %v863_v60 = vpop.permute.xlu1 %862  ;;  %v884_v15 = vadd.f32 %v873_v58, %v868_v11  ;;  %v855_v16 = vadd.f32 %v847_v59, %v839_v14 }
 0x34d   : > { %v871_v21 = vadd.f32 %v863_v60, %v855_v16 }
 0x352   : > { %v879_v61 = vpop.permute.xlu2 %878  ;;  %v861_v62 = vpop.permute.xlu0 %860 }
 0x353   : > { %v877_v40 = vpop.permute.xlu1 %876  ;;  %v887_v25 = vadd.f32 %v879_v61, %v871_v21  ;;  %v870_v19 = vadd.f32 %v861_v62, %v854_v20 }
 0x355   : > { %v886_v30 = vadd.f32 %v877_v40, %v870_v19 }
 0x35a   : > { %v893_v63 = vpop.permute.xlu2 %892  ;;  %v875_v4 = vpop.permute.xlu0 %874 }
 0x35b   : > { %v891_v5 = vpop.permute.xlu1 %890  ;;  %v902_v33 = vadd.f32 %v893_v63, %v886_v30  ;;  %v885_v32 = vadd.f32 %v875_v4, %v869_v47 }
 0x35d   : > { %v901_v42 = vadd.f32 %v891_v5, %v885_v32 }
 0x362   : > { %v907_v12 = vpop.permute.xlu2 %906  ;;  %v889_v13 = vpop.permute.xlu0 %888 }
 0x363   : > { %v905_v56 = vpop.permute.xlu1 %904  ;;  %v900_v17 = vadd.f32 %v889_v13, %v884_v15  ;;  %v917_v36 = vadd.f32 %v907_v12, %v901_v42 }
 0x365   : > { %v916_v22 = vadd.f32 %v905_v56, %v900_v17 }
 0x36a   : > { %v921_v51 = vpop.permute.xlu2 %920  ;;  %v895_v24 = vpop.permute.xlu0 %894 }
 0x36b   : > { %v932_v26 = vadd.f32 %v921_v51, %v916_v22  ;;  %v911_v27 = vpop.permute.xlu1 %910  ;;  %v903_v23 = vadd.f32 %v895_v24, %v887_v25 }
 0x36d   : > { %940 = vrot.lane.b32.xlu0 %v932_v26, %s9219_s25  ;;  %v919_v31 = vadd.f32 %v911_v27, %v903_v23 }
 0x372   : > { %v927_v34 = vpop.permute.xlu2 %926  ;;  %v909_v35 = vpop.permute.xlu0 %908 }
 0x373   : > { %v935_v37 = vadd.f32 %v927_v34, %v919_v31  ;;  %v918_v38 = vadd.f32 %v909_v35, %v902_v33  ;;  %v925_v39 = vpop.permute.xlu1 %924 }
 0x375   : > { %v934_v41 = vadd.f32 %v925_v39, %v918_v38  ;;  %946 = vrot.lane.b32.xlu0 %v935_v37, %s9219_s25 }
 0x377   : > { %944 = vrot.lane.b32.xlu2 %v934_v41, %s9219_s25 }
 0x37a   : > { %v923_v43 = vpop.permute.xlu0 %922 }
 0x37b   : > { %v933_v44 = vadd.f32 %v923_v43, %v917_v36 }
 0x37d   : > { %961 = vrot.lane.b32.xlu0 %v5731_v0, %s9221_s26  ;;  %942 = vrot.lane.b32.xlu1 %v933_v44, %s9219_s25  ;;  %s9239_s25 = smov 88  }
 0x37f   : > { %959 = vrot.lane.b32.xlu2 %v5779_v9, %s9221_s26 }
 0x385   : > { %957 = vrot.lane.b32.xlu1 %v5736_v1, %s9221_s26 }
 0x38d   : > { %963 = vrot.lane.b32.xlu1 %v5766_v6, %s9221_s26  ;;  %s9243_s26 = smov 7  }
 0x3d1   : > { %v945_v45 = vpop.permute.xlu2 %944 }
 0x3d2   : > { %955 = vst.msk [vmem:[#allocation2 + $0x10] sm:$0xff] %vm952_vm3, %v945_v45 }
 0x3d9   : > { %v960_v46 = vpop.permute.xlu2 %959 }
 0x3da   : > { %v6104_v48 = vmul.f32 %v960_v46, %v5774_v8 }
 0x3dc   : > { %979 = vrot.lane.b32.xlu0 %v6104_v48, %s5639_s23 }
 0x3df   : > { %v941_v0 = vpop.permute.xlu0 %940 }
 0x3e0   : > { %953 = vst.msk [vmem:[#allocation2] sm:$0xff] %vm952_vm3, %v941_v0 }
 0x3e7   : > { %v947_v9 = vpop.permute.xlu0 %946 }
 0x3e8   : > { %956 = vst.msk [vmem:[#allocation2 + $0x18] sm:$0xff] %vm952_vm3, %v947_v9  ;;  %v6165_v9 = vld [vmem:[%s9208_s1 + $0x10] sm:$0xff] }
 0x3ef   : > { %v943_v1 = vpop.permute.xlu1 %942  ;;  %v962_v49 = vpop.permute.xlu0 %961 }
 0x3f0   : > { %954 = vst.msk [vmem:[#allocation2 + $0x8] sm:$0xff] %vm952_vm3, %v943_v1  ;;  %v6112_v6 = vmul.f32 %v962_v49, %v5746_v2  ;;  %v6172_v1 = vld [vmem:[%s9208_s1] sm:$0xff]  ;;  %v6179_v49 = vld [vmem:[%s9208_s1 + $0x8] sm:$0xff] }
 0x3f2   : > { %981 = vrot.lane.b32.xlu1 %v6112_v6, %s5639_s23 }
 0x3f7   : > { %v958_v8 = vpop.permute.xlu1 %957 }
 0x3f8   : > { %v969_v50 = vmul.f32 %v958_v8, %v5749_v3 }
 0x3fa   : > { %993 = vrot.lane.b32.xlu0 %v969_v50, %s5640_s24  ;;  %977 = vrot.lane.b32.xlu2 %v969_v50, %s5639_s23 }
 0x3fb   : > { %995 = vrot.lane.b32.xlu1 %v6104_v48, %s5640_s24 }
 0x3ff   : > { %v964_v52 = vpop.permute.xlu1 %963 }
 0x400   : > { %v972_v53 = vmul.f32 %v964_v52, %v5771_v7  ;;  %v6192_v52 = vld [vmem:[%s5743_s22 + $0x8] sm:$0xff] }
 0x402   : > { %999 = vrot.lane.b32.xlu0 %v972_v53, %s5640_s24  ;;  %983 = vrot.lane.b32.xlu2 %v972_v53, %s5639_s23 }
 0x403   : > { %1009 = vrot.lane.b32.xlu1 %v969_v50, %s5641_s29 }
 0x40a   : > { %1013 = vrot.lane.b32.xlu0 %v6112_v6, %s5641_s29  ;;  %997 = vrot.lane.b32.xlu2 %v6112_v6, %s5640_s24 }
 0x40b   : > { %1015 = vrot.lane.b32.xlu1 %v972_v53, %s5641_s29 }
 0x412   : > { %1027 = vrot.lane.b32.xlu0 %v6104_v48, %s5642_s30  ;;  %1011 = vrot.lane.b32.xlu2 %v6104_v48, %s5641_s29 }
 0x413   : > { %1029 = vrot.lane.b32.xlu1 %v6112_v6, %s5642_s30 }
 0x41a   : > { %1041 = vrot.lane.b32.xlu0 %v969_v50, %s5643_s11  ;;  %1025 = vrot.lane.b32.xlu2 %v969_v50, %s5642_s30 }
 0x41b   : > { %1043 = vrot.lane.b32.xlu1 %v6104_v48, %s5643_s11 }
 0x422   : > { %1047 = vrot.lane.b32.xlu0 %v972_v53, %s5643_s11  ;;  %1031 = vrot.lane.b32.xlu2 %v972_v53, %s5642_s30 }
 0x423   : > { %1057 = vrot.lane.b32.xlu1 %v969_v50, %s5644_s12 }
 0x42a   : > { %1061 = vrot.lane.b32.xlu0 %v6112_v6, %s5644_s12  ;;  %1045 = vrot.lane.b32.xlu2 %v6112_v6, %s5643_s11 }
 0x42b   : > { %1063 = vrot.lane.b32.xlu1 %v972_v53, %s5644_s12 }
 0x432   : > { %1075 = vrot.lane.b32.xlu0 %v6104_v48, %s5645_s16  ;;  %1059 = vrot.lane.b32.xlu2 %v6104_v48, %s5644_s12 }
 0x433   : > { %1077 = vrot.lane.b32.xlu1 %v6112_v6, %s5645_s16 }
 0x43a   : > { %1073 = vrot.lane.b32.xlu2 %v969_v50, %s5645_s16 }
 0x442   : > { %1079 = vrot.lane.b32.xlu2 %v972_v53, %s5645_s16 }
 0x44e   : > { %v980_v7 = vpop.permute.xlu0 %979 }
 0x44f   : > { %v990_v51 = vadd.f32 %v980_v7, %v6104_v48 }
 0x454   : > { %v978_v2 = vpop.permute.xlu2 %977 }
 0x455   : > { %v989_v12 = vadd.f32 %v978_v2, %v969_v50 }
 0x45c   : > { %v984_v3 = vpop.permute.xlu2 %983 }
 0x45d   : > { %v992_v17 = vadd.f32 %v984_v3, %v972_v53 }
 0x464   : > { %v998_v55 = vpop.permute.xlu2 %997  ;;  %v982_v57 = vpop.permute.xlu1 %981 }
 0x465   : > { %v991_v19 = vadd.f32 %v982_v57, %v6112_v6  ;;  %v6186_v6 = vld [vmem:[%s9208_s1 + $0x18] sm:$0xff]  ;;  %v6203_v57 = vld [vmem:[%s5743_s22 + $0x10] sm:$0xff] }
 0x466   : > { %9287 = vst [vmem:[#allocation3_spill] sm:$0xff] %v6203_v57 }
 0x467   : > { %v1007_v29 = vadd.f32 %v998_v55, %v991_v19 }
 0x46c   : > { %v1012_v58 = vpop.permute.xlu2 %1011  ;;  %v994_v59 = vpop.permute.xlu0 %993 }
 0x46d   : > { %v996_v60 = vpop.permute.xlu1 %995  ;;  %v1005_v13 = vadd.f32 %v994_v59, %v989_v12 }
 0x46e   : > { %v1006_v28 = vadd.f32 %v996_v60, %v990_v51  ;;  %v6211_v60 = vld [vmem:[%s5743_s22] sm:$0xff] }
 0x470   : > { %v1022_v47 = vadd.f32 %v1012_v58, %v1006_v28 }
 0x474   : > { %v1026_v61 = vpop.permute.xlu2 %1025  ;;  %v1000_v62 = vpop.permute.xlu0 %999 }
 0x475   : > { %v1010_v40 = vpop.permute.xlu1 %1009  ;;  %v1008_v20 = vadd.f32 %v1000_v62, %v992_v17 }
 0x476   : > { %v1021_v16 = vadd.f32 %v1010_v40, %v1005_v13  ;;  %v6219_v40 = vld [vmem:[%s5743_s22 + $0x18] sm:$0xff]  ;;  %s9231_s22 = smov 5  }
 0x477   : > { %9288 = vst [vmem:[#allocation4_spill] sm:$0xff] %v6219_v40 }
 0x478   : > { %v1037_v18 = vadd.f32 %v1026_v61, %v1021_v16 }
 0x47c   : > { %v1032_v63 = vpop.permute.xlu2 %1031  ;;  %v1014_v4 = vpop.permute.xlu0 %1013 }
 0x47d   : > { %v1016_v54 = vpop.permute.xlu1 %1015  ;;  %v1023_v33 = vadd.f32 %v1014_v4, %v1007_v29 }
 0x47e   : > { %v1024_v26 = vadd.f32 %v1016_v54, %v1008_v20 }
 0x480   : > { %v1040_v30 = vadd.f32 %v1032_v63, %v1024_v26 }
 0x484   : > { %v1046_v5 = vpop.permute.xlu2 %1045  ;;  %v1028_v10 = vpop.permute.xlu0 %1027 }
 0x485   : > { %v1030_v11 = vpop.permute.xlu1 %1029  ;;  %v1038_v35 = vadd.f32 %v1028_v10, %v1022_v47 }
 0x486   : > { %v1039_v37 = vadd.f32 %v1030_v11, %v1023_v33 }
 0x488   : > { %v1055_v36 = vadd.f32 %v1046_v5, %v1039_v37 }
 0x48c   : > { %v1060_v14 = vpop.permute.xlu2 %1059  ;;  %v1042_v15 = vpop.permute.xlu0 %1041 }
 0x48d   : > { %v1044_v56 = vpop.permute.xlu1 %1043  ;;  %v1053_v21 = vadd.f32 %v1042_v15, %v1037_v18 }
 0x48e   : > { %v1054_v39 = vadd.f32 %v1044_v56, %v1038_v35 }
 0x490   : > { %v1070_v43 = vadd.f32 %v1060_v14, %v1054_v39 }
 0x494   : > { %v1048_v22 = vpop.permute.xlu0 %1047  ;;  %v1074_v24 = vpop.permute.xlu2 %1073 }
 0x495   : > { %v1058_v25 = vpop.permute.xlu1 %1057  ;;  %v1056_v31 = vadd.f32 %v1048_v22, %v1040_v30 }
 0x496   : > { %v1069_v27 = vadd.f32 %v1058_v25, %v1053_v21 }
 0x498   : > { %v1085_v23 = vadd.f32 %v1074_v24, %v1069_v27 }
 0x49a   : > { %1093 = vrot.lane.b32.xlu0 %v1085_v23, %s9233_s27 }
 0x49c   : > { %v1062_v34 = vpop.permute.xlu0 %1061  ;;  %v1080_v41 = vpop.permute.xlu2 %1079 }
 0x49d   : > { %v1064_v32 = vpop.permute.xlu1 %1063  ;;  %v1071_v44 = vadd.f32 %v1062_v34, %v1055_v36 }
 0x49e   : > { %v1072_v38 = vadd.f32 %v1064_v32, %v1056_v31 }
 0x4a0   : > { %v1088_v42 = vadd.f32 %v1080_v41, %v1072_v38 }
 0x4a2   : > { %1099 = vrot.lane.b32.xlu0 %v1088_v42, %s9233_s27 }
 0x4a4   : > { %v1076_v45 = vpop.permute.xlu0 %1075 }
 0x4a5   : > { %v1078_v46 = vpop.permute.xlu1 %1077  ;;  %v1086_v48 = vadd.f32 %v1076_v45, %v1070_v43 }
 0x4a6   : > { %v1087_v0 = vadd.f32 %v1078_v46, %v1071_v44 }
 0x4a7   : > { %1095 = vrot.lane.b32.xlu1 %v1086_v48, %s9233_s27 }
 0x4a8   : > { %1097 = vrot.lane.b32.xlu2 %v1087_v0, %s9233_s27  ;;  %s9338_s27 = smov 1  }
 0x4aa   : > { %1114 = vrot.lane.b32.xlu0 %v6165_v9, %s9239_s25 }
 0x4af   : > { %1110 = vrot.lane.b32.xlu1 %v6172_v1, %s9239_s25 }
 0x4b0   : > { %1112 = vrot.lane.b32.xlu2 %v6179_v49, %s9239_s25 }
 0x4b7   : > { %1116 = vrot.lane.b32.xlu1 %v6186_v6, %s9239_s25  ;;  %s9474_s25 = sshll.u32 %s9476_s14, 5 }
 0x502   : > { %v1098_v8 = vpop.permute.xlu2 %1097 }
 0x503   : > { %1108 = vst.msk [vmem:[#allocation2 + $0x10] sm:$0xff] %vm1105_vm4, %v1098_v8 }
 0x50a   : > { %v1113_v50 = vpop.permute.xlu2 %1112 }
 0x50b   : > { %v6195_v53 = vmul.f32 %v6192_v52, %v1113_v50 }
 0x50c   : > { %v1094_v2 = vpop.permute.xlu0 %1093 }
 0x50d   : > { %1106 = vst.msk [vmem:[#allocation2] sm:$0xff] %vm1105_vm4, %v1094_v2  ;;  %1132 = vrot.lane.b32.xlu0 %v6195_v53, %s5639_s23 }
 0x514   : > { %v1100_v3 = vpop.permute.xlu0 %1099 }
 0x515   : > { %1109 = vst.msk [vmem:[#allocation2 + $0x18] sm:$0xff] %vm1105_vm4, %v1100_v3 }
 0x519   : > { %v1096_v7 = vpop.permute.xlu1 %1095 }
 0x51a   : > { %1107 = vst.msk [vmem:[#allocation2 + $0x8] sm:$0xff] %vm1105_vm4, %v1096_v7 }
 0x51c   : > { %v1115_v55 = vpop.permute.xlu0 %1114 }
 0x51d   : > { %v6206_v58 = vmul.f32 %v6203_v57, %v1115_v55 }
 0x51f   : > { %1134 = vrot.lane.b32.xlu1 %v6206_v58, %s5639_s23 }
 0x521   : > { %v1111_v59 = vpop.permute.xlu1 %1110 }
 0x522   : > { %v1122_v61 = vmul.f32 %v6211_v60, %v1111_v59 }
 0x524   : > { %1146 = vrot.lane.b32.xlu0 %v1122_v61, %s5640_s24  ;;  %1130 = vrot.lane.b32.xlu2 %v1122_v61, %s5639_s23 }
 0x527   : > { %1148 = vrot.lane.b32.xlu1 %v6195_v53, %s5640_s24 }
 0x529   : > { %v1117_v62 = vpop.permute.xlu1 %1116 }
 0x52a   : > { %v1125_v63 = vmul.f32 %v6219_v40, %v1117_v62 }
 0x52c   : > { %1152 = vrot.lane.b32.xlu0 %v1125_v63, %s5640_s24  ;;  %1136 = vrot.lane.b32.xlu2 %v1125_v63, %s5639_s23 }
 0x52f   : > { %1162 = vrot.lane.b32.xlu1 %v1122_v61, %s5641_s29 }
 0x534   : > { %1166 = vrot.lane.b32.xlu0 %v6206_v58, %s5641_s29  ;;  %1150 = vrot.lane.b32.xlu2 %v6206_v58, %s5640_s24 }
 0x537   : > { %1168 = vrot.lane.b32.xlu1 %v1125_v63, %s5641_s29 }
 0x53c   : > { %1180 = vrot.lane.b32.xlu0 %v6195_v53, %s5642_s30  ;;  %1164 = vrot.lane.b32.xlu2 %v6195_v53, %s5641_s29 }
 0x53f   : > { %1182 = vrot.lane.b32.xlu1 %v6206_v58, %s5642_s30 }
 0x544   : > { %1194 = vrot.lane.b32.xlu0 %v1122_v61, %s5643_s11  ;;  %1178 = vrot.lane.b32.xlu2 %v1122_v61, %s5642_s30 }
 0x547   : > { %1196 = vrot.lane.b32.xlu1 %v6195_v53, %s5643_s11 }
 0x54c   : > { %1200 = vrot.lane.b32.xlu0 %v1125_v63, %s5643_s11  ;;  %1184 = vrot.lane.b32.xlu2 %v1125_v63, %s5642_s30 }
 0x54f   : > { %1210 = vrot.lane.b32.xlu1 %v1122_v61, %s5644_s12 }
 0x554   : > { %1214 = vrot.lane.b32.xlu0 %v6206_v58, %s5644_s12  ;;  %1198 = vrot.lane.b32.xlu2 %v6206_v58, %s5643_s11 }
 0x557   : > { %1216 = vrot.lane.b32.xlu1 %v1125_v63, %s5644_s12 }
 0x55c   : > { %1228 = vrot.lane.b32.xlu0 %v6195_v53, %s5645_s16  ;;  %1212 = vrot.lane.b32.xlu2 %v6195_v53, %s5644_s12 }
 0x55f   : > { %1230 = vrot.lane.b32.xlu1 %v6206_v58, %s5645_s16 }
 0x564   : > { %1226 = vrot.lane.b32.xlu2 %v1122_v61, %s5645_s16 }
 0x56c   : > { %1232 = vrot.lane.b32.xlu2 %v1125_v63, %s5645_s16 }
 0x57e   : > { %v1131_v4 = vpop.permute.xlu2 %1130 }
 0x57f   : > { %v1133_v5 = vpop.permute.xlu0 %1132  ;;  %v1142_v24 = vadd.f32 %v1131_v4, %v1122_v61 }
 0x580   : > { %v1143_v47 = vadd.f32 %v1133_v5, %v6195_v53 }
 0x586   : > { %v1137_v54 = vpop.permute.xlu2 %1136 }
 0x587   : > { %v1145_v23 = vadd.f32 %v1137_v54, %v1125_v63 }
 0x58e   : > { %v1151_v10 = vpop.permute.xlu2 %1150 }
 0x591   : > { %v1135_v11 = vpop.permute.xlu1 %1134 }
 0x592   : > { %v1144_v37 = vadd.f32 %v1135_v11, %v6206_v58 }
 0x594   : > { %v1160_v36 = vadd.f32 %v1151_v10, %v1144_v37 }
 0x596   : > { %v1165_v12 = vpop.permute.xlu2 %1164  ;;  %v1147_v13 = vpop.permute.xlu0 %1146 }
 0x597   : > { %v1158_v26 = vadd.f32 %v1147_v13, %v1142_v24 }
 0x599   : > { %v1149_v14 = vpop.permute.xlu1 %1148 }
 0x59a   : > { %v1159_v34 = vadd.f32 %v1149_v14, %v1143_v47 }
 0x59c   : > { %v1175_v42 = vadd.f32 %v1165_v12, %v1159_v34 }
 0x59e   : > { %v1179_v15 = vpop.permute.xlu2 %1178  ;;  %v1153_v56 = vpop.permute.xlu0 %1152 }
 0x59f   : > { %v1161_v33 = vadd.f32 %v1153_v56, %v1145_v23 }
 0x5a1   : > { %v1163_v16 = vpop.permute.xlu1 %1162 }
 0x5a2   : > { %v1174_v28 = vadd.f32 %v1163_v16, %v1158_v26 }
 0x5a4   : > { %v1190_v29 = vadd.f32 %v1179_v15, %v1174_v28 }
 0x5a6   : > { %v1185_v17 = vpop.permute.xlu2 %1184  ;;  %v1167_v18 = vpop.permute.xlu0 %1166 }
 0x5a7   : > { %v1176_v46 = vadd.f32 %v1167_v18, %v1160_v36 }
 0x5a9   : > { %v1169_v20 = vpop.permute.xlu1 %1168 }
 0x5aa   : > { %v1177_v38 = vadd.f32 %v1169_v20, %v1161_v33 }
 0x5ac   : > { %v1193_v43 = vadd.f32 %v1185_v17, %v1177_v38 }
 0x5ae   : > { %v1199_v21 = vpop.permute.xlu2 %1198  ;;  %v1181_v22 = vpop.permute.xlu0 %1180 }
 0x5af   : > { %v1191_v45 = vadd.f32 %v1181_v22, %v1175_v42 }
 0x5b1   : > { %v1183_v51 = vpop.permute.xlu1 %1182 }
 0x5b2   : > { %v1192_v50 = vadd.f32 %v1183_v51, %v1176_v46 }
 0x5b4   : > { %v1208_v55 = vadd.f32 %v1199_v21, %v1192_v50 }
 0x5b6   : > { %v1195_v25 = vpop.permute.xlu0 %1194  ;;  %v1213_v19 = vpop.permute.xlu2 %1212 }
 0x5b7   : > { %v1206_v31 = vadd.f32 %v1195_v25, %v1190_v29 }
 0x5b9   : > { %v1197_v27 = vpop.permute.xlu1 %1196 }
 0x5ba   : > { %v1207_v0 = vadd.f32 %v1197_v27, %v1191_v45 }
 0x5bc   : > { %v1223_v7 = vadd.f32 %v1213_v19, %v1207_v0 }
 0x5be   : > { %v1201_v30 = vpop.permute.xlu0 %1200  ;;  %v1227_v35 = vpop.permute.xlu2 %1226 }
 0x5bf   : > { %v1209_v48 = vadd.f32 %v1201_v30, %v1193_v43 }
 0x5c1   : > { %v1211_v32 = vpop.permute.xlu1 %1210 }
 0x5c2   : > { %v1222_v39 = vadd.f32 %v1211_v32, %v1206_v31 }
 0x5c4   : > { %v1238_v41 = vadd.f32 %v1227_v35, %v1222_v39 }
 0x5c6   : > { %1246 = vrot.lane.b32.xlu0 %v1238_v41, %s9231_s22  ;;  %v1215_v44 = vpop.permute.xlu0 %1214  ;;  %v1233_v2 = vpop.permute.xlu2 %1232 }
 0x5c7   : > { %v1224_v61 = vadd.f32 %v1215_v44, %v1208_v55 }
 0x5c9   : > { %v1217_v8 = vpop.permute.xlu1 %1216 }
 0x5ca   : > { %v1225_v53 = vadd.f32 %v1217_v8, %v1209_v48 }
 0x5cc   : > { %v1241_v3 = vadd.f32 %v1233_v2, %v1225_v53 }
 0x5ce   : > { %1252 = vrot.lane.b32.xlu0 %v1241_v3, %s9231_s22  ;;  %v1229_v58 = vpop.permute.xlu0 %1228 }
 0x5cf   : > { %v1239_v59 = vadd.f32 %v1229_v58, %v1223_v7 }
 0x5d1   : > { %v1231_v62 = vpop.permute.xlu1 %1230  ;;  %1248 = vrot.lane.b32.xlu1 %v1239_v59, %s9231_s22 }
 0x5d2   : > { %v1240_v63 = vadd.f32 %v1231_v62, %v1224_v61 }
 0x5d4   : > { %1250 = vrot.lane.b32.xlu2 %v1240_v63, %s9231_s22  ;;  %s9339_s22 = smov 2  }
 0x5d6   : > { %1267 = vrot.lane.b32.xlu0 %v6165_v9, %s9237_s19 }
 0x5d9   : > { %1263 = vrot.lane.b32.xlu1 %v6172_v1, %s9237_s19 }
 0x5dc   : > { %1265 = vrot.lane.b32.xlu2 %v6179_v49, %s9237_s19 }
 0x5e1   : > { %1269 = vrot.lane.b32.xlu1 %v6186_v6, %s9237_s19 }
 0x62e   : > { %v1251_v4 = vpop.permute.xlu2 %1250 }
 0x62f   : > { %1261 = vst.msk [vmem:[#allocation2 + $0x10] sm:$0xff] %vm1258_vm5, %v1251_v4 }
 0x636   : > { %v1266_v54 = vpop.permute.xlu2 %1265 }
 0x637   : > { %v6272_v5 = vmul.f32 %v6192_v52, %v1266_v54 }
 0x638   : > { %v1247_v10 = vpop.permute.xlu0 %1246 }
 0x639   : > { %1259 = vst.msk [vmem:[#allocation2] sm:$0xff] %vm1258_vm5, %v1247_v10  ;;  %1285 = vrot.lane.b32.xlu0 %v6272_v5, %s5639_s23 }
 0x640   : > { %v1253_v11 = vpop.permute.xlu0 %1252 }
 0x641   : > { %1262 = vst.msk [vmem:[#allocation2 + $0x18] sm:$0xff] %vm1258_vm5, %v1253_v11 }
 0x643   : > { %v1249_v12 = vpop.permute.xlu1 %1248 }
 0x644   : > { %1260 = vst.msk [vmem:[#allocation2 + $0x8] sm:$0xff] %vm1258_vm5, %v1249_v12 }
 0x648   : > { %v1268_v13 = vpop.permute.xlu0 %1267 }
 0x649   : > { %v6280_v14 = vmul.f32 %v6203_v57, %v1268_v13 }
 0x64b   : > { %1287 = vrot.lane.b32.xlu1 %v6280_v14, %s5639_s23  ;;  %v1264_v15 = vpop.permute.xlu1 %1263 }
 0x64c   : > { %v6285_v56 = vmul.f32 %v6211_v60, %v1264_v15 }
 0x64e   : > { %1299 = vrot.lane.b32.xlu0 %v6285_v56, %s5640_s24  ;;  %1283 = vrot.lane.b32.xlu2 %v6285_v56, %s5639_s23 }
 0x653   : > { %1301 = vrot.lane.b32.xlu1 %v6272_v5, %s5640_s24  ;;  %v1270_v16 = vpop.permute.xlu1 %1269 }
 0x654   : > { %v6294_v17 = vmul.f32 %v6219_v40, %v1270_v16 }
 0x656   : > { %1305 = vrot.lane.b32.xlu0 %v6294_v17, %s5640_s24  ;;  %1289 = vrot.lane.b32.xlu2 %v6294_v17, %s5639_s23 }
 0x65b   : > { %1315 = vrot.lane.b32.xlu1 %v6285_v56, %s5641_s29 }
 0x65e   : > { %1319 = vrot.lane.b32.xlu0 %v6280_v14, %s5641_s29  ;;  %1303 = vrot.lane.b32.xlu2 %v6280_v14, %s5640_s24 }
 0x663   : > { %1321 = vrot.lane.b32.xlu1 %v6294_v17, %s5641_s29 }
 0x666   : > { %1333 = vrot.lane.b32.xlu0 %v6272_v5, %s5642_s30  ;;  %1317 = vrot.lane.b32.xlu2 %v6272_v5, %s5641_s29 }
 0x66b   : > { %1416 = vrot.lane.b32.xlu1 %v6172_v1, %s9235_s20 }
 0x66e   : > { %1420 = vrot.lane.b32.xlu0 %v6165_v9, %s9235_s20  ;;  %1331 = vrot.lane.b32.xlu2 %v6285_v56, %s5642_s30 }
 0x673   : > { %1422 = vrot.lane.b32.xlu1 %v6186_v6, %s9235_s20 }
 0x676   : > { %1337 = vrot.lane.b32.xlu0 %v6294_v17, %s5642_s30  ;;  %1418 = vrot.lane.b32.xlu2 %v6179_v49, %s9235_s20 }
 0x67b   : > { %1347 = vrot.lane.b32.xlu1 %v6285_v56, %s5643_s11 }
 0x67e   : > { %1351 = vrot.lane.b32.xlu0 %v6280_v14, %s5643_s11  ;;  %1335 = vrot.lane.b32.xlu2 %v6280_v14, %s5642_s30 }
 0x683   : > { %1353 = vrot.lane.b32.xlu1 %v6294_v17, %s5643_s11 }
 0x686   : > { %1365 = vrot.lane.b32.xlu0 %v6272_v5, %s5644_s12  ;;  %1349 = vrot.lane.b32.xlu2 %v6272_v5, %s5643_s11 }
 0x68b   : > { %1367 = vrot.lane.b32.xlu1 %v6280_v14, %s5644_s12 }
 0x68e   : > { %1363 = vrot.lane.b32.xlu2 %v6285_v56, %s5644_s12 }
 0x696   : > { %1369 = vrot.lane.b32.xlu2 %v6294_v17, %s5644_s12 }
 0x6a8   : > { %v6342_v9 = vpop.permute.xlu2 %1283 }
 0x6ab   : > { %v6346_v49 = vpop.permute.xlu0 %1285 }
 0x6ac   : > { %v1296_v4 = vadd.f32 %v6346_v49, %v6272_v5 }
 0x6b0   : > { %v6344_v1 = vpop.permute.xlu2 %1289 }
 0x6b8   : > { %v6348_v6 = vpop.permute.xlu2 %1303 }
 0x6bd   : > { %v6350_v18 = vpop.permute.xlu1 %1287 }
 0x6c0   : > { %v6352_v20 = vpop.permute.xlu2 %1317  ;;  %v6354_v21 = vpop.permute.xlu0 %1299 }
 0x6c5   : > { %v6356_v22 = vpop.permute.xlu1 %1301 }
 0x6c6   : > { %v1312_v54 = vadd.f32 %v6356_v22, %v1296_v4 }
 0x6c8   : > { %v6358_v51 = vpop.permute.xlu2 %1331  ;;  %v6360_v24 = vpop.permute.xlu0 %1305  ;;  %v1328_v13 = vadd.f32 %v6352_v20, %v1312_v54 }
 0x6cd   : > { %v6362_v25 = vpop.permute.xlu1 %1315 }
 0x6d0   : > { %v1419_v19 = vpop.permute.xlu2 %1418  ;;  %v6364_v26 = vpop.permute.xlu0 %1319 }
 0x6d1   : > { %v6367_v27 = vmul.f32 %v6192_v52, %v1419_v19 }
 0x6d3   : > { %1438 = vrot.lane.b32.xlu1 %v6367_v27, %s5639_s23 }
 0x6d5   : > { %v6371_v28 = vpop.permute.xlu1 %1321 }
 0x6d8   : > { %v6373_v23 = vpop.permute.xlu0 %1333  ;;  %v6428_v35 = vpop.permute.xlu2 %1335 }
 0x6d9   : > { %v1344_v19 = vadd.f32 %v6373_v23, %v1328_v13 }
 0x6db   : > { %1454 = vrot.lane.b32.xlu1 %v6367_v27, %s5640_s24 }
 0x6dd   : > { %v1417_v29 = vpop.permute.xlu1 %1416 }
 0x6de   : > { %v6378_v30 = vmul.f32 %v6211_v60, %v1417_v29 }
 0x6e0   : > { %1436 = vrot.lane.b32.xlu0 %v6378_v30, %s5639_s23  ;;  %v1421_v47 = vpop.permute.xlu0 %1420  ;;  %v1350_v32 = vpop.permute.xlu2 %1349 }
 0x6e1   : > { %v6383_v33 = vmul.f32 %v6203_v57, %v1421_v47  ;;  %v1360_v29 = vadd.f32 %v1350_v32, %v1344_v19 }
 0x6e3   : > { %1468 = vrot.lane.b32.xlu1 %v6378_v30, %s5641_s29  ;;  %1440 = vrot.lane.b32.xlu2 %v6383_v33, %s5639_s23 }
 0x6e5   : > { %v1423_v31 = vpop.permute.xlu1 %1422 }
 0x6e6   : > { %v6390_v34 = vmul.f32 %v6219_v40, %v1423_v31  ;;  %v1295_v40 = vadd.f32 %v6342_v9, %v6285_v56 }
 0x6e8   : > { %1452 = vrot.lane.b32.xlu0 %v6378_v30, %s5640_s24  ;;  %v6444_v38 = vpop.permute.xlu2 %1363  ;;  %v6454_v42 = vpop.permute.xlu0 %1337 }
 0x6eb   : > { %1472 = vrot.lane.b32.xlu1 %v6383_v33, %s5641_s29  ;;  %1442 = vrot.lane.b32.xlu2 %v6390_v34, %s5639_s23 }
 0x6ed   : > { %v1348_v37 = vpop.permute.xlu1 %1347 }
 0x6f0   : > { %1456 = vrot.lane.b32.xlu0 %v6383_v33, %s5640_s24  ;;  %v6452_v41 = vpop.permute.xlu2 %1369  ;;  %v6458_v44 = vpop.permute.xlu0 %1351 }
 0x6f3   : > { %1474 = vrot.lane.b32.xlu1 %v6390_v34, %s5641_s29  ;;  %1470 = vrot.lane.b32.xlu2 %v6367_v27, %s5641_s29 }
 0x6f5   : > { %v6450_v39 = vpop.permute.xlu1 %1353 }
 0x6f8   : > { %1458 = vrot.lane.b32.xlu0 %v6390_v34, %s5640_s24  ;;  %v1366_v48 = vpop.permute.xlu0 %1365 }
 0x6f9   : > { %v1376_v57 = vadd.f32 %v1366_v48, %v1360_v29  ;;  %v1577_v29 = vld [vmem:[%s9213_s6] sm:$0xff] }
 0x6fb   : > { %1502 = vrot.lane.b32.xlu1 %v6367_v27, %s5643_s11  ;;  %1484 = vrot.lane.b32.xlu2 %v6378_v30, %s5642_s30 }
 0x6fd   : > { %v6456_v36 = vpop.permute.xlu1 %1367 }
 0x700   : > { %1486 = vrot.lane.b32.xlu0 %v6367_v27, %s5642_s30 }
 0x703   : > { %1516 = vrot.lane.b32.xlu1 %v6378_v30, %s5644_s12  ;;  %1488 = vrot.lane.b32.xlu2 %v6383_v33, %s5642_s30 }
 0x708   : > { %1500 = vrot.lane.b32.xlu0 %v6378_v30, %s5643_s11 }
 0x70b   : > { %1381 = vrot.lane.b32.xlu1 %v6272_v5, %s5645_s16  ;;  %1490 = vrot.lane.b32.xlu2 %v6390_v34, %s5642_s30  ;;  %v1311_v5 = vadd.f32 %v6354_v21, %v1295_v40 }
 0x70d   : > { %v1327_v20 = vadd.f32 %v6362_v25, %v1311_v5 }
 0x70f   : > { %v1343_v9 = vadd.f32 %v6358_v51, %v1327_v20  ;;  %v1297_v51 = vadd.f32 %v6350_v18, %v6280_v14  ;;  %v1712_v20 = vld [vmem:[%s9210_s3 + $0x10] sm:$0xff] }
 0x710   : > { %1504 = vrot.lane.b32.xlu0 %v6383_v33, %s5643_s11 }
 0x711   : > { %v1359_v48 = vadd.f32 %v1348_v37, %v1343_v9  ;;  %v1716_v9 = vld [vmem:[%s9210_s3 + $0x30] sm:$0xff] }
 0x713   : > { %1532 = vrot.lane.b32.xlu1 %v6378_v30, %s5645_s16  ;;  %1518 = vrot.lane.b32.xlu2 %v6367_v27, %s5644_s12 }
 0x718   : > { %1379 = vrot.lane.b32.xlu0 %v6285_v56, %s5645_s16 }
 0x71b   : > { %1522 = vrot.lane.b32.xlu1 %v6390_v34, %s5644_s12  ;;  %1506 = vrot.lane.b32.xlu2 %v6390_v34, %s5643_s11 }
 0x720   : > { %1520 = vrot.lane.b32.xlu0 %v6383_v33, %s5644_s12 }
 0x723   : > { %1538 = vrot.lane.b32.xlu1 %v6390_v34, %s5645_s16  ;;  %1534 = vrot.lane.b32.xlu2 %v6367_v27, %s5645_s16 }
 0x728   : > { %1383 = vrot.lane.b32.xlu0 %v6280_v14, %s5645_s16  ;;  %v1298_v14 = vadd.f32 %v6344_v1, %v6294_v17 }
 0x72b   : > { %1536 = vrot.lane.b32.xlu2 %v6383_v33, %s5645_s16 }
 0x730   : > { %1385 = vrot.lane.b32.xlu0 %v6294_v17, %s5645_s16 }
 0x73d   : > { %v1441_v43 = vpop.permute.xlu2 %1440 }
 0x745   : > { %v1439_v45 = vpop.permute.xlu1 %1438  ;;  %v6460_v46 = vpop.permute.xlu2 %1442 }
 0x746   : > { %v1449_v32 = vadd.f32 %v1439_v45, %v6367_v27 }
 0x74d   : > { %v1455_v0 = vpop.permute.xlu1 %1454  ;;  %v1471_v8 = vpop.permute.xlu2 %1470 }
 0x74e   : > { %v1465_v40 = vadd.f32 %v1455_v0, %v1449_v32  ;;  %v1715_v32 = vld [vmem:[%s9210_s3 + $0x28] sm:$0xff] }
 0x752   : > { %v1437_v50 = vpop.permute.xlu0 %1436 }
 0x753   : > { %v1448_v11 = vadd.f32 %v1437_v50, %v6378_v30  ;;  %v5658_v30 = vmov 0  }
 0x754   : > { %5546 = vset.pattern.permute.xlu1 %v5658_v30  ;;  %5548 = vset.pattern.permute.xlu0 %v5658_v30 }
 0x755   : > { %v1469_v53 = vpop.permute.xlu1 %1468  ;;  %v1485_v2 = vpop.permute.xlu2 %1484  ;;  %5547 = vset.pattern.permute.xlu2 %v5658_v30  ;;  %v1710_v30 = vld [vmem:[%s9210_s3] sm:$0xff] }
 0x75a   : > { %v1453_v3 = vpop.permute.xlu0 %1452 }
 0x75b   : > { %v1464_v15 = vadd.f32 %v1453_v3, %v1448_v11  ;;  %v1481_v3 = vadd.f32 %v1471_v8, %v1465_v40  ;;  %v1375_v11 = vadd.f32 %v6444_v38, %v1359_v48  ;;  %v1451_v38 = vadd.f32 %v6460_v46, %v6390_v34  ;;  %v1718_v40 = vld [vmem:[%s9210_s3 + $0x40] sm:$0xff]  ;;  %v1719_v48 = vld [vmem:[%s9210_s3 + $0x48] sm:$0xff] }
 0x75d   : > { %v1473_v7 = vpop.permute.xlu1 %1472  ;;  %v1489_v55 = vpop.permute.xlu2 %1488  ;;  %v1480_v47 = vadd.f32 %v1469_v53, %v1464_v15 }
 0x75f   : > { %v1496_v22 = vadd.f32 %v1485_v2, %v1480_v47 }
 0x762   : > { %v1457_v58 = vpop.permute.xlu0 %1456 }
 0x765   : > { %v6462_v59 = vpop.permute.xlu1 %1474  ;;  %v6466_v62 = vpop.permute.xlu2 %1490 }
 0x76a   : > { %v6464_v61 = vpop.permute.xlu0 %1458 }
 0x76d   : > { %v1503_v63 = vpop.permute.xlu1 %1502  ;;  %v1519_v16 = vpop.permute.xlu2 %1518 }
 0x772   : > { %v1487_v10 = vpop.permute.xlu0 %1486 }
 0x773   : > { %v1497_v54 = vadd.f32 %v1487_v10, %v1481_v3  ;;  %v1724_v3 = vld [vmem:[%s9210_s3 + $0x70] sm:$0xff] }
 0x775   : > { %v1517_v12 = vpop.permute.xlu1 %1516  ;;  %v1507_v50 = vpop.permute.xlu2 %1506  ;;  %v1513_v37 = vadd.f32 %v1503_v63, %v1497_v54  ;;  %v1725_v54 = vld [vmem:[%s9210_s3 + $0x78] sm:$0xff] }
 0x777   : > { %v1529_v0 = vadd.f32 %v1519_v16, %v1513_v37  ;;  %v1314_v16 = vadd.f32 %v6360_v24, %v1298_v14  ;;  %v2696_v37 = vld [vmem:[%s9215_s8 + $0x8] sm:$0xff] }
 0x778   : > { %v2700_v14 = vld [vmem:[%s9216_s9 + $0x8] sm:$0xff] }
 0x779   : > { %v1330_v34 = vadd.f32 %v6371_v28, %v1314_v16 }
 0x77a   : > { %v1501_v31 = vpop.permute.xlu0 %1500 }
 0x77b   : > { %v1512_v23 = vadd.f32 %v1501_v31, %v1496_v22  ;;  %v1582_v22 = vld [vmem:[%s9214_s7 + $0x8] sm:$0xff] }
 0x77d   : > { %v1382_v49 = vpop.permute.xlu1 %1381  ;;  %v1528_v21 = vadd.f32 %v1517_v12, %v1512_v23  ;;  %v1535_v13 = vpop.permute.xlu2 %1534  ;;  %v1713_v23 = vld [vmem:[%s9210_s3 + $0x18] sm:$0xff] }
 0x77e   : > { %v1392_v4 = vadd.f32 %v1382_v49, %v1376_v57  ;;  %v1450_v57 = vadd.f32 %v1441_v43, %v6383_v33  ;;  %v1313_v43 = vadd.f32 %v6348_v6, %v1297_v51  ;;  %v1545_v12 = vadd.f32 %v1535_v13, %v1529_v0  ;;  %v1580_v49 = vld [vmem:[%s9213_s6 + $0x18] sm:$0xff]  ;;  %v1723_v13 = vld [vmem:[%s9210_s3 + $0x68] sm:$0xff]  ;;  %v2636_v51 = vld [vmem:[%s9212_s5] sm:$0xff] }
 0x77f   : > { %v2639_v0 = vld [vmem:[%s9212_s5 + $0x18] sm:$0xff] }
 0x780   : > { %1401 = vrot.lane.b32.xlu0 %v1392_v4, %s9245_s21  ;;  %v1466_v25 = vadd.f32 %v1457_v58, %v1450_v57  ;;  %v1329_v10 = vadd.f32 %v6364_v26, %v1313_v43  ;;  %v1583_v4 = vld [vmem:[%s9214_s7 + $0x10] sm:$0xff]  ;;  %v1721_v57 = vld [vmem:[%s9210_s3 + $0x58] sm:$0xff] }
 0x781   : > { %v2698_v43 = vld [vmem:[%s9215_s8 + $0x18] sm:$0xff] }
 0x782   : > { %v1505_v56 = vpop.permute.xlu0 %1504  ;;  %v1482_v45 = vadd.f32 %v1473_v7, %v1466_v25  ;;  %v1345_v18 = vadd.f32 %v6428_v35, %v1329_v10  ;;  %v1346_v35 = vadd.f32 %v6454_v42, %v1330_v34  ;;  %v1720_v25 = vld [vmem:[%s9210_s3 + $0x50] sm:$0xff] }
 0x784   : > { %v1498_v33 = vadd.f32 %v1489_v55, %v1482_v45  ;;  %v1467_v55 = vadd.f32 %v6464_v61, %v1451_v38  ;;  %v1361_v26 = vadd.f32 %v6458_v44, %v1345_v18  ;;  %v1362_v24 = vadd.f32 %v6450_v39, %v1346_v35  ;;  %v1579_v39 = vld [vmem:[%s9213_s6 + $0x10] sm:$0xff] }
 0x785   : > { %v1533_v53 = vpop.permute.xlu1 %1532  ;;  %v1537_v19 = vpop.permute.xlu2 %1536  ;;  %v2701_v38 = vld [vmem:[%s9216_s9 + $0x10] sm:$0xff] }
 0x786   : > { %v1544_v2 = vadd.f32 %v1533_v53, %v1528_v21  ;;  %v1514_v8 = vadd.f32 %v1505_v56, %v1498_v33  ;;  %v1377_v46 = vadd.f32 %v6456_v36, %v1361_v26  ;;  %v1483_v17 = vadd.f32 %v6462_v59, %v1467_v55  ;;  %v1711_v56 = vld [vmem:[%s9210_s3 + $0x8] sm:$0xff]  ;;  %v1714_v21 = vld [vmem:[%s9210_s3 + $0x20] sm:$0xff]  ;;  %v1717_v53 = vld [vmem:[%s9210_s3 + $0x38] sm:$0xff] }
 0x787   : > { %v1378_v59 = vadd.f32 %v6452_v41, %v1362_v24  ;;  %v1578_v41 = vld [vmem:[%s9213_s6 + $0x8] sm:$0xff] }
 0x788   : > { %1552 = vrot.lane.b32.xlu1 %v1544_v2, %s9243_s26  ;;  %v1499_v44 = vadd.f32 %v6466_v62, %v1483_v17  ;;  %v1584_v62 = vld [vmem:[%s9214_s7 + $0x18] sm:$0xff]  ;;  %v1722_v2 = vld [vmem:[%s9210_s3 + $0x60] sm:$0xff] }
 0x78a   : > { %v1380_v27 = vpop.permute.xlu0 %1379  ;;  %v1515_v47 = vadd.f32 %v1507_v50, %v1499_v44  ;;  %v1581_v50 = vld [vmem:[%s9214_s7] sm:$0xff] }
 0x78b   : > { %v1391_v15 = vadd.f32 %v1380_v27, %v1375_v11  ;;  %v2637_v11 = vld [vmem:[%s9212_s5 + $0x8] sm:$0xff]  ;;  %v2638_v27 = vld [vmem:[%s9212_s5 + $0x10] sm:$0xff] }
 0x78d   : > { %1399 = vrot.lane.b32.xlu2 %v1391_v15, %s9245_s21  ;;  %v1523_v6 = vpop.permute.xlu1 %1522  ;;  %v2695_v15 = vld [vmem:[%s9215_s8] sm:$0xff] }
 0x78e   : > { %v1531_v36 = vadd.f32 %v1523_v6, %v1515_v47  ;;  %v5661_v6 = vmov 32.0  }
 0x78f   : > { %5549 = vrcp.f32 %v5661_v6 }
 0x792   : > { %v1521_v58 = vpop.permute.xlu0 %1520 }
 0x793   : > { %v1530_v7 = vadd.f32 %v1521_v58, %v1514_v8  ;;  %v2699_v58 = vld [vmem:[%s9216_s9] sm:$0xff] }
 0x795   : > { %v1546_v63 = vadd.f32 %v1537_v19, %v1530_v7  ;;  %1554 = vrot.lane.b32.xlu2 %v1545_v12, %s9243_s26  ;;  %v1539_v28 = vpop.permute.xlu1 %1538  ;;  %v2697_v12 = vld [vmem:[%s9215_s8 + $0x10] sm:$0xff]  ;;  %v2702_v7 = vld [vmem:[%s9216_s9 + $0x18] sm:$0xff] }
 0x796   : > { %v1547_v5 = vadd.f32 %v1539_v28, %v1531_v36 }
 0x797   : > { %1556 = vrot.lane.b32.xlu1 %v1546_v63, %s9243_s26 }
 0x79a   : > { %v1384_v1 = vpop.permute.xlu0 %1383 }
 0x79b   : > { %v1393_v61 = vadd.f32 %v1384_v1, %v1377_v46  ;;  %v9289_v1 = vld [vmem:[#allocation3_spill] sm:$0xff] }
 0x79d   : > { %1403 = vrot.lane.b32.xlu0 %v1393_v61, %s9245_s21  ;;  %v5550_v61 = vpop.eup %5549 }
 0x79e   : > { %v1600_v24 = vmul.f32 32.0, %v5550_v61  ;;  %vm1604_vm9 = vweird.f32 %v5550_v61 }
 0x79f   : > { %1646 = vperm.xlu1 %5546, %v1577_v29  }
 0x7a2   : > { %v1386_v31 = vpop.permute.xlu0 %1385 }
 0x7a3   : > { %v1394_v42 = vadd.f32 %v1386_v31, %v1378_v59  ;;  %v9290_v59 = vld [vmem:[#allocation4_spill] sm:$0xff] }
 0x7a5   : > { %1558 = vrot.lane.b32.xlu0 %v1547_v5, %s9243_s26  ;;  %1405 = vrot.lane.b32.xlu2 %v1394_v42, %s9245_s21  ;;  %s9340_s21 = smov 104   ;;  %s9341_s26 = smov 96  }
 0x7a7   : > { %1661 = vperm.xlu1 %5546, %v1580_v49  }
 0x7ad   : > { %1656 = vperm.xlu0 %5548, %v1579_v39   ;;  %1651 = vperm.xlu2 %5547, %v1578_v41  }
 0x7af   : > { %1685 = vperm.xlu1 %5546, %v1584_v62  }
 0x7b5   : > { %1675 = vperm.xlu0 %5548, %v1582_v22   ;;  %1680 = vperm.xlu2 %5547, %v1583_v4  }
 0x7b7   : > { %1728 = vperm.xlu1 %5546, %v1710_v30  }
 0x7bd   : > { %1738 = vperm.xlu0 %5548, %v1712_v20   ;;  %1670 = vperm.xlu2 %5547, %v1581_v50  }
 0x7bf   : > { %1743 = vperm.xlu1 %5546, %v1713_v23  }
 0x7c5   : > { %1753 = vperm.xlu0 %5548, %v1715_v32   ;;  %1733 = vperm.xlu2 %5547, %v1711_v56  }
 0x7c7   : > { %1758 = vperm.xlu1 %5546, %v1716_v9  }
 0x7cd   : > { %1768 = vperm.xlu0 %5548, %v1718_v40   ;;  %1748 = vperm.xlu2 %5547, %v1714_v21  }
 0x7cf   : > { %1773 = vperm.xlu1 %5546, %v1719_v48  }
 0x7d5   : > { %1783 = vperm.xlu0 %5548, %v1721_v57   ;;  %1763 = vperm.xlu2 %5547, %v1717_v53  }
 0x7d7   : > { %1788 = vperm.xlu1 %5546, %v1722_v2  }
 0x7dd   : > { %1798 = vperm.xlu0 %5548, %v1724_v3   ;;  %1778 = vperm.xlu2 %5547, %v1720_v25  }
 0x7df   : > { %1803 = vperm.xlu1 %5546, %v1725_v54  }
 0x7e5   : > { %2647 = vperm.xlu0 %5548, %v2637_v11   ;;  %1793 = vperm.xlu2 %5547, %v1723_v13  }
 0x7e7   : > { %v1400_v45 = vpop.permute.xlu2 %1399  ;;  %2652 = vperm.xlu1 %5546, %v2638_v27  }
 0x7e8   : > { %1412 = vst.msk [vmem:[#allocation2] sm:$0xff] %vm9264_vm6, %v1400_v45 }
 0x7ed   : > { %2756 = vperm.xlu0 %5548, %v2695_v15   ;;  %2642 = vperm.xlu2 %5547, %v2636_v51  }
 0x7ef   : > { %2761 = vperm.xlu1 %5546, %v2696_v37   ;;  %v1555_v8 = vpop.permute.xlu2 %1554 }
 0x7f2   : > { %v1402_v33 = vpop.permute.xlu0 %1401 }
 0x7f3   : > { %1413 = vst.msk [vmem:[#allocation2 + $0x8] sm:$0xff] %vm9264_vm6, %v1402_v33 }
 0x7f4   : > { %1566 = vst.msk [vmem:[#allocation2 + $0x8] sm:$0xff] %vm9263_vm7, %v1555_v8 }
 0x7f5   : > { %2771 = vperm.xlu0 %5548, %v2698_v43   ;;  %2657 = vperm.xlu2 %5547, %v2639_v0  }
 0x7f7   : > { %2780 = vperm.xlu1 %5546, %v2699_v58  }
 0x7fa   : > { %v1553_v10 = vpop.permute.xlu1 %1552 }
 0x7fb   : > { %1565 = vst.msk [vmem:[#allocation2] sm:$0xff] %vm9263_vm7, %v1553_v10  ;;  %v1570_v26 = vld [vmem:[#allocation2 + $0x8] sm:$0xff] }
 0x7fc   : > { %v1574_v17 = vadd.f32 %v6192_v52, %v1570_v26 }
 0x7fd   : > { %2790 = vperm.xlu0 %5548, %v2701_v38   ;;  %2766 = vperm.xlu2 %5547, %v2697_v12  }
 0x7fe   : > { %v1587_v44 = vsel %vm1585_vm8, %v1574_v17, 0.0 }
 0x7ff   : > { %2795 = vperm.xlu1 %5546, %v2702_v7   ;;  %v1406_v19 = vpop.permute.xlu2 %1405 }
 0x800   : > { %1415 = vst.msk [vmem:[#allocation2 + $0x18] sm:$0xff] %vm9264_vm6, %v1406_v19 }
 0x802   : > { %v1569_v63 = vld [vmem:[#allocation2] sm:$0xff] }
 0x803   : > { %v1573_v34 = vadd.f32 %v6211_v60, %v1569_v63  ;;  %v1601_v60 = vsub.f32 1.0, %v1600_v24 }
 0x805   : > { %2785 = vperm.xlu2 %5547, %v2700_v14   ;;  %v1586_v29 = vsel %vm1585_vm8, %v1573_v34, 0.0  ;;  %v1602_v39 = vmul.f32 %v5550_v61, %v1601_v60 }
 0x806   : > { %v1588_v36 = vadd.f32 %v1587_v44, %v1586_v29 }
 0x807   : > { %v1603_v22 = vadd.f32 %v5550_v61, %v1602_v39  ;;  %v1652_v10 = vpop.permute.xlu2 %1651  ;;  %v5498_v39 = vld [vmem:[%s9209_s2 + $0x38] sm:$0xff] }
 0x809   : > { %v1557_v55 = vpop.permute.xlu1 %1556  ;;  %v6633_v20 = vsel %vm1604_vm9, %v5550_v61, %v1603_v22  ;;  %v5495_v22 = vld [vmem:[%s9209_s2 + $0x20] sm:$0xff] }
 0x80a   : > { %9291 = vst [vmem:[#allocation3_spill] sm:$0xff] %v6633_v20 }
 0x80f   : > { %v1404_v18 = vpop.permute.xlu0 %1403 }
 0x810   : > { %1414 = vst.msk [vmem:[#allocation2 + $0x10] sm:$0xff] %vm9264_vm6, %v1404_v18  ;;  %v1681_v18 = vpop.permute.xlu2 %1680 }
 0x811   : > { %1567 = vst.msk [vmem:[#allocation2 + $0x10] sm:$0xff] %vm9263_vm7, %v1557_v55  ;;  %v1647_v58 = vpop.permute.xlu1 %1646 }
 0x817   : > { %v1559_v16 = vpop.permute.xlu0 %1558 }
 0x818   : > { %1568 = vst.msk [vmem:[#allocation2 + $0x18] sm:$0xff] %vm9263_vm7, %v1559_v16  ;;  %v1571_v46 = vld [vmem:[#allocation2 + $0x10] sm:$0xff] }
 0x819   : > { %v1575_v35 = vadd.f32 %v9289_v1, %v1571_v46  ;;  %v1662_v19 = vpop.permute.xlu1 %1661 }
 0x81b   : > { %v1589_v47 = vsel %vm1585_vm8, %v1575_v35, 0.0 }
 0x81c   : > { %v1590_v5 = vadd.f32 %v1589_v47, %v1588_v36 }
 0x81f   : > { %v1572_v28 = vld [vmem:[#allocation2 + $0x18] sm:$0xff]  ;;  %v1657_v63 = vpop.permute.xlu0 %1656 }
 0x820   : > { %v1576_v31 = vadd.f32 %v9290_v59, %v1572_v28  ;;  %v1671_v28 = vpop.permute.xlu2 %1670 }
 0x821   : > { %v1686_v24 = vpop.permute.xlu1 %1685 }
 0x822   : > { %v1591_v42 = vsel %vm1585_vm8, %v1576_v31, 0.0 }
 0x823   : > { %v1592_v52 = vadd.f32 %v1591_v42, %v1590_v5  ;;  %v5491_v42 = vld [vmem:[%s9209_s2] sm:$0xff] }
 0x825   : > { %v1593_v49 = vrot.slane %v1592_v52, 4 }
 0x827   : > { %v1594_v41 = vadd.f32 %v1593_v49, %v1592_v52  ;;  %v1676_v36 = vpop.permute.xlu0 %1675  ;;  %v5497_v52 = vld [vmem:[%s9209_s2 + $0x30] sm:$0xff]  ;;  %v5492_v49 = vld [vmem:[%s9209_s2 + $0x8] sm:$0xff] }
 0x829   : > { %v1595_v62 = vrot.slane %v1594_v41, 2 }
 0x82b   : > { %v1596_v4 = vadd.f32 %v1595_v62, %v1594_v41  ;;  %v5493_v41 = vld [vmem:[%s9209_s2 + $0x10] sm:$0xff]  ;;  %v5494_v62 = vld [vmem:[%s9209_s2 + $0x18] sm:$0xff] }
 0x82d   : > { %v1597_v30 = vrot.slane %v1596_v4, 1 }
 0x82f   : > { %v1598_v50 = vadd.f32 %v1597_v30, %v1596_v4  ;;  %v5496_v4 = vld [vmem:[%s9209_s2 + $0x28] sm:$0xff]  ;;  %v1729_v30 = vpop.permute.xlu1 %1728 }
 0x831   : > { %v1606_v23 = vmul.f32 %v6633_v20, %v1598_v50  ;;  %v1734_v50 = vpop.permute.xlu2 %1733 }
 0x833   : > { %v1607_v32 = vsub.f32 %v1573_v34, %v1606_v23  ;;  %v1608_v56 = vsub.f32 %v1574_v17, %v1606_v23  ;;  %v1609_v9 = vsub.f32 %v1575_v35, %v1606_v23  ;;  %v1610_v40 = vsub.f32 %v1576_v31, %v1606_v23 }
 0x835   : > { %v1611_v21 = vmul.f32 %v1607_v32, %v1607_v32  ;;  %v1612_v48 = vmul.f32 %v1608_v56, %v1608_v56  ;;  %v1613_v57 = vmul.f32 %v1609_v9, %v1609_v9  ;;  %v1614_v53 = vmul.f32 %v1610_v40, %v1610_v40 }
 0x837   : > { %v1615_v2 = vsel %vm1585_vm8, %v1611_v21, 0.0  ;;  %v1616_v3 = vsel %vm1585_vm8, %v1612_v48, 0.0  ;;  %v1618_v54 = vsel %vm1585_vm8, %v1613_v57, 0.0  ;;  %v1620_v13 = vsel %vm1585_vm8, %v1614_v53, 0.0  ;;  %v1744_v23 = vpop.permute.xlu1 %1743 }
 0x838   : > { %v1617_v25 = vadd.f32 %v1616_v3, %v1615_v2 }
 0x83a   : > { %v1619_v11 = vadd.f32 %v1618_v54, %v1617_v25 }
 0x83c   : > { %v1621_v27 = vadd.f32 %v1620_v13, %v1619_v11 }
 0x83e   : > { %v1622_v45 = vrot.slane %v1621_v27, 4 }
 0x840   : > { %v1623_v15 = vadd.f32 %v1622_v45, %v1621_v27 }
 0x842   : > { %v1624_v51 = vrot.slane %v1623_v15, 2 }
 0x844   : > { %v1625_v37 = vadd.f32 %v1624_v51, %v1623_v15 }
 0x846   : > { %v1626_v33 = vrot.slane %v1625_v37, 1 }
 0x848   : > { %v1627_v43 = vadd.f32 %v1626_v33, %v1625_v37 }
 0x84a   : > { %v1628_v0 = vmul.f32 %v1627_v43, %v6633_v20 }
 0x84c   : > { %v1629_v8 = vadd.f32 1e-12, %v1628_v0 }
 0x84e   : > { %5551 = vrsqrt.f32 %v1629_v8  ;;  %vm1636_vm11 = vweird.f32 %v1629_v8 }
 0x854   : > { %v5552_v38 = vpop.eup %5551 }
 0x855   : > { %v1631_v12 = vmul.f32 %v5552_v38, %v1629_v8  ;;  %vm1637_vm10 = vweird.f32 %v5552_v38 }
 0x856   : > { %vm1638_vm12 = vmor %vm1636_vm11, %vm1637_vm10 }
 0x857   : > { %v1632_v7 = vmul.f32 %v5552_v38, %v1631_v12 }
 0x859   : > { %v1633_v14 = vmul.f32 0.5, %v1632_v7 }
 0x85b   : > { %v1634_v55 = vsub.f32 1.5, %v1633_v14 }
 0x85d   : > { %v1635_v6 = vmul.f32 %v5552_v38, %v1634_v55 }
 0x85f   : > { %v1639_v16 = vsel %vm1638_vm12, %v5552_v38, %v1635_v6 }
 0x860   : > { %v1643_v26 = vmul.f32 %v1639_v16, %v1610_v40  ;;  %v1642_v34 = vmul.f32 %v1639_v16, %v1609_v9  ;;  %v1641_v46 = vmul.f32 %v1639_v16, %v1608_v56  ;;  %v1640_v17 = vmul.f32 %v1639_v16, %v1607_v32  ;;  %v1739_v32 = vpop.permute.xlu0 %1738  ;;  %v6685_v56 = vpop.permute.xlu2 %1748 }
 0x861   : > { %v6687_v9 = vpop.permute.xlu1 %1758 }
 0x862   : > { %v1667_v1 = vmul.f32 %v1662_v19, %v1643_v26  ;;  %v1666_v35 = vmul.f32 %v1657_v63, %v1642_v34  ;;  %v1665_v61 = vmul.f32 %v1652_v10, %v1641_v46  ;;  %v1664_v29 = vmul.f32 %v1647_v58, %v1640_v17 }
 0x864   : > { %v6641_v44 = vadd.f32 %v1686_v24, %v1667_v1  ;;  %v6643_v47 = vadd.f32 %v1681_v18, %v1666_v35  ;;  %v6645_v59 = vadd.f32 %v1676_v36, %v1665_v61  ;;  %v6649_v5 = vadd.f32 %v1671_v28, %v1664_v29 }
 0x866   : > { %9292 = vst [vmem:[#allocation4_spill] sm:$0xff] %v6641_v44  ;;  %v1709_v31 = vpack.c.bf16 %v6641_v44, %v6643_v47  ;;  %v1708_v60 = vpack.c.bf16 %v6645_v59, %v6649_v5 }
 0x867   : > { %9293 = vst [vmem:[#allocation5_spill] sm:$0xff] %v6643_v47 }
 0x868   : > { %9294 = vst [vmem:[#allocation6_spill] sm:$0xff] %v6645_v59  ;;  %1877 = vmatpush.bf16.msra.mxu0 %v1709_v31  ;;  %5511 = vmatpush.bf16.msra.mxu1 %v1709_v31  ;;  %v6689_v40 = vpop.permute.xlu0 %1753  ;;  %v6691_v21 = vpop.permute.xlu2 %1763 }
 0x869   : > { %9295 = vst [vmem:[#allocation7_spill] sm:$0xff] %v6649_v5  ;;  %v6693_v48 = vpop.permute.xlu1 %1773 }
 0x86c   : > { %1878 = vmatpush.bf16.msra.mxu0 %v1708_v60  ;;  %5512 = vmatpush.bf16.msra.mxu1 %v1708_v60 }
 0x86f   : > { %5331 = vmatmul.msk.bf16.vlgmr.msra.gmra.mxu0 %vm9257_vm13, %v5491_v42  ;;  %5337 = vmatmul.msk.bf16.vlgmr.msra.gmra.mxu1 %vm9257_vm13, %v5497_v52 }
 0x870   : > { %v6695_v57 = vpop.permute.xlu0 %1768  ;;  %v6697_v53 = vpop.permute.xlu2 %1778 }
 0x871   : > { %v1789_v2 = vpop.permute.xlu1 %1788 }
 0x878   : > { %v6709_v45 = vpop.permute.xlu0 %1783  ;;  %v1794_v15 = vpop.permute.xlu2 %1793 }
 0x87f   : > { %5332 = vmatmul.msk.bf16.gmra.mxu0 %vm9257_vm13, %v5492_v49  ;;  %5338 = vmatmul.msk.bf16.gmra.mxu1 %vm9257_vm13, %v5498_v39 }
 0x880   : > { %v1799_v12 = vpop.permute.xlu0 %1798 }
 0x88f   : > { %5333 = vmatmul.msk.bf16.gmra.mxu0 %vm9257_vm13, %v5493_v41 }
 0x89f   : > { %5334 = vmatmul.msk.bf16.gmra.mxu0 %vm9257_vm13, %v5494_v62 }
 0x8af   : > { %5335 = vmatmul.msk.bf16.gmra.mxu0 %vm9257_vm13, %v5495_v22  ;;  %v1804_v22 = vpop.permute.xlu1 %1803 }
 0x8bf   : > { %5336 = vmatmul.msk.bf16.gmra.mxu0 %vm9257_vm13, %v5496_v4 }
 0x8ec   : > { %v1880_v3 = vpop.f32.mrf.mxu0  ;;  %v1910_v25 = vpop.f32.mrf.mxu1 }
 0x8ed   : > { %v6699_v54 = vadd.f32 %v1880_v3, %v1729_v30  ;;  %v6701_v11 = vadd.f32 %v1910_v25, %v1789_v2 }
 0x8ef   : > { %9296 = vst [vmem:[#allocation8_spill] sm:$0xff] %v6699_v54  ;;  %v6704_v13 = vmul.f32 0.70710677, %v6699_v54  ;;  %v6707_v27 = vmul.f32 0.70710677, %v6701_v11 }
 0x8f1   : > { %9297 = vst [vmem:[#allocation9_spill] sm:$0xff] %v6704_v13  ;;  %v1952_v51 = vmul.f32 %v6704_v13, %v6704_v13  ;;  %v2432_v37 = vmul.f32 %v6707_v27, %v6707_v27 }
 0x8f3   : > { %v6717_v8 = vmin.f32 %v1952_v51, 16.0  ;;  %v6719_v58 = vmin.f32 %v2432_v37, 16.0 }
 0x8f4   : > { %v1882_v33 = vpop.f32.mrf.mxu0  ;;  %v1912_v43 = vpop.f32.mrf.mxu1 }
 0x8f5   : > { %v6715_v0 = vadd.f32 %v1912_v43, %v1794_v15  ;;  %v1954_v7 = vmul.f32 2.1237322e-06, %v6717_v8  ;;  %v2434_v19 = vmul.f32 2.1237322e-06, %v6719_v58  ;;  %v2445_v63 = vmul.f32 3.8918573e-05, %v6719_v58 }
 0x8f6   : > { %v6735_v26 = vadd.f32 %v1882_v33, %v1734_v50 }
 0x8f7   : > { %v6722_v10 = vmul.f32 0.70710677, %v6715_v0  ;;  %v1955_v46 = vadd.f32 0.00028619796, %v1954_v7  ;;  %v2435_v17 = vadd.f32 0.00028619796, %v2434_v19 }
 0x8f8   : > { %9298 = vst [vmem:[#allocation10_spill] sm:$0xff] %v6735_v26  ;;  %v2446_v61 = vadd.f32 0.001143296, %v2445_v63  ;;  %v6745_v24 = vmul.f32 0.70710677, %v6735_v26 }
 0x8f9   : > { %v2472_v38 = vmul.f32 %v6722_v10, %v6722_v10  ;;  %v1956_v36 = vmul.f32 %v1955_v46, %v6717_v8  ;;  %v2436_v60 = vmul.f32 %v2435_v17, %v6719_v58 }
 0x8fa   : > { %9299 = vst [vmem:[#allocation11_spill] sm:$0xff] %v6745_v24  ;;  %v2447_v41 = vmul.f32 %v2446_v61, %v6719_v58  ;;  %v1992_v4 = vmul.f32 %v6745_v24, %v6745_v24 }
 0x8fb   : > { %v6728_v14 = vmin.f32 %v2472_v38, 16.0  ;;  %v2437_v25 = vadd.f32 0.0036580483, %v2436_v60 }
 0x8fc   : > { %v1885_v18 = vpop.f32.mrf.mxu0  ;;  %v1915_v55 = vpop.f32.mrf.mxu1  ;;  %v2448_v51 = vadd.f32 0.014752088, %v2447_v41  ;;  %v6767_v33 = vmin.f32 %v1992_v4, 16.0 }
 0x8fd   : > { %v6731_v6 = vadd.f32 %v1885_v18, %v1739_v32  ;;  %v6733_v16 = vadd.f32 %v1915_v55, %v1799_v12  ;;  %v2474_v34 = vmul.f32 2.1237322e-06, %v6728_v14  ;;  %v1957_v32 = vadd.f32 0.0036580483, %v1956_v36 }
 0x8fe   : > { %v2438_v18 = vmul.f32 %v2437_v25, %v6719_v58  ;;  %v2449_v46 = vmul.f32 %v2448_v51, %v6719_v58  ;;  %v1994_v60 = vmul.f32 2.1237322e-06, %v6767_v33 }
 0x8ff   : > { %v2475_v1 = vadd.f32 0.00028619796, %v2474_v34  ;;  %v6739_v35 = vmul.f32 0.70710677, %v6731_v6  ;;  %v6742_v29 = vmul.f32 0.70710677, %v6733_v16  ;;  %v1958_v12 = vmul.f32 %v1957_v32, %v6717_v8 }
 0x900   : > { %v2450_v4 = vadd.f32 0.112945676, %v2449_v46 }
 0x901   : > { %v2032_v28 = vmul.f32 %v6739_v35, %v6739_v35  ;;  %v2512_v31 = vmul.f32 %v6742_v29, %v6742_v29  ;;  %v2476_v42 = vmul.f32 %v2475_v1, %v6728_v14  ;;  %v6798_v41 = vadd.f32 0.05243302, %v1958_v12 }
 0x902   : > { %v2451_v46 = vmul.f32 %v2450_v4, %v6719_v58 }
 0x903   : > { %v6754_v52 = vmin.f32 %v2032_v28, 16.0  ;;  %v6757_v62 = vmin.f32 %v2512_v31, 16.0  ;;  %v2477_v15 = vadd.f32 0.0036580483, %v2476_v42 }
 0x904   : > { %v1887_v49 = vpop.f32.mrf.mxu0  ;;  %v1917_v39 = vpop.f32.mrf.mxu1 }
 0x905   : > { %v2034_v30 = vmul.f32 2.1237322e-06, %v6754_v52  ;;  %v6762_v50 = vadd.f32 %v1887_v49, %v1744_v23  ;;  %v2514_v2 = vmul.f32 2.1237322e-06, %v6757_v62  ;;  %v6765_v3 = vadd.f32 %v1917_v39, %v1804_v22 }
 0x906   : > { %v2525_v19 = vmul.f32 3.8918573e-05, %v6757_v62  ;;  %v2478_v55 = vmul.f32 %v2477_v15, %v6728_v14  ;;  %v2439_v22 = vadd.f32 0.05243302, %v2438_v18  ;;  %v1995_v18 = vadd.f32 0.00028619796, %v1994_v60 }
 0x907   : > { %9300 = vst [vmem:[#allocation12_spill] sm:$0xff] %v6762_v50  ;;  %v2515_v37 = vadd.f32 0.00028619796, %v2514_v2  ;;  %v2035_v43 = vadd.f32 0.00028619796, %v2034_v30 }
 0x908   : > { %v6770_v38 = vmul.f32 0.70710677, %v6762_v50  ;;  %v6775_v7 = vmul.f32 0.70710677, %v6765_v3  ;;  %v2526_v28 = vadd.f32 0.001143296, %v2525_v19 }
 0x909   : > { %v2516_v23 = vmul.f32 %v2515_v37, %v6757_v62  ;;  %v2036_v36 = vmul.f32 %v2035_v43, %v6754_v52  ;;  %v2479_v30 = vadd.f32 0.05243302, %v2478_v55  ;;  %v6806_v43 = vmul.f32 0.5, %v6701_v11 }
 0x90a   : > { %9301 = vst [vmem:[#allocation13_spill] sm:$0xff] %v6770_v38  ;;  %v2072_v63 = vmul.f32 %v6770_v38, %v6770_v38  ;;  %v2552_v1 = vmul.f32 %v6775_v7, %v6775_v7 }
 0x90b   : > { %v2517_v17 = vadd.f32 0.0036580483, %v2516_v23  ;;  %v2037_v15 = vadd.f32 0.0036580483, %v2036_v36 }
 0x90c   : > { %v1890_v34 = vpop.f32.mrf.mxu0  ;;  %v6789_v31 = vmin.f32 %v2072_v63, 16.0  ;;  %v6793_v49 = vmin.f32 %v2552_v1, 16.0  ;;  %v2480_v1 = vmul.f32 %v2479_v30, %v6728_v14 }
 0x90d   : > { %v6786_v61 = vadd.f32 %v1890_v34, %v6685_v56  ;;  %v2518_v42 = vmul.f32 %v2517_v17, %v6757_v62  ;;  %v2527_v56 = vmul.f32 %v2526_v28, %v6757_v62  ;;  %v2440_v17 = vmul.f32 %v2439_v22, %v6719_v58 }
 0x90e   : > { %v2074_v32 = vmul.f32 2.1237322e-06, %v6789_v31  ;;  %v2554_v2 = vmul.f32 2.1237322e-06, %v6793_v49  ;;  %v2565_v34 = vmul.f32 3.8918573e-05, %v6793_v49  ;;  %v2038_v36 = vmul.f32 %v2037_v15, %v6754_v52 }
 0x90f   : > { %9302 = vst [vmem:[#allocation14_spill] sm:$0xff] %v6786_v61  ;;  %v6796_v39 = vmul.f32 0.70710677, %v6786_v61  ;;  %v2519_v51 = vadd.f32 0.05243302, %v2518_v42  ;;  %v1996_v22 = vmul.f32 %v1995_v18, %v6767_v33 }
 0x910   : > { %v2528_v37 = vadd.f32 0.014752088, %v2527_v56  ;;  %v2075_v12 = vadd.f32 0.00028619796, %v2074_v32  ;;  %v2555_v23 = vadd.f32 0.00028619796, %v2554_v2 }
 0x911   : > { %v2112_v25 = vmul.f32 %v6796_v39, %v6796_v39  ;;  %v2566_v56 = vadd.f32 0.001143296, %v2565_v34  ;;  %v2520_v32 = vmul.f32 %v2519_v51, %v6757_v62  ;;  %v2441_v15 = vadd.f32 0.18741608, %v2440_v17 }
 0x912   : > { %v2529_v55 = vmul.f32 %v2528_v37, %v6757_v62  ;;  %v2556_v28 = vmul.f32 %v2555_v23, %v6793_v49  ;;  %v2076_v2 = vmul.f32 %v2075_v12, %v6789_v31  ;;  %v2452_v23 = vadd.f32 0.4994258, %v2451_v46 }
 0x913   : > { %v6808_v19 = vmin.f32 %v2112_v25, 16.0  ;;  %v2481_v20 = vadd.f32 0.18741608, %v2480_v1  ;;  %v2567_v34 = vmul.f32 %v2566_v56, %v6793_v49  ;;  %v2521_v18 = vadd.f32 0.18741608, %v2520_v32 }
 0x914   : > { %v1892_v63 = vpop.f32.mrf.mxu0  ;;  %v2530_v60 = vadd.f32 0.112945676, %v2529_v55  ;;  %v2557_v4 = vadd.f32 0.0036580483, %v2556_v28  ;;  %v2039_v55 = vadd.f32 0.05243302, %v2038_v36  ;;  %v2453_v1 = vmul.f32 %v2452_v23, %v6719_v58 }
 0x915   : > { %v2114_v11 = vmul.f32 2.1237322e-06, %v6808_v19  ;;  %v6819_v42 = vadd.f32 %v1892_v63, %v6689_v40  ;;  %v2077_v28 = vadd.f32 0.0036580483, %v2076_v2  ;;  %v1997_v36 = vadd.f32 0.0036580483, %v1996_v22 }
 0x916   : > { %v2531_v37 = vmul.f32 %v2530_v60, %v6757_v62  ;;  %v2558_v40 = vmul.f32 %v2557_v4, %v6793_v49  ;;  %v2442_v60 = vmul.f32 %v2441_v15, %v6719_v58  ;;  %v2482_v4 = vmul.f32 %v2481_v20, %v6728_v14 }
 0x917   : > { %9303 = vst [vmem:[#allocation15_spill] sm:$0xff] %v6819_v42  ;;  %v2115_v25 = vadd.f32 0.00028619796, %v2114_v11  ;;  %v6825_v30 = vmul.f32 0.70710677, %v6819_v42  ;;  %v2040_v56 = vmul.f32 %v2039_v55, %v6754_v52  ;;  %v6849_v58 = vadd.f32 1.0, %v2453_v1 }
 0x918   : > { %v2532_v12 = vadd.f32 0.4994258, %v2531_v37  ;;  %v2559_v44 = vadd.f32 0.05243302, %v2558_v40  ;;  %v2568_v37 = vadd.f32 0.014752088, %v2567_v34  ;;  %v2522_v40 = vmul.f32 %v2521_v18, %v6757_v62 }
 0x919   : > { %9304 = vst [vmem:[#allocation16_spill] sm:$0xff] %v6825_v30  ;;  %v2116_v63 = vmul.f32 %v2115_v25, %v6808_v19  ;;  %v2152_v51 = vmul.f32 %v6825_v30, %v6825_v30  ;;  %v2443_v15 = vadd.f32 1.1283791, %v2442_v60  ;;  %v6857_v55 = vmul.f32 0.5, %v6715_v0 }
 0x91a   : > { %v2533_v17 = vmul.f32 %v2532_v12, %v6757_v62  ;;  %v2560_v20 = vmul.f32 %v2559_v44, %v6793_v49  ;;  %v6860_v62 = vmul.f32 0.5, %v6733_v16  ;;  %v2041_v12 = vadd.f32 0.18741608, %v2040_v56 }
 0x91b   : > { %v2117_v11 = vadd.f32 0.0036580483, %v2116_v63  ;;  %v6833_v47 = vmin.f32 %v2152_v51, 16.0  ;;  %v2078_v63 = vmul.f32 %v2077_v28, %v6789_v31  ;;  %v2483_v51 = vadd.f32 1.1283791, %v2482_v4 }
 0x91c   : > { %v1895_v46 = vpop.f32.mrf.mxu0  ;;  %v6844_v2 = vadd.f32 1.0, %v2533_v17  ;;  %v2569_v18 = vmul.f32 %v2568_v37, %v6793_v49  ;;  %v6868_v28 = vmul.f32 %v6798_v41, %v6717_v8  ;;  %v6872_v0 = vmul.f32 %v1997_v36, %v6767_v33 }
 0x91d   : > { %v6840_v25 = vadd.f32 %v1895_v46, %v6687_v9  ;;  %v2154_v32 = vmul.f32 2.1237322e-06, %v6833_v47  ;;  %v2118_v23 = vmul.f32 %v2117_v11, %v6808_v19  ;;  %v2523_v11 = vadd.f32 1.1283791, %v2522_v40 }
 0x91e   : > { %5553 = vrcp.f32 %v6844_v2  ;;  %v2079_v16 = vadd.f32 0.05243302, %v2078_v63  ;;  %v2561_v17 = vadd.f32 0.18741608, %v2560_v20  ;;  %v6877_v4 = vmul.f32 %v2443_v15, %v6707_v27 }
 0x91f   : > { %v2155_v22 = vadd.f32 0.00028619796, %v2154_v32  ;;  %v6853_v9 = vmul.f32 0.70710677, %v6840_v25  ;;  %v2119_v46 = vadd.f32 0.05243302, %v2118_v23  ;;  %5555 = vrcp.f32 %v6849_v58 }
 0x920   : > { %v6880_v56 = vmul.f32 %v2483_v51, %v6722_v10  ;;  %v6883_v41 = vmul.f32 0.5, %v6765_v3  ;;  %v6887_v36 = vmul.f32 %v2041_v12, %v6754_v52  ;;  %v2570_v23 = vadd.f32 0.112945676, %v2569_v18 }
 0x921   : > { %v2156_v34 = vmul.f32 %v2155_v22, %v6833_v47  ;;  %v2192_v44 = vmul.f32 %v6853_v9, %v6853_v9  ;;  %v2524_v20 = vmul.f32 %v2523_v11, %v6742_v29  ;;  %v2120_v27 = vmul.f32 %v2119_v46, %v6808_v19 }
 0x922   : > { %v2080_v3 = vmul.f32 %v2079_v16, %v6789_v31  ;;  %v2571_v51 = vmul.f32 %v2570_v23, %v6793_v49  ;;  %vm2540_vm14 = vweird.f32 %v6844_v2  ;;  %v2546_v29 = vand.u32 2147483648, %v6844_v2 }
 0x923   : > { %v6874_v1 = vmin.f32 %v2192_v44, 16.0  ;;  %v2157_v40 = vadd.f32 0.0036580483, %v2156_v34  ;;  %v2544_v59 = vand.u32 2147483647, %v6844_v2  ;;  %vm2460_vm11 = vweird.f32 %v6849_v58 }
 0x924   : > { %v1897_v60 = vpop.f32.mrf.mxu0  ;;  %v5554_v37 = vpop.eup %5553  ;;  %v2572_v46 = vadd.f32 0.4994258, %v2571_v51  ;;  %v2547_v54 = vor.u32 1.1754944e-38, %v2546_v29  ;;  %v2464_v29 = vand.u32 2147483647, %v6849_v58 }
 0x925   : > { %v1898_v32 = vadd.f32 %v1897_v60, %v6691_v21  ;;  %v2194_v63 = vmul.f32 2.1237322e-06, %v6874_v1  ;;  %v2536_v10 = vmul.f32 %v5554_v37, %v6844_v2  ;;  %v2562_v21 = vmul.f32 %v2561_v17, %v6793_v49  ;;  %v6898_v12 = vpop.eup %5555 }
 0x926   : > { %v2158_v18 = vmul.f32 %v2157_v40, %v6833_v47  ;;  %v2456_v16 = vmul.f32 %v6898_v12, %v6849_v58  ;;  %v2121_v17 = vadd.f32 0.18741608, %v2120_v27  ;;  %vm2541_vm15 = vweird.f32 %v5554_v37 }
 0x927   : > { %v6892_v22 = vmul.f32 0.70710677, %v1898_v32  ;;  %v2195_v15 = vadd.f32 0.00028619796, %v2194_v63  ;;  %v2537_v44 = vsub.f32 1.0, %v2536_v10  ;;  %v2573_v26 = vmul.f32 %v2572_v46, %v6793_v49  ;;  %vm2542_vm9 = vmor %vm2540_vm14, %vm2541_vm15 }
 0x928   : > { %v2563_v23 = vadd.f32 1.1283791, %v2562_v21  ;;  %v2159_v24 = vadd.f32 0.05243302, %v2158_v18  ;;  %v2457_v21 = vsub.f32 1.0, %v2456_v16  ;;  %vm2545_vm10 = vcmp.eq.f32.partialorder %v2544_v59, 8.507059e+37 }
 0x929   : > { %v2232_v34 = vmul.f32 %v6892_v22, %v6892_v22  ;;  %v2196_v11 = vmul.f32 %v2195_v15, %v6874_v1  ;;  %v2538_v63 = vmul.f32 %v5554_v37, %v2537_v44  ;;  %v2122_v44 = vmul.f32 %v2121_v17, %v6808_v19 }
 0x92a   : > { %v6922_v46 = vadd.f32 0.18741608, %v2080_v3  ;;  %v6930_v18 = vmul.f32 %v2563_v23, %v6775_v7  ;;  %v2160_v16 = vmul.f32 %v2159_v24, %v6833_v47  ;;  %v2458_v59 = vmul.f32 %v6898_v12, %v2457_v21 }
 0x92b   : > { %v6908_v60 = vmin.f32 %v2232_v34, 16.0  ;;  %v2197_v5 = vadd.f32 0.0036580483, %v2196_v11  ;;  %v2539_v51 = vadd.f32 %v5554_v37, %v2538_v63  ;;  %v6917_v34 = vadd.f32 1.0, %v2573_v26 }
 0x92c   : > { %v1900_v10 = vpop.f32.mrf.mxu0  ;;  %v6937_v3 = vadd.f32 1.1283791, %v2122_v44  ;;  %vm2461_vm12 = vweird.f32 %v6898_v12  ;;  %vm6950_vm14 = vcmp.eq.f32.partialorder %v2464_v29, 8.507059e+37  ;;  %v6954_v44 = vadd.f32 0.18741608, %v2160_v16 }
 0x92d   : > { %v2234_v40 = vmul.f32 2.1237322e-06, %v6908_v60  ;;  %v1901_v15 = vadd.f32 %v1900_v10, %v6695_v57  ;;  %v2198_v27 = vmul.f32 %v2197_v5, %v6874_v1  ;;  %v2543_v49 = vsel %vm2542_vm9, %v5554_v37, %v2539_v51 }
 0x92e   : > { %5557 = vrcp.f32 %v6917_v34  ;;  %v2548_v26 = vsel %vm2545_vm10, %v2547_v54, %v2543_v49  ;;  %v6934_v37 = vmul.f32 0.5, %v6840_v25  ;;  %v6943_v10 = vmul.f32 0.5, %v1898_v32  ;;  %vm6975_vm10 = vmor %vm2460_vm11, %vm2461_vm12 }
 0x92f   : > { %v2235_v11 = vadd.f32 0.00028619796, %v2234_v40  ;;  %v6920_v50 = vmul.f32 0.70710677, %v1901_v15  ;;  %v2199_v57 = vadd.f32 0.05243302, %v2198_v27  ;;  %v2549_v23 = vmul.f32 %v2548_v26, %v2524_v20 }
 0x930   : > { %v2584_v51 = vand.u32 2147483647, %v6917_v34  ;;  %v2459_v32 = vadd.f32 %v6898_v12, %v2458_v59  ;;  %v2466_v20 = vand.u32 2147483648, %v6849_v58  ;;  %vm2580_vm15 = vweird.f32 %v6917_v34 }
 0x931   : > { %v2236_v5 = vmul.f32 %v2235_v11, %v6908_v60  ;;  %v2272_v2 = vmul.f32 %v6920_v50, %v6920_v50  ;;  %v2200_v54 = vmul.f32 %v2199_v57, %v6874_v1  ;;  %v2485_v11 = vmul.f32 3.8918573e-05, %v6728_v14 }
 0x932   : > { %v6959_v57 = vmul.f32 0.5, %v1901_v15  ;;  %v5353_v26 = vclamps-f32 %v2549_v23, 1.0  ;;  %v2586_v29 = vand.u32 2147483648, %v6917_v34  ;;  %vm6967_vm9 = vcmp.eq.f32.partialorder %v2584_v51, 8.507059e+37 }
 0x933   : > { %v2237_v17 = vadd.f32 0.0036580483, %v2236_v5  ;;  %v6939_v63 = vmin.f32 %v2272_v2, 16.0  ;;  %v2201_v16 = vadd.f32 0.18741608, %v2200_v54  ;;  %v2463_v54 = vsel %vm6975_vm10, %v6898_v12, %v2459_v32 }
 0x934   : > { %v1902_v7 = vpop.f32.mrf.mxu0  ;;  %v5558_v21 = vpop.eup %5557  ;;  %v2587_v42 = vor.u32 1.1754944e-38, %v2586_v29  ;;  %v2467_v38 = vor.u32 1.1754944e-38, %v2466_v20  ;;  %v2606_v32 = vadd.f32 1.0, %v5353_v26 }
 0x935   : > { %v2238_v24 = vmul.f32 %v2237_v17, %v6908_v60  ;;  %v2274_v25 = vmul.f32 2.1237322e-06, %v6939_v63  ;;  %v1903_v40 = vadd.f32 %v1902_v7, %v6693_v48  ;;  %v2576_v48 = vmul.f32 %v5558_v21, %v6917_v34 }
 0x936   : > { %vm2581_vm13 = vweird.f32 %v5558_v21  ;;  %v2468_v29 = vsel %vm6950_vm14, %v2467_v38, %v2463_v54  ;;  %v2205_v54 = vmul.f32 3.8918573e-05, %v6874_v1 }
 0x937   : > { %v2239_v49 = vadd.f32 0.05243302, %v2238_v24  ;;  %v2275_v5 = vadd.f32 0.00028619796, %v2274_v25  ;;  %v6962_v2 = vmul.f32 0.70710677, %v1903_v40  ;;  %vm2582_vm11 = vmor %vm2580_vm15, %vm2581_vm13 }
 0x938   : > { %v2577_v17 = vsub.f32 1.0, %v2576_v48  ;;  %v2486_v24 = vadd.f32 0.001143296, %v2485_v11  ;;  %v2125_v25 = vmul.f32 3.8918573e-05, %v6808_v19  ;;  %v2202_v11 = vmul.f32 %v2201_v16, %v6874_v1 }
 0x939   : > { %v2276_v59 = vmul.f32 %v2275_v5, %v6939_v63  ;;  %v2312_v23 = vmul.f32 %v6962_v2, %v6962_v2  ;;  %v2240_v51 = vmul.f32 %v2239_v49, %v6908_v60  ;;  %v7006_v16 = vmul.f32 0.5, %v1903_v40 }
 0x93a   : > { %v2578_v48 = vmul.f32 %v5558_v21, %v2577_v17  ;;  %v2487_v61 = vmul.f32 %v2486_v24, %v6728_v14  ;;  %v2126_v24 = vadd.f32 0.001143296, %v2125_v25  ;;  %v2203_v7 = vadd.f32 1.1283791, %v2202_v11 }
 0x93b   : > { %v2277_v5 = vadd.f32 0.0036580483, %v2276_v59  ;;  %v6986_v58 = vmin.f32 %v2312_v23, 16.0  ;;  %v2241_v59 = vadd.f32 0.18741608, %v2240_v51 }
 0x93c   : > { %v1905_v13 = vpop.f32.mrf.mxu0  ;;  %v2579_v12 = vadd.f32 %v5558_v21, %v2578_v48  ;;  %v2488_v20 = vadd.f32 0.014752088, %v2487_v61  ;;  %v2469_v61 = vmul.f32 %v2468_v29, %v6877_v4  ;;  %v2127_v51 = vmul.f32 %v2126_v24, %v6808_v19 }
 0x93d   : > { %v2278_v30 = vmul.f32 %v2277_v5, %v6939_v63  ;;  %v6991_v15 = vadd.f32 %v1905_v13, %v6697_v53  ;;  %v2314_v49 = vmul.f32 2.1237322e-06, %v6986_v58  ;;  %v2206_v4 = vadd.f32 0.001143296, %v2205_v54 }
 0x93e   : > { %v2583_v23 = vsel %vm2582_vm11, %v5558_v21, %v2579_v12  ;;  %v2489_v26 = vmul.f32 %v2488_v20, %v6728_v14  ;;  %v2622_v29 = vmul.f32 %v2606_v32, %v6860_v62  ;;  %v5351_v20 = vclamps-f32 %v2469_v61, 1.0 }
 0x93f   : > { %v2279_v17 = vadd.f32 0.05243302, %v2278_v30  ;;  %v2315_v5 = vadd.f32 0.00028619796, %v2314_v49  ;;  %v7000_v53 = vmul.f32 0.70710677, %v6991_v15  ;;  %v2588_v13 = vsel %vm6967_vm9, %v2587_v42, %v2583_v23 }
 0x940   : > { %v2589_v38 = vmul.f32 %v2588_v13, %v6930_v18  ;;  %v2490_v21 = vadd.f32 0.112945676, %v2489_v26  ;;  %v2242_v42 = vmul.f32 %v2241_v59, %v6908_v60  ;;  %v2207_v59 = vmul.f32 %v2206_v4, %v6874_v1 }
 0x941   : > { %v2280_v34 = vmul.f32 %v2279_v17, %v6939_v63  ;;  %v2316_v30 = vmul.f32 %v2315_v5, %v6986_v58  ;;  %v2352_v27 = vmul.f32 %v7000_v53, %v7000_v53 }
 0x942   : > { %v5354_v25 = vclamps-f32 %v2589_v38, 1.0  ;;  %v2491_v18 = vmul.f32 %v2490_v21, %v6728_v14  ;;  %v2243_v5 = vadd.f32 1.1283791, %v2242_v42  ;;  %v2128_v38 = vadd.f32 0.014752088, %v2127_v51 }
 0x943   : > { %v2317_v40 = vadd.f32 0.0036580483, %v2316_v30  ;;  %v7016_v48 = vmin.f32 %v2352_v27, 16.0  ;;  %v2281_v12 = vadd.f32 0.18741608, %v2280_v34  ;;  %v7031_v42 = vmul.f32 %v2203_v7, %v6853_v9 }
 0x944   : > { %v2607_v49 = vadd.f32 1.0, %v5354_v25  ;;  %v2492_v23 = vadd.f32 0.4994258, %v2491_v18  ;;  %v1907_v13 = vpop.f32.mrf.mxu0  ;;  %v2208_v54 = vadd.f32 0.014752088, %v2207_v59  ;;  %v2604_v51 = vadd.f32 1.0, %v5351_v20 }
 0x945   : > { %v2318_v17 = vmul.f32 %v2317_v40, %v6986_v58  ;;  %v2354_v11 = vmul.f32 2.1237322e-06, %v7016_v48  ;;  %v2365_v26 = vmul.f32 3.8918573e-05, %v7016_v48  ;;  %v7027_v62 = vadd.f32 %v1907_v13, %v6709_v45 }
 0x946   : > { %v2623_v24 = vmul.f32 %v2607_v49, %v6883_v41  ;;  %v2493_v27 = vmul.f32 %v2492_v23, %v6728_v14  ;;  %v2282_v32 = vmul.f32 %v2281_v12, %v6939_v63  ;;  %v2209_v14 = vmul.f32 %v2208_v54, %v6874_v1 }
 0x947   : > { %v2319_v30 = vadd.f32 0.05243302, %v2318_v17  ;;  %v2355_v34 = vadd.f32 0.00028619796, %v2354_v11  ;;  %v2366_v21 = vadd.f32 0.001143296, %v2365_v26  ;;  %v2129_v18 = vmul.f32 %v2128_v38, %v6808_v19 }
 0x948   : > { %v2635_v61 = vpack.c.bf16 %v2623_v24, %v2622_v29  ;;  %v7034_v25 = vadd.f32 1.0, %v2493_v27  ;;  %v7037_v40 = vmul.f32 0.70710677, %v7027_v62  ;;  %v7044_v9 = vmul.f32 0.5, %v6991_v15 }
 0x949   : > { %v2356_v41 = vmul.f32 %v2355_v34, %v7016_v48  ;;  %v2367_v45 = vmul.f32 %v2366_v21, %v7016_v48  ;;  %v2320_v4 = vmul.f32 %v2319_v30, %v6986_v58  ;;  %v7048_v12 = vmul.f32 %v2243_v5, %v6892_v22 }
 0x94a   : > { %2672 = vmatpush.bf16.msrb.mxu1 %v2635_v61  ;;  %5559 = vrcp.f32 %v7034_v25  ;;  %v2283_v49 = vadd.f32 1.1283791, %v2282_v32  ;;  %v2392_v29 = vmul.f32 %v7037_v40, %v7037_v40  ;;  %v7054_v11 = vmul.f32 %v2604_v51, %v6806_v43 }
 0x94b   : > { %v2357_v7 = vadd.f32 0.0036580483, %v2356_v41  ;;  %v2368_v20 = vadd.f32 0.014752088, %v2367_v45  ;;  %v2210_v23 = vadd.f32 0.112945676, %v2209_v14  ;;  %vm2500_vm13 = vweird.f32 %v7034_v25 }
 0x94c   : > { %v2245_v15 = vmul.f32 3.8918573e-05, %v6908_v60  ;;  %v7057_v59 = vmin.f32 %v2392_v29, 16.0  ;;  %v7060_v13 = vadd.f32 0.112945676, %v2129_v18  ;;  %v7068_v43 = vmul.f32 %v2283_v49, %v6920_v50 }
 0x94d   : > { %v2358_v17 = vmul.f32 %v2357_v7, %v7016_v48  ;;  %v2369_v24 = vmul.f32 %v2368_v20, %v7016_v48  ;;  %v7063_v22 = vmul.f32 3.8918573e-05, %v6754_v52  ;;  %v2321_v5 = vadd.f32 0.18741608, %v2320_v4 }
 0x94e   : > { %v2504_v38 = vand.u32 2147483647, %v7034_v25  ;;  %v2211_v30 = vmul.f32 %v2210_v23, %v6874_v1  ;;  %v2394_v34 = vmul.f32 2.1237322e-06, %v7057_v59  ;;  %v2405_v32 = vmul.f32 3.8918573e-05, %v7057_v59 }
 0x94f   : > { %v2359_v26 = vadd.f32 0.05243302, %v2358_v17  ;;  %v2370_v27 = vadd.f32 0.112945676, %v2369_v24  ;;  %v2285_v21 = vmul.f32 3.8918573e-05, %v6939_v63  ;;  %v2322_v29 = vmul.f32 %v2321_v5, %v6986_v58 }
 0x950   : > { %v5560_v61 = vpop.eup %5559  ;;  %v2212_v54 = vadd.f32 0.4994258, %v2211_v30  ;;  %v2246_v41 = vadd.f32 0.001143296, %v2245_v15  ;;  %v2506_v45 = vand.u32 2147483648, %v7034_v25  ;;  %vm2505_vm15 = vcmp.eq.f32.partialorder %v2504_v38, 8.507059e+37 }
 0x951   : > { %v2496_v51 = vmul.f32 %v5560_v61, %v7034_v25  ;;  %v2395_v14 = vadd.f32 0.00028619796, %v2394_v34  ;;  %v2371_v50 = vmul.f32 %v2370_v27, %v7016_v48  ;;  %v2360_v18 = vmul.f32 %v2359_v26, %v7016_v48 }
 0x952   : > { %v2406_v4 = vadd.f32 0.001143296, %v2405_v32  ;;  %v2286_v7 = vadd.f32 0.001143296, %v2285_v21  ;;  %v2213_v49 = vmul.f32 %v2212_v54, %v6874_v1  ;;  %v2247_v34 = vmul.f32 %v2246_v41, %v6908_v60 }
 0x953   : > { %v2497_v20 = vsub.f32 1.0, %v2496_v51  ;;  %v2396_v17 = vmul.f32 %v2395_v14, %v7057_v59  ;;  %v2372_v23 = vadd.f32 0.4994258, %v2371_v50  ;;  %vm2501_vm12 = vweird.f32 %v5560_v61 }
 0x954   : > { %v2407_v15 = vmul.f32 %v2406_v4, %v7057_v59  ;;  %v2287_v24 = vmul.f32 %v2286_v7, %v6939_v63  ;;  %v7083_v30 = vadd.f32 1.0, %v2213_v49  ;;  %v2361_v1 = vadd.f32 0.18741608, %v2360_v18  ;;  %vm2502_vm14 = vmor %vm2500_vm13, %vm2501_vm12 }
 0x955   : > { %v2498_v27 = vmul.f32 %v5560_v61, %v2497_v20  ;;  %v2397_v26 = vadd.f32 0.0036580483, %v2396_v17  ;;  %v2373_v32 = vmul.f32 %v2372_v23, %v7016_v48  ;;  %v2325_v50 = vmul.f32 3.8918573e-05, %v6986_v58 }
 0x956   : > { %v2408_v21 = vadd.f32 0.014752088, %v2407_v15  ;;  %v2288_v5 = vadd.f32 0.014752088, %v2287_v24  ;;  %5561 = vrcp.f32 %v7083_v30  ;;  %v2323_v4 = vadd.f32 1.1283791, %v2322_v29 }
 0x957   : > { %v2499_v54 = vadd.f32 %v5560_v61, %v2498_v27  ;;  %v2398_v51 = vmul.f32 %v2397_v26, %v7057_v59  ;;  %v7089_v14 = vadd.f32 1.0, %v2373_v32  ;;  %v2507_v41 = vor.u32 1.1754944e-38, %v2506_v45 }
 0x958   : > { %v2409_v7 = vmul.f32 %v2408_v21, %v7057_v59  ;;  %v2289_v18 = vmul.f32 %v2288_v5, %v6939_v63  ;;  %v2362_v17 = vmul.f32 %v2361_v1, %v7016_v48  ;;  %v2248_v24 = vadd.f32 0.014752088, %v2247_v34 }
 0x959   : > { %v2503_v49 = vsel %vm2502_vm14, %v5560_v61, %v2499_v54  ;;  %v2399_v20 = vadd.f32 0.05243302, %v2398_v51  ;;  %5563 = vrcp.f32 %v7089_v14  ;;  %v2326_v45 = vadd.f32 0.001143296, %v2325_v50 }
 0x95a   : > { %v2508_v23 = vsel %vm2505_vm15, %v2507_v41, %v2503_v49  ;;  %v2410_v15 = vadd.f32 0.112945676, %v2409_v7  ;;  %v2290_v27 = vadd.f32 0.112945676, %v2289_v18  ;;  %v7103_v32 = vmul.f32 %v2323_v4, %v6962_v2 }
 0x95b   : > { %v2509_v29 = vmul.f32 %v2508_v23, %v6880_v56  ;;  %v2400_v25 = vmul.f32 %v2399_v20, %v7057_v59  ;;  %v7106_v38 = vmul.f32 0.5, %v7027_v62  ;;  %v2131_v48 = vmul.f32 %v7060_v13, %v6808_v19 }
 0x95c   : > { %v7100_v26 = vpop.eup %5561  ;;  %v2411_v61 = vmul.f32 %v2410_v15, %v7057_v59  ;;  %v2291_v56 = vmul.f32 %v2290_v27, %v6939_v63  ;;  %v2327_v21 = vmul.f32 %v2326_v45, %v6986_v58  ;;  %v2363_v5 = vadd.f32 1.1283791, %v2362_v17 }
 0x95d   : > { %v5352_v34 = vclamps-f32 %v2509_v29, 1.0  ;;  %v2401_v1 = vadd.f32 0.18741608, %v2400_v25  ;;  %v2216_v2 = vmul.f32 %v7100_v26, %v7083_v30  ;;  %v2249_v51 = vmul.f32 %v2248_v24, %v6908_v60 }
 0x95e   : > { %v2412_v54 = vadd.f32 0.4994258, %v2411_v61  ;;  %v2292_v41 = vadd.f32 0.4994258, %v2291_v56  ;;  %v2328_v7 = vadd.f32 0.014752088, %v2327_v21  ;;  %v2364_v56 = vmul.f32 %v2363_v5, %v7000_v53 }
 0x95f   : > { %v5564_v62 = vpop.eup %5563  ;;  %v2605_v50 = vadd.f32 1.0, %v5352_v34  ;;  %v2402_v4 = vmul.f32 %v2401_v1, %v7057_v59  ;;  %v2384_v18 = vand.u32 2147483647, %v7089_v14  ;;  %v2217_v20 = vsub.f32 1.0, %v2216_v2 }
 0x960   : > { %v2376_v13 = vmul.f32 %v5564_v62, %v7089_v14  ;;  %v2413_v49 = vmul.f32 %v2412_v54, %v7057_v59  ;;  %v2386_v23 = vand.u32 2147483648, %v7089_v14  ;;  %v2293_v15 = vmul.f32 %v2292_v41, %v6939_v63 }
 0x961   : > { %v2621_v17 = vmul.f32 %v2605_v50, %v6857_v55  ;;  %v2329_v24 = vmul.f32 %v2328_v7, %v6986_v58  ;;  %v2403_v29 = vadd.f32 1.1283791, %v2402_v4  ;;  %v2224_v45 = vand.u32 2147483647, %v7083_v30 }
 0x962   : > { %v2377_v25 = vsub.f32 1.0, %v2376_v13  ;;  %v7124_v27 = vadd.f32 1.0, %v2413_v49  ;;  %v7128_v34 = vadd.f32 1.0, %v2293_v15  ;;  %v2218_v1 = vmul.f32 %v7100_v26, %v2217_v20 }
 0x963   : > { %v2634_v61 = vpack.c.bf16 %v2621_v17, %v7054_v11  ;;  %v2330_v59 = vadd.f32 0.112945676, %v2329_v24  ;;  %vm2381_vm9 = vweird.f32 %v5564_v62  ;;  %v2226_v63 = vand.u32 2147483648, %v7083_v30 }
 0x964   : > { %v2378_v55 = vmul.f32 %v5564_v62, %v2377_v25  ;;  %5565 = vrcp.f32 %v7124_v27  ;;  %vm2220_vm10 = vweird.f32 %v7083_v30  ;;  %vm2221_vm11 = vweird.f32 %v7100_v26 }
 0x965   : > { %2673 = vmatpush.bf16.msrb.mxu1 %v2634_v61  ;;  %5567 = vrcp.f32 %v7128_v34  ;;  %vm2380_vm13 = vweird.f32 %v7089_v14  ;;  %vm2385_vm12 = vcmp.eq.f32.partialorder %v2384_v18, 8.507059e+37  ;;  %v2331_v21 = vmul.f32 %v2330_v59, %v6986_v58  ;;  %vm2222_vm7 = vmor %vm2220_vm10, %vm2221_vm11 }
 0x966   : > { %v2379_v11 = vadd.f32 %v5564_v62, %v2378_v55  ;;  %v7140_v54 = vmul.f32 %v2403_v29, %v7037_v40  ;;  %vm2382_vm14 = vmor %vm2380_vm13, %vm2381_vm9  ;;  %v2387_v2 = vor.u32 1.1754944e-38, %v2386_v23  ;;  %v2219_v53 = vadd.f32 %v7100_v26, %v2218_v1 }
 0x967   : > { %vm2225_vm15 = vcmp.eq.f32.partialorder %v2224_v45, 8.507059e+37  ;;  %v2332_v50 = vadd.f32 0.4994258, %v2331_v21  ;;  %v2227_v30 = vor.u32 1.1754944e-38, %v2226_v63  ;;  %v2250_v4 = vadd.f32 0.112945676, %v2249_v51 }
 0x968   : > { %v2383_v5 = vsel %vm2382_vm14, %v5564_v62, %v2379_v11  ;;  %v2424_v7 = vand.u32 2147483647, %v7124_v27  ;;  %v2223_v14 = vsel %vm2222_vm7, %v7100_v26, %v2219_v53  ;;  %v2132_v13 = vadd.f32 0.4994258, %v2131_v48 }
 0x969   : > { %v2388_v41 = vsel %vm2385_vm12, %v2387_v2, %v2383_v5  ;;  %v2333_v40 = vmul.f32 %v2332_v50, %v6986_v58  ;;  %v2228_v20 = vsel %vm2225_vm15, %v2227_v30, %v2223_v14  ;;  %v2251_v17 = vmul.f32 %v2250_v4, %v6908_v60 }
 0x96a   : > { %v5566_v18 = vpop.eup %5565  ;;  %v2389_v49 = vmul.f32 %v2388_v41, %v2364_v56  ;;  %vm2420_vm9 = vweird.f32 %v7124_v27  ;;  %v2426_v51 = vand.u32 2147483648, %v7124_v27  ;;  %v2133_v15 = vmul.f32 %v2132_v13, %v6808_v19 }
 0x96b   : > { %v5568_v23 = vpop.eup %5567  ;;  %v2416_v62 = vmul.f32 %v5566_v18, %v7124_v27  ;;  %vm2300_vm7 = vweird.f32 %v7128_v34  ;;  %v7153_v48 = vadd.f32 1.0, %v2333_v40  ;;  %v2229_v29 = vmul.f32 %v2228_v20, %v7031_v42 }
 0x96c   : > { %v5349_v24 = vclamps-f32 %v2389_v49, 1.0  ;;  %v2296_v26 = vmul.f32 %v5568_v23, %v7128_v34  ;;  %v2252_v25 = vadd.f32 0.4994258, %v2251_v17  ;;  %v7156_v45 = vadd.f32 1.0, %v2133_v15 }
 0x96d   : > { %v2417_v58 = vsub.f32 1.0, %v2416_v62  ;;  %vm7158_vm10 = vcmp.eq.f32.partialorder %v2424_v7, 8.507059e+37  ;;  %v2304_v19 = vand.u32 2147483647, %v7128_v34  ;;  %5569 = vrcp.f32 %v7153_v48 }
 0x96e   : > { %v2297_v59 = vsub.f32 1.0, %v2296_v26  ;;  %vm2421_vm11 = vweird.f32 %v5566_v18  ;;  %v2306_v55 = vand.u32 2147483648, %v7128_v34  ;;  %v2253_v63 = vmul.f32 %v2252_v25, %v6908_v60 }
 0x96f   : > { %v2418_v1 = vmul.f32 %v5566_v18, %v2417_v58  ;;  %v2602_v56 = vadd.f32 1.0, %v5349_v24  ;;  %vm2301_vm13 = vweird.f32 %v5568_v23  ;;  %5571 = vrcp.f32 %v7156_v45  ;;  %vm2422_vm12 = vmor %vm2420_vm9, %vm2421_vm11 }
 0x970   : > { %v2298_v42 = vmul.f32 %v5568_v23, %v2297_v59  ;;  %v2427_v21 = vor.u32 1.1754944e-38, %v2426_v51  ;;  %v5345_v2 = vclamps-f32 %v2229_v29, 1.0  ;;  %v7167_v53 = vadd.f32 1.0, %v2253_v63  ;;  %vm2302_vm15 = vmor %vm2300_vm7, %vm2301_vm13 }
 0x971   : > { %v2419_v11 = vadd.f32 %v5566_v18, %v2418_v1  ;;  %vm2305_vm14 = vcmp.eq.f32.partialorder %v2304_v19, 8.507059e+37  ;;  %v2344_v50 = vand.u32 2147483647, %v7153_v48  ;;  %v2346_v30 = vand.u32 2147483648, %v7153_v48 }
 0x972   : > { %v2299_v5 = vadd.f32 %v5568_v23, %v2298_v42  ;;  %v2307_v4 = vor.u32 1.1754944e-38, %v2306_v55  ;;  %5573 = vrcp.f32 %v7167_v53  ;;  %v2165_v41 = vmul.f32 3.8918573e-05, %v6833_v47 }
 0x973   : > { %v2423_v60 = vsel %vm2422_vm12, %v5566_v18, %v2419_v11  ;;  %v5570_v7 = vpop.eup %5569  ;;  %v2618_v14 = vmul.f32 %v2602_v56, %v7044_v9  ;;  %vm2340_vm9 = vweird.f32 %v7153_v48  ;;  %v7183_v40 = vadd.f32 1.0, %v5345_v2 }
 0x974   : > { %v2428_v27 = vsel %vm7158_vm10, %v2427_v21, %v2423_v60  ;;  %v2303_v13 = vsel %vm2302_vm15, %v5568_v23, %v2299_v5  ;;  %v2336_v34 = vmul.f32 %v5570_v7, %v7153_v48  ;;  %vm7187_vm7 = vcmp.eq.f32.partialorder %v2344_v50, 8.507059e+37 }
 0x975   : > { %v2429_v49 = vmul.f32 %v2428_v27, %v7140_v54  ;;  %v2308_v18 = vsel %vm2305_vm14, %v2307_v4, %v2303_v13  ;;  %v7185_v20 = vpop.eup %5571  ;;  %v2347_v62 = vor.u32 1.1754944e-38, %v2346_v30  ;;  %v2264_v51 = vand.u32 2147483647, %v7167_v53 }
 0x976   : > { %v2266_v9 = vand.u32 2147483648, %v7167_v53  ;;  %v2337_v15 = vsub.f32 1.0, %v2336_v34  ;;  %v2136_v54 = vmul.f32 %v7185_v20, %v7156_v45  ;;  %v2144_v24 = vand.u32 2147483647, %v7156_v45 }
 0x977   : > { %v5350_v23 = vclamps-f32 %v2429_v49, 1.0  ;;  %v2309_v26 = vmul.f32 %v2308_v18, %v7068_v43  ;;  %vm2260_vm10 = vweird.f32 %v7167_v53  ;;  %v2166_v58 = vadd.f32 0.001143296, %v2165_v41 }
 0x978   : > { %v2046_v29 = vadd.f32 0.001143296, %v7063_v22  ;;  %v5574_v25 = vpop.eup %5573  ;;  %v2338_v59 = vmul.f32 %v5570_v7, %v2337_v15  ;;  %vm2341_vm11 = vweird.f32 %v5570_v7  ;;  %v2085_v19 = vmul.f32 3.8918573e-05, %v6789_v31 }
 0x979   : > { %v2603_v61 = vadd.f32 1.0, %v5350_v23  ;;  %v2256_v1 = vmul.f32 %v5574_v25, %v7167_v53  ;;  %vm7201_vm13 = vcmp.eq.f32.partialorder %v2264_v51, 8.507059e+37  ;;  %v2267_v63 = vor.u32 1.1754944e-38, %v2266_v9  ;;  %vm2342_vm12 = vmor %vm2340_vm9, %vm2341_vm11 }
 0x97a   : > { %v2146_v43 = vand.u32 2147483648, %v7156_v45  ;;  %v2167_v56 = vmul.f32 %v2166_v58, %v6833_v47  ;;  %v2339_v22 = vadd.f32 %v5570_v7, %v2338_v59  ;;  %v2137_v11 = vsub.f32 1.0, %v2136_v54 }
 0x97b   : > { %v2619_v42 = vmul.f32 %v2603_v61, %v7106_v38  ;;  %v2047_v21 = vmul.f32 %v2046_v29, %v6754_v52  ;;  %v5347_v2 = vclamps-f32 %v2309_v26, 1.0  ;;  %v2257_v5 = vsub.f32 1.0, %v2256_v1 }
 0x97c   : > { %v2168_v50 = vadd.f32 0.014752088, %v2167_v56  ;;  %v2086_v30 = vadd.f32 0.001143296, %v2085_v19  ;;  %v2343_v4 = vsel %vm2342_vm12, %v5570_v7, %v2339_v22  ;;  %vm2261_vm14 = vweird.f32 %v5574_v25 }
 0x97d   : > { %v2633_v60 = vpack.c.bf16 %v2619_v42, %v2618_v14  ;;  %v2048_v41 = vadd.f32 0.014752088, %v2047_v21  ;;  %v2348_v27 = vsel %vm7187_vm7, %v2347_v62, %v2343_v4  ;;  %v2258_v13 = vmul.f32 %v5574_v25, %v2257_v5  ;;  %vm2262_vm7 = vmor %vm2260_vm10, %vm2261_vm14 }
 0x97e   : > { %vm2140_vm15 = vweird.f32 %v7156_v45  ;;  %v2169_v38 = vmul.f32 %v2168_v50, %v6833_v47  ;;  %v2087_v49 = vmul.f32 %v2086_v30, %v6789_v31  ;;  %v2349_v48 = vmul.f32 %v2348_v27, %v7103_v32 }
 0x97f   : > { %2674 = vmatpush.bf16.msrb.mxu1 %v2633_v60  ;;  %v2138_v18 = vmul.f32 %v7185_v20, %v2137_v11  ;;  %v2049_v14 = vmul.f32 %v2048_v41, %v6754_v52  ;;  %v1965_v7 = vmul.f32 3.8918573e-05, %v6717_v8  ;;  %v2259_v34 = vadd.f32 %v5574_v25, %v2258_v13 }
 0x980   : > { %vm2141_vm9 = vweird.f32 %v7185_v20  ;;  %v2170_v17 = vadd.f32 0.112945676, %v2169_v38  ;;  %v2088_v62 = vadd.f32 0.014752088, %v2087_v49  ;;  %v5348_v51 = vclamps-f32 %v2349_v48, 1.0 }
 0x981   : > { %v2600_v9 = vadd.f32 1.0, %v5347_v2  ;;  %v2050_v23 = vadd.f32 0.112945676, %v2049_v14  ;;  %v1966_v15 = vadd.f32 0.001143296, %v1965_v7  ;;  %v2263_v32 = vsel %vm2262_vm7, %v5574_v25, %v2259_v34  ;;  %vm7243_vm10 = vmor %vm2140_vm15, %vm2141_vm9 }
 0x982   : > { %v2171_v54 = vmul.f32 %v2170_v17, %v6833_v47  ;;  %v2089_v26 = vmul.f32 %v2088_v62, %v6789_v31  ;;  %v2005_v58 = vmul.f32 3.8918573e-05, %v6767_v33  ;;  %v2601_v29 = vadd.f32 1.0, %v5348_v51 }
 0x983   : > { %v2268_v61 = vsel %vm7201_vm13, %v2267_v63, %v2263_v32  ;;  %v2139_v59 = vadd.f32 %v7185_v20, %v2138_v18  ;;  %v2051_v19 = vmul.f32 %v2050_v23, %v6754_v52  ;;  %v1967_v25 = vmul.f32 %v1966_v15, %v6717_v8  ;;  %v9319_v32 = vld [vmem:[#allocation16_spill] sm:$0xff] }
 0x984   : > { %v2269_v53 = vmul.f32 %v2268_v61, %v7048_v12  ;;  %v2172_v1 = vadd.f32 0.4994258, %v2171_v54  ;;  %v2090_v56 = vadd.f32 0.112945676, %v2089_v26  ;;  %v2616_v42 = vmul.f32 %v2600_v9, %v6959_v57 }
 0x985   : > { %v2617_v22 = vmul.f32 %v2601_v29, %v7006_v16  ;;  %v2052_v11 = vadd.f32 0.4994258, %v2051_v19  ;;  %v2006_v21 = vadd.f32 0.001143296, %v2005_v58  ;;  %v1968_v5 = vadd.f32 0.014752088, %v1967_v25 }
 0x986   : > { %v5346_v2 = vclamps-f32 %v2269_v53, 1.0  ;;  %v2173_v55 = vmul.f32 %v2172_v1, %v6833_v47  ;;  %v2091_v63 = vmul.f32 %v2090_v56, %v6789_v31  ;;  %v2162_v50 = vmul.f32 %v6954_v44, %v6833_v47 }
 0x987   : > { %v2632_v12 = vpack.c.bf16 %v2617_v22, %v2616_v42  ;;  %v2053_v16 = vmul.f32 %v2052_v11, %v6754_v52  ;;  %v2007_v30 = vmul.f32 %v2006_v21, %v6767_v33  ;;  %v2143_v4 = vsel %vm7243_vm10, %v7185_v20, %v2139_v59 }
 0x988   : > { %v2599_v60 = vadd.f32 1.0, %v5346_v2  ;;  %v7252_v41 = vadd.f32 1.0, %v2173_v55  ;;  %v2092_v47 = vadd.f32 0.4994258, %v2091_v63  ;;  %v2147_v44 = vor.u32 1.1754944e-38, %v2146_v43 }
 0x989   : > { %2675 = vmatpush.bf16.msrb.mxu1 %v2632_v12  ;;  %v7256_v27 = vadd.f32 1.0, %v2053_v16  ;;  %v1969_v13 = vmul.f32 %v1968_v5, %v6717_v8  ;;  %v2008_v38 = vadd.f32 0.014752088, %v2007_v30  ;;  %v2614_v52 = vmul.f32 %v7183_v40, %v6934_v37 }
 0x98a   : > { %v2615_v49 = vmul.f32 %v2599_v60, %v6943_v10  ;;  %vm2145_vm11 = vcmp.eq.f32.partialorder %v2144_v24, 8.507059e+37  ;;  %5575 = vrcp.f32 %v7252_v41  ;;  %v1961_v20 = vadd.f32 0.18741608, %v6868_v28 }
 0x98b   : > { %v2148_v48 = vsel %vm2145_vm11, %v2147_v44, %v2143_v4  ;;  %5577 = vrcp.f32 %v7256_v27  ;;  %v1999_v43 = vadd.f32 0.05243302, %v6872_v0  ;;  %v2124_v18 = vmul.f32 %v6937_v3, %v6796_v39 }
 0x98c   : > { %v2631_v14 = vpack.c.bf16 %v2615_v49, %v2614_v52  ;;  %v2093_v37 = vmul.f32 %v2092_v47, %v6789_v31  ;;  %v2043_v10 = vadd.f32 1.1283791, %v6887_v36  ;;  %v1970_v40 = vadd.f32 0.112945676, %v1969_v13  ;;  %v9320_v49 = vld [vmem:[#allocation14_spill] sm:$0xff] }
 0x98d   : > { %v2009_v45 = vmul.f32 %v2008_v38, %v6767_v33  ;;  %v2082_v24 = vmul.f32 %v6922_v46, %v6789_v31  ;;  %v2163_v28 = vadd.f32 1.1283791, %v2162_v50  ;;  %v2149_v7 = vmul.f32 %v2148_v48, %v2124_v18  ;;  %v9321_v18 = vld [vmem:[#allocation13_spill] sm:$0xff] }
 0x98e   : > { %2676 = vmatpush.bf16.msrb.mxu1 %v2631_v14  ;;  %v7275_v34 = vadd.f32 1.0, %v2093_v37  ;;  %v1971_v0 = vmul.f32 %v1970_v40, %v6717_v8  ;;  %v1962_v3 = vmul.f32 %v1961_v20, %v6717_v8  ;;  %v2000_v62 = vmul.f32 %v1999_v43, %v6767_v33  ;;  %v9322_v37 = vld [vmem:[#allocation15_spill] sm:$0xff] }
 0x98f   : > { %v2010_v17 = vadd.f32 0.112945676, %v2009_v45  ;;  %v7281_v36 = vmul.f32 0.5, %v6731_v6  ;;  %v2044_v31 = vmul.f32 %v2043_v10, %v6739_v35  ;;  %v2083_v15 = vadd.f32 1.1283791, %v2082_v24 }
 0x990   : > { %v5576_v39 = vpop.eup %5575  ;;  %5579 = vrcp.f32 %v7275_v34  ;;  %v1972_v9 = vadd.f32 0.4994258, %v1971_v0  ;;  %v2164_v54 = vmul.f32 %v2163_v28, %v9319_v32  ;;  %v5343_v26 = vclamps-f32 %v2149_v7, 1.0 }
 0x991   : > { %v5578_v51 = vpop.eup %5577  ;;  %v2176_v46 = vmul.f32 %v5576_v39, %v7252_v41  ;;  %v2011_v23 = vmul.f32 %v2010_v17, %v6767_v33  ;;  %v2184_v6 = vand.u32 2147483647, %v7252_v41  ;;  %v2186_v19 = vand.u32 2147483648, %v7252_v41 }
 0x992   : > { %v2056_v58 = vmul.f32 %v5578_v51, %v7256_v27  ;;  %v1973_v61 = vmul.f32 %v1972_v9, %v6717_v8  ;;  %v2064_v53 = vand.u32 2147483647, %v7256_v27  ;;  %v2066_v1 = vand.u32 2147483648, %v7256_v27  ;;  %v9323_v9 = vld [vmem:[#allocation9_spill] sm:$0xff] }
 0x993   : > { %v2177_v29 = vsub.f32 1.0, %v2176_v46  ;;  %v2012_v59 = vadd.f32 0.4994258, %v2011_v23  ;;  %vm2181_vm13 = vweird.f32 %v5576_v39  ;;  %vm2180_vm12 = vweird.f32 %v7252_v41 }
 0x994   : > { %v2057_v35 = vsub.f32 1.0, %v2056_v58  ;;  %v7294_v25 = vadd.f32 1.0, %v1973_v61  ;;  %vm2060_vm14 = vweird.f32 %v7256_v27  ;;  %vm2061_vm15 = vweird.f32 %v5578_v51  ;;  %vm2182_vm7 = vmor %vm2180_vm12, %vm2181_vm13 }
 0x995   : > { %v2178_v56 = vmul.f32 %v5576_v39, %v2177_v29  ;;  %v2013_v42 = vmul.f32 %v2012_v59, %v6767_v33  ;;  %vm2185_vm9 = vcmp.eq.f32.partialorder %v2184_v6, 8.507059e+37  ;;  %v2187_v2 = vor.u32 1.1754944e-38, %v2186_v19  ;;  %vm2062_vm11 = vmor %vm2060_vm14, %vm2061_vm15 }
 0x996   : > { %v5580_v22 = vpop.eup %5579  ;;  %v2058_v11 = vmul.f32 %v5578_v51, %v2057_v35  ;;  %5581 = vrcp.f32 %v7294_v25  ;;  %vm2065_vm10 = vcmp.eq.f32.partialorder %v2064_v53, 8.507059e+37  ;;  %v2067_v63 = vor.u32 1.1754944e-38, %v2066_v1 }
 0x997   : > { %v2179_v8 = vadd.f32 %v5576_v39, %v2178_v56  ;;  %v2096_v21 = vmul.f32 %v5580_v22, %v7275_v34  ;;  %v2104_v12 = vand.u32 2147483647, %v7275_v34  ;;  %v7302_v57 = vadd.f32 1.0, %v2013_v42 }
 0x998   : > { %v2059_v55 = vadd.f32 %v5578_v51, %v2058_v11  ;;  %vm2101_vm6 = vweird.f32 %v5580_v22  ;;  %v2106_v60 = vand.u32 2147483648, %v7275_v34  ;;  %v1963_v44 = vadd.f32 1.1283791, %v1962_v3 }
 0x999   : > { %v2183_v5 = vsel %vm2182_vm7, %v5576_v39, %v2179_v8  ;;  %v2097_v50 = vsub.f32 1.0, %v2096_v21  ;;  %5583 = vrcp.f32 %v7302_v57  ;;  %v2001_v27 = vadd.f32 0.18741608, %v2000_v62 }
 0x99a   : > { %v2188_v16 = vsel %vm2185_vm9, %v2187_v2, %v2183_v5  ;;  %v2063_v30 = vsel %vm2062_vm11, %v5578_v51, %v2059_v55  ;;  %v2596_v13 = vadd.f32 1.0, %v5343_v26  ;;  %v1924_v20 = vmul.f32 0.5, %v9320_v49  ;;  %v7331_v5 = vld [vmem:[%s9208_s1 + $0x28] sm:$0xff] }
 0x99b   : > { %v2189_v4 = vmul.f32 %v2188_v16, %v2164_v54  ;;  %v2068_v41 = vsel %vm2065_vm10, %v2067_v63, %v2063_v30  ;;  %v2098_v47 = vmul.f32 %v5580_v22, %v2097_v50  ;;  %vm2100_vm13 = vweird.f32 %v7275_v34  ;;  %v9324_v54 = vld [vmem:[#allocation12_spill] sm:$0xff]  ;;  %v7326_v63 = vld [vmem:[%s9208_s1 + $0x20] sm:$0xff]  ;;  %2937 = vrot.lane.b32.xlu1 %v7331_v5, %s5646_s17 }
 0x99c   : > { %v2069_v38 = vmul.f32 %v2068_v41, %v2044_v31  ;;  %v5582_v52 = vpop.eup %5581  ;;  %v2084_v14 = vmul.f32 %v2083_v15, %v9321_v18  ;;  %v1925_v10 = vmul.f32 0.5, %v9322_v37  ;;  %vm2102_vm12 = vmor %vm2100_vm13, %vm2101_vm6  ;;  %v2107_v40 = vor.u32 1.1754944e-38, %v2106_v60  ;;  %2935 = vrot.lane.b32.xlu0 %v7326_v63, %s5646_s17  ;;  %v7341_v41 = vld [vmem:[%s9208_s1 + $0x38] sm:$0xff]  ;;  %v7356_v18 = vld [vmem:[%s9208_s1 + $0x30] sm:$0xff] }
 0x99d   : > { %v5344_v48 = vclamps-f32 %v2189_v4, 1.0  ;;  %v2099_v43 = vadd.f32 %v5580_v22, %v2098_v47  ;;  %v1976_v45 = vmul.f32 %v5582_v52, %v7294_v25  ;;  %vm2105_vm14 = vcmp.eq.f32.partialorder %v2104_v12, 8.507059e+37  ;;  %v9326_v47 = vld [vmem:[#allocation8_spill] sm:$0xff]  ;;  %2939 = vrot.lane.b32.xlu2 %v7356_v18, %s5646_s17 }
 0x99e   : > { %v5341_v28 = vclamps-f32 %v2069_v38, 1.0  ;;  %v2002_v0 = vmul.f32 %v2001_v27, %v6767_v33  ;;  %v2612_v17 = vmul.f32 %v2596_v13, %v1924_v20  ;;  %v1984_v31 = vand.u32 2147483647, %v7294_v25  ;;  %v9327_v27 = vld [vmem:[#allocation10_spill] sm:$0xff] }
 0x99f   : > { %v2597_v24 = vadd.f32 1.0, %v5344_v48  ;;  %v2103_v7 = vsel %vm2102_vm12, %v5580_v22, %v2099_v43  ;;  %v1977_v3 = vsub.f32 1.0, %v1976_v45  ;;  %v5584_v62 = vpop.eup %5583  ;;  %v1986_v46 = vand.u32 2147483648, %v7294_v25  ;;  %v5499_v48 = vld [vmem:[%s9211_s4] sm:$0xff]  ;;  %v5500_v43 = vld [vmem:[%s9211_s4 + $0x8] sm:$0xff] }
 0x9a0   : > { %v2108_v39 = vsel %vm2105_vm14, %v2107_v40, %v2103_v7  ;;  %v1964_v23 = vmul.f32 %v1963_v44, %v9323_v9  ;;  %vm1981_vm6 = vweird.f32 %v5582_v52  ;;  %v2016_v32 = vmul.f32 %v5584_v62, %v7302_v57  ;;  %v2648_v40 = vpop.permute.xlu0 %2647 }
 0x9a1   : > { %v2613_v34 = vmul.f32 %v2597_v24, %v1925_v10  ;;  %v2109_v51 = vmul.f32 %v2108_v39, %v2084_v14  ;;  %v1978_v15 = vmul.f32 %v5582_v52, %v1977_v3  ;;  %v1923_v26 = vmul.f32 0.5, %v9324_v54  ;;  %v2643_v10 = vpop.permute.xlu2 %2642  ;;  %v2653_v24 = vpop.permute.xlu1 %2652  ;;  %v9329_v3 = vld [vmem:[#allocation7_spill] sm:$0xff] }
 0x9a2   : > { %v2594_v29 = vadd.f32 1.0, %v5341_v28  ;;  %v2003_v6 = vadd.f32 1.1283791, %v2002_v0  ;;  %vm1980_vm15 = vweird.f32 %v7294_v25  ;;  %v2017_v59 = vsub.f32 1.0, %v2016_v32 }
 0x9a3   : > { %v2630_v58 = vpack.c.bf16 %v2613_v34, %v2612_v17  ;;  %v5342_v33 = vclamps-f32 %v2109_v51, 1.0  ;;  %v1979_v61 = vadd.f32 %v5582_v52, %v1978_v15  ;;  %vm1982_vm9 = vmor %vm1980_vm15, %vm1981_vm6  ;;  %vm1985_vm7 = vcmp.eq.f32.partialorder %v1984_v31, 8.507059e+37  ;;  %v9328_v17 = vld [vmem:[#allocation6_spill] sm:$0xff]  ;;  %v9330_v34 = vld [vmem:[#allocation5_spill] sm:$0xff] }
 0x9a4   : > { %v1987_v35 = vor.u32 1.1754944e-38, %v1986_v46  ;;  %v2026_v53 = vand.u32 2147483648, %v7302_v57  ;;  %v2018_v56 = vmul.f32 %v5584_v62, %v2017_v59  ;;  %vm2021_vm10 = vweird.f32 %v5584_v62  ;;  %2941 = vrot.lane.b32.xlu0 %v7341_v41, %s5646_s17  ;;  %s9337_s17 = smov 112  }
 0x9a5   : > { %2677 = vmatpush.bf16.msrb.mxu1 %v2630_v58  ;;  %v2595_v19 = vadd.f32 1.0, %v5342_v33  ;;  %v1983_v1 = vsel %vm1982_vm9, %v5582_v52, %v1979_v61  ;;  %v2024_v42 = vand.u32 2147483647, %v7302_v57  ;;  %v2610_v22 = vmul.f32 %v2594_v29, %v7281_v36  ;;  %v9325_v36 = vld [vmem:[#allocation11_spill] sm:$0xff] }
 0x9a6   : > { %v1988_v8 = vsel %vm1985_vm7, %v1987_v35, %v1983_v1  ;;  %v2019_v2 = vadd.f32 %v5584_v62, %v2018_v56  ;;  %vm2020_vm11 = vweird.f32 %v7302_v57  ;;  %v2027_v55 = vor.u32 1.1754944e-38, %v2026_v53  ;;  %v9332_v56 = vld [vmem:[#allocation3_spill] sm:$0xff] }
 0x9a7   : > { %v2611_v11 = vmul.f32 %v2595_v19, %v1923_v26  ;;  %v1989_v21 = vmul.f32 %v1988_v8, %v1964_v23  ;;  %vm2022_vm13 = vmor %vm2020_vm11, %vm2021_vm10  ;;  %v2004_v50 = vmul.f32 %v2003_v6, %v9325_v36  ;;  %vm2025_vm12 = vcmp.eq.f32.partialorder %v2024_v42, 8.507059e+37  ;;  %v9331_v26 = vld [vmem:[#allocation4_spill] sm:$0xff] }
 0x9a8   : > { %v2023_v16 = vsel %vm2022_vm13, %v5584_v62, %v2019_v2  ;;  %v1920_v44 = vmul.f32 0.5, %v9326_v47  ;;  %v1921_v13 = vmul.f32 0.5, %v9327_v27 }
 0x9a9   : > { %v2629_v25 = vpack.c.bf16 %v2611_v11, %v2610_v22  ;;  %v5339_v12 = vclamps-f32 %v1989_v21, 1.0  ;;  %v2028_v57 = vsel %vm2025_vm12, %v2027_v55, %v2023_v16  ;;  %v2658_v46 = vpop.permute.xlu2 %2657  ;;  %vm9409_vm12 = vcmask 261120  }
 0x9aa   : > { %v2029_v30 = vmul.f32 %v2028_v57, %v2004_v50 }
 0x9ab   : > { %2678 = vmatpush.bf16.msrb.mxu1 %v2629_v25  ;;  %v2592_v4 = vadd.f32 1.0, %v5339_v12 }
 0x9ac   : > { %v5340_v60 = vclamps-f32 %v2029_v30, 1.0 }
 0x9ad   : > { %v2608_v52 = vmul.f32 %v2592_v4, %v1920_v44 }
 0x9ae   : > { %v2593_v38 = vadd.f32 1.0, %v5340_v60 }
 0x9b0   : > { %v2609_v49 = vmul.f32 %v2593_v38, %v1921_v13 }
 0x9b2   : > { %v2628_v20 = vpack.c.bf16 %v2609_v49, %v2608_v52 }
 0x9b4   : > { %2679 = vmatpush.bf16.msrb.mxu1 %v2628_v20 }
 0x9b7   : > { %2680 = vmatmul.bf16.vlgmr.msrb.gmra.mxu1 %v5499_v48  ;;  %v2757_v48 = vpop.permute.xlu0 %2756 }
 0x9c7   : > { %2685 = vmatmul.bf16.gmra.mxu1 %v5500_v43 }
 0xa34   : > { %v2681_v14 = vpop.f32.mrf.mxu1 }
 0xa35   : > { %v2682_v7 = vadd.f32 %v2681_v14, %v2643_v10 }
 0xa37   : > { %v2691_v62 = vadd.f32 %v2682_v7, %v9329_v3 }
 0xa39   : > { %v2703_v23 = vsel %vm1585_vm8, %v2691_v62, 0.0 }
 0xa3c   : > { %v2683_v37 = vpop.f32.mrf.mxu1 }
 0xa3d   : > { %v2684_v45 = vadd.f32 %v2683_v37, %v2648_v40  ;;  %v2762_v37 = vpop.permute.xlu1 %2761  ;;  %v2767_v40 = vpop.permute.xlu2 %2766 }
 0xa3f   : > { %v2692_v39 = vadd.f32 %v2684_v45, %v9328_v17  ;;  %v2772_v45 = vpop.permute.xlu0 %2771 }
 0xa41   : > { %v2704_v31 = vsel %vm1585_vm8, %v2692_v39, 0.0 }
 0xa42   : > { %v2705_v54 = vadd.f32 %v2704_v31, %v2703_v23 }
 0xa44   : > { %v2686_v28 = vpop.f32.mrf.mxu1 }
 0xa45   : > { %v2687_v0 = vadd.f32 %v2686_v28, %v2653_v24  ;;  %v2781_v17 = vpop.permute.xlu1 %2780 }
 0xa47   : > { %v2693_v51 = vadd.f32 %v2687_v0, %v9330_v34 }
 0xa49   : > { %v2706_v15 = vsel %vm1585_vm8, %v2693_v51, 0.0 }
 0xa4a   : > { %v2707_v33 = vadd.f32 %v2706_v15, %v2705_v54 }
 0xa4c   : > { %v2688_v9 = vpop.f32.mrf.mxu1 }
 0xa4d   : > { %v2689_v32 = vadd.f32 %v2688_v9, %v2658_v46  ;;  %v2786_v46 = vpop.permute.xlu2 %2785  ;;  %v2791_v9 = vpop.permute.xlu0 %2790 }
 0xa4f   : > { %v2694_v58 = vadd.f32 %v2689_v32, %v9331_v26 }
 0xa51   : > { %v2708_v29 = vsel %vm1585_vm8, %v2694_v58, 0.0 }
 0xa52   : > { %v2709_v6 = vadd.f32 %v2708_v29, %v2707_v33 }
 0xa54   : > { %v2710_v61 = vrot.slane %v2709_v6, 4 }
 0xa56   : > { %v2711_v59 = vadd.f32 %v2710_v61, %v2709_v6  ;;  %v2796_v6 = vpop.permute.xlu1 %2795 }
 0xa58   : > { %v2712_v19 = vrot.slane %v2711_v59, 2 }
 0xa5a   : > { %v2713_v35 = vadd.f32 %v2712_v19, %v2711_v59  ;;  %v2936_v19 = vpop.permute.xlu0 %2935 }
 0xa5c   : > { %v2714_v53 = vrot.slane %v2713_v35, 1 }
 0xa5e   : > { %v2715_v1 = vadd.f32 %v2714_v53, %v2713_v35  ;;  %v2940_v35 = vpop.permute.xlu2 %2939 }
 0xa60   : > { %v2716_v42 = vmul.f32 %v2715_v1, %v9332_v56 }
 0xa62   : > { %v2717_v22 = vsub.f32 %v2691_v62, %v2716_v42  ;;  %v2718_v11 = vsub.f32 %v2692_v39, %v2716_v42  ;;  %v2719_v8 = vsub.f32 %v2693_v51, %v2716_v42  ;;  %v2720_v21 = vsub.f32 %v2694_v58, %v2716_v42  ;;  %v2938_v42 = vpop.permute.xlu1 %2937 }
 0xa64   : > { %v2721_v2 = vmul.f32 %v2717_v22, %v2717_v22  ;;  %v2722_v25 = vmul.f32 %v2718_v11, %v2718_v11  ;;  %v2723_v55 = vmul.f32 %v2719_v8, %v2719_v8  ;;  %v2724_v36 = vmul.f32 %v2720_v21, %v2720_v21 }
 0xa66   : > { %v2725_v50 = vsel %vm1585_vm8, %v2721_v2, 0.0  ;;  %v2726_v12 = vsel %vm1585_vm8, %v2722_v25, 0.0  ;;  %v2728_v57 = vsel %vm1585_vm8, %v2723_v55, 0.0  ;;  %v2730_v60 = vsel %vm1585_vm8, %v2724_v36, 0.0 }
 0xa67   : > { %v2727_v16 = vadd.f32 %v2726_v12, %v2725_v50 }
 0xa69   : > { %v2729_v30 = vadd.f32 %v2728_v57, %v2727_v16 }
 0xa6b   : > { %v2731_v4 = vadd.f32 %v2730_v60, %v2729_v30 }
 0xa6d   : > { %v2732_v47 = vrot.slane %v2731_v4, 4 }
 0xa6f   : > { %v2733_v44 = vadd.f32 %v2732_v47, %v2731_v4 }
 0xa71   : > { %v2734_v27 = vrot.slane %v2733_v44, 2 }
 0xa73   : > { %v2735_v13 = vadd.f32 %v2734_v27, %v2733_v44 }
 0xa75   : > { %v2736_v38 = vrot.slane %v2735_v13, 1 }
 0xa77   : > { %v2737_v52 = vadd.f32 %v2736_v38, %v2735_v13 }
 0xa79   : > { %v2738_v49 = vmul.f32 %v2737_v52, %v9332_v56 }
 0xa7b   : > { %v2739_v20 = vadd.f32 1e-12, %v2738_v49 }
 0xa7d   : > { %5585 = vrsqrt.f32 %v2739_v20  ;;  %vm2746_vm6 = vweird.f32 %v2739_v20 }
 0xa83   : > { %v5586_v43 = vpop.eup %5585 }
 0xa84   : > { %v2741_v14 = vmul.f32 %v5586_v43, %v2739_v20  ;;  %vm2747_vm14 = vweird.f32 %v5586_v43 }
 0xa85   : > { %vm2748_vm15 = vmor %vm2746_vm6, %vm2747_vm14 }
 0xa86   : > { %v2742_v10 = vmul.f32 %v5586_v43, %v2741_v14  ;;  %vm9410_vm14 = vmmov %vm9409_vm12 }
 0xa87   : > { %vm9411_vm6 = vmmov %vm9409_vm12 }
 0xa88   : > { %v2743_v24 = vmul.f32 0.5, %v2742_v10 }
 0xa8a   : > { %v2744_v28 = vsub.f32 1.5, %v2743_v24 }
 0xa8c   : > { %v2745_v7 = vmul.f32 %v5586_v43, %v2744_v28 }
 0xa8e   : > { %v2749_v0 = vsel %vm2748_vm15, %v5586_v43, %v2745_v7  ;;  %vm9412_vm15 = vmmov %vm9411_vm6 }
 0xa8f   : > { %v2750_v39 = vmul.f32 %v2749_v0, %v2717_v22  ;;  %v2751_v3 = vmul.f32 %v2749_v0, %v2718_v11  ;;  %v2752_v62 = vmul.f32 %v2749_v0, %v2719_v8  ;;  %v2753_v23 = vmul.f32 %v2749_v0, %v2720_v21  ;;  %v2942_v22 = vpop.permute.xlu0 %2941 }
 0xa91   : > { %v2774_v34 = vmul.f32 %v2757_v48, %v2750_v39  ;;  %v2775_v51 = vmul.f32 %v2762_v37, %v2751_v3  ;;  %v2776_v31 = vmul.f32 %v2767_v40, %v2752_v62  ;;  %v2777_v26 = vmul.f32 %v2772_v45, %v2753_v23 }
 0xa93   : > { %v7374_v15 = vadd.f32 %v2781_v17, %v2774_v34  ;;  %v7376_v32 = vadd.f32 %v2786_v46, %v2775_v51  ;;  %v7378_v54 = vadd.f32 %v2791_v9, %v2776_v31  ;;  %v7398_v61 = vadd.f32 %v2796_v6, %v2777_v26 }
 0xa95   : > { %9333 = vst [vmem:[#allocation16_spill] sm:$0xff] %v7374_v15  ;;  %v7382_v58 = vmul.f32 %v7331_v5, %v7376_v32  ;;  %v7386_v33 = vmul.f32 %v7326_v63, %v7374_v15  ;;  %v7390_v29 = vmul.f32 %v7356_v18, %v7378_v54  ;;  %v7402_v59 = vmul.f32 %v7341_v41, %v7398_v61 }
 0xa96   : > { %9334 = vst [vmem:[#allocation14_spill] sm:$0xff] %v7376_v32  ;;  %v7453_v53 = vmul.f32 %v2940_v35, %v7378_v54  ;;  %v7456_v1 = vmul.f32 %v2936_v19, %v7374_v15  ;;  %v7465_v11 = vmul.f32 %v2938_v42, %v7376_v32  ;;  %v7468_v8 = vmul.f32 %v2942_v22, %v7398_v61 }
 0xa97   : > { %9335 = vst [vmem:[#allocation13_spill] sm:$0xff] %v7378_v54  ;;  %2817 = vrot.lane.b32.xlu0 %v7382_v58, %s5639_s23  ;;  %2815 = vrot.lane.b32.xlu2 %v7386_v33, %s5639_s23 }
 0xa98   : > { %2819 = vrot.lane.b32.xlu1 %v7390_v29, %s5639_s23  ;;  %9336 = vst [vmem:[#allocation15_spill] sm:$0xff] %v7398_v61 }
 0xa9f   : > { %2831 = vrot.lane.b32.xlu0 %v7386_v33, %s5640_s24  ;;  %2821 = vrot.lane.b32.xlu2 %v7402_v59, %s5639_s23 }
 0xaa0   : > { %2833 = vrot.lane.b32.xlu1 %v7382_v58, %s5640_s24 }
 0xaa7   : > { %2837 = vrot.lane.b32.xlu0 %v7402_v59, %s5640_s24  ;;  %2835 = vrot.lane.b32.xlu2 %v7390_v29, %s5640_s24 }
 0xaa8   : > { %2847 = vrot.lane.b32.xlu1 %v7386_v33, %s5641_s29 }
 0xaaf   : > { %2851 = vrot.lane.b32.xlu0 %v7390_v29, %s5641_s29  ;;  %2849 = vrot.lane.b32.xlu2 %v7382_v58, %s5641_s29 }
 0xab0   : > { %2853 = vrot.lane.b32.xlu1 %v7402_v59, %s5641_s29 }
 0xab7   : > { %2865 = vrot.lane.b32.xlu0 %v7382_v58, %s5642_s30  ;;  %2863 = vrot.lane.b32.xlu2 %v7386_v33, %s5642_s30 }
 0xab8   : > { %2867 = vrot.lane.b32.xlu1 %v7390_v29, %s5642_s30 }
 0xabf   : > { %2879 = vrot.lane.b32.xlu0 %v7386_v33, %s5643_s11  ;;  %2869 = vrot.lane.b32.xlu2 %v7402_v59, %s5642_s30 }
 0xac0   : > { %2881 = vrot.lane.b32.xlu1 %v7382_v58, %s5643_s11 }
 0xac7   : > { %2885 = vrot.lane.b32.xlu0 %v7402_v59, %s5643_s11  ;;  %2883 = vrot.lane.b32.xlu2 %v7390_v29, %s5643_s11 }
 0xac8   : > { %2895 = vrot.lane.b32.xlu1 %v7386_v33, %s5644_s12 }
 0xacf   : > { %2899 = vrot.lane.b32.xlu0 %v7390_v29, %s5644_s12  ;;  %2897 = vrot.lane.b32.xlu2 %v7382_v58, %s5644_s12 }
 0xad0   : > { %2901 = vrot.lane.b32.xlu1 %v7402_v59, %s5644_s12 }
 0xad7   : > { %2913 = vrot.lane.b32.xlu0 %v7382_v58, %s5645_s16  ;;  %2911 = vrot.lane.b32.xlu2 %v7386_v33, %s5645_s16 }
 0xad8   : > { %2915 = vrot.lane.b32.xlu1 %v7390_v29, %s5645_s16 }
 0xadf   : > { %2959 = vrot.lane.b32.xlu0 %v7453_v53, %s5639_s23  ;;  %2917 = vrot.lane.b32.xlu2 %v7402_v59, %s5645_s16 }
 0xae0   : > { %2955 = vrot.lane.b32.xlu1 %v7456_v1, %s5639_s23 }
 0xae7   : > { %2973 = vrot.lane.b32.xlu0 %v7465_v11, %s5640_s24  ;;  %2957 = vrot.lane.b32.xlu2 %v7465_v11, %s5639_s23 }
 0xae8   : > { %2961 = vrot.lane.b32.xlu1 %v7468_v8, %s5639_s23 }
 0xaef   : > { %2987 = vrot.lane.b32.xlu0 %v7456_v1, %s5641_s29  ;;  %2971 = vrot.lane.b32.xlu2 %v7456_v1, %s5640_s24 }
 0xaf0   : > { %2975 = vrot.lane.b32.xlu1 %v7453_v53, %s5640_s24 }
 0xaf1   : > { %v2816_v21 = vpop.permute.xlu2 %2815 }
 0xaf2   : > { %v2827_v49 = vadd.f32 %v2816_v21, %v7386_v33 }
 0xaf7   : > { %2993 = vrot.lane.b32.xlu0 %v7468_v8, %s5641_s29  ;;  %2977 = vrot.lane.b32.xlu2 %v7468_v8, %s5640_s24 }
 0xaf8   : > { %2989 = vrot.lane.b32.xlu1 %v7465_v11, %s5641_s29 }
 0xaf9   : > { %v2822_v2 = vpop.permute.xlu2 %2821 }
 0xafa   : > { %v2830_v10 = vadd.f32 %v2822_v2, %v7402_v59 }
 0xaff   : > { %3007 = vrot.lane.b32.xlu0 %v7453_v53, %s5642_s30  ;;  %2991 = vrot.lane.b32.xlu2 %v7453_v53, %s5641_s29 }
 0xb00   : > { %3003 = vrot.lane.b32.xlu1 %v7456_v1, %s5642_s30 }
 0xb01   : > { %v2836_v25 = vpop.permute.xlu2 %2835 }
 0xb07   : > { %3021 = vrot.lane.b32.xlu0 %v7465_v11, %s5643_s11  ;;  %3005 = vrot.lane.b32.xlu2 %v7465_v11, %s5642_s30 }
 0xb08   : > { %3009 = vrot.lane.b32.xlu1 %v7468_v8, %s5642_s30 }
 0xb09   : > { %v2850_v55 = vpop.permute.xlu2 %2849  ;;  %v2818_v36 = vpop.permute.xlu0 %2817 }
 0xb0a   : > { %v2820_v50 = vpop.permute.xlu1 %2819  ;;  %v2828_v0 = vadd.f32 %v2818_v36, %v7382_v58 }
 0xb0b   : > { %v2829_v39 = vadd.f32 %v2820_v50, %v7390_v29 }
 0xb0d   : > { %v2845_v31 = vadd.f32 %v2836_v25, %v2829_v39 }
 0xb0f   : > { %3035 = vrot.lane.b32.xlu0 %v7456_v1, %s5644_s12  ;;  %3019 = vrot.lane.b32.xlu2 %v7456_v1, %s5643_s11 }
 0xb10   : > { %3023 = vrot.lane.b32.xlu1 %v7453_v53, %s5643_s11 }
 0xb11   : > { %v2864_v12 = vpop.permute.xlu2 %2863  ;;  %v2832_v16 = vpop.permute.xlu0 %2831 }
 0xb12   : > { %v2834_v57 = vpop.permute.xlu1 %2833  ;;  %v2843_v20 = vadd.f32 %v2832_v16, %v2827_v49 }
 0xb13   : > { %v2844_v34 = vadd.f32 %v2834_v57, %v2828_v0 }
 0xb15   : > { %v2860_v9 = vadd.f32 %v2850_v55, %v2844_v34 }
 0xb17   : > { %3041 = vrot.lane.b32.xlu0 %v7468_v8, %s5644_s12  ;;  %3025 = vrot.lane.b32.xlu2 %v7468_v8, %s5643_s11 }
 0xb18   : > { %3037 = vrot.lane.b32.xlu1 %v7465_v11, %s5644_s12 }
 0xb19   : > { %v2870_v30 = vpop.permute.xlu2 %2869  ;;  %v2838_v60 = vpop.permute.xlu0 %2837 }
 0xb1a   : > { %v2848_v4 = vpop.permute.xlu1 %2847  ;;  %v2846_v45 = vadd.f32 %v2838_v60, %v2830_v10 }
 0xb1b   : > { %v2859_v37 = vadd.f32 %v2848_v4, %v2843_v20 }
 0xb1d   : > { %v2875_v40 = vadd.f32 %v2864_v12, %v2859_v37 }
 0xb1f   : > { %3055 = vrot.lane.b32.xlu0 %v7453_v53, %s5645_s16  ;;  %3039 = vrot.lane.b32.xlu2 %v7453_v53, %s5644_s12 }
 0xb20   : > { %3051 = vrot.lane.b32.xlu1 %v7456_v1, %s5645_s16 }
 0xb21   : > { %v2884_v47 = vpop.permute.xlu2 %2883  ;;  %v2852_v44 = vpop.permute.xlu0 %2851 }
 0xb22   : > { %v2854_v27 = vpop.permute.xlu1 %2853  ;;  %v2861_v23 = vadd.f32 %v2852_v44, %v2845_v31 }
 0xb23   : > { %v2862_v3 = vadd.f32 %v2854_v27, %v2846_v45 }
 0xb25   : > { %v2878_v46 = vadd.f32 %v2870_v30, %v2862_v3 }
 0xb27   : > { %3087 = vrot.lane.b32.xlu0 %v7326_v63, %s9337_s17  ;;  %3053 = vrot.lane.b32.xlu2 %v7465_v11, %s5645_s16 }
 0xb28   : > { %3057 = vrot.lane.b32.xlu1 %v7468_v8, %s5645_s16 }
 0xb29   : > { %v2898_v13 = vpop.permute.xlu2 %2897  ;;  %v2866_v38 = vpop.permute.xlu0 %2865 }
 0xb2a   : > { %v2868_v52 = vpop.permute.xlu1 %2867  ;;  %v2876_v59 = vadd.f32 %v2866_v38, %v2860_v9 }
 0xb2b   : > { %v2877_v58 = vadd.f32 %v2868_v52, %v2861_v23 }
 0xb2d   : > { %v2893_v22 = vadd.f32 %v2884_v47, %v2877_v58 }
 0xb2f   : > { %3093 = vrot.lane.b32.xlu0 %v7341_v41, %s9337_s17  ;;  %3091 = vrot.lane.b32.xlu2 %v7356_v18, %s9337_s17 }
 0xb30   : > { %3089 = vrot.lane.b32.xlu1 %v7331_v5, %s9337_s17  ;;  %s359_s17 = scalar_lea.vmem %s9217_s10, %s9474_s25 }
 0xb31   : > { %v2912_v48 = vpop.permute.xlu2 %2911  ;;  %v2880_v43 = vpop.permute.xlu0 %2879 }
 0xb32   : > { %v2882_v14 = vpop.permute.xlu1 %2881  ;;  %v2891_v24 = vadd.f32 %v2880_v43, %v2875_v40 }
 0xb33   : > { %v2892_v42 = vadd.f32 %v2882_v14, %v2876_v59 }
 0xb35   : > { %v2908_v21 = vadd.f32 %v2898_v13, %v2892_v42 }
 0xb39   : > { %v2918_v28 = vpop.permute.xlu2 %2917  ;;  %v2886_v7 = vpop.permute.xlu0 %2885 }
 0xb3a   : > { %v2896_v17 = vpop.permute.xlu1 %2895  ;;  %v2894_v26 = vadd.f32 %v2886_v7, %v2878_v46 }
 0xb3b   : > { %v2907_v62 = vadd.f32 %v2896_v17, %v2891_v24 }
 0xb3d   : > { %v2923_v51 = vadd.f32 %v2912_v48, %v2907_v62 }
 0xb3f   : > { %2927 = vst.msk [vmem:[#allocation2] sm:$0xff] %vm489_vm0, %v2923_v51 }
 0xb41   : > { %v7535_v33 = vpop.permute.xlu2 %2957  ;;  %v2900_v6 = vpop.permute.xlu0 %2899 }
 0xb42   : > { %v2902_v19 = vpop.permute.xlu1 %2901  ;;  %v2909_v2 = vadd.f32 %v2900_v6, %v2893_v22 }
 0xb43   : > { %v2910_v35 = vadd.f32 %v2902_v19, %v2894_v26  ;;  %v2968_v26 = vadd.f32 %v7535_v33, %v7465_v11 }
 0xb45   : > { %v2926_v29 = vadd.f32 %v2918_v28, %v2910_v35 }
 0xb47   : > { %2930 = vst.msk [vmem:[#allocation2 + $0x18] sm:$0xff] %vm489_vm0, %v2926_v29 }
 0xb49   : > { %v7538_v25 = vpop.permute.xlu2 %2971  ;;  %v2914_v36 = vpop.permute.xlu0 %2913 }
 0xb4a   : > { %v2916_v55 = vpop.permute.xlu1 %2915  ;;  %v2924_v50 = vadd.f32 %v2914_v36, %v2908_v21 }
 0xb4b   : > { %v2925_v12 = vadd.f32 %v2916_v55, %v2909_v2 }
 0xb4c   : > { %2928 = vst.msk [vmem:[#allocation2 + $0x8] sm:$0xff] %vm489_vm0, %v2924_v50 }
 0xb4d   : > { %2929 = vst.msk [vmem:[#allocation2 + $0x10] sm:$0xff] %vm489_vm0, %v2925_v12  ;;  %vm9392_vm0 = vcmask 56368  }
 0xb4e   : > { %vm9396_vm9 = vmmov %vm9392_vm0 }
 0xb51   : > { %v7542_v16 = vpop.permute.xlu2 %2977  ;;  %v2960_v57 = vpop.permute.xlu0 %2959 }
 0xb52   : > { %v2956_v30 = vpop.permute.xlu1 %2955  ;;  %v2969_v19 = vadd.f32 %v2960_v57, %v7453_v53 }
 0xb53   : > { %v2967_v58 = vadd.f32 %v2956_v30, %v7456_v1 }
 0xb55   : > { %v2983_v33 = vadd.f32 %v7538_v25, %v2967_v58 }
 0xb59   : > { %v7544_v60 = vpop.permute.xlu2 %2991  ;;  %v2974_v4 = vpop.permute.xlu0 %2973 }
 0xb5a   : > { %v7546_v47 = vpop.permute.xlu1 %2961  ;;  %v2984_v6 = vadd.f32 %v2974_v4, %v2968_v26 }
 0xb5b   : > { %v2970_v21 = vadd.f32 %v7546_v47, %v7468_v8 }
 0xb5d   : > { %v2986_v25 = vadd.f32 %v7542_v16, %v2970_v21 }
 0xb61   : > { %v3006_v44 = vpop.permute.xlu2 %3005  ;;  %v7548_v27 = vpop.permute.xlu0 %2987 }
 0xb62   : > { %v2976_v13 = vpop.permute.xlu1 %2975  ;;  %v2999_v53 = vadd.f32 %v7548_v27, %v2983_v33 }
 0xb63   : > { %v2985_v42 = vadd.f32 %v2976_v13, %v2969_v19 }
 0xb65   : > { %v3001_v22 = vadd.f32 %v7544_v60, %v2985_v42 }
 0xb69   : > { %v7550_v38 = vpop.permute.xlu2 %3019  ;;  %v7552_v52 = vpop.permute.xlu0 %2993 }
 0xb6a   : > { %v2990_v49 = vpop.permute.xlu1 %2989  ;;  %v3002_v57 = vadd.f32 %v7552_v52, %v2986_v25 }
 0xb6b   : > { %v3000_v59 = vadd.f32 %v2990_v49, %v2984_v6 }
 0xb6d   : > { %v3016_v35 = vadd.f32 %v3006_v44, %v3000_v59 }
 0xb71   : > { %v7554_v20 = vpop.permute.xlu2 %3025  ;;  %v3008_v48 = vpop.permute.xlu0 %3007 }
 0xb72   : > { %v3004_v43 = vpop.permute.xlu1 %3003  ;;  %v3017_v1 = vadd.f32 %v3008_v48, %v3001_v22 }
 0xb73   : > { %v3015_v2 = vadd.f32 %v3004_v43, %v2999_v53 }
 0xb75   : > { %v3031_v50 = vadd.f32 %v7550_v38, %v3015_v2 }
 0xb79   : > { %v7556_v14 = vpop.permute.xlu2 %3039  ;;  %v3022_v37 = vpop.permute.xlu0 %3021 }
 0xb7a   : > { %v7558_v10 = vpop.permute.xlu1 %3009  ;;  %v3032_v11 = vadd.f32 %v3022_v37, %v3016_v35 }
 0xb7b   : > { %v3018_v60 = vadd.f32 %v7558_v10, %v3002_v57 }
 0xb7d   : > { %v3034_v47 = vadd.f32 %v7554_v20, %v3018_v60 }
 0xb81   : > { %v3054_v40 = vpop.permute.xlu2 %3053  ;;  %v7560_v45 = vpop.permute.xlu0 %3035 }
 0xb82   : > { %v3024_v24 = vpop.permute.xlu1 %3023  ;;  %v3047_v8 = vadd.f32 %v7560_v45, %v3031_v50 }
 0xb83   : > { %v3033_v55 = vadd.f32 %v3024_v24, %v3017_v1 }
 0xb85   : > { %v3049_v12 = vadd.f32 %v7556_v14, %v3033_v55 }
 0xb89   : > { %v3092_v28 = vpop.permute.xlu2 %3091  ;;  %v7562_v7 = vpop.permute.xlu0 %3041 }
 0xb8a   : > { %v7565_v0 = vmul.f32 %v3092_v28, %v7378_v54  ;;  %v3038_v17 = vpop.permute.xlu1 %3037  ;;  %v3050_v16 = vadd.f32 %v7562_v7, %v3034_v47 }
 0xb8b   : > { %v3048_v29 = vadd.f32 %v3038_v17, %v3032_v11 }
 0xb8c   : > { %3111 = vrot.lane.b32.xlu0 %v7565_v0, %s5639_s23 }
 0xb8d   : > { %v3064_v36 = vadd.f32 %v3054_v40, %v3048_v29 }
 0xb91   : > { %v3056_v39 = vpop.permute.xlu0 %3055 }
 0xb92   : > { %v3052_v3 = vpop.permute.xlu1 %3051  ;;  %v3065_v30 = vadd.f32 %v3056_v39, %v3049_v12 }
 0xb93   : > { %v3063_v4 = vadd.f32 %v3052_v3, %v3047_v8 }
 0xb99   : > { %v3088_v62 = vpop.permute.xlu0 %3087 }
 0xb9a   : > { %v7569_v34 = vpop.permute.xlu1 %3057  ;;  %v7572_v51 = vmul.f32 %v3088_v62, %v7374_v15 }
 0xb9b   : > { %v3066_v44 = vadd.f32 %v7569_v34, %v3050_v16 }
 0xb9c   : > { %3107 = vrot.lane.b32.xlu1 %v7572_v51, %s5639_s23 }
 0xba1   : > { %v3094_v31 = vpop.permute.xlu0 %3093 }
 0xba2   : > { %v3090_v46 = vpop.permute.xlu1 %3089  ;;  %v7577_v9 = vmul.f32 %v3094_v31, %v7398_v61 }
 0xba3   : > { %v7580_v23 = vmul.f32 %v3090_v46, %v7376_v32 }
 0xba4   : > { %3113 = vrot.lane.b32.xlu1 %v7577_v9, %s5639_s23 }
 0xba5   : > { %3125 = vrot.lane.b32.xlu0 %v7580_v23, %s5640_s24  ;;  %3109 = vrot.lane.b32.xlu2 %v7580_v23, %s5639_s23 }
 0xbac   : > { %3127 = vrot.lane.b32.xlu1 %v7565_v0, %s5640_s24 }
 0xbad   : > { %3139 = vrot.lane.b32.xlu0 %v7572_v51, %s5641_s29  ;;  %3123 = vrot.lane.b32.xlu2 %v7572_v51, %s5640_s24 }
 0xbb4   : > { %3141 = vrot.lane.b32.xlu1 %v7580_v23, %s5641_s29 }
 0xbb5   : > { %3145 = vrot.lane.b32.xlu0 %v7577_v9, %s5641_s29  ;;  %3129 = vrot.lane.b32.xlu2 %v7577_v9, %s5640_s24 }
 0xbbc   : > { %3155 = vrot.lane.b32.xlu1 %v7572_v51, %s5642_s30 }
 0xbbd   : > { %3159 = vrot.lane.b32.xlu0 %v7565_v0, %s5642_s30  ;;  %3143 = vrot.lane.b32.xlu2 %v7565_v0, %s5641_s29 }
 0xbc4   : > { %3161 = vrot.lane.b32.xlu1 %v7577_v9, %s5642_s30 }
 0xbc5   : > { %3173 = vrot.lane.b32.xlu0 %v7580_v23, %s5643_s11  ;;  %3157 = vrot.lane.b32.xlu2 %v7580_v23, %s5642_s30 }
 0xbcc   : > { %3175 = vrot.lane.b32.xlu1 %v7565_v0, %s5643_s11 }
 0xbcd   : > { %3187 = vrot.lane.b32.xlu0 %v7572_v51, %s5644_s12  ;;  %3171 = vrot.lane.b32.xlu2 %v7572_v51, %s5643_s11 }
 0xbd4   : > { %3189 = vrot.lane.b32.xlu1 %v7580_v23, %s5644_s12 }
 0xbd5   : > { %3193 = vrot.lane.b32.xlu0 %v7577_v9, %s5644_s12  ;;  %3177 = vrot.lane.b32.xlu2 %v7577_v9, %s5643_s11 }
 0xbdc   : > { %3203 = vrot.lane.b32.xlu1 %v7572_v51, %s5645_s16 }
 0xbdd   : > { %3207 = vrot.lane.b32.xlu0 %v7565_v0, %s5645_s16  ;;  %3191 = vrot.lane.b32.xlu2 %v7565_v0, %s5644_s12 }
 0xbe4   : > { %3209 = vrot.lane.b32.xlu1 %v7577_v9, %s5645_s16 }
 0xbe5   : > { %3073 = vrot.lane.b32.xlu0 %v3064_v36, %s9338_s27  ;;  %3205 = vrot.lane.b32.xlu2 %v7580_v23, %s5645_s16 }
 0xbec   : > { %3075 = vrot.lane.b32.xlu1 %v3065_v30, %s9338_s27 }
 0xbed   : > { %3071 = vrot.lane.b32.xlu2 %v3063_v4, %s9338_s27 }
 0xbf5   : > { %3077 = vrot.lane.b32.xlu2 %v3066_v44, %s9338_s27 }
 0xbfe   : > { %v3112_v52 = vpop.permute.xlu0 %3111 }
 0xbff   : > { %v3110_v27 = vpop.permute.xlu2 %3109  ;;  %v3121_v58 = vadd.f32 %v3112_v52, %v7565_v0 }
 0xc00   : > { %v3120_v34 = vadd.f32 %v3110_v27, %v7580_v23 }
 0xc07   : > { %v3124_v13 = vpop.permute.xlu2 %3123 }
 0xc0e   : > { %v3108_v38 = vpop.permute.xlu1 %3107 }
 0xc0f   : > { %v3130_v49 = vpop.permute.xlu2 %3129  ;;  %v3119_v26 = vadd.f32 %v3108_v38, %v7572_v51 }
 0xc11   : > { %v3135_v42 = vadd.f32 %v3124_v13, %v3119_v26 }
 0xc16   : > { %v3114_v48 = vpop.permute.xlu1 %3113 }
 0xc17   : > { %v3144_v43 = vpop.permute.xlu2 %3143  ;;  %v3126_v14 = vpop.permute.xlu0 %3125  ;;  %v3122_v1 = vadd.f32 %v3114_v48, %v7577_v9 }
 0xc18   : > { %v3136_v31 = vadd.f32 %v3126_v14, %v3120_v34 }
 0xc19   : > { %v3138_v50 = vadd.f32 %v3130_v49, %v3122_v1 }
 0xc1e   : > { %v3128_v37 = vpop.permute.xlu1 %3127 }
 0xc1f   : > { %v3158_v10 = vpop.permute.xlu2 %3157  ;;  %v3140_v40 = vpop.permute.xlu0 %3139  ;;  %v3137_v35 = vadd.f32 %v3128_v37, %v3121_v58 }
 0xc20   : > { %v3151_v33 = vadd.f32 %v3140_v40, %v3135_v42 }
 0xc21   : > { %v3153_v22 = vadd.f32 %v3144_v43, %v3137_v35 }
 0xc26   : > { %v3142_v45 = vpop.permute.xlu1 %3141 }
 0xc27   : > { %v3172_v24 = vpop.permute.xlu2 %3171  ;;  %v3146_v20 = vpop.permute.xlu0 %3145  ;;  %v3152_v6 = vadd.f32 %v3142_v45, %v3136_v31 }
 0xc28   : > { %v3154_v12 = vadd.f32 %v3146_v20, %v3138_v50 }
 0xc29   : > { %v3168_v11 = vadd.f32 %v3158_v10, %v3152_v6 }
 0xc2e   : > { %v3156_v28 = vpop.permute.xlu1 %3155 }
 0xc2f   : > { %v3178_v7 = vpop.permute.xlu2 %3177  ;;  %v3160_v17 = vpop.permute.xlu0 %3159  ;;  %v3167_v21 = vadd.f32 %v3156_v28, %v3151_v33 }
 0xc30   : > { %v3169_v55 = vadd.f32 %v3160_v17, %v3153_v22 }
 0xc31   : > { %v3183_v0 = vadd.f32 %v3172_v24, %v3167_v21 }
 0xc36   : > { %v3162_v39 = vpop.permute.xlu1 %3161 }
 0xc37   : > { %v3192_v3 = vpop.permute.xlu2 %3191  ;;  %v3174_v62 = vpop.permute.xlu0 %3173  ;;  %v3170_v60 = vadd.f32 %v3162_v39, %v3154_v12 }
 0xc38   : > { %v3184_v29 = vadd.f32 %v3174_v62, %v3168_v11 }
 0xc39   : > { %v3186_v44 = vadd.f32 %v3178_v7, %v3170_v60 }
 0xc3e   : > { %v3176_v46 = vpop.permute.xlu1 %3175 }
 0xc3f   : > { %v3206_v59 = vpop.permute.xlu2 %3205  ;;  %v3188_v19 = vpop.permute.xlu0 %3187  ;;  %v3185_v25 = vadd.f32 %v3176_v46, %v3169_v55 }
 0xc40   : > { %v3199_v57 = vadd.f32 %v3188_v19, %v3183_v0 }
 0xc41   : > { %v3201_v30 = vadd.f32 %v3192_v3, %v3185_v25 }
 0xc46   : > { %v3190_v53 = vpop.permute.xlu1 %3189 }
 0xc47   : > { %v3072_v23 = vpop.permute.xlu2 %3071  ;;  %v3200_v2 = vadd.f32 %v3190_v53, %v3184_v29  ;;  %v3194_v36 = vpop.permute.xlu0 %3193 }
 0xc48   : > { %3083 = vst.msk [vmem:[#allocation2] sm:$0xff] %vm646_vm1, %v3072_v23  ;;  %v3202_v27 = vadd.f32 %v3194_v36, %v3186_v44 }
 0xc49   : > { %v3216_v51 = vadd.f32 %v3206_v59, %v3200_v2 }
 0xc4b   : > { %3225 = vrot.lane.b32.xlu0 %v3216_v51, %s9339_s22 }
 0xc4e   : > { %v3204_v8 = vpop.permute.xlu1 %3203 }
 0xc4f   : > { %v3078_v4 = vpop.permute.xlu2 %3077  ;;  %v3215_v9 = vadd.f32 %v3204_v8, %v3199_v57  ;;  %v3208_v47 = vpop.permute.xlu0 %3207 }
 0xc50   : > { %3086 = vst.msk [vmem:[#allocation2 + $0x18] sm:$0xff] %vm646_vm1, %v3078_v4  ;;  %v3217_v16 = vadd.f32 %v3208_v47, %v3201_v30 }
 0xc51   : > { %3223 = vrot.lane.b32.xlu2 %v3215_v9, %s9339_s22 }
 0xc52   : > { %3227 = vrot.lane.b32.xlu1 %v3217_v16, %s9339_s22 }
 0xc53   : > { %3239 = vrot.lane.b32.xlu0 %v7326_v63, %s9340_s21 }
 0xc56   : > { %v3210_v13 = vpop.permute.xlu1 %3209 }
 0xc57   : > { %v3218_v38 = vadd.f32 %v3210_v13, %v3202_v27  ;;  %v3074_v52 = vpop.permute.xlu0 %3073 }
 0xc58   : > { %3084 = vst.msk [vmem:[#allocation2 + $0x8] sm:$0xff] %vm646_vm1, %v3074_v52 }
 0xc59   : > { %3229 = vrot.lane.b32.xlu2 %v3218_v38, %s9339_s22 }
 0xc5a   : > { %3241 = vrot.lane.b32.xlu1 %v7331_v5, %s9340_s21 }
 0xc5b   : > { %3245 = vrot.lane.b32.xlu0 %v7341_v41, %s9340_s21 }
 0xc5e   : > { %v3076_v49 = vpop.permute.xlu1 %3075 }
 0xc5f   : > { %3085 = vst.msk [vmem:[#allocation2 + $0x10] sm:$0xff] %vm646_vm1, %v3076_v49  ;;  %vm9393_vm1 = vmmov %vm9392_vm0 }
 0xc61   : > { %3243 = vrot.lane.b32.xlu2 %v7356_v18, %s9340_s21 }
 0xcab   : > { %v3224_v48 = vpop.permute.xlu2 %3223 }
 0xcac   : > { %3235 = vst.msk [vmem:[#allocation2] sm:$0xff] %vm799_vm2, %v3224_v48 }
 0xcb3   : > { %v3230_v43 = vpop.permute.xlu2 %3229 }
 0xcb4   : > { %3238 = vst.msk [vmem:[#allocation2 + $0x18] sm:$0xff] %vm799_vm2, %v3230_v43 }
 0xcbb   : > { %v3244_v14 = vpop.permute.xlu2 %3243 }
 0xcbc   : > { %v7679_v37 = vmul.f32 %v3244_v14, %v7378_v54 }
 0xcbd   : > { %v3226_v10 = vpop.permute.xlu0 %3225 }
 0xcbe   : > { %3236 = vst.msk [vmem:[#allocation2 + $0x8] sm:$0xff] %vm799_vm2, %v3226_v10  ;;  %3263 = vrot.lane.b32.xlu0 %v7679_v37, %s5639_s23 }
 0xcc4   : > { %v3228_v40 = vpop.permute.xlu1 %3227 }
 0xcc5   : > { %3237 = vst.msk [vmem:[#allocation2 + $0x10] sm:$0xff] %vm799_vm2, %v3228_v40  ;;  %v3240_v45 = vpop.permute.xlu0 %3239  ;;  %vm9394_vm2 = vcmask 64568  }
 0xcc6   : > { %v7686_v24 = vmul.f32 %v3240_v45, %v7374_v15  ;;  %3393 = vrot.lane.b32.xlu0 %v7331_v5, %s9341_s26  ;;  %vm9399_vm7 = vmmov %vm9394_vm2 }
 0xcc8   : > { %3259 = vrot.lane.b32.xlu1 %v7686_v24, %s5639_s23 }
 0xccc   : > { %v3242_v20 = vpop.permute.xlu1 %3241 }
 0xccd   : > { %v7693_v28 = vmul.f32 %v3242_v20, %v7376_v32  ;;  %v3246_v7 = vpop.permute.xlu0 %3245 }
 0xcce   : > { %v7696_v17 = vmul.f32 %v3246_v7, %v7398_v61  ;;  %3395 = vrot.lane.b32.xlu0 %v7356_v18, %s9341_s26 }
 0xccf   : > { %3261 = vrot.lane.b32.xlu2 %v7693_v28, %s5639_s23 }
 0xcd0   : > { %3265 = vrot.lane.b32.xlu1 %v7696_v17, %s5639_s23 }
 0xcd6   : > { %3547 = vrot.lane.b32.xlu0 %v7356_v18, %s9342_s15 }
 0xcd7   : > { %3391 = vrot.lane.b32.xlu2 %v7326_v63, %s9341_s26 }
 0xcd8   : > { %3543 = vrot.lane.b32.xlu1 %v7326_v63, %s9342_s15 }
 0xcde   : > { %3397 = vrot.lane.b32.xlu0 %v7341_v41, %s9341_s26 }
 0xcdf   : > { %3545 = vrot.lane.b32.xlu2 %v7331_v5, %s9342_s15 }
 0xce0   : > { %3695 = vrot.lane.b32.xlu1 %v7326_v63, %s9343_s28 }
 0xce6   : > { %3851 = vrot.lane.b32.xlu0 %v7356_v18, %s9344_s18 }
 0xce7   : > { %3697 = vrot.lane.b32.xlu2 %v7331_v5, %s9343_s28 }
 0xce8   : > { %3847 = vrot.lane.b32.xlu1 %v7326_v63, %s9344_s18 }
 0xcef   : > { %3849 = vrot.lane.b32.xlu2 %v7331_v5, %s9344_s18 }
 0xcf0   : > { %3699 = vrot.lane.b32.xlu1 %v7356_v18, %s9343_s28 }
 0xcf7   : > { %3549 = vrot.lane.b32.xlu2 %v7341_v41, %s9342_s15 }
 0xcf8   : > { %3701 = vrot.lane.b32.xlu1 %v7341_v41, %s9343_s28 }
 0xcff   : > { %3853 = vrot.lane.b32.xlu2 %v7341_v41, %s9344_s18 }
 0xd07   : > { %3275 = vrot.lane.b32.xlu2 %v7686_v24, %s5640_s24 }
 0xd29   : > { %v7734_v39 = vpop.permute.xlu2 %3261 }
 0xd30   : > { %v7736_v63 = vpop.permute.xlu0 %3263 }
 0xd31   : > { %v3392_v5 = vpop.permute.xlu2 %3391 }
 0xd32   : > { %v7739_v3 = vmul.f32 %v3392_v5, %v7374_v15 }
 0xd34   : > { %3411 = vrot.lane.b32.xlu0 %v7739_v3, %s5639_s23 }
 0xd38   : > { %v3394_v18 = vpop.permute.xlu0 %3393 }
 0xd39   : > { %v3546_v62 = vpop.permute.xlu2 %3545  ;;  %v7744_v34 = vmul.f32 %v3394_v18, %v7376_v32 }
 0xd3a   : > { %v7747_v41 = vmul.f32 %v3546_v62, %v7376_v32  ;;  %v7749_v31 = vpop.permute.xlu1 %3259 }
 0xd3b   : > { %3413 = vrot.lane.b32.xlu1 %v7744_v34, %s5639_s23 }
 0xd3c   : > { %3277 = vrot.lane.b32.xlu0 %v7693_v28, %s5640_s24  ;;  %3565 = vrot.lane.b32.xlu2 %v7747_v41, %s5639_s23 }
 0xd40   : > { %v3396_v46 = vpop.permute.xlu0 %3395 }
 0xd41   : > { %v7758_v26 = vmul.f32 %v3396_v46, %v7378_v54  ;;  %v3698_v33 = vpop.permute.xlu2 %3697 }
 0xd42   : > { %v7760_v6 = vpop.permute.xlu1 %3265  ;;  %v7786_v22 = vmul.f32 %v3698_v33, %v7376_v32 }
 0xd44   : > { %3429 = vrot.lane.b32.xlu2 %v7744_v34, %s5640_s24  ;;  %3415 = vrot.lane.b32.xlu0 %v7758_v26, %s5639_s23 }
 0xd48   : > { %v3548_v58 = vpop.permute.xlu0 %3547 }
 0xd49   : > { %v7774_v35 = vmul.f32 %v3548_v58, %v7378_v54  ;;  %v3850_v1 = vpop.permute.xlu2 %3849 }
 0xd4a   : > { %v3544_v59 = vpop.permute.xlu1 %3543  ;;  %v7804_v23 = vmul.f32 %v3850_v1, %v7376_v32 }
 0xd4b   : > { %v7767_v19 = vmul.f32 %v3544_v59, %v7374_v15 }
 0xd4c   : > { %3279 = vrot.lane.b32.xlu2 %v7679_v37, %s5640_s24 }
 0xd4d   : > { %3563 = vrot.lane.b32.xlu1 %v7767_v19, %s5639_s23 }
 0xd50   : > { %v3398_v36 = vpop.permute.xlu0 %3397 }
 0xd51   : > { %v7816_v55 = vmul.f32 %v3398_v36, %v7398_v61  ;;  %v3550_v51 = vpop.permute.xlu2 %3549 }
 0xd52   : > { %v3696_v42 = vpop.permute.xlu1 %3695  ;;  %v7837_v50 = vmul.f32 %v3550_v51, %v7398_v61 }
 0xd53   : > { %v7777_v11 = vmul.f32 %v3696_v42, %v7374_v15 }
 0xd54   : > { %3567 = vrot.lane.b32.xlu2 %v7774_v35, %s5639_s23 }
 0xd55   : > { %3427 = vrot.lane.b32.xlu1 %v7739_v3, %s5640_s24  ;;  %3715 = vrot.lane.b32.xlu0 %v7777_v11, %s5639_s23 }
 0xd58   : > { %v3852_v57 = vpop.permute.xlu0 %3851 }
 0xd59   : > { %v3854_v25 = vpop.permute.xlu2 %3853  ;;  %v7856_v30 = vmul.f32 %v3852_v57, %v7378_v54 }
 0xd5a   : > { %v3848_v29 = vpop.permute.xlu1 %3847  ;;  %v7900_v38 = vmul.f32 %v3854_v25, %v7398_v61 }
 0xd5b   : > { %v7789_v53 = vmul.f32 %v3848_v29, %v7374_v15 }
 0xd5d   : > { %3717 = vrot.lane.b32.xlu1 %v7786_v22, %s5639_s23  ;;  %3291 = vrot.lane.b32.xlu0 %v7686_v24, %s5641_s29 }
 0xd5e   : > { %3867 = vrot.lane.b32.xlu2 %v7789_v53, %s5639_s23 }
 0xd61   : > { %v7843_v0 = vpop.permute.xlu2 %3275 }
 0xd62   : > { %v3700_v21 = vpop.permute.xlu1 %3699 }
 0xd63   : > { %v7807_v2 = vmul.f32 %v3700_v21, %v7378_v54 }
 0xd65   : > { %3293 = vrot.lane.b32.xlu1 %v7693_v28, %s5641_s29  ;;  %3579 = vrot.lane.b32.xlu0 %v7767_v19, %s5640_s24 }
 0xd66   : > { %3431 = vrot.lane.b32.xlu2 %v7758_v26, %s5640_s24 }
 0xd6a   : > { %v3702_v8 = vpop.permute.xlu1 %3701 }
 0xd6b   : > { %v7859_v60 = vmul.f32 %v3702_v8, %v7398_v61 }
 0xd6d   : > { %3581 = vrot.lane.b32.xlu1 %v7747_v41, %s5640_s24  ;;  %3869 = vrot.lane.b32.xlu0 %v7804_v23, %s5639_s23 }
 0xd6e   : > { %3719 = vrot.lane.b32.xlu2 %v7807_v2, %s5639_s23 }
 0xd75   : > { %3443 = vrot.lane.b32.xlu0 %v7739_v3, %s5641_s29  ;;  %3417 = vrot.lane.b32.xlu1 %v7816_v55, %s5639_s23 }
 0xd76   : > { %3281 = vrot.lane.b32.xlu2 %v7696_v17, %s5640_s24 }
 0xd7d   : > { %3731 = vrot.lane.b32.xlu0 %v7777_v11, %s5640_s24  ;;  %3445 = vrot.lane.b32.xlu1 %v7744_v34, %s5641_s29 }
 0xd7e   : > { %3309 = vrot.lane.b32.xlu2 %v7693_v28, %s5642_s30 }
 0xd85   : > { %3295 = vrot.lane.b32.xlu0 %v7679_v37, %s5641_s29  ;;  %3733 = vrot.lane.b32.xlu1 %v7786_v22, %s5640_s24 }
 0xd86   : > { %3595 = vrot.lane.b32.xlu2 %v7767_v19, %s5641_s29 }
 0xd8d   : > { %3569 = vrot.lane.b32.xlu0 %v7837_v50, %s5639_s23  ;;  %3307 = vrot.lane.b32.xlu1 %v7686_v24, %s5642_s30 }
 0xd8e   : > { %3883 = vrot.lane.b32.xlu2 %v7789_v53, %s5640_s24 }
 0xd95   : > { %3597 = vrot.lane.b32.xlu0 %v7747_v41, %s5641_s29  ;;  %3583 = vrot.lane.b32.xlu1 %v7774_v35, %s5640_s24 }
 0xd96   : > { %v7851_v12 = vpop.permute.xlu2 %3565  ;;  %3447 = vrot.lane.b32.xlu2 %v7758_v26, %s5641_s29 }
 0xd9d   : > { %3885 = vrot.lane.b32.xlu0 %v7804_v23, %s5640_s24  ;;  %3871 = vrot.lane.b32.xlu1 %v7856_v30, %s5639_s23 }
 0xd9e   : > { %v7865_v4 = vpop.permute.xlu2 %3429  ;;  %3721 = vrot.lane.b32.xlu2 %v7859_v60, %s5639_s23 }
 0xda5   : > { %3459 = vrot.lane.b32.xlu0 %v7739_v3, %s5642_s30  ;;  %3433 = vrot.lane.b32.xlu1 %v7816_v55, %s5640_s24 }
 0xda6   : > { %v7873_v9 = vpop.permute.xlu2 %3279  ;;  %3749 = vrot.lane.b32.xlu2 %v7786_v22, %s5641_s29  ;;  %v7877_v47 = vpop.permute.xlu0 %3411 }
 0xda7   : > { %9345 = vst [vmem:[#allocation9_spill] sm:$0xff] %v7877_v47 }
 0xdad   : > { %3735 = vrot.lane.b32.xlu0 %v7807_v2, %s5640_s24  ;;  %3461 = vrot.lane.b32.xlu1 %v7744_v34, %s5642_s30  ;;  %v7895_v27 = vpop.permute.xlu1 %3413 }
 0xdae   : > { %3323 = vrot.lane.b32.xlu2 %v7686_v24, %s5643_s11  ;;  %v7885_v16 = vpop.permute.xlu2 %3567  ;;  %v7887_v44 = vpop.permute.xlu0 %3277 }
 0xdb5   : > { %3297 = vrot.lane.b32.xlu0 %v7696_v17, %s5641_s29  ;;  %3747 = vrot.lane.b32.xlu1 %v7777_v11, %s5641_s29 }
 0xdb6   : > { %3599 = vrot.lane.b32.xlu2 %v7774_v35, %s5641_s29  ;;  %v7908_v52 = vpop.permute.xlu0 %3415 }
 0xdb7   : > { %9347 = vst [vmem:[#allocation11_spill] sm:$0xff] %v7908_v52 }
 0xdb8   : > { %v7897_v13 = vpop.permute.xlu2 %3867 }
 0xdb9   : > { %9346 = vst [vmem:[#allocation12_spill] sm:$0xff] %v7897_v13 }
 0xdbd   : > { %3325 = vrot.lane.b32.xlu0 %v7693_v28, %s5643_s11  ;;  %3311 = vrot.lane.b32.xlu1 %v7679_v37, %s5642_s30 }
 0xdbe   : > { %3873 = vrot.lane.b32.xlu2 %v7900_v38, %s5639_s23  ;;  %s9382_s23 = smov 3  }
 0xdbf   : > { %v7910_v49 = vpop.permute.xlu1 %3563 }
 0xdc0   : > { %v7912_v48 = vpop.permute.xlu2 %3431 }
 0xdc1   : > { %9348 = vst [vmem:[#allocation8_spill] sm:$0xff] %v7912_v48  ;;  %v3274_v48 = vadd.f32 %v7760_v6, %v7696_v17 }
 0xdc5   : > { %3611 = vrot.lane.b32.xlu0 %v7767_v19, %s5642_s30  ;;  %3585 = vrot.lane.b32.xlu1 %v7837_v50, %s5640_s24 }
 0xdc6   : > { %3901 = vrot.lane.b32.xlu2 %v7804_v23, %s5641_s29 }
 0xdc7   : > { %v7920_v43 = vpop.permute.xlu1 %3427  ;;  %v7922_v14 = vpop.permute.xlu0 %3715 }
 0xdc8   : > { %9349 = vst [vmem:[#allocation10_spill] sm:$0xff] %v7920_v43  ;;  %v7924_v10 = vpop.permute.xlu2 %3719 }
 0xdc9   : > { %9350 = vst [vmem:[#allocation6_spill] sm:$0xff] %v7924_v10 }
 0xdcd   : > { %3887 = vrot.lane.b32.xlu0 %v7856_v30, %s5640_s24  ;;  %3613 = vrot.lane.b32.xlu1 %v7747_v41, %s5642_s30 }
 0xdce   : > { %3475 = vrot.lane.b32.xlu2 %v7739_v3, %s5643_s11 }
 0xdcf   : > { %v7932_v40 = vpop.permute.xlu1 %3717  ;;  %v7934_v45 = vpop.permute.xlu0 %3291 }
 0xdd0   : > { %9351 = vst [vmem:[#allocation7_spill] sm:$0xff] %v7932_v40  ;;  %v7936_v20 = vpop.permute.xlu2 %3281 }
 0xdd1   : > { %v3290_v52 = vadd.f32 %v7936_v20, %v3274_v48 }
 0xdd5   : > { %3449 = vrot.lane.b32.xlu0 %v7816_v55, %s5641_s29  ;;  %3899 = vrot.lane.b32.xlu1 %v7789_v53, %s5641_s29 }
 0xdd6   : > { %3751 = vrot.lane.b32.xlu2 %v7807_v2, %s5641_s29 }
 0xdd7   : > { %v7944_v7 = vpop.permute.xlu1 %3293  ;;  %v7946_v5 = vpop.permute.xlu0 %3579 }
 0xdd8   : > { %v7948_v18 = vpop.permute.xlu2 %3309 }
 0xddd   : > { %3477 = vrot.lane.b32.xlu0 %v7744_v34, %s5643_s11  ;;  %3463 = vrot.lane.b32.xlu1 %v7758_v26, %s5642_s30 }
 0xdde   : > { %3313 = vrot.lane.b32.xlu2 %v7696_v17, %s5642_s30 }
 0xddf   : > { %v7956_v62 = vpop.permute.xlu1 %3581  ;;  %v7958_v46 = vpop.permute.xlu0 %3869 }
 0xde0   : > { %9352 = vst [vmem:[#allocation5_spill] sm:$0xff] %v7958_v46  ;;  %v7960_v59 = vpop.permute.xlu2 %3595 }
 0xde5   : > { %3763 = vrot.lane.b32.xlu0 %v7777_v11, %s5642_s30  ;;  %3737 = vrot.lane.b32.xlu1 %v7859_v60, %s5640_s24 }
 0xde6   : > { %3341 = vrot.lane.b32.xlu2 %v7693_v28, %s5644_s12 }
 0xde7   : > { %v7968_v58 = vpop.permute.xlu1 %3417  ;;  %v7970_v42 = vpop.permute.xlu0 %3443 }
 0xde8   : > { %9353 = vst [vmem:[#allocation4_spill] sm:$0xff] %v7970_v42  ;;  %v7972_v33 = vpop.permute.xlu2 %3883 }
 0xde9   : > { %9354 = vst [vmem:[#allocation17_spill] sm:$0xff] %v7972_v33 }
 0xded   : > { %3327 = vrot.lane.b32.xlu0 %v7679_v37, %s5643_s11  ;;  %3765 = vrot.lane.b32.xlu1 %v7786_v22, %s5642_s30 }
 0xdee   : > { %3627 = vrot.lane.b32.xlu2 %v7767_v19, %s5643_s11 }
 0xdef   : > { %v7980_v29 = vpop.permute.xlu1 %3445  ;;  %v7982_v1 = vpop.permute.xlu0 %3731 }
 0xdf0   : > { %v7984_v21 = vpop.permute.xlu2 %3447 }
 0xdf1   : > { %9355 = vst [vmem:[#allocation18_spill] sm:$0xff] %v7984_v21 }
 0xdf5   : > { %3601 = vrot.lane.b32.xlu0 %v7837_v50, %s5641_s29  ;;  %3339 = vrot.lane.b32.xlu1 %v7686_v24, %s5644_s12 }
 0xdf6   : > { %3903 = vrot.lane.b32.xlu2 %v7856_v30, %s5641_s29 }
 0xdf7   : > { %v7992_v36 = vpop.permute.xlu1 %3733  ;;  %v7994_v51 = vpop.permute.xlu0 %3295 }
 0xdf8   : > { %9356 = vst [vmem:[#allocation19_spill] sm:$0xff] %v7992_v36  ;;  %v7996_v25 = vpop.permute.xlu2 %3721 }
 0xdf9   : > { %9357 = vst [vmem:[#allocation20_spill] sm:$0xff] %v7996_v25 }
 0xdfd   : > { %3629 = vrot.lane.b32.xlu0 %v7747_v41, %s5643_s11  ;;  %3615 = vrot.lane.b32.xlu1 %v7774_v35, %s5642_s30 }
 0xdfe   : > { %3465 = vrot.lane.b32.xlu2 %v7816_v55, %s5642_s30 }
 0xdff   : > { %v8004_v57 = vpop.permute.xlu1 %3307  ;;  %v8006_v8 = vpop.permute.xlu0 %3569 }
 0xe00   : > { %v8008_v56 = vpop.permute.xlu2 %3749 }
 0xe01   : > { %9358 = vst [vmem:[#allocation21_spill] sm:$0xff] %v8008_v56 }
 0xe05   : > { %3915 = vrot.lane.b32.xlu0 %v7789_v53, %s5642_s30  ;;  %3889 = vrot.lane.b32.xlu1 %v7900_v38, %s5640_s24  ;;  %s9388_s24 = smov 4  }
 0xe06   : > { %3493 = vrot.lane.b32.xlu2 %v7744_v34, %s5644_s12 }
 0xe07   : > { %v8016_v54 = vpop.permute.xlu1 %3583  ;;  %v8018_v61 = vpop.permute.xlu0 %3597 }
 0xe08   : > { %v8020_v32 = vpop.permute.xlu2 %3323 }
 0xe0d   : > { %3479 = vrot.lane.b32.xlu0 %v7758_v26, %s5643_s11  ;;  %3917 = vrot.lane.b32.xlu1 %v7804_v23, %s5642_s30 }
 0xe0e   : > { %3779 = vrot.lane.b32.xlu2 %v7777_v11, %s5643_s11 }
 0xe0f   : > { %v3872_v15 = vpop.permute.xlu1 %3871  ;;  %v8028_v42 = vpop.permute.xlu0 %3885 }
 0xe10   : > { %9359 = vst [vmem:[#allocation22_spill] sm:$0xff] %v8028_v42  ;;  %v8030_v43 = vpop.permute.xlu2 %3599 }
 0xe15   : > { %3753 = vrot.lane.b32.xlu0 %v7859_v60, %s5641_s29  ;;  %3491 = vrot.lane.b32.xlu1 %v7739_v3, %s5644_s12 }
 0xe16   : > { %3343 = vrot.lane.b32.xlu2 %v7679_v37, %s5644_s12 }
 0xe17   : > { %v8038_v47 = vpop.permute.xlu1 %3433  ;;  %v8040_v56 = vpop.permute.xlu0 %3459 }
 0xe18   : > { %9360 = vst [vmem:[#allocation23_spill] sm:$0xff] %v8040_v56  ;;  %v8042_v36 = vpop.permute.xlu2 %3873 }
 0xe19   : > { %9361 = vst [vmem:[#allocation24_spill] sm:$0xff] %v8042_v36 }
 0xe1d   : > { %3781 = vrot.lane.b32.xlu0 %v7786_v22, %s5643_s11  ;;  %3767 = vrot.lane.b32.xlu1 %v7807_v2, %s5642_s30 }
 0xe1e   : > { %3617 = vrot.lane.b32.xlu2 %v7837_v50, %s5642_s30 }
 0xe1f   : > { %v8050_v10 = vpop.permute.xlu1 %3461  ;;  %v8052_v40 = vpop.permute.xlu0 %3735 }
 0xe20   : > { %9362 = vst [vmem:[#allocation25_spill] sm:$0xff] %v8052_v40  ;;  %v8054_v25 = vpop.permute.xlu2 %3901 }
 0xe21   : > { %9363 = vst [vmem:[#allocation26_spill] sm:$0xff] %v8054_v25 }
 0xe25   : > { %3355 = vrot.lane.b32.xlu0 %v7686_v24, %s5645_s16  ;;  %3329 = vrot.lane.b32.xlu1 %v7696_v17, %s5643_s11 }
 0xe26   : > { %3645 = vrot.lane.b32.xlu2 %v7747_v41, %s5644_s12 }
 0xe27   : > { %v8062_v56 = vpop.permute.xlu1 %3747  ;;  %v3298_v42 = vpop.permute.xlu0 %3297 }
 0xe28   : > { %v8064_v21 = vpop.permute.xlu2 %3475 }
 0xe29   : > { %9364 = vst [vmem:[#allocation27_spill] sm:$0xff] %v8064_v21  ;;  %v3272_v21 = vadd.f32 %v7734_v39, %v7693_v28 }
 0xe2b   : > { %v3288_v36 = vadd.f32 %v7887_v44, %v3272_v21 }
 0xe2d   : > { %3631 = vrot.lane.b32.xlu0 %v7774_v35, %s5643_s11  ;;  %3357 = vrot.lane.b32.xlu1 %v7693_v28, %s5645_s16  ;;  %v3304_v28 = vadd.f32 %v7944_v7, %v3288_v36 }
 0xe2e   : > { %3931 = vrot.lane.b32.xlu2 %v7789_v53, %s5643_s11 }
 0xe2f   : > { %v8072_v40 = vpop.permute.xlu1 %3311  ;;  %v3326_v25 = vpop.permute.xlu0 %3325  ;;  %v3320_v48 = vadd.f32 %v7948_v18, %v3304_v28 }
 0xe30   : > { %v8074_v46 = vpop.permute.xlu2 %3751 }
 0xe31   : > { %9365 = vst [vmem:[#allocation28_spill] sm:$0xff] %v8074_v46  ;;  %v3306_v46 = vadd.f32 %v3298_v42, %v3290_v52  ;;  %v3336_v44 = vadd.f32 %v3326_v25, %v3320_v48 }
 0xe35   : > { %3905 = vrot.lane.b32.xlu0 %v7900_v38, %s5641_s29  ;;  %3643 = vrot.lane.b32.xlu1 %v7767_v19, %s5644_s12  ;;  %s9389_s29 = smov 5  }
 0xe36   : > { %3495 = vrot.lane.b32.xlu2 %v7758_v26, %s5644_s12 }
 0xe37   : > { %v8088_v33 = vpop.permute.xlu1 %3585  ;;  %v3612_v6 = vpop.permute.xlu0 %3611 }
 0xe38   : > { %v3314_v13 = vpop.permute.xlu2 %3313 }
 0xe39   : > { %v8091_v39 = vadd.f32 %v3314_v13, %v3306_v46  ;;  %v3575_v13 = vadd.f32 %v7910_v49, %v7767_v19 }
 0xe3b   : > { %v3591_v18 = vadd.f32 %v7946_v5, %v3575_v13  ;;  %v3881_v5 = vadd.f32 %v3872_v15, %v7856_v30  ;;  %v3426_v13 = vadd.f32 %v7968_v58, %v7816_v55  ;;  %v3424_v15 = vadd.f32 %v7895_v27, %v7744_v34 }
 0xe3c   : > { %v3273_v58 = vadd.f32 %v7736_v63, %v7679_v37  ;;  %v3271_v63 = vadd.f32 %v7749_v31, %v7686_v24 }
 0xe3d   : > { %3933 = vrot.lane.b32.xlu0 %v7804_v23, %s5643_s11  ;;  %3919 = vrot.lane.b32.xlu1 %v7856_v30, %s5642_s30  ;;  %v3607_v46 = vadd.f32 %v7960_v59, %v3591_v18  ;;  %v3442_v18 = vadd.f32 %v8038_v47, %v3426_v13 }
 0xe3e   : > { %3769 = vrot.lane.b32.xlu2 %v7859_v60, %s5642_s30  ;;  %v3289_v27 = vadd.f32 %v7873_v9, %v3273_v58 }
 0xe3f   : > { %v8100_v52 = vpop.permute.xlu1 %3613  ;;  %v3888_v20 = vpop.permute.xlu0 %3887  ;;  %v3623_v21 = vadd.f32 %v3612_v6, %v3607_v46 }
 0xe40   : > { %v3342_v42 = vpop.permute.xlu2 %3341  ;;  %v3897_v59 = vadd.f32 %v3888_v20, %v3881_v5 }
 0xe41   : > { %v8104_v7 = vadd.f32 %v3342_v42, %v3336_v44 }
 0xe45   : > { %3507 = vrot.lane.b32.xlu0 %v7739_v3, %s5645_s16  ;;  %3481 = vrot.lane.b32.xlu1 %v7816_v55, %s5643_s11 }
 0xe46   : > { %3797 = vrot.lane.b32.xlu2 %v7786_v22, %s5644_s12 }
 0xe47   : > { %v8114_v36 = vpop.permute.xlu1 %3899  ;;  %v3450_v25 = vpop.permute.xlu0 %3449 }
 0xe48   : > { %v3628_v49 = vpop.permute.xlu2 %3627  ;;  %v3458_v20 = vadd.f32 %v3450_v25, %v3442_v18 }
 0xe49   : > { %v8116_v28 = vadd.f32 %v3628_v49, %v3623_v21 }
 0xe4d   : > { %3783 = vrot.lane.b32.xlu0 %v7807_v2, %s5643_s11  ;;  %3509 = vrot.lane.b32.xlu1 %v7744_v34, %s5645_s16  ;;  %v3440_v34 = vadd.f32 %v7865_v4, %v3424_v15  ;;  %v3727_v15 = vadd.f32 %v7922_v14, %v7777_v11 }
 0xe4e   : > { %3633 = vrot.lane.b32.xlu2 %v7837_v50, %s5643_s11 }
 0xe4f   : > { %v8125_v48 = vpop.permute.xlu1 %3463  ;;  %v3478_v6 = vpop.permute.xlu0 %3477  ;;  %v3456_v5 = vadd.f32 %v7980_v29, %v3440_v34  ;;  %v3743_v31 = vadd.f32 %v7982_v1, %v3727_v15 }
 0xe50   : > { %v3904_v44 = vpop.permute.xlu2 %3903 }
 0xe51   : > { %v8127_v42 = vadd.f32 %v3904_v44, %v3897_v59  ;;  %v3305_v59 = vadd.f32 %v7994_v51, %v3289_v27  ;;  %v3472_v44 = vadd.f32 %v8050_v10, %v3456_v5  ;;  %v3287_v10 = vadd.f32 %v7843_v0, %v3271_v63  ;;  %v9366_v5 = vld [vmem:[#allocation12_spill] sm:$0xff] }
 0xe52   : > { %v3759_v18 = vadd.f32 %v8062_v56, %v3743_v31  ;;  %v9370_v31 = vld [vmem:[#allocation8_spill] sm:$0xff] }
 0xe53   : > { %v3321_v4 = vadd.f32 %v8072_v40, %v3305_v59  ;;  %v3488_v9 = vadd.f32 %v3478_v6, %v3472_v44  ;;  %v3303_v24 = vadd.f32 %v7934_v45, %v3287_v10  ;;  %v3578_v6 = vadd.f32 %v8006_v8, %v7837_v50  ;;  %v9367_v44 = vld [vmem:[#allocation17_spill] sm:$0xff] }
 0xe54   : > { %v3576_v8 = vadd.f32 %v7851_v12, %v7747_v41  ;;  %v3879_v59 = vadd.f32 %v9366_v5, %v7789_v53 }
 0xe55   : > { %3345 = vrot.lane.b32.xlu0 %v7696_v17, %s5644_s12  ;;  %3795 = vrot.lane.b32.xlu1 %v7777_v11, %s5644_s12  ;;  %v3319_v40 = vadd.f32 %v8004_v57, %v3303_v24  ;;  %v3594_v14 = vadd.f32 %v8088_v33, %v3578_v6  ;;  %v9371_v6 = vld [vmem:[#allocation5_spill] sm:$0xff] }
 0xe56   : > { %3661 = vrot.lane.b32.xlu2 %v7747_v41, %s5645_s16  ;;  %v3895_v63 = vadd.f32 %v9367_v44, %v3879_v59  ;;  %v9377_v44 = vld [vmem:[#allocation6_spill] sm:$0xff] }
 0xe57   : > { %v8140_v46 = vpop.permute.xlu1 %3737  ;;  %v3764_v21 = vpop.permute.xlu0 %3763  ;;  %v3335_v0 = vadd.f32 %v8020_v32, %v3319_v40  ;;  %v3577_v32 = vadd.f32 %v7885_v16, %v7774_v35 }
 0xe58   : > { %v3466_v49 = vpop.permute.xlu2 %3465  ;;  %v3775_v45 = vadd.f32 %v3764_v21, %v3759_v18  ;;  %v3880_v18 = vadd.f32 %v9371_v6, %v7804_v23 }
 0xe59   : > { %v8145_v47 = vadd.f32 %v3466_v49, %v3458_v20  ;;  %v3593_v33 = vadd.f32 %v8016_v54, %v3577_v32 }
 0xe5b   : > { %v3609_v41 = vadd.f32 %v8030_v43, %v3593_v33 }
 0xe5d   : > { %3647 = vrot.lane.b32.xlu0 %v7774_v35, %s5644_s12  ;;  %3359 = vrot.lane.b32.xlu1 %v7679_v37, %s5645_s16 }
 0xe5e   : > { %3947 = vrot.lane.b32.xlu2 %v7789_v53, %s5644_s12 }
 0xe5f   : > { %v8160_v29 = vpop.permute.xlu1 %3765  ;;  %v3328_v51 = vpop.permute.xlu0 %3327 }
 0xe60   : > { %v3494_v25 = vpop.permute.xlu2 %3493  ;;  %v3337_v13 = vadd.f32 %v3328_v51, %v3321_v4  ;;  %v9369_v51 = vld [vmem:[#allocation11_spill] sm:$0xff] }
 0xe61   : > { %v8165_v37 = vadd.f32 %v3494_v25, %v3488_v9  ;;  %v3425_v10 = vadd.f32 %v9369_v51, %v7758_v26 }
 0xe63   : > { %v3441_v40 = vadd.f32 %v9370_v31, %v3425_v10 }
 0xe65   : > { %3921 = vrot.lane.b32.xlu0 %v7900_v38, %s5642_s30  ;;  %3659 = vrot.lane.b32.xlu1 %v7767_v19, %s5645_s16  ;;  %v3592_v19 = vadd.f32 %v7956_v62, %v3576_v8  ;;  %s9390_s30 = smov 6  }
 0xe66   : > { %3511 = vrot.lane.b32.xlu2 %v7758_v26, %s5645_s16  ;;  %v9374_v26 = vld [vmem:[#allocation26_spill] sm:$0xff] }
 0xe67   : > { %v3340_v1 = vpop.permute.xlu1 %3339  ;;  %v3602_v57 = vpop.permute.xlu0 %3601  ;;  %v3608_v21 = vadd.f32 %v8018_v61, %v3592_v19 }
 0xe68   : > { %v3780_v56 = vpop.permute.xlu2 %3779  ;;  %v8183_v20 = vadd.f32 %v3340_v1, %v3335_v0  ;;  %v3610_v58 = vadd.f32 %v3602_v57, %v3594_v14  ;;  %v9373_v14 = vld [vmem:[#allocation22_spill] sm:$0xff] }
 0xe69   : > { %v8185_v49 = vadd.f32 %v3780_v56, %v3775_v45  ;;  %v3624_v12 = vadd.f32 %v8100_v52, %v3608_v21  ;;  %v3911_v52 = vadd.f32 %v8114_v36, %v3895_v63  ;;  %v9372_v36 = vld [vmem:[#allocation18_spill] sm:$0xff]  ;;  %v3896_v45 = vadd.f32 %v9373_v14, %v3880_v18  ;;  %v9375_v21 = vld [vmem:[#allocation20_spill] sm:$0xff] }
 0xe6a   : > { %v3457_v0 = vadd.f32 %v9372_v36, %v3441_v40  ;;  %v3729_v63 = vadd.f32 %v9377_v44, %v7807_v2 }
 0xe6b   : > { %v3912_v1 = vadd.f32 %v9374_v26, %v3896_v45 }
 0xe6c   : > { %v3473_v57 = vadd.f32 %v8125_v48, %v3457_v0 }
 0xe6d   : > { %3949 = vrot.lane.b32.xlu0 %v7804_v23, %s5644_s12  ;;  %3935 = vrot.lane.b32.xlu1 %v7856_v30, %s5643_s11 }
 0xe6e   : > { %3811 = vrot.lane.b32.xlu2 %v7777_v11, %s5645_s16  ;;  %v9368_v11 = vld [vmem:[#allocation24_spill] sm:$0xff] }
 0xe6f   : > { %v3616_v16 = vpop.permute.xlu1 %3615  ;;  %v3630_v34 = vpop.permute.xlu0 %3629  ;;  %v3882_v43 = vadd.f32 %v9368_v11, %v7900_v38 }
 0xe70   : > { %v3344_v62 = vpop.permute.xlu2 %3343  ;;  %v8200_v27 = vadd.f32 %v3616_v16, %v3609_v41  ;;  %v3640_v54 = vadd.f32 %v3630_v34, %v3624_v12  ;;  %v3730_v41 = vadd.f32 %v9375_v21, %v7859_v60  ;;  %v9376_v34 = vld [vmem:[#allocation7_spill] sm:$0xff] }
 0xe71   : > { %v8202_v61 = vadd.f32 %v3344_v62, %v3337_v13  ;;  %v3728_v62 = vadd.f32 %v9376_v34, %v7786_v22 }
 0xe72   : > { %v3746_v48 = vadd.f32 %v8140_v46, %v3730_v41 }
 0xe75   : > { %3785 = vrot.lane.b32.xlu0 %v7859_v60, %s5643_s11  ;;  %3497 = vrot.lane.b32.xlu1 %v7816_v55, %s5644_s12 }
 0xe76   : > { %3649 = vrot.lane.b32.xlu2 %v7837_v50, %s5644_s12 }
 0xe77   : > { %v3890_v4 = vpop.permute.xlu1 %3889  ;;  %v3916_v9 = vpop.permute.xlu0 %3915 }
 0xe78   : > { %v3618_v25 = vpop.permute.xlu2 %3617  ;;  %v8218_v13 = vadd.f32 %v3890_v4, %v3882_v43  ;;  %v3927_v15 = vadd.f32 %v3916_v9, %v3911_v52  ;;  %v9379_v43 = vld [vmem:[#allocation21_spill] sm:$0xff] }
 0xe79   : > { %v8220_v24 = vadd.f32 %v3618_v25, %v3610_v58  ;;  %v9380_v52 = vld [vmem:[#allocation25_spill] sm:$0xff] }
 0xe7a   : > { %v3745_v46 = vadd.f32 %v9380_v52, %v3729_v63 }
 0xe7d   : > { %3813 = vrot.lane.b32.xlu0 %v7786_v22, %s5645_s16  ;;  %3799 = vrot.lane.b32.xlu1 %v7807_v2, %s5644_s12 }
 0xe7e   : > { %3951 = vrot.lane.b32.xlu2 %v7856_v30, %s5644_s12 }
 0xe7f   : > { %v3918_v8 = vpop.permute.xlu1 %3917  ;;  %v3480_v56 = vpop.permute.xlu0 %3479 }
 0xe80   : > { %v3646_v58 = vpop.permute.xlu2 %3645  ;;  %v3928_v32 = vadd.f32 %v3918_v8, %v3912_v1  ;;  %v3489_v19 = vadd.f32 %v3480_v56, %v3473_v57  ;;  %v9383_v1 = vld [vmem:[#allocation9_spill] sm:$0xff] }
 0xe81   : > { %v8235_v33 = vadd.f32 %v3646_v58, %v3640_v54  ;;  %v3423_v57 = vadd.f32 %v9383_v1, %v7739_v3  ;;  %v9385_v58 = vld [vmem:[#allocation4_spill] sm:$0xff] }
 0xe85   : > { %3663 = vrot.lane.b32.xlu0 %v7774_v35, %s5645_s16  ;;  %3361 = vrot.lane.b32.xlu1 %v7696_v17, %s5645_s16  ;;  %v9378_v35 = vld [vmem:[#allocation19_spill] sm:$0xff] }
 0xe86   : > { %3513 = vrot.lane.b32.xlu2 %v7816_v55, %s5645_s16  ;;  %v3744_v11 = vadd.f32 %v9378_v35, %v3728_v62  ;;  %v9381_v55 = vld [vmem:[#allocation28_spill] sm:$0xff] }
 0xe87   : > { %v3492_v12 = vpop.permute.xlu1 %3491  ;;  %v3754_v16 = vpop.permute.xlu0 %3753  ;;  %v3761_v22 = vadd.f32 %v9381_v55, %v3745_v46 }
 0xe88   : > { %v3932_v54 = vpop.permute.xlu2 %3931  ;;  %v3762_v5 = vadd.f32 %v3754_v16, %v3746_v48  ;;  %v3760_v17 = vadd.f32 %v9379_v43, %v3744_v11 }
 0xe89   : > { %v3943_v59 = vadd.f32 %v3932_v54, %v3927_v15 }
 0xe8a   : > { %v3776_v4 = vadd.f32 %v8160_v29, %v3760_v17 }
 0xe8d   : > { %3963 = vrot.lane.b32.xlu0 %v7789_v53, %s5645_s16  ;;  %3937 = vrot.lane.b32.xlu1 %v7900_v38, %s5643_s11  ;;  %s9391_s11 = smov 7  }
 0xe8e   : > { %3665 = vrot.lane.b32.xlu2 %v7837_v50, %s5645_s16 }
 0xe8f   : > { %v3768_v9 = vpop.permute.xlu1 %3767  ;;  %v3782_v51 = vpop.permute.xlu0 %3781 }
 0xe90   : > { %v3496_v10 = vpop.permute.xlu2 %3495  ;;  %v3777_v25 = vadd.f32 %v3768_v9, %v3761_v22  ;;  %v3792_v15 = vadd.f32 %v3782_v51, %v3776_v4 }
 0xe91   : > { %v8261_v31 = vadd.f32 %v3496_v10, %v3489_v19 }
 0xe95   : > { %3801 = vrot.lane.b32.xlu0 %v7859_v60, %s5644_s12  ;;  %3965 = vrot.lane.b32.xlu1 %v7804_v23, %s5645_s16 }
 0xe96   : > { %3817 = vrot.lane.b32.xlu2 %v7859_v60, %s5645_s16 }
 0xe97   : > { %v3330_v53 = vpop.permute.xlu1 %3329  ;;  %v3356_v29 = vpop.permute.xlu0 %3355 }
 0xe98   : > { %v3770_v40 = vpop.permute.xlu2 %3769  ;;  %v8270_v50 = vadd.f32 %v3330_v53, %v8091_v39 }
 0xe99   : > { %v8272_v6 = vadd.f32 %v3770_v40, %v3762_v5 }
 0xe9d   : > { %3953 = vrot.lane.b32.xlu0 %v7900_v38, %s5644_s12  ;;  %3815 = vrot.lane.b32.xlu1 %v7807_v2, %s5645_s16 }
 0xe9f   : > { %v3358_v18 = vpop.permute.xlu1 %3357  ;;  %v3632_v36 = vpop.permute.xlu0 %3631 }
 0xea0   : > { %v3798_v23 = vpop.permute.xlu2 %3797  ;;  %v3368_v0 = vadd.f32 %v3358_v18, %v8104_v7  ;;  %v8280_v60 = vadd.f32 %v3632_v36, %v8200_v27  ;;  %v3367_v27 = vadd.f32 %v3356_v29, %v8183_v20  ;;  %v9387_v20 = vld [vmem:[#allocation27_spill] sm:$0xff] }
 0xea1   : > { %v8282_v14 = vadd.f32 %v3798_v23, %v3792_v15 }
 0xea2   : > { %3377 = vrot.lane.b32.xlu2 %v3368_v0, %s9382_s23 }
 0xea5   : > { %3969 = vrot.lane.b32.xlu0 %v7900_v38, %s5645_s16  ;;  %3967 = vrot.lane.b32.xlu1 %v7856_v30, %s5645_s16  ;;  %v9384_v38 = vld [vmem:[#allocation10_spill] sm:$0xff] }
 0xea6   : > { %v3439_v8 = vadd.f32 %v9384_v38, %v3423_v57 }
 0xea7   : > { %v3644_v39 = vpop.permute.xlu1 %3643  ;;  %v3906_v2 = vpop.permute.xlu0 %3905 }
 0xea8   : > { %v3634_v45 = vpop.permute.xlu2 %3633  ;;  %v8290_v26 = vadd.f32 %v3906_v2, %v8218_v13  ;;  %v3455_v19 = vadd.f32 %v9385_v58, %v3439_v8  ;;  %v3655_v4 = vadd.f32 %v3644_v39, %v8116_v28 }
 0xea9   : > { %v8293_v7 = vadd.f32 %v3634_v45, %v8220_v24  ;;  %v9386_v24 = vld [vmem:[#allocation23_spill] sm:$0xff] }
 0xeaa   : > { %v3471_v48 = vadd.f32 %v9386_v24, %v3455_v19 }
 0xeac   : > { %v3487_v16 = vadd.f32 %v9387_v20, %v3471_v48 }
 0xead   : > { %3375 = vrot.lane.b32.xlu1 %v3367_v27, %s9382_s23 }
 0xeae   : > { %v3503_v34 = vadd.f32 %v3492_v12, %v3487_v16 }
 0xeaf   : > { %v3920_v56 = vpop.permute.xlu1 %3919  ;;  %v3934_v30 = vpop.permute.xlu0 %3933 }
 0xeb0   : > { %v3662_v21 = vpop.permute.xlu2 %3661  ;;  %v8302_v13 = vadd.f32 %v3920_v56, %v8127_v42  ;;  %v8304_v41 = vadd.f32 %v3934_v30, %v3928_v32 }
 0xeb1   : > { %v3672_v12 = vadd.f32 %v3662_v21, %v8235_v33 }
 0xeb7   : > { %v3482_v3 = vpop.permute.xlu1 %3481  ;;  %v3508_v62 = vpop.permute.xlu0 %3507 }
 0xeb8   : > { %v3948_v54 = vpop.permute.xlu2 %3947  ;;  %v3490_v5 = vadd.f32 %v3482_v3, %v8145_v47  ;;  %v3519_v44 = vadd.f32 %v3508_v62, %v3503_v34 }
 0xeb9   : > { %v3959_v63 = vadd.f32 %v3948_v54, %v3943_v59 }
 0xeba   : > { %3527 = vrot.lane.b32.xlu0 %v3519_v44, %s9388_s24 }
 0xebf   : > { %v3510_v35 = vpop.permute.xlu1 %3509  ;;  %v3784_v11 = vpop.permute.xlu0 %3783 }
 0xec0   : > { %v3512_v42 = vpop.permute.xlu2 %3511  ;;  %v3520_v32 = vadd.f32 %v3510_v35, %v8165_v37  ;;  %v3793_v43 = vadd.f32 %v3784_v11, %v3777_v25 }
 0xec1   : > { %v3521_v51 = vadd.f32 %v3512_v42, %v8261_v31 }
 0xec2   : > { %3529 = vrot.lane.b32.xlu1 %v3520_v32, %s9388_s24 }
 0xec7   : > { %v3796_v17 = vpop.permute.xlu1 %3795  ;;  %v3346_v52 = vpop.permute.xlu0 %3345 }
 0xec8   : > { %v3812_v46 = vpop.permute.xlu2 %3811  ;;  %v3807_v33 = vadd.f32 %v3796_v17, %v8185_v49  ;;  %v3354_v39 = vadd.f32 %v3346_v52, %v8270_v50  ;;  %v5374_v17 = vld [vmem:[%s9214_s7 + $0x38] sm:$0xff]  ;;  %v5367_v52 = vld [vmem:[%s9213_s6 + $0x20] sm:$0xff] }
 0xeca   : > { %3681 = vrot.lane.b32.xlu1 %v3672_v12, %s9389_s29  ;;  %v3823_v29 = vadd.f32 %v3812_v46, %v3807_v33  ;;  %v5368_v12 = vld [vmem:[%s9213_s6 + $0x28] sm:$0xff]  ;;  %v5401_v33 = vld [vmem:[%s9210_s3 + $0xd0] sm:$0xff] }
 0xecf   : > { %v3360_v47 = vpop.permute.xlu1 %3359  ;;  %v3648_v55 = vpop.permute.xlu0 %3647 }
 0xed0   : > { %v3650_v59 = vpop.permute.xlu2 %3649  ;;  %v3369_v22 = vadd.f32 %v3360_v47, %v8202_v61  ;;  %v3657_v49 = vadd.f32 %v3648_v55, %v8280_v60  ;;  %v5371_v55 = vld [vmem:[%s9214_s7 + $0x20] sm:$0xff] }
 0xed1   : > { %v3658_v21 = vadd.f32 %v3650_v59, %v8293_v7  ;;  %v5372_v59 = vld [vmem:[%s9214_s7 + $0x28] sm:$0xff] }
 0xed2   : > { %3379 = vrot.lane.b32.xlu2 %v3369_v22, %s9382_s23  ;;  %v5405_v22 = vld [vmem:[%s9210_s3 + $0xf0] sm:$0xff] }
 0xed7   : > { %v3660_v37 = vpop.permute.xlu1 %3659  ;;  %v3922_v9 = vpop.permute.xlu0 %3921 }
 0xed8   : > { %v3952_v10 = vpop.permute.xlu2 %3951  ;;  %v3671_v25 = vadd.f32 %v3660_v37, %v3655_v4  ;;  %v3930_v3 = vadd.f32 %v3922_v9, %v8290_v26  ;;  %v5369_v26 = vld [vmem:[%s9213_s6 + $0x30] sm:$0xff]  ;;  %v5406_v9 = vld [vmem:[%s9210_s3 + $0xf8] sm:$0xff] }
 0xeda   : > { %3531 = vrot.lane.b32.xlu2 %v3521_v51, %s9388_s24  ;;  %3679 = vrot.lane.b32.xlu0 %v3671_v25, %s9389_s29  ;;  %v5403_v51 = vld [vmem:[%s9210_s3 + $0xe0] sm:$0xff] }
 0xedf   : > { %v3936_v15 = vpop.permute.xlu1 %3935  ;;  %v3950_v53 = vpop.permute.xlu0 %3949 }
 0xee0   : > { %v3514_v61 = vpop.permute.xlu2 %3513  ;;  %v3960_v50 = vadd.f32 %v3950_v53, %v8304_v41  ;;  %v3945_v62 = vadd.f32 %v3936_v15, %v8302_v13  ;;  %v5370_v13 = vld [vmem:[%s9213_s6 + $0x38] sm:$0xff]  ;;  %v5399_v53 = vld [vmem:[%s9210_s3 + $0xc0] sm:$0xff] }
 0xee1   : > { %v5402_v15 = vld [vmem:[%s9210_s3 + $0xd8] sm:$0xff] }
 0xee2   : > { %3831 = vrot.lane.b32.xlu0 %v3823_v29, %s9390_s30  ;;  %v5400_v29 = vld [vmem:[%s9210_s3 + $0xc8] sm:$0xff] }
 0xee7   : > { %v3498_v40 = vpop.permute.xlu1 %3497  ;;  %v3786_v28 = vpop.permute.xlu0 %3785 }
 0xee8   : > { %v3666_v18 = vpop.permute.xlu2 %3665  ;;  %v3506_v57 = vadd.f32 %v3498_v40, %v3490_v5  ;;  %v3794_v54 = vadd.f32 %v3786_v28, %v8272_v6  ;;  %v5398_v40 = vld [vmem:[%s9210_s3 + $0xb8] sm:$0xff] }
 0xee9   : > { %v3674_v16 = vadd.f32 %v3666_v18, %v3658_v21  ;;  %v5395_v18 = vld [vmem:[%s9210_s3 + $0xa0] sm:$0xff] }
 0xeea   : > { %v3522_v56 = vadd.f32 %v3514_v61, %v3506_v57  ;;  %v5397_v61 = vld [vmem:[%s9210_s3 + $0xb0] sm:$0xff] }
 0xeef   : > { %v3800_v36 = vpop.permute.xlu1 %3799  ;;  %v3814_v23 = vpop.permute.xlu0 %3813 }
 0xef0   : > { %v3824_v31 = vadd.f32 %v3814_v23, %v8282_v14  ;;  %v3818_v0 = vpop.permute.xlu2 %3817  ;;  %v3809_v24 = vadd.f32 %v3800_v36, %v3793_v43  ;;  %v5373_v43 = vld [vmem:[%s9214_s7 + $0x30] sm:$0xff]  ;;  %v5396_v36 = vld [vmem:[%s9210_s3 + $0xa8] sm:$0xff] }
 0xef1   : > { %v5393_v23 = vld [vmem:[%s9210_s3 + $0x90] sm:$0xff] }
 0xef2   : > { %3833 = vrot.lane.b32.xlu1 %v3824_v31, %s9390_s30 }
 0xef7   : > { %v3362_v2 = vpop.permute.xlu1 %3361  ;;  %v3664_v45 = vpop.permute.xlu0 %3663 }
 0xef8   : > { %v3370_v27 = vadd.f32 %v3362_v2, %v3354_v39  ;;  %v3673_v1 = vadd.f32 %v3664_v45, %v3657_v49  ;;  %v5394_v39 = vld [vmem:[%s9210_s3 + $0x98] sm:$0xff]  ;;  %v5391_v49 = vld [vmem:[%s9210_s3 + $0x80] sm:$0xff]  ;;  %v5392_v2 = vld [vmem:[%s9210_s3 + $0x88] sm:$0xff] }
 0xef9   : > { %v5467_v45 = vld [vmem:[%s9212_s5 + $0x20] sm:$0xff] }
 0xefa   : > { %3381 = vrot.lane.b32.xlu2 %v3370_v27, %s9382_s23  ;;  %3683 = vrot.lane.b32.xlu0 %v3673_v1, %s9389_s29  ;;  %v5468_v27 = vld [vmem:[%s9212_s5 + $0x28] sm:$0xff]  ;;  %v5469_v1 = vld [vmem:[%s9212_s5 + $0x30] sm:$0xff] }
 0xefc   : > { %v3378_v38 = vpop.permute.xlu2 %3377 }
 0xefd   : > { %3388 = vst.msk [vmem:[#allocation2 + $0x8] sm:$0xff] %vm952_vm3, %v3378_v38 }
 0xeff   : > { %v3938_v14 = vpop.permute.xlu1 %3937  ;;  %v3964_v8 = vpop.permute.xlu0 %3963 }
 0xf00   : > { %v3975_v30 = vadd.f32 %v3964_v8, %v3959_v63  ;;  %v3946_v41 = vadd.f32 %v3938_v14, %v3930_v3  ;;  %v3961_v63 = vadd.f32 %v3952_v10, %v3945_v62  ;;  %v5404_v10 = vld [vmem:[%s9210_s3 + $0xe8] sm:$0xff]  ;;  %v5470_v14 = vld [vmem:[%s9212_s5 + $0x38] sm:$0xff]  ;;  %v5479_v8 = vld [vmem:[%s9215_s8 + $0x20] sm:$0xff] }
 0xf02   : > { %3533 = vrot.lane.b32.xlu0 %v3522_v56, %s9388_s24  ;;  %3983 = vrot.lane.b32.xlu1 %v3975_v30, %s9391_s11  ;;  %v5480_v56 = vld [vmem:[%s9215_s8 + $0x28] sm:$0xff] }
 0xf07   : > { %v3966_v60 = vpop.permute.xlu1 %3965  ;;  %v3802_v58 = vpop.permute.xlu0 %3801 }
 0xf08   : > { %v3976_v19 = vadd.f32 %v3966_v60, %v3960_v50  ;;  %v3810_v5 = vadd.f32 %v3802_v58, %v3794_v54  ;;  %v5481_v50 = vld [vmem:[%s9215_s8 + $0x30] sm:$0xff]  ;;  %v5482_v60 = vld [vmem:[%s9215_s8 + $0x38] sm:$0xff]  ;;  %v5483_v58 = vld [vmem:[%s9216_s9 + $0x20] sm:$0xff] }
 0xf0a   : > { %3985 = vrot.lane.b32.xlu2 %v3976_v19, %s9391_s11  ;;  %v3826_v11 = vadd.f32 %v3818_v0, %v3810_v5 }
 0xf0f   : > { %v3816_v48 = vpop.permute.xlu1 %3815  ;;  %v3954_v20 = vpop.permute.xlu0 %3953 }
 0xf10   : > { %v3825_v34 = vadd.f32 %v3816_v48, %v3809_v24  ;;  %v3962_v44 = vadd.f32 %v3954_v20, %v3946_v41  ;;  %v5484_v48 = vld [vmem:[%s9216_s9 + $0x28] sm:$0xff]  ;;  %v5485_v20 = vld [vmem:[%s9216_s9 + $0x30] sm:$0xff] }
 0xf12   : > { %3685 = vrot.lane.b32.xlu2 %v3674_v16, %s9389_s29  ;;  %3835 = vrot.lane.b32.xlu1 %v3825_v34, %s9390_s30  ;;  %v5486_v16 = vld [vmem:[%s9216_s9 + $0x38] sm:$0xff] }
 0xf17   : > { %v3968_v7 = vpop.permute.xlu1 %3967  ;;  %v3970_v35 = vpop.permute.xlu0 %3969 }
 0xf18   : > { %v3977_v42 = vadd.f32 %v3968_v7, %v3961_v63  ;;  %v3978_v32 = vadd.f32 %v3970_v35, %v3962_v44  ;;  %v9400_v44 = vld [vmem:[#allocation16_spill] sm:$0xff]  ;;  %v9401_v7 = vld [vmem:[#allocation14_spill] sm:$0xff] }
 0xf1a   : > { %3987 = vrot.lane.b32.xlu0 %v3977_v42, %s9391_s11  ;;  %3837 = vrot.lane.b32.xlu1 %v3826_v11, %s9390_s30 }
 0xf1b   : > { %3989 = vrot.lane.b32.xlu2 %v3978_v32, %s9391_s11 }
 0xf1f   : > { %v3376_v6 = vpop.permute.xlu1 %3375 }
 0xf20   : > { %3387 = vst.msk [vmem:[#allocation2] sm:$0xff] %vm952_vm3, %v3376_v6  ;;  %v9402_v6 = vld [vmem:[#allocation15_spill] sm:$0xff] }
 0xf22   : > { %4080 = vperm.xlu0 %5548, %v5369_v26   ;;  %4085 = vperm.xlu1 %5546, %v5370_v13  }
 0xf23   : > { %4104 = vperm.xlu2 %5547, %v5373_v43   ;;  %v9403_v43 = vld [vmem:[#allocation13_spill] sm:$0xff] }
 0xf2a   : > { %4109 = vperm.xlu0 %5548, %v5374_v17   ;;  %4070 = vperm.xlu1 %5546, %v5367_v52  }
 0xf2b   : > { %4075 = vperm.xlu2 %5547, %v5368_v12  }
 0xf2c   : > { %v3380_v46 = vpop.permute.xlu2 %3379  ;;  %v3528_v47 = vpop.permute.xlu0 %3527 }
 0xf2d   : > { %3389 = vst.msk [vmem:[#allocation2 + $0x10] sm:$0xff] %vm952_vm3, %v3380_v46 }
 0xf2e   : > { %3539 = vst.msk [vmem:[#allocation2] sm:$0xff] %vm1105_vm4, %v3528_v47 }
 0xf32   : > { %4094 = vperm.xlu0 %5548, %v5371_v55   ;;  %4099 = vperm.xlu1 %5546, %v5372_v59  }
 0xf33   : > { %4224 = vperm.xlu2 %5547, %v5405_v22  }
 0xf34   : > { %v3532_v4 = vpop.permute.xlu2 %3531  ;;  %v3530_v37 = vpop.permute.xlu1 %3529 }
 0xf35   : > { %3541 = vst.msk [vmem:[#allocation2 + $0x10] sm:$0xff] %vm1105_vm4, %v3532_v4 }
 0xf36   : > { %3540 = vst.msk [vmem:[#allocation2 + $0x8] sm:$0xff] %vm1105_vm4, %v3530_v37 }
 0xf3a   : > { %4229 = vperm.xlu0 %5548, %v5406_v9   ;;  %4214 = vperm.xlu1 %5546, %v5403_v51  }
 0xf3b   : > { %4219 = vperm.xlu2 %5547, %v5404_v10   ;;  %v9404_v10 = vld [vmem:[#allocation3_spill] sm:$0xff] }
 0xf3c   : > { %v3682_v25 = vpop.permute.xlu1 %3681 }
 0xf3d   : > { %3692 = vst.msk [vmem:[#allocation2 + $0x8] sm:$0xff] %vm1258_vm5, %v3682_v25 }
 0xf42   : > { %4204 = vperm.xlu0 %5548, %v5401_v33   ;;  %4209 = vperm.xlu1 %5546, %v5402_v15  }
 0xf43   : > { %4194 = vperm.xlu2 %5547, %v5399_v53  }
 0xf4a   : > { %4199 = vperm.xlu0 %5548, %v5400_v29   ;;  %4184 = vperm.xlu1 %5546, %v5397_v61  }
 0xf4b   : > { %4189 = vperm.xlu2 %5547, %v5398_v40  }
 0xf4c   : > { %v3680_v28 = vpop.permute.xlu0 %3679 }
 0xf4d   : > { %3691 = vst.msk [vmem:[#allocation2] sm:$0xff] %vm1258_vm5, %v3680_v28 }
 0xf52   : > { %4174 = vperm.xlu0 %5548, %v5395_v18   ;;  %4179 = vperm.xlu1 %5546, %v5396_v36  }
 0xf53   : > { %4164 = vperm.xlu2 %5547, %v5393_v23  }
 0xf54   : > { %v3382_v31 = vpop.permute.xlu2 %3381  ;;  %v3832_v0 = vpop.permute.xlu0 %3831 }
 0xf55   : > { %3390 = vst.msk [vmem:[#allocation2 + $0x18] sm:$0xff] %vm952_vm3, %v3382_v31  ;;  %vm9395_vm3 = vmmov %vm9394_vm2 }
 0xf56   : > { %3843 = vst.msk [vmem:[#allocation2] sm:$0xff] %vm9392_vm0, %v3832_v0 }
 0xf5a   : > { %4169 = vperm.xlu0 %5548, %v5394_v39   ;;  %4154 = vperm.xlu1 %5546, %v5391_v49  }
 0xf5b   : > { %4159 = vperm.xlu2 %5547, %v5392_v2  }
 0xf62   : > { %5069 = vperm.xlu0 %5548, %v5467_v45   ;;  %5074 = vperm.xlu1 %5546, %v5468_v27  }
 0xf63   : > { %5079 = vperm.xlu2 %5547, %v5469_v1  }
 0xf64   : > { %v3986_v57 = vpop.permute.xlu2 %3985  ;;  %v3834_v38 = vpop.permute.xlu1 %3833 }
 0xf65   : > { %3844 = vst.msk [vmem:[#allocation2 + $0x8] sm:$0xff] %vm9393_vm1, %v3834_v38 }
 0xf66   : > { %3996 = vst.msk [vmem:[#allocation2 + $0x8] sm:$0xff] %vm9394_vm2, %v3986_v57 }
 0xf6a   : > { %5084 = vperm.xlu0 %5548, %v5470_v14   ;;  %5185 = vperm.xlu1 %5546, %v5479_v8  }
 0xf6b   : > { %5190 = vperm.xlu2 %5547, %v5480_v56  }
 0xf6c   : > { %v3684_v30 = vpop.permute.xlu0 %3683  ;;  %v3686_v24 = vpop.permute.xlu2 %3685 }
 0xf6d   : > { %3693 = vst.msk [vmem:[#allocation2 + $0x10] sm:$0xff] %vm1258_vm5, %v3684_v30  ;;  %v4000_v5 = vld [vmem:[#allocation2 + $0x8] sm:$0xff] }
 0xf6e   : > { %v4004_v35 = vadd.f32 %v4000_v5, %v9401_v7 }
 0xf70   : > { %v4018_v13 = vsel %vm1585_vm8, %v4004_v35, 0.0 }
 0xf72   : > { %5195 = vperm.xlu0 %5548, %v5481_v50   ;;  %5200 = vperm.xlu1 %5546, %v5482_v60  }
 0xf73   : > { %5209 = vperm.xlu2 %5547, %v5483_v58  }
 0xf74   : > { %v3984_v19 = vpop.permute.xlu1 %3983  ;;  %v3534_v21 = vpop.permute.xlu0 %3533 }
 0xf75   : > { %3995 = vst.msk [vmem:[#allocation2] sm:$0xff] %vm9395_vm3, %v3984_v19  ;;  %v3990_v54 = vpop.permute.xlu2 %3989 }
 0xf76   : > { %3542 = vst.msk [vmem:[#allocation2 + $0x18] sm:$0xff] %vm1105_vm4, %v3534_v21  ;;  %vm9397_vm4 = vmmov %vm9392_vm0 }
 0xf77   : > { %3694 = vst.msk [vmem:[#allocation2 + $0x18] sm:$0xff] %vm1258_vm5, %v3686_v24  ;;  %vm9398_vm5 = vmmov %vm9394_vm2 }
 0xf78   : > { %vm9413_vm0 = vmmov %vm9411_vm6 }
 0xf79   : > { %vm9414_vm1 = vmmov %vm9413_vm0 }
 0xf7a   : > { %5214 = vperm.xlu0 %5548, %v5484_v48   ;;  %5219 = vperm.xlu1 %5546, %v5485_v20   ;;  %vm9415_vm2 = vmmov %vm9413_vm0 }
 0xf7b   : > { %5224 = vperm.xlu2 %5547, %v5486_v16   ;;  %vm9416_vm3 = vmmov %vm9413_vm0 }
 0xf7c   : > { %v3999_v41 = vld [vmem:[#allocation2] sm:$0xff] }
 0xf7d   : > { %v4003_v63 = vadd.f32 %v3999_v41, %v9400_v44  ;;  %v4105_v24 = vpop.permute.xlu2 %4104 }
 0xf7f   : > { %v4017_v42 = vsel %vm1585_vm8, %v4003_v63, 0.0 }
 0xf80   : > { %v4019_v52 = vadd.f32 %v4018_v13, %v4017_v42 }
 0xf84   : > { %v3836_v34 = vpop.permute.xlu1 %3835 }
 0xf85   : > { %3845 = vst.msk [vmem:[#allocation2 + $0x10] sm:$0xff] %vm9396_vm9, %v3836_v34  ;;  %v4076_v7 = vpop.permute.xlu2 %4075 }
 0xf8c   : > { %v3838_v3 = vpop.permute.xlu1 %3837  ;;  %v3988_v62 = vpop.permute.xlu0 %3987 }
 0xf8d   : > { %3846 = vst.msk [vmem:[#allocation2 + $0x18] sm:$0xff] %vm9397_vm4, %v3838_v3 }
 0xf8e   : > { %3998 = vst.msk [vmem:[#allocation2 + $0x18] sm:$0xff] %vm9398_vm5, %v3990_v54 }
 0xf8f   : > { %3997 = vst.msk [vmem:[#allocation2 + $0x10] sm:$0xff] %vm9399_vm7, %v3988_v62 }
 0xf94   : > { %v4086_v50 = vpop.permute.xlu1 %4085  ;;  %v4081_v58 = vpop.permute.xlu0 %4080 }
 0xf95   : > { %v4002_v11 = vld [vmem:[#allocation2 + $0x18] sm:$0xff] }
 0xf96   : > { %v4001_v32 = vld [vmem:[#allocation2 + $0x10] sm:$0xff]  ;;  %v4006_v26 = vadd.f32 %v4002_v11, %v9402_v6 }
 0xf97   : > { %v4005_v17 = vadd.f32 %v4001_v32, %v9403_v43 }
 0xf98   : > { %v4022_v46 = vsel %vm1585_vm8, %v4006_v26, 0.0 }
 0xf99   : > { %v4020_v12 = vsel %vm1585_vm8, %v4005_v17, 0.0 }
 0xf9a   : > { %v4021_v47 = vadd.f32 %v4020_v12, %v4019_v52  ;;  %v5501_v12 = vld [vmem:[%s9209_s2 + $0x40] sm:$0xff] }
 0xf9c   : > { %v4023_v55 = vadd.f32 %v4022_v46, %v4021_v47  ;;  %v4071_v34 = vpop.permute.xlu1 %4070  ;;  %v4110_v3 = vpop.permute.xlu0 %4109  ;;  %v5506_v46 = vld [vmem:[%s9209_s2 + $0x68] sm:$0xff] }
 0xf9d   : > { %v5502_v47 = vld [vmem:[%s9209_s2 + $0x48] sm:$0xff] }
 0xf9e   : > { %v4024_v59 = vrot.slane %v4023_v55, 4 }
 0xfa0   : > { %v4025_v22 = vadd.f32 %v4024_v59, %v4023_v55  ;;  %v5507_v55 = vld [vmem:[%s9209_s2 + $0x70] sm:$0xff] }
 0xfa1   : > { %v5503_v59 = vld [vmem:[%s9209_s2 + $0x50] sm:$0xff] }
 0xfa2   : > { %v4026_v4 = vrot.slane %v4025_v22, 2 }
 0xfa4   : > { %v4027_v37 = vadd.f32 %v4026_v4, %v4025_v22  ;;  %v4100_v6 = vpop.permute.xlu1 %4099  ;;  %v5508_v22 = vld [vmem:[%s9209_s2 + $0x78] sm:$0xff] }
 0xfa5   : > { %v5504_v4 = vld [vmem:[%s9209_s2 + $0x58] sm:$0xff] }
 0xfa6   : > { %v4028_v9 = vrot.slane %v4027_v37, 1 }
 0xfa8   : > { %v4029_v51 = vadd.f32 %v4028_v9, %v4027_v37  ;;  %v5505_v37 = vld [vmem:[%s9209_s2 + $0x60] sm:$0xff]  ;;  %v4225_v9 = vpop.permute.xlu2 %4224 }
 0xfaa   : > { %v4030_v25 = vmul.f32 %v4029_v51, %v9404_v10 }
 0xfac   : > { %v4031_v33 = vsub.f32 %v4003_v63, %v4030_v25  ;;  %v4032_v15 = vsub.f32 %v4004_v35, %v4030_v25  ;;  %v4033_v53 = vsub.f32 %v4005_v17, %v4030_v25  ;;  %v4034_v29 = vsub.f32 %v4006_v26, %v4030_v25  ;;  %v4095_v26 = vpop.permute.xlu0 %4094  ;;  %v4215_v51 = vpop.permute.xlu1 %4214 }
 0xfae   : > { %v4035_v61 = vmul.f32 %v4031_v33, %v4031_v33  ;;  %v4036_v40 = vmul.f32 %v4032_v15, %v4032_v15  ;;  %v4037_v28 = vmul.f32 %v4033_v53, %v4033_v53  ;;  %v4038_v18 = vmul.f32 %v4034_v29, %v4034_v29 }
 0xfb0   : > { %v4039_v36 = vsel %vm1585_vm8, %v4035_v61, 0.0  ;;  %v4040_v23 = vsel %vm1585_vm8, %v4036_v40, 0.0  ;;  %v4042_v0 = vsel %vm1585_vm8, %v4037_v28, 0.0  ;;  %v4044_v49 = vsel %vm1585_vm8, %v4038_v18, 0.0  ;;  %v4220_v25 = vpop.permute.xlu2 %4219 }
 0xfb1   : > { %v4041_v31 = vadd.f32 %v4040_v23, %v4039_v36 }
 0xfb3   : > { %v4043_v39 = vadd.f32 %v4042_v0, %v4041_v31 }
 0xfb5   : > { %v4045_v2 = vadd.f32 %v4044_v49, %v4043_v39 }
 0xfb7   : > { %v4046_v45 = vrot.slane %v4045_v2, 4 }
 0xfb9   : > { %v4047_v27 = vadd.f32 %v4046_v45, %v4045_v2 }
 0xfbb   : > { %v4048_v1 = vrot.slane %v4047_v27, 2 }
 0xfbd   : > { %v4049_v57 = vadd.f32 %v4048_v1, %v4047_v27 }
 0xfbf   : > { %v4050_v38 = vrot.slane %v4049_v57, 1 }
 0xfc1   : > { %v4051_v14 = vadd.f32 %v4050_v38, %v4049_v57 }
 0xfc3   : > { %v4052_v8 = vmul.f32 %v4051_v14, %v9404_v10 }
 0xfc5   : > { %v4053_v56 = vadd.f32 1e-12, %v4052_v8 }
 0xfc7   : > { %5587 = vrsqrt.f32 %v4053_v56  ;;  %vm4060_vm11 = vweird.f32 %v4053_v56 }
 0xfcd   : > { %v5588_v30 = vpop.eup %5587 }
 0xfce   : > { %v4055_v60 = vmul.f32 %v5588_v30, %v4053_v56  ;;  %vm4061_vm10 = vweird.f32 %v5588_v30 }
 0xfcf   : > { %vm4062_vm13 = vmor %vm4060_vm11, %vm4061_vm10 }
 0xfd0   : > { %v4056_v19 = vmul.f32 %v5588_v30, %v4055_v60 }
 0xfd2   : > { %v4057_v21 = vmul.f32 0.5, %v4056_v19 }
 0xfd4   : > { %v4058_v48 = vsub.f32 1.5, %v4057_v21 }
 0xfd6   : > { %v4059_v20 = vmul.f32 %v5588_v30, %v4058_v48 }
 0xfd8   : > { %v4063_v16 = vsel %vm4062_vm13, %v5588_v30, %v4059_v20 }
 0xfd9   : > { %v4067_v62 = vmul.f32 %v4063_v16, %v4034_v29  ;;  %v4066_v54 = vmul.f32 %v4063_v16, %v4033_v53  ;;  %v4064_v44 = vmul.f32 %v4063_v16, %v4031_v33  ;;  %v4065_v63 = vmul.f32 %v4063_v16, %v4032_v15  ;;  %v4210_v33 = vpop.permute.xlu1 %4209  ;;  %v8527_v15 = vpop.permute.xlu2 %4194 }
 0xfda   : > { %v8529_v53 = vpop.permute.xlu0 %4229 }
 0xfdb   : > { %v4091_v41 = vmul.f32 %v4086_v50, %v4067_v62  ;;  %v4090_v5 = vmul.f32 %v4081_v58, %v4066_v54  ;;  %v4088_v11 = vmul.f32 %v4071_v34, %v4064_v44  ;;  %v4089_v32 = vmul.f32 %v4076_v7, %v4065_v63 }
 0xfdd   : > { %v8483_v35 = vadd.f32 %v4105_v24, %v4090_v5  ;;  %v8485_v42 = vadd.f32 %v4110_v3, %v4091_v41  ;;  %v8487_v13 = vadd.f32 %v4100_v6, %v4089_v32  ;;  %v8489_v43 = vadd.f32 %v4095_v26, %v4088_v11 }
 0xfdf   : > { %9405 = vst [vmem:[#allocation12_spill] sm:$0xff] %v8483_v35  ;;  %v4134_v17 = vpack.c.bf16 %v8485_v42, %v8483_v35  ;;  %v4133_v52 = vpack.c.bf16 %v8487_v13, %v8489_v43 }
 0xfe0   : > { %9406 = vst [vmem:[#allocation17_spill] sm:$0xff] %v8485_v42 }
 0xfe1   : > { %9407 = vst [vmem:[#allocation24_spill] sm:$0xff] %v8487_v13  ;;  %4302 = vmatpush.bf16.msra.mxu2 %v4134_v17  ;;  %5513 = vmatpush.bf16.msra.mxu3 %v4134_v17  ;;  %v8531_v40 = vpop.permute.xlu1 %4184  ;;  %v8533_v36 = vpop.permute.xlu2 %4189 }
 0xfe2   : > { %9408 = vst [vmem:[#allocation11_spill] sm:$0xff] %v8489_v43  ;;  %v4205_v23 = vpop.permute.xlu0 %4204 }
 0xfe5   : > { %4303 = vmatpush.bf16.msra.mxu2 %v4133_v52  ;;  %5514 = vmatpush.bf16.msra.mxu3 %v4133_v52 }
 0xfe8   : > { %5439 = vmatmul.msk.bf16.vlgmr.msra.gmra.mxu2 %vm9409_vm12, %v5501_v12  ;;  %5444 = vmatmul.msk.bf16.vlgmr.msra.gmra.mxu3 %vm9410_vm14, %v5506_v46 }
 0xfe9   : > { %v4180_v39 = vpop.permute.xlu1 %4179  ;;  %v4165_v1 = vpop.permute.xlu2 %4164 }
 0xfea   : > { %v8549_v14 = vpop.permute.xlu0 %4199 }
 0xff1   : > { %v4155_v50 = vpop.permute.xlu1 %4154  ;;  %v4160_v3 = vpop.permute.xlu2 %4159 }
 0xff2   : > { %v4175_v54 = vpop.permute.xlu0 %4174 }
 0xff8   : > { %5440 = vmatmul.msk.bf16.gmra.mxu2 %vm9411_vm6, %v5502_v47  ;;  %5445 = vmatmul.msk.bf16.gmra.mxu3 %vm9412_vm15, %v5507_v55 }
0x1008   : > { %5441 = vmatmul.msk.bf16.gmra.mxu2 %vm9413_vm0, %v5503_v59  ;;  %5446 = vmatmul.msk.bf16.gmra.mxu3 %vm9414_vm1, %v5508_v22 }
0x1018   : > { %5442 = vmatmul.msk.bf16.gmra.mxu2 %vm9415_vm2, %v5504_v4 }
0x1028   : > { %5443 = vmatmul.msk.bf16.gmra.mxu2 %vm9416_vm3, %v5505_v37 }
0x106b   : > { %v4305_v29 = vpop.f32.mrf.mxu2  ;;  %v4330_v61 = vpop.f32.mrf.mxu3 }
0x106c   : > { %v8535_v31 = vadd.f32 %v4330_v61, %v4205_v23  ;;  %v8560_v19 = vadd.f32 %v4305_v29, %v4155_v50  ;;  %v4170_v23 = vpop.permute.xlu0 %4169 }
0x106e   : > { %v8540_v49 = vmul.f32 0.70710677, %v8535_v31  ;;  %9417 = vst [vmem:[#allocation8_spill] sm:$0xff] %v8560_v19  ;;  %v8571_v62 = vmul.f32 0.70710677, %v8560_v19  ;;  %v8680_v43 = vmul.f32 0.5, %v8535_v31 }
0x1070   : > { %v4777_v57 = vmul.f32 %v8540_v49, %v8540_v49  ;;  %9419 = vst [vmem:[#allocation18_spill] sm:$0xff] %v8571_v62  ;;  %v4377_v6 = vmul.f32 %v8571_v62, %v8571_v62 }
0x1072   : > { %v8553_v56 = vmin.f32 %v4777_v57, 16.0 }
0x1073   : > { %v4307_v28 = vpop.f32.mrf.mxu2  ;;  %v4332_v18 = vpop.f32.mrf.mxu3 }
0x1074   : > { %v8537_v0 = vadd.f32 %v4332_v18, %v4210_v33  ;;  %v4779_v24 = vmul.f32 2.1237322e-06, %v8553_v56  ;;  %v8573_v41 = vadd.f32 %v4307_v28, %v4160_v3 }
0x1076   : > { %v8543_v2 = vmul.f32 0.70710677, %v8537_v0  ;;  %9420 = vst [vmem:[#allocation22_spill] sm:$0xff] %v8573_v41  ;;  %v4780_v5 = vadd.f32 0.00028619796, %v4779_v24 }
0x1077   : > { %v8590_v12 = vmul.f32 0.70710677, %v8573_v41 }
0x1078   : > { %v4817_v38 = vmul.f32 %v8543_v2, %v8543_v2  ;;  %v4781_v46 = vmul.f32 %v4780_v5, %v8553_v56 }
0x1079   : > { %9423 = vst [vmem:[#allocation7_spill] sm:$0xff] %v8590_v12  ;;  %v4417_v61 = vmul.f32 %v8590_v12, %v8590_v12 }
0x107a   : > { %v8555_v30 = vmin.f32 %v4817_v38, 16.0  ;;  %v4782_v29 = vadd.f32 0.0036580483, %v4781_v46 }
0x107b   : > { %v4310_v45 = vpop.f32.mrf.mxu2  ;;  %v4335_v27 = vpop.f32.mrf.mxu3 }
0x107c   : > { %v8551_v8 = vadd.f32 %v4335_v27, %v4215_v51  ;;  %v4819_v48 = vmul.f32 2.1237322e-06, %v8555_v30  ;;  %v8566_v16 = vadd.f32 %v4310_v45, %v4165_v1  ;;  %v8604_v51 = vmin.f32 %v4377_v6, 16.0 }
0x107d   : > { %v4783_v3 = vmul.f32 %v4782_v29, %v8553_v56 }
0x107e   : > { %v8558_v60 = vmul.f32 0.70710677, %v8551_v8  ;;  %9418 = vst [vmem:[#allocation5_spill] sm:$0xff] %v8566_v16  ;;  %v4820_v44 = vadd.f32 0.00028619796, %v4819_v48 }
0x107f   : > { %v8579_v7 = vmul.f32 0.70710677, %v8566_v16  ;;  %v4379_v57 = vmul.f32 2.1237322e-06, %v8604_v51 }
0x1080   : > { %v4857_v34 = vmul.f32 %v8558_v60, %v8558_v60  ;;  %v4821_v47 = vmul.f32 %v4820_v44, %v8555_v30 }
0x1081   : > { %9421 = vst [vmem:[#allocation26_spill] sm:$0xff] %v8579_v7  ;;  %v4457_v22 = vmul.f32 %v8579_v7, %v8579_v7 }
0x1082   : > { %v8581_v11 = vmin.f32 %v4857_v34, 16.0  ;;  %v4822_v28 = vadd.f32 0.0036580483, %v4821_v47 }
0x1083   : > { %v4312_v58 = vpop.f32.mrf.mxu2  ;;  %v4337_v21 = vpop.f32.mrf.mxu3  ;;  %v8613_v45 = vmin.f32 %v4457_v22, 16.0 }
0x1084   : > { %v8564_v20 = vadd.f32 %v4337_v21, %v4220_v25  ;;  %v4859_v4 = vmul.f32 2.1237322e-06, %v8581_v11  ;;  %v8619_v38 = vadd.f32 %v4312_v58, %v4170_v23  ;;  %v4823_v5 = vmul.f32 %v4822_v28, %v8555_v30 }
0x1085   : > { %v4459_v44 = vmul.f32 2.1237322e-06, %v8613_v45 }
0x1086   : > { %v8576_v63 = vmul.f32 0.70710677, %v8564_v20  ;;  %v4860_v27 = vadd.f32 0.00028619796, %v4859_v4  ;;  %9424 = vst [vmem:[#allocation6_spill] sm:$0xff] %v8619_v38 }
0x1087   : > { %v4784_v4 = vadd.f32 0.05243302, %v4783_v3  ;;  %v4460_v29 = vadd.f32 0.00028619796, %v4459_v44 }
0x1088   : > { %v4897_v26 = vmul.f32 %v8576_v63, %v8576_v63  ;;  %v4861_v58 = vmul.f32 %v4860_v27, %v8581_v11 }
0x1089   : > { %v4785_v3 = vmul.f32 %v4784_v4, %v8553_v56 }
0x108a   : > { %v8594_v55 = vmin.f32 %v4897_v26, 16.0  ;;  %v4380_v26 = vadd.f32 0.00028619796, %v4379_v57 }
0x108b   : > { %v4315_v32 = vpop.f32.mrf.mxu2  ;;  %v4340_v52 = vpop.f32.mrf.mxu3 }
0x108c   : > { %v8587_v17 = vadd.f32 %v4315_v32, %v4175_v54  ;;  %v8602_v37 = vadd.f32 %v4340_v52, %v4225_v9  ;;  %v4899_v25 = vmul.f32 2.1237322e-06, %v8594_v55  ;;  %v8627_v54 = vmin.f32 %v4417_v61, 16.0 }
0x108d   : > { %v8638_v52 = vmul.f32 0.70710677, %v8619_v38  ;;  %v4862_v61 = vadd.f32 0.0036580483, %v4861_v58  ;;  %v4461_v58 = vmul.f32 %v4460_v29, %v8613_v45 }
0x108e   : > { %9422 = vst [vmem:[#allocation20_spill] sm:$0xff] %v8587_v17  ;;  %v8597_v59 = vmul.f32 0.70710677, %v8587_v17  ;;  %v8616_v9 = vmul.f32 0.70710677, %v8602_v37 }
0x108f   : > { %v4900_v50 = vadd.f32 0.00028619796, %v4899_v25  ;;  %9426 = vst [vmem:[#allocation21_spill] sm:$0xff] %v8627_v54  ;;  %v4419_v25 = vmul.f32 2.1237322e-06, %v8627_v54  ;;  %v4497_v23 = vmul.f32 %v8638_v52, %v8638_v52 }
0x1090   : > { %v4537_v33 = vmul.f32 %v8597_v59, %v8597_v59  ;;  %v4937_v48 = vmul.f32 %v8616_v9, %v8616_v9  ;;  %9427 = vst [vmem:[#allocation25_spill] sm:$0xff] %v8638_v52  ;;  %v4462_v42 = vadd.f32 0.0036580483, %v4461_v58 }
0x1092   : > { %v8611_v18 = vmin.f32 %v4537_v33, 16.0  ;;  %v8632_v32 = vmin.f32 %v4937_v48, 16.0  ;;  %v4824_v33 = vadd.f32 0.05243302, %v4823_v5  ;;  %v4381_v48 = vmul.f32 %v4380_v26, %v8604_v51 }
0x1093   : > { %v4317_v1 = vpop.f32.mrf.mxu2  ;;  %v4342_v21 = vpop.f32.mrf.mxu3  ;;  %v4420_v5 = vadd.f32 0.00028619796, %v4419_v25 }
0x1094   : > { %v4539_v24 = vmul.f32 2.1237322e-06, %v8611_v18  ;;  %v8624_v34 = vadd.f32 %v4317_v1, %v4180_v39  ;;  %v8635_v6 = vadd.f32 %v4342_v21, %v8529_v53  ;;  %v4901_v39 = vmul.f32 %v4900_v50, %v8594_v55 }
0x1095   : > { %v4939_v47 = vmul.f32 2.1237322e-06, %v8632_v32  ;;  %v4825_v44 = vmul.f32 %v4824_v33, %v8555_v30  ;;  %v4382_v25 = vadd.f32 0.0036580483, %v4381_v48  ;;  %v4786_v33 = vadd.f32 0.18741608, %v4785_v3 }
0x1096   : > { %9425 = vst [vmem:[#allocation19_spill] sm:$0xff] %v8624_v34  ;;  %v4540_v46 = vadd.f32 0.00028619796, %v4539_v24  ;;  %v8643_v22 = vmul.f32 0.70710677, %v8624_v34 }
0x1097   : > { %v8647_v53 = vmul.f32 0.70710677, %v8635_v6  ;;  %v4902_v27 = vadd.f32 0.0036580483, %v4901_v39  ;;  %v4940_v50 = vadd.f32 0.00028619796, %v4939_v47 }
0x1098   : > { %v4541_v57 = vmul.f32 %v4540_v46, %v8611_v18  ;;  %v4577_v21 = vmul.f32 %v8643_v22, %v8643_v22  ;;  %v8666_v46 = vmin.f32 %v4497_v23, 16.0  ;;  %v4421_v23 = vmul.f32 %v4420_v5, %v8627_v54 }
0x1099   : > { %v4977_v24 = vmul.f32 %v8647_v53, %v8647_v53  ;;  %v4903_v47 = vmul.f32 %v4902_v27, %v8594_v55  ;;  %v4941_v26 = vmul.f32 %v4940_v50, %v8632_v32  ;;  %v4787_v5 = vmul.f32 %v4786_v33, %v8553_v56 }
0x109a   : > { %v4542_v10 = vadd.f32 0.0036580483, %v4541_v57  ;;  %v8673_v4 = vmin.f32 %v4577_v21, 16.0  ;;  %v4499_v57 = vmul.f32 2.1237322e-06, %v8666_v46 }
0x109b   : > { %v4320_v28 = vpop.f32.mrf.mxu2  ;;  %v8664_v39 = vmin.f32 %v4977_v24, 16.0  ;;  %v4826_v24 = vadd.f32 0.18741608, %v4825_v44  ;;  %v4904_v50 = vadd.f32 0.05243302, %v4903_v47  ;;  %v8692_v44 = vmul.f32 0.5, %v8537_v0 }
0x109c   : > { %v8652_v1 = vadd.f32 %v4320_v28, %v8531_v40  ;;  %v4863_v40 = vmul.f32 %v4862_v61, %v8581_v11  ;;  %v4543_v48 = vmul.f32 %v4542_v10, %v8611_v18  ;;  %v4942_v3 = vadd.f32 0.0036580483, %v4941_v26 }
0x109d   : > { %v4979_v29 = vmul.f32 2.1237322e-06, %v8664_v39  ;;  %v4579_v13 = vmul.f32 2.1237322e-06, %v8673_v4  ;;  %v4827_v47 = vmul.f32 %v4826_v24, %v8555_v30  ;;  %v8699_v26 = vmul.f32 %v4382_v25, %v8604_v51 }
0x109e   : > { %v8670_v28 = vmul.f32 0.70710677, %v8652_v1  ;;  %v4864_v27 = vadd.f32 0.05243302, %v4863_v40  ;;  %v4422_v40 = vadd.f32 0.0036580483, %v4421_v23  ;;  %v4905_v0 = vmul.f32 %v4904_v50, %v8594_v55 }
0x109f   : > { %v4980_v31 = vadd.f32 0.00028619796, %v4979_v29  ;;  %9428 = vst [vmem:[#allocation28_spill] sm:$0xff] %v8699_v26  ;;  %v4544_v29 = vadd.f32 0.05243302, %v4543_v48  ;;  %v4943_v19 = vmul.f32 %v4942_v3, %v8632_v32  ;;  %v8707_v24 = vmul.f32 0.5, %v8551_v8 }
0x10a0   : > { %v4617_v61 = vmul.f32 %v8670_v28, %v8670_v28  ;;  %v4865_v10 = vmul.f32 %v4864_v27, %v8581_v11  ;;  %v4580_v23 = vadd.f32 0.00028619796, %v4579_v13  ;;  %v4788_v12 = vadd.f32 1.1283791, %v4787_v5 }
0x10a1   : > { %v8713_v27 = vmul.f32 %v4422_v40, %v8627_v54  ;;  %v4906_v5 = vadd.f32 0.18741608, %v4905_v0  ;;  %v4944_v62 = vadd.f32 0.05243302, %v4943_v19  ;;  %v8739_v19 = vmul.f32 0.5, %v8564_v20 }
0x10a2   : > { %v8683_v21 = vmin.f32 %v4617_v61, 16.0  ;;  %v4463_v61 = vmul.f32 %v4462_v42, %v8613_v45  ;;  %v4981_v42 = vmul.f32 %v4980_v31, %v8664_v39  ;;  %v4866_v38 = vadd.f32 0.18741608, %v4865_v10 }
0x10a3   : > { %v4322_v35 = vpop.f32.mrf.mxu2  ;;  %9429 = vst [vmem:[#allocation9_spill] sm:$0xff] %v8713_v27  ;;  %v4545_v31 = vmul.f32 %v4544_v29, %v8611_v18  ;;  %v4581_v40 = vmul.f32 %v4580_v23, %v8673_v4  ;;  %v4990_v34 = vmul.f32 3.8918573e-05, %v8664_v39 }
0x10a4   : > { %v8688_v41 = vadd.f32 %v4322_v35, %v8533_v36  ;;  %v4619_v58 = vmul.f32 2.1237322e-06, %v8683_v21  ;;  %v4500_v35 = vadd.f32 0.00028619796, %v4499_v57  ;;  %v4828_v57 = vadd.f32 1.1283791, %v4827_v47 }
0x10a5   : > { %v8725_v47 = vmul.f32 %v4788_v12, %v8540_v49  ;;  %v4867_v0 = vmul.f32 %v4866_v38, %v8581_v11 }
0x10a6   : > { %v4620_v36 = vadd.f32 0.00028619796, %v4619_v58  ;;  %v8702_v33 = vmul.f32 0.70710677, %v8688_v41  ;;  %v4464_v58 = vadd.f32 0.05243302, %v4463_v61  ;;  %v4501_v48 = vmul.f32 %v4500_v35, %v8666_v46 }
0x10a7   : > { %v4982_v61 = vadd.f32 0.0036580483, %v4981_v42  ;;  %v4907_v42 = vmul.f32 %v4906_v5, %v8594_v55 }
0x10a8   : > { %v4657_v25 = vmul.f32 %v8702_v33, %v8702_v33  ;;  %v4621_v13 = vmul.f32 %v4620_v36, %v8683_v21  ;;  %v8732_v36 = vmul.f32 %v4828_v57, %v8543_v2  ;;  %v4502_v29 = vadd.f32 0.0036580483, %v4501_v48 }
0x10a9   : > { %v4950_v2 = vmul.f32 3.8918573e-05, %v8632_v32  ;;  %v4945_v57 = vmul.f32 %v4944_v62, %v8632_v32  ;;  %v4868_v48 = vadd.f32 1.1283791, %v4867_v0 }
0x10aa   : > { %v8717_v3 = vmin.f32 %v4657_v25, 16.0  ;;  %v4622_v49 = vadd.f32 0.0036580483, %v4621_v13  ;;  %v4546_v25 = vadd.f32 0.18741608, %v4545_v31  ;;  %v8751_v13 = vmul.f32 0.5, %v8602_v37 }
0x10ab   : > { %v4325_v50 = vpop.f32.mrf.mxu2  ;;  %v4951_v31 = vadd.f32 0.001143296, %v4950_v2  ;;  %v4790_v37 = vmul.f32 3.8918573e-05, %v8553_v56  ;;  %v4946_v16 = vadd.f32 0.18741608, %v4945_v57 }
0x10ac   : > { %v8720_v8 = vadd.f32 %v4325_v50, %v8527_v15  ;;  %v4659_v10 = vmul.f32 2.1237322e-06, %v8717_v3  ;;  %v8735_v15 = vmul.f32 %v4464_v58, %v8613_v45  ;;  %v4582_v50 = vadd.f32 0.0036580483, %v4581_v40 }
0x10ad   : > { %v4983_v58 = vmul.f32 %v4982_v61, %v8664_v39  ;;  %v4623_v40 = vmul.f32 %v4622_v49, %v8683_v21  ;;  %v4952_v0 = vmul.f32 %v4951_v31, %v8632_v32  ;;  %v8766_v49 = vmul.f32 %v4502_v29, %v8666_v46 }
0x10ae   : > { %v8729_v35 = vmul.f32 0.70710677, %v8720_v8  ;;  %9430 = vst [vmem:[#allocation10_spill] sm:$0xff] %v8735_v15  ;;  %v4660_v12 = vadd.f32 0.00028619796, %v4659_v10  ;;  %v8754_v10 = vmul.f32 0.5, %v8635_v6  ;;  %v4583_v6 = vmul.f32 %v4582_v50, %v8673_v4 }
0x10af   : > { %v4984_v7 = vadd.f32 0.05243302, %v4983_v58  ;;  %9431 = vst [vmem:[#allocation4_spill] sm:$0xff] %v8766_v49 }
0x10b0   : > { %v4697_v23 = vmul.f32 %v8729_v35, %v8729_v35  ;;  %v4661_v38 = vmul.f32 %v4660_v12, %v8717_v3  ;;  %v4908_v12 = vadd.f32 1.1283791, %v4907_v42  ;;  %v4624_v42 = vadd.f32 0.05243302, %v4623_v40 }
0x10b1   : > { %v4584_v17 = vadd.f32 0.05243302, %v4583_v6  ;;  %v8780_v40 = vmul.f32 0.5, %v8652_v1  ;;  %v4830_v1 = vmul.f32 3.8918573e-05, %v8555_v30 }
0x10b2   : > { %v8748_v20 = vmin.f32 %v4697_v23, 16.0  ;;  %v4662_v52 = vadd.f32 0.0036580483, %v4661_v38  ;;  %v4547_v23 = vmul.f32 %v4546_v25, %v8611_v18  ;;  %v4625_v26 = vmul.f32 %v4624_v42, %v8683_v21 }
0x10b3   : > { %v4327_v5 = vpop.f32.mrf.mxu2  ;;  %9432 = vst [vmem:[#allocation23_spill] sm:$0xff] %v8780_v40  ;;  %v4831_v40 = vadd.f32 0.001143296, %v4830_v1 }
0x10b4   : > { %v4699_v62 = vmul.f32 2.1237322e-06, %v8748_v20  ;;  %v8759_v61 = vadd.f32 %v4327_v5, %v8549_v14  ;;  %v4953_v14 = vadd.f32 0.014752088, %v4952_v0  ;;  %v4791_v5 = vadd.f32 0.001143296, %v4790_v37 }
0x10b5   : > { %v4663_v25 = vmul.f32 %v4662_v52, %v8717_v3  ;;  %v4548_v57 = vadd.f32 1.1283791, %v4547_v23  ;;  %v4991_v37 = vadd.f32 0.001143296, %v4990_v34  ;;  %v4985_v23 = vmul.f32 %v4984_v7, %v8664_v39 }
0x10b6   : > { %v4700_v2 = vadd.f32 0.00028619796, %v4699_v62  ;;  %v8769_v38 = vmul.f32 0.70710677, %v8759_v61  ;;  %v4954_v58 = vmul.f32 %v4953_v14, %v8632_v32  ;;  %v4792_v29 = vmul.f32 %v4791_v5, %v8553_v56 }
0x10b7   : > { %v4947_v62 = vmul.f32 %v4946_v16, %v8632_v32  ;;  %v4664_v49 = vadd.f32 0.05243302, %v4663_v25  ;;  %v4992_v14 = vmul.f32 %v4991_v37, %v8664_v39  ;;  %v8794_v7 = vmul.f32 %v4868_v48, %v8558_v60 }
0x10b8   : > { %v4701_v31 = vmul.f32 %v4700_v2, %v8748_v20  ;;  %v4737_v50 = vmul.f32 %v8769_v38, %v8769_v38  ;;  %v4955_v2 = vadd.f32 0.112945676, %v4954_v58  ;;  %v4793_v27 = vadd.f32 0.014752088, %v4792_v29 }
0x10b9   : > { %v4948_v6 = vadd.f32 1.1283791, %v4947_v62  ;;  %v4993_v58 = vadd.f32 0.014752088, %v4992_v14  ;;  %v4986_v37 = vadd.f32 0.18741608, %v4985_v23  ;;  %v4832_v48 = vmul.f32 %v4831_v40, %v8555_v30 }
0x10ba   : > { %v4702_v0 = vadd.f32 0.0036580483, %v4701_v31  ;;  %v8782_v52 = vmin.f32 %v4737_v50, 16.0  ;;  %v4956_v16 = vmul.f32 %v4955_v2, %v8632_v32  ;;  %v4794_v34 = vmul.f32 %v4793_v27, %v8553_v56 }
0x10bb   : > { %v4585_v31 = vmul.f32 %v4584_v17, %v8673_v4  ;;  %v4626_v15 = vadd.f32 0.18741608, %v4625_v26  ;;  %v4994_v2 = vmul.f32 %v4993_v58, %v8664_v39  ;;  %v4665_v27 = vmul.f32 %v4664_v49, %v8717_v3 }
0x10bc   : > { %v4739_v5 = vmul.f32 2.1237322e-06, %v8782_v52  ;;  %v4703_v50 = vmul.f32 %v4702_v0, %v8748_v20  ;;  %v4957_v25 = vadd.f32 0.4994258, %v4956_v16  ;;  %v4795_v29 = vadd.f32 0.112945676, %v4794_v34 }
0x10bd   : > { %v4586_v14 = vadd.f32 0.18741608, %v4585_v31  ;;  %v4995_v60 = vadd.f32 0.112945676, %v4994_v2  ;;  %v4987_v49 = vmul.f32 %v4986_v37, %v8664_v39  ;;  %v4627_v34 = vmul.f32 %v4626_v15, %v8683_v21 }
0x10be   : > { %v4740_v42 = vadd.f32 0.00028619796, %v4739_v5  ;;  %v4958_v17 = vmul.f32 %v4957_v25, %v8632_v32  ;;  %v4796_v0 = vmul.f32 %v4795_v29, %v8553_v56  ;;  %v4704_v54 = vadd.f32 0.05243302, %v4703_v50 }
0x10bf   : > { %v8803_v5 = vmul.f32 %v4908_v12, %v8576_v63  ;;  %v4996_v32 = vmul.f32 %v4995_v60, %v8664_v39  ;;  %v4833_v1 = vadd.f32 0.014752088, %v4832_v48  ;;  %v8811_v31 = vmul.f32 %v4548_v57, %v8597_v59 }
0x10c0   : > { %v4741_v62 = vmul.f32 %v4740_v42, %v8782_v52  ;;  %v8805_v23 = vadd.f32 1.0, %v4958_v17  ;;  %v4797_v16 = vadd.f32 0.4994258, %v4796_v0  ;;  %v4666_v50 = vadd.f32 0.18741608, %v4665_v27 }
0x10c1   : > { %v8816_v63 = vmul.f32 0.5, %v8688_v41  ;;  %v4705_v12 = vmul.f32 %v4704_v54, %v8748_v20  ;;  %v4997_v58 = vadd.f32 0.4994258, %v4996_v32  ;;  %v8821_v15 = vmul.f32 %v4948_v6, %v8616_v9 }
0x10c2   : > { %v4742_v26 = vadd.f32 0.0036580483, %v4741_v62  ;;  %5589 = vrcp.f32 %v8805_v23  ;;  %v4798_v42 = vmul.f32 %v4797_v16, %v8553_v56  ;;  %v4587_v25 = vmul.f32 %v4586_v14, %v8673_v4 }
0x10c3   : > { %v4870_v59 = vmul.f32 3.8918573e-05, %v8581_v11  ;;  %v4834_v57 = vmul.f32 %v4833_v1, %v8555_v30  ;;  %v4988_v29 = vadd.f32 1.1283791, %v4987_v49  ;;  %v4628_v37 = vadd.f32 1.1283791, %v4627_v34 }
0x10c4   : > { %v4743_v40 = vmul.f32 %v4742_v26, %v8782_v52  ;;  %v4998_v2 = vmul.f32 %v4997_v58, %v8664_v39  ;;  %v8827_v41 = vadd.f32 1.0, %v4798_v42  ;;  %v4667_v54 = vmul.f32 %v4666_v50, %v8717_v3 }
0x10c5   : > { %v4871_v62 = vadd.f32 0.001143296, %v4870_v59  ;;  %v4835_v56 = vadd.f32 0.112945676, %v4834_v57  ;;  %v8831_v9 = vmul.f32 0.5, %v8720_v8  ;;  %v4971_v60 = vand.u32 2147483648, %v8805_v23 }
0x10c6   : > { %v4744_v27 = vadd.f32 0.05243302, %v4743_v40  ;;  %v4706_v6 = vadd.f32 0.18741608, %v4705_v12  ;;  %v8833_v17 = vadd.f32 1.0, %v4998_v2  ;;  %5591 = vrcp.f32 %v8827_v41 }
0x10c7   : > { %v8836_v14 = vadd.f32 1.1283791, %v4587_v25  ;;  %v4969_v39 = vand.u32 2147483647, %v8805_v23  ;;  %v4872_v48 = vmul.f32 %v4871_v62, %v8581_v11  ;;  %v8842_v26 = vmul.f32 %v4988_v29, %v8647_v53 }
0x10c8   : > { %v5590_v0 = vpop.eup %5589  ;;  %5593 = vrcp.f32 %v8833_v17  ;;  %v4836_v16 = vmul.f32 %v4835_v56, %v8555_v30  ;;  %v8848_v49 = vmul.f32 %v4628_v37, %v8670_v28  ;;  %v8850_v34 = vadd.f32 1.1283791, %v4667_v54 }
0x10c9   : > { %v4961_v8 = vmul.f32 %v5590_v0, %v8805_v23  ;;  %v4745_v32 = vmul.f32 %v4744_v27, %v8782_v52  ;;  %v4873_v1 = vadd.f32 0.014752088, %v4872_v48  ;;  %v8854_v50 = vmul.f32 %v4706_v6, %v8748_v20 }
0x10ca   : > { %vm4965_vm9 = vweird.f32 %v8805_v23  ;;  %v4910_v53 = vmul.f32 3.8918573e-05, %v8594_v55  ;;  %vm8858_vm4 = vcmp.eq.f32.partialorder %v4969_v39, 8.507059e+37  ;;  %v4972_v58 = vor.u32 1.1754944e-38, %v4971_v60 }
0x10cb   : > { %v4962_v40 = vsub.f32 1.0, %v4961_v8  ;;  %v4874_v28 = vmul.f32 %v4873_v1, %v8581_v11  ;;  %v4470_v42 = vmul.f32 3.8918573e-05, %v8613_v45  ;;  %vm4966_vm5 = vweird.f32 %v5590_v0 }
0x10cc   : > { %v8864_v25 = vpop.eup %5591  ;;  %v4911_v57 = vadd.f32 0.001143296, %v4910_v53  ;;  %v4837_v29 = vadd.f32 0.4994258, %v4836_v16  ;;  %v4746_v37 = vadd.f32 0.18741608, %v4745_v32  ;;  %vm4805_vm7 = vweird.f32 %v8827_v41  ;;  %vm4967_vm10 = vmor %vm4965_vm9, %vm4966_vm5 }
0x10cd   : > { %v4963_v59 = vmul.f32 %v5590_v0, %v4962_v40  ;;  %v4875_v2 = vadd.f32 0.112945676, %v4874_v28  ;;  %v4801_v54 = vmul.f32 %v8864_v25, %v8827_v41  ;;  %v5009_v56 = vand.u32 2147483647, %v8833_v17 }
0x10ce   : > { %v5594_v27 = vpop.eup %5593  ;;  %v4912_v6 = vmul.f32 %v4911_v57, %v8594_v55  ;;  %v4838_v39 = vmul.f32 %v4837_v29, %v8555_v30  ;;  %v5011_v48 = vand.u32 2147483648, %v8833_v17  ;;  %v4471_v53 = vadd.f32 0.001143296, %v4470_v42 }
0x10cf   : > { %v4964_v62 = vadd.f32 %v5590_v0, %v4963_v59  ;;  %v5001_v60 = vmul.f32 %v5594_v27, %v8833_v17  ;;  %v4876_v8 = vmul.f32 %v4875_v2, %v8581_v11  ;;  %v4802_v16 = vsub.f32 1.0, %v4801_v54 }
0x10d0   : > { %v4913_v1 = vadd.f32 0.014752088, %v4912_v6  ;;  %v8877_v40 = vadd.f32 1.0, %v4838_v39  ;;  %vm5006_vm11 = vweird.f32 %v5594_v27  ;;  %vm4806_vm13 = vweird.f32 %v8864_v25 }
0x10d1   : > { %v4968_v32 = vsel %vm4967_vm10, %v5590_v0, %v4964_v62  ;;  %v5002_v59 = vsub.f32 1.0, %v5001_v60  ;;  %v4877_v30 = vadd.f32 0.4994258, %v4876_v8  ;;  %v4803_v23 = vmul.f32 %v8864_v25, %v4802_v16  ;;  %vm8898_vm14 = vmor %vm4805_vm7, %vm4806_vm13 }
0x10d2   : > { %v4973_v28 = vsel %vm8858_vm4, %v4972_v58, %v4968_v32  ;;  %v4914_v57 = vmul.f32 %v4913_v1, %v8594_v55  ;;  %5595 = vrcp.f32 %v8877_v40  ;;  %vm5005_vm12 = vweird.f32 %v8833_v17 }
0x10d3   : > { %v4974_v0 = vmul.f32 %v4973_v28, %v8821_v15  ;;  %v5003_v29 = vmul.f32 %v5594_v27, %v5002_v59  ;;  %v4878_v2 = vmul.f32 %v4877_v30, %v8581_v11  ;;  %v4804_v42 = vadd.f32 %v8864_v25, %v4803_v23  ;;  %vm5007_vm6 = vmor %vm5005_vm12, %vm5006_vm11 }
0x10d4   : > { %v4915_v12 = vadd.f32 0.112945676, %v4914_v57  ;;  %v4809_v58 = vand.u32 2147483647, %v8827_v41  ;;  %v4811_v54 = vand.u32 2147483648, %v8827_v41  ;;  %v8892_v62 = vmul.f32 %v4746_v37, %v8782_v52 }
0x10d5   : > { %v5004_v6 = vadd.f32 %v5594_v27, %v5003_v29  ;;  %v8894_v39 = vadd.f32 1.0, %v4878_v2  ;;  %v4472_v11 = vmul.f32 %v4471_v53, %v8613_v45  ;;  %vm5010_vm15 = vcmp.eq.f32.partialorder %v5009_v56, 8.507059e+37 }
0x10d6   : > { %v5012_v17 = vor.u32 1.1754944e-38, %v5011_v48  ;;  %v4916_v60 = vmul.f32 %v4915_v12, %v8594_v55  ;;  %v4550_v37 = vmul.f32 3.8918573e-05, %v8611_v18  ;;  %v5461_v8 = vclamps-f32 %v4974_v0, 1.0 }
0x10d7   : > { %v5008_v16 = vsel %vm5007_vm6, %v5594_v27, %v5004_v6  ;;  %5597 = vrcp.f32 %v8894_v39  ;;  %v4808_v41 = vsel %vm8898_vm14, %v8864_v25, %v4804_v42  ;;  %vm4810_vm0 = vcmp.eq.f32.partialorder %v4809_v58, 8.507059e+37 }
0x10d8   : > { %v8910_v32 = vpop.eup %5595  ;;  %v5013_v1 = vsel %vm5010_vm15, %v5012_v17, %v5008_v16  ;;  %v4917_v53 = vadd.f32 0.4994258, %v4916_v60  ;;  %v4812_v28 = vor.u32 1.1754944e-38, %v4811_v54  ;;  %v4849_v59 = vand.u32 2147483647, %v8877_v40 }
0x10d9   : > { %v5014_v56 = vmul.f32 %v5013_v1, %v8842_v26  ;;  %v4841_v48 = vmul.f32 %v8910_v32, %v8877_v40  ;;  %v4473_v27 = vadd.f32 0.014752088, %v4472_v11  ;;  %v4851_v57 = vand.u32 2147483648, %v8877_v40 }
0x10da   : > { %v4918_v30 = vmul.f32 %v4917_v53, %v8594_v55  ;;  %v4813_v23 = vsel %vm4810_vm0, %v4812_v28, %v4808_v41  ;;  %v4551_v25 = vadd.f32 0.001143296, %v4550_v37  ;;  %v5031_v29 = vadd.f32 1.0, %v5461_v8 }
0x10db   : > { %v5462_v0 = vclamps-f32 %v5014_v56, 1.0  ;;  %v4889_v2 = vand.u32 2147483647, %v8894_v39  ;;  %v4842_v42 = vsub.f32 1.0, %v4841_v48  ;;  %v4891_v12 = vand.u32 2147483648, %v8894_v39 }
0x10dc   : > { %v8920_v26 = vadd.f32 1.0, %v4918_v30  ;;  %vm4845_vm1 = vweird.f32 %v8877_v40  ;;  %v4552_v58 = vmul.f32 %v4551_v25, %v8611_v18  ;;  %v8925_v55 = vmul.f32 %v4813_v23, %v8725_v47 }
0x10dd   : > { %v5598_v54 = vpop.eup %5597  ;;  %v5032_v6 = vadd.f32 1.0, %v5462_v0  ;;  %v4843_v15 = vmul.f32 %v8910_v32, %v4842_v42  ;;  %v4710_v11 = vmul.f32 3.8918573e-05, %v8748_v20  ;;  %vm4885_vm2 = vweird.f32 %v8894_v39 }
0x10de   : > { %v4881_v17 = vmul.f32 %v5598_v54, %v8894_v39  ;;  %5599 = vrcp.f32 %v8920_v26  ;;  %vm8932_vm3 = vcmp.eq.f32.partialorder %v4849_v59, 8.507059e+37  ;;  %v4852_v37 = vor.u32 1.1754944e-38, %v4851_v57 }
0x10df   : > { %v5047_v8 = vmul.f32 %v5031_v29, %v8751_v13  ;;  %v5048_v47 = vmul.f32 %v5032_v6, %v8754_v10  ;;  %vm8938_vm9 = vcmp.eq.f32.partialorder %v4889_v2, 8.507059e+37  ;;  %vm4846_vm4 = vweird.f32 %v8910_v32 }
0x10e0   : > { %v4882_v41 = vsub.f32 1.0, %v4881_v17  ;;  %v4844_v1 = vadd.f32 %v8910_v32, %v4843_v15  ;;  %v4711_v53 = vadd.f32 0.001143296, %v4710_v11  ;;  %v4553_v28 = vadd.f32 0.014752088, %v4552_v58  ;;  %vm8953_vm10 = vmor %vm4845_vm1, %vm4846_vm4 }
0x10e1   : > { %v5061_v56 = vpack.c.bf16 %v5048_v47, %v5047_v8  ;;  %v4892_v48 = vor.u32 1.1754944e-38, %v4891_v12  ;;  %v4931_v59 = vand.u32 2147483648, %v8920_v26  ;;  %v5457_v30 = vclamps-f32 %v8925_v55, 1.0 }
0x10e2   : > { %v4883_v13 = vmul.f32 %v5598_v54, %v4882_v41  ;;  %vm4886_vm5 = vweird.f32 %v5598_v54  ;;  %v4712_v10 = vmul.f32 %v4711_v53, %v8748_v20  ;;  %v4630_v23 = vmul.f32 3.8918573e-05, %v8683_v21 }
0x10e3   : > { %5099 = vmatpush.bf16.msrb.mxu3 %v5061_v56  ;;  %vm4925_vm7 = vweird.f32 %v8920_v26  ;;  %v4554_v25 = vmul.f32 %v4553_v28, %v8611_v18  ;;  %v4590_v0 = vmul.f32 3.8918573e-05, %v8673_v4  ;;  %v8960_v29 = vmul.f32 %v4473_v27, %v8613_v45  ;;  %vm4887_vm11 = vmor %vm4885_vm2, %vm4886_vm5 }
0x10e4   : > { %v5600_v2 = vpop.eup %5599  ;;  %v4884_v42 = vadd.f32 %v5598_v54, %v4883_v13  ;;  %v4848_v12 = vsel %vm8953_vm10, %v8910_v32, %v4844_v1  ;;  %v4713_v58 = vadd.f32 0.014752088, %v4712_v10  ;;  %v4631_v6 = vadd.f32 0.001143296, %v4630_v23 }
0x10e5   : > { %v4921_v40 = vmul.f32 %v5600_v2, %v8920_v26  ;;  %v4929_v15 = vand.u32 2147483647, %v8920_v26  ;;  %v4932_v11 = vor.u32 1.1754944e-38, %v4931_v59  ;;  %v4750_v17 = vmul.f32 3.8918573e-05, %v8782_v52 }
0x10e6   : > { %v4888_v27 = vsel %vm4887_vm11, %v5598_v54, %v4884_v42  ;;  %v4714_v8 = vmul.f32 %v4713_v58, %v8748_v20  ;;  %v4632_v47 = vmul.f32 %v4631_v6, %v8683_v21  ;;  %v4555_v41 = vadd.f32 0.112945676, %v4554_v25 }
0x10e7   : > { %v4893_v32 = vsel %vm8938_vm9, %v4892_v48, %v4888_v27  ;;  %v4922_v1 = vsub.f32 1.0, %v4921_v40  ;;  %v4853_v39 = vsel %vm8932_vm3, %v4852_v37, %v4848_v12  ;;  %v4751_v53 = vadd.f32 0.001143296, %v4750_v17 }
0x10e8   : > { %v4894_v28 = vmul.f32 %v4893_v32, %v8794_v7  ;;  %v4715_v56 = vadd.f32 0.112945676, %v4714_v8  ;;  %v4633_v59 = vadd.f32 0.014752088, %v4632_v47  ;;  %v4556_v13 = vmul.f32 %v4555_v41, %v8611_v18 }
0x10e9   : > { %v4923_v54 = vmul.f32 %v5600_v2, %v4922_v1  ;;  %vm4926_vm13 = vweird.f32 %v5600_v2  ;;  %v4752_v10 = vmul.f32 %v4751_v53, %v8782_v52  ;;  %v4670_v23 = vmul.f32 3.8918573e-05, %v8717_v3 }
0x10ea   : > { %v4854_v16 = vmul.f32 %v4853_v39, %v8732_v36  ;;  %v4716_v48 = vmul.f32 %v4715_v56, %v8748_v20  ;;  %v4634_v60 = vmul.f32 %v4633_v59, %v8683_v21  ;;  %v4557_v37 = vadd.f32 0.4994258, %v4556_v13  ;;  %vm4927_vm12 = vmor %vm4925_vm7, %vm4926_vm13 }
0x10eb   : > { %v4924_v57 = vadd.f32 %v5600_v2, %v4923_v54  ;;  %v4753_v25 = vadd.f32 0.014752088, %v4752_v10  ;;  %v4671_v7 = vadd.f32 0.001143296, %v4670_v23  ;;  %v4591_v42 = vadd.f32 0.001143296, %v4590_v0 }
0x10ec   : > { %v5459_v12 = vclamps-f32 %v4894_v28, 1.0  ;;  %v4717_v58 = vadd.f32 0.4994258, %v4716_v48  ;;  %v4635_v6 = vadd.f32 0.112945676, %v4634_v60  ;;  %v4558_v40 = vmul.f32 %v4557_v37, %v8611_v18 }
0x10ed   : > { %v4928_v17 = vsel %vm4927_vm12, %v5600_v2, %v4924_v57  ;;  %vm4930_vm14 = vcmp.eq.f32.partialorder %v4929_v15, 8.507059e+37  ;;  %v4754_v36 = vmul.f32 %v4753_v25, %v8782_v52  ;;  %v4672_v27 = vmul.f32 %v4671_v7, %v8717_v3 }
0x10ee   : > { %v4933_v8 = vsel %vm4930_vm14, %v4932_v11, %v4928_v17  ;;  %v5458_v47 = vclamps-f32 %v4854_v16, 1.0  ;;  %v4718_v41 = vmul.f32 %v4717_v58, %v8748_v20  ;;  %v4636_v0 = vmul.f32 %v4635_v6, %v8683_v21 }
0x10ef   : > { %v4934_v32 = vmul.f32 %v4933_v8, %v8803_v5  ;;  %v4755_v26 = vadd.f32 0.112945676, %v4754_v36  ;;  %v4673_v1 = vadd.f32 0.014752088, %v4672_v27  ;;  %v8991_v39 = vadd.f32 1.0, %v4558_v40 }
0x10f0   : > { %v5029_v53 = vadd.f32 1.0, %v5459_v12  ;;  %v8993_v18 = vadd.f32 1.0, %v4718_v41  ;;  %v4637_v2 = vadd.f32 0.4994258, %v4636_v0  ;;  %v4592_v15 = vmul.f32 %v4591_v42, %v8673_v4 }
0x10f1   : > { %v5460_v28 = vclamps-f32 %v4934_v32, 1.0  ;;  %v4756_v11 = vmul.f32 %v4755_v26, %v8782_v52  ;;  %v4674_v56 = vmul.f32 %v4673_v1, %v8717_v3  ;;  %5601 = vrcp.f32 %v8991_v39 }
0x10f2   : > { %v4708_v20 = vadd.f32 1.1283791, %v8854_v50  ;;  %v5027_v5 = vadd.f32 1.0, %v5457_v30  ;;  %v5028_v59 = vadd.f32 1.0, %v5458_v47  ;;  %5603 = vrcp.f32 %v8993_v18 }
0x10f3   : > { %v5030_v13 = vadd.f32 1.0, %v5460_v28  ;;  %v4757_v54 = vadd.f32 0.4994258, %v4756_v11  ;;  %v4638_v10 = vmul.f32 %v4637_v2, %v8683_v21  ;;  %v4675_v23 = vadd.f32 0.112945676, %v4674_v56 }
0x10f4   : > { %v4748_v16 = vadd.f32 1.1283791, %v8892_v62  ;;  %v5045_v48 = vmul.f32 %v5029_v53, %v8707_v24  ;;  %v4593_v60 = vadd.f32 0.014752088, %v4592_v15  ;;  %v4475_v37 = vadd.f32 0.112945676, %v8960_v29 }
0x10f5   : > { %v5046_v50 = vmul.f32 %v5030_v13, %v8739_v19  ;;  %v4758_v55 = vmul.f32 %v4757_v54, %v8782_v52  ;;  %v9009_v30 = vadd.f32 1.0, %v4638_v10  ;;  %v4676_v57 = vmul.f32 %v4675_v23, %v8717_v3 }
0x10f6   : > { %v4709_v25 = vmul.f32 %v4708_v20, %v8729_v35  ;;  %v5044_v21 = vmul.f32 %v5028_v59, %v8692_v44  ;;  %v4729_v7 = vand.u32 2147483647, %v8993_v18  ;;  %v4731_v62 = vand.u32 2147483648, %v8993_v18 }
0x10f7   : > { %v9016_v24 = vpop.eup %5601  ;;  %v5060_v42 = vpack.c.bf16 %v5046_v50, %v5045_v48  ;;  %v5043_v29 = vmul.f32 %v5027_v5, %v8680_v43  ;;  %v9019_v19 = vadd.f32 1.0, %v4758_v55  ;;  %5605 = vrcp.f32 %v9009_v30 }
0x10f8   : > { %v5604_v52 = vpop.eup %5603  ;;  %v4677_v12 = vadd.f32 0.4994258, %v4676_v57  ;;  %v4561_v35 = vmul.f32 %v9016_v24, %v8991_v39  ;;  %v4594_v44 = vmul.f32 %v4593_v60, %v8673_v4  ;;  %v4476_v58 = vmul.f32 %v4475_v37, %v8613_v45 }
0x10f9   : > { %v9027_v6 = vmul.f32 %v4748_v16, %v8769_v38  ;;  %5100 = vmatpush.bf16.msrb.mxu3 %v5060_v42  ;;  %v4721_v40 = vmul.f32 %v5604_v52, %v8993_v18  ;;  %5607 = vrcp.f32 %v9019_v19  ;;  %v9032_v43 = vmul.f32 3.8918573e-05, %v8666_v46 }
0x10fa   : > { %v5059_v17 = vpack.c.bf16 %v5044_v21, %v5043_v29  ;;  %vm4725_vm6 = vweird.f32 %v8993_v18  ;;  %vm9035_vm15 = vcmp.eq.f32.partialorder %v4729_v7, 8.507059e+37  ;;  %v4732_v27 = vor.u32 1.1754944e-38, %v4731_v62 }
0x10fb   : > { %v4722_v8 = vsub.f32 1.0, %v4721_v40  ;;  %v4678_v38 = vmul.f32 %v4677_v12, %v8717_v3  ;;  %v4562_v47 = vsub.f32 1.0, %v4561_v35  ;;  %vm4565_vm0 = vweird.f32 %v8991_v39 }
0x10fc   : > { %v4569_v41 = vand.u32 2147483647, %v8991_v39  ;;  %vm4645_vm1 = vweird.f32 %v9009_v30  ;;  %v4571_v0 = vand.u32 2147483648, %v8991_v39  ;;  %v4595_v32 = vadd.f32 0.112945676, %v4594_v44 }
0x10fd   : > { %v4477_v26 = vadd.f32 0.4994258, %v4476_v58  ;;  %v5606_v1 = vpop.eup %5605  ;;  %5101 = vmatpush.bf16.msrb.mxu3 %v5059_v17  ;;  %v4723_v53 = vmul.f32 %v5604_v52, %v4722_v8  ;;  %vm4726_vm2 = vweird.f32 %v5604_v52  ;;  %v9044_v2 = vadd.f32 1.0, %v4678_v38 }
0x10fe   : > { %v4563_v15 = vmul.f32 %v9016_v24, %v4562_v47  ;;  %v4641_v3 = vmul.f32 %v5606_v1, %v9009_v30  ;;  %v4649_v28 = vand.u32 2147483647, %v9009_v30  ;;  %v4651_v11 = vand.u32 2147483648, %v9009_v30  ;;  %vm4727_vm9 = vmor %vm4725_vm6, %vm4726_vm2 }
0x10ff   : > { %v4596_v56 = vmul.f32 %v4595_v32, %v8673_v4  ;;  %v5608_v20 = vpop.eup %5607  ;;  %v4724_v5 = vadd.f32 %v5604_v52, %v4723_v53  ;;  %vm4765_vm3 = vweird.f32 %v9019_v19  ;;  %v4769_v59 = vand.u32 2147483647, %v9019_v19 }
0x1100   : > { %5609 = vrcp.f32 %v9044_v2  ;;  %v4761_v13 = vmul.f32 %v5608_v20, %v9019_v19  ;;  %v4771_v54 = vand.u32 2147483648, %v9019_v19  ;;  %v4642_v10 = vsub.f32 1.0, %v4641_v3 }
0x1101   : > { %vm9058_vm4 = vcmp.eq.f32.partialorder %v4569_v41, 8.507059e+37  ;;  %v4478_v16 = vmul.f32 %v4477_v26, %v8613_v45  ;;  %v4728_v48 = vsel %vm4727_vm9, %v5604_v52, %v4724_v5  ;;  %v4564_v60 = vadd.f32 %v9016_v24, %v4563_v15 }
0x1102   : > { %vm4566_vm5 = vweird.f32 %v9016_v24  ;;  %v4597_v37 = vadd.f32 0.4994258, %v4596_v56  ;;  %v4733_v18 = vsel %vm9035_vm15, %v4732_v27, %v4728_v48  ;;  %v4762_v50 = vsub.f32 1.0, %v4761_v13 }
0x1103   : > { %v4643_v55 = vmul.f32 %v5606_v1, %v4642_v10  ;;  %vm4646_vm7 = vweird.f32 %v5606_v1  ;;  %v4734_v57 = vmul.f32 %v4733_v18, %v4709_v25  ;;  %vm9067_vm10 = vcmp.eq.f32.partialorder %v4649_v28, 8.507059e+37  ;;  %vm9074_vm13 = vmor %vm4565_vm0, %vm4566_vm5  ;;  %v9453_v18 = vld [vmem:[#allocation21_spill] sm:$0xff] }
0x1104   : > { %v4652_v7 = vor.u32 1.1754944e-38, %v4651_v11  ;;  %v4598_v62 = vmul.f32 %v4597_v37, %v8673_v4  ;;  %v4763_v42 = vmul.f32 %v5608_v20, %v4762_v50  ;;  %vm4766_vm11 = vweird.f32 %v5608_v20  ;;  %vm4647_vm14 = vmor %vm4645_vm1, %vm4646_vm7 }
0x1105   : > { %v4644_v29 = vadd.f32 %v5606_v1, %v4643_v55  ;;  %v9078_v12 = vadd.f32 1.0, %v4478_v16  ;;  %vm9080_vm12 = vcmp.eq.f32.partialorder %v4769_v59, 8.507059e+37  ;;  %v4772_v44 = vor.u32 1.1754944e-38, %v4771_v54  ;;  %vm4767_vm6 = vmor %vm4765_vm3, %vm4766_vm11 }
0x1106   : > { %v5610_v35 = vpop.eup %5609  ;;  %v4568_v4 = vsel %vm9074_vm13, %v9016_v24, %v4564_v60  ;;  %v9089_v39 = vadd.f32 1.0, %v4598_v62  ;;  %v5455_v58 = vclamps-f32 %v4734_v57, 1.0  ;;  %v4764_v40 = vadd.f32 %v5608_v20, %v4763_v42 }
0x1107   : > { %v4648_v17 = vsel %vm4647_vm14, %v5606_v1, %v4644_v29  ;;  %v4681_v36 = vmul.f32 %v5610_v35, %v9044_v2  ;;  %v4572_v8 = vor.u32 1.1754944e-38, %v4571_v0  ;;  %v4511_v30 = vadd.f32 0.001143296, %v9032_v43 }
0x1108   : > { %v4653_v27 = vsel %vm9067_vm10, %v4652_v7, %v4648_v17  ;;  %5611 = vrcp.f32 %v9089_v39  ;;  %v4768_v38 = vsel %vm4767_vm6, %v5608_v20, %v4764_v40  ;;  %v4689_v19 = vand.u32 2147483647, %v9044_v2  ;;  %v9454_v40 = vld [vmem:[#allocation23_spill] sm:$0xff] }
0x1109   : > { %v4654_v24 = vmul.f32 %v4653_v27, %v8848_v49  ;;  %v4682_v47 = vsub.f32 1.0, %v4681_v36  ;;  %5613 = vrcp.f32 %v9078_v12  ;;  %v4773_v41 = vsel %vm9080_vm12, %v4772_v44, %v4768_v38 }
0x110a   : > { %v4691_v32 = vand.u32 2147483648, %v9044_v2  ;;  %v4573_v0 = vsel %vm9058_vm4, %v4572_v8, %v4568_v4  ;;  %v4774_v26 = vmul.f32 %v4773_v41, %v9027_v6  ;;  %v5025_v1 = vadd.f32 1.0, %v5455_v58  ;;  %v9455_v8 = vld [vmem:[#allocation10_spill] sm:$0xff]  ;;  %v9456_v41 = vld [vmem:[#allocation4_spill] sm:$0xff] }
0x110b   : > { %v4683_v43 = vmul.f32 %v5610_v35, %v4682_v47  ;;  %vm4686_vm15 = vweird.f32 %v5610_v35  ;;  %v4589_v49 = vmul.f32 %v8836_v14, %v8643_v22  ;;  %v4669_v53 = vmul.f32 %v8850_v34, %v8702_v33 }
0x110c   : > { %v4354_v15 = vmul.f32 0.5, %v8759_v61  ;;  %v5453_v3 = vclamps-f32 %v4654_v24, 1.0  ;;  %v5456_v28 = vclamps-f32 %v4774_v26, 1.0  ;;  %vm4685_vm0 = vweird.f32 %v9044_v2 }
0x110d   : > { %v4684_v11 = vadd.f32 %v5610_v35, %v4683_v43  ;;  %v4512_v56 = vmul.f32 %v4511_v30, %v8666_v46  ;;  %vm4687_vm1 = vmor %vm4685_vm0, %vm4686_vm15  ;;  %vm4690_vm2 = vcmp.eq.f32.partialorder %v4689_v19, 8.507059e+37  ;;  %v4692_v6 = vor.u32 1.1754944e-38, %v4691_v32 }
0x110e   : > { %v5612_v20 = vpop.eup %5611  ;;  %v4574_v5 = vmul.f32 %v4573_v0, %v8811_v31  ;;  %v4390_v22 = vmul.f32 3.8918573e-05, %v8604_v51  ;;  %v5026_v33 = vadd.f32 1.0, %v5456_v28  ;;  %v5041_v61 = vmul.f32 %v5025_v1, %v8831_v9  ;;  %v9457_v1 = vld [vmem:[#allocation28_spill] sm:$0xff] }
0x110f   : > { %v9116_v14 = vpop.eup %5613  ;;  %v4688_v34 = vsel %vm4687_vm1, %v5610_v35, %v4684_v11  ;;  %v4601_v59 = vmul.f32 %v5612_v20, %v9089_v39  ;;  %v5023_v2 = vadd.f32 1.0, %v5453_v3  ;;  %v4609_v54 = vand.u32 2147483647, %v9089_v39  ;;  %v9458_v3 = vld [vmem:[#allocation9_spill] sm:$0xff] }
0x1110   : > { %v4693_v13 = vsel %vm4690_vm2, %v4692_v6, %v4688_v34  ;;  %v4611_v10 = vand.u32 2147483648, %v9089_v39  ;;  %v5042_v23 = vmul.f32 %v5026_v33, %v4354_v15  ;;  %v4513_v31 = vadd.f32 0.014752088, %v4512_v56  ;;  %v9460_v34 = vld [vmem:[#allocation19_spill] sm:$0xff] }
0x1111   : > { %v4694_v16 = vmul.f32 %v4693_v13, %v4669_v53  ;;  %v4602_v48 = vsub.f32 1.0, %v4601_v59  ;;  %vm4606_vm3 = vweird.f32 %v5612_v20  ;;  %v4481_v60 = vmul.f32 %v9116_v14, %v9078_v12 }
0x1112   : > { %v4391_v37 = vadd.f32 0.001143296, %v4390_v22  ;;  %v4430_v9 = vmul.f32 3.8918573e-05, %v9453_v18  ;;  %v5058_v50 = vpack.c.bf16 %v5042_v23, %v5041_v61  ;;  %v4514_v21 = vmul.f32 %v4513_v31, %v8666_v46 }
0x1113   : > { %v5454_v55 = vclamps-f32 %v4694_v16, 1.0  ;;  %v4603_v57 = vmul.f32 %v5612_v20, %v4602_v48  ;;  %v5451_v7 = vclamps-f32 %v4574_v5, 1.0  ;;  %vm4605_vm9 = vweird.f32 %v9089_v39  ;;  %v9459_v5 = vld [vmem:[#allocation20_spill] sm:$0xff] }
0x1114   : > { %v4392_v62 = vmul.f32 %v4391_v37, %v8604_v51  ;;  %v4431_v42 = vadd.f32 0.001143296, %v4430_v9  ;;  %5102 = vmatpush.bf16.msrb.mxu3 %v5058_v50  ;;  %vm4610_vm4 = vcmp.eq.f32.partialorder %v4609_v54, 8.507059e+37  ;;  %v4515_v35 = vadd.f32 0.112945676, %v4514_v21  ;;  %vm4607_vm5 = vmor %vm4605_vm9, %vm4606_vm3 }
0x1115   : > { %v5024_v29 = vadd.f32 1.0, %v5454_v55  ;;  %v4604_v52 = vadd.f32 %v5612_v20, %v4603_v57  ;;  %v4612_v25 = vor.u32 1.1754944e-38, %v4611_v10  ;;  %v4482_v44 = vsub.f32 1.0, %v4481_v60 }
0x1116   : > { %v4393_v4 = vadd.f32 0.014752088, %v4392_v62  ;;  %v4432_v58 = vmul.f32 %v4431_v42, %v9453_v18  ;;  %v5039_v17 = vmul.f32 %v5023_v2, %v9454_v40  ;;  %v4516_v27 = vmul.f32 %v4515_v35, %v8666_v46 }
0x1117   : > { %v5040_v36 = vmul.f32 %v5024_v29, %v8816_v63  ;;  %v4608_v39 = vsel %vm4607_vm5, %v5612_v20, %v4604_v52  ;;  %v4466_v30 = vadd.f32 0.18741608, %v9455_v8  ;;  %v4504_v19 = vadd.f32 0.05243302, %v9456_v41 }
0x1118   : > { %v4613_v38 = vsel %vm4610_vm4, %v4612_v25, %v4608_v39  ;;  %v4394_v24 = vmul.f32 %v4393_v4, %v8604_v51  ;;  %v4433_v47 = vadd.f32 0.014752088, %v4432_v58  ;;  %v4517_v26 = vadd.f32 0.4994258, %v4516_v27 }
0x1119   : > { %v5057_v32 = vpack.c.bf16 %v5040_v36, %v5039_v17  ;;  %v4614_v0 = vmul.f32 %v4613_v38, %v4589_v49  ;;  %v4384_v43 = vadd.f32 0.05243302, %v9457_v1  ;;  %v4483_v53 = vmul.f32 %v9116_v14, %v4482_v44  ;;  %v9461_v44 = vld [vmem:[#allocation26_spill] sm:$0xff] }
0x111a   : > { %v4395_v15 = vadd.f32 0.112945676, %v4394_v24  ;;  %v4434_v63 = vmul.f32 %v4433_v47, %v9453_v18  ;;  %v4424_v28 = vadd.f32 0.05243302, %v9458_v3  ;;  %v5021_v56 = vadd.f32 1.0, %v5451_v7  ;;  %v9462_v47 = vld [vmem:[#allocation5_spill] sm:$0xff] }
0x111b   : > { %5103 = vmatpush.bf16.msrb.mxu3 %v5057_v32  ;;  %v5452_v11 = vclamps-f32 %v4614_v0, 1.0  ;;  %v4518_v20 = vmul.f32 %v4517_v26, %v8666_v46  ;;  %v4467_v6 = vmul.f32 %v4466_v30, %v8613_v45  ;;  %v4349_v22 = vmul.f32 0.5, %v9459_v5 }
0x111c   : > { %v4396_v49 = vmul.f32 %v4395_v15, %v8604_v51  ;;  %v4435_v33 = vadd.f32 0.112945676, %v4434_v63  ;;  %v4505_v61 = vmul.f32 %v4504_v19, %v8666_v46  ;;  %v4350_v59 = vmul.f32 0.5, %v9460_v34  ;;  %v9463_v15 = vld [vmem:[#allocation25_spill] sm:$0xff] }
0x111d   : > { %v5022_v13 = vadd.f32 1.0, %v5452_v11  ;;  %v4519_v2 = vadd.f32 1.0, %v4518_v20  ;;  %v4484_v54 = vadd.f32 %v9116_v14, %v4483_v53  ;;  %vm4486_vm7 = vweird.f32 %v9116_v14 }
0x111e   : > { %v4397_v10 = vadd.f32 0.4994258, %v4396_v49  ;;  %v4436_v23 = vmul.f32 %v4435_v33, %v9453_v18  ;;  %v5037_v16 = vmul.f32 %v5021_v56, %v4349_v22  ;;  %v4491_v48 = vand.u32 2147483648, %v9078_v12 }
0x111f   : > { %v5038_v45 = vmul.f32 %v5022_v13, %v4350_v59  ;;  %5615 = vrcp.f32 %v4519_v2  ;;  %vm4485_vm10 = vweird.f32 %v9078_v12  ;;  %v4489_v31 = vand.u32 2147483647, %v9078_v12 }
0x1120   : > { %v4398_v60 = vmul.f32 %v4397_v10, %v8604_v51  ;;  %v4437_v37 = vadd.f32 0.4994258, %v4436_v23  ;;  %v4385_v9 = vmul.f32 %v4384_v43, %v8604_v51  ;;  %v4468_v50 = vadd.f32 1.1283791, %v4467_v6  ;;  %vm4487_vm11 = vmor %vm4485_vm10, %vm4486_vm7  ;;  %v9465_v10 = vld [vmem:[#allocation6_spill] sm:$0xff] }
0x1121   : > { %v5056_v55 = vpack.c.bf16 %v5038_v45, %v5037_v16  ;;  %v4506_v57 = vadd.f32 0.18741608, %v4505_v61  ;;  %v4488_v21 = vsel %vm4487_vm11, %v9116_v14, %v4484_v54  ;;  %v4492_v42 = vor.u32 1.1754944e-38, %v4491_v48 }
0x1122   : > { %v4399_v7 = vadd.f32 1.0, %v4398_v60  ;;  %v4438_v62 = vmul.f32 %v4437_v37, %v9453_v18  ;;  %v4425_v29 = vmul.f32 %v4424_v28, %v9453_v18  ;;  %vm4490_vm13 = vcmp.eq.f32.partialorder %v4489_v31, 8.507059e+37  ;;  %v9466_v60 = vld [vmem:[#allocation7_spill] sm:$0xff] }
0x1123   : > { %5104 = vmatpush.bf16.msrb.mxu3 %v5056_v55  ;;  %v4386_v52 = vadd.f32 0.18741608, %v4385_v9  ;;  %v4493_v35 = vsel %vm4490_vm13, %v4492_v42, %v4488_v21  ;;  %v4469_v4 = vmul.f32 %v4468_v50, %v9461_v44  ;;  %v4507_v58 = vmul.f32 %v4506_v57, %v8666_v46 }
0x1124   : > { %5617 = vrcp.f32 %v4399_v7  ;;  %v9157_v25 = vadd.f32 1.0, %v4438_v62  ;;  %v4426_v14 = vadd.f32 0.18741608, %v4425_v29  ;;  %v4531_v27 = vand.u32 2147483648, %v4519_v2 }
0x1125   : > { %v5616_v12 = vpop.eup %5615  ;;  %v4494_v17 = vmul.f32 %v4493_v35, %v4469_v4  ;;  %v4387_v39 = vmul.f32 %v4386_v52, %v8604_v51  ;;  %v4508_v30 = vadd.f32 1.1283791, %v4507_v58  ;;  %v4529_v24 = vand.u32 2147483647, %v4519_v2  ;;  %v9467_v35 = vld [vmem:[#allocation8_spill] sm:$0xff]  ;;  %v9468_v4 = vld [vmem:[#allocation22_spill] sm:$0xff] }
0x1126   : > { %v4521_v40 = vmul.f32 %v5616_v12, %v4519_v2  ;;  %5619 = vrcp.f32 %v9157_v25  ;;  %vm4526_vm12 = vweird.f32 %v5616_v12  ;;  %v4347_v41 = vmul.f32 0.5, %v9462_v47  ;;  %v5080_v47 = vpop.permute.xlu2 %5079 }
0x1127   : > { %v4427_v32 = vmul.f32 %v4426_v14, %v9453_v18  ;;  %v5449_v46 = vclamps-f32 %v4494_v17, 1.0  ;;  %vm4525_vm14 = vweird.f32 %v4519_v2  ;;  %v4388_v1 = vadd.f32 1.1283791, %v4387_v39  ;;  %v9464_v2 = vld [vmem:[#allocation18_spill] sm:$0xff] }
0x1128   : > { %v4522_v36 = vsub.f32 1.0, %v4521_v40  ;;  %vm4527_vm6 = vmor %vm4525_vm14, %vm4526_vm12  ;;  %v4532_v43 = vor.u32 1.1754944e-38, %v4531_v27  ;;  %v4411_v51 = vand.u32 2147483648, %v4399_v7  ;;  %v4509_v63 = vmul.f32 %v4508_v30, %v9463_v15  ;;  %v5510_v39 = vld [vmem:[%s9211_s4 + $0x18] sm:$0xff]  ;;  %v5075_v30 = vpop.permute.xlu1 %5074 }
0x1129   : > { %vm4530_vm15 = vcmp.eq.f32.partialorder %v4529_v24, 8.507059e+37  ;;  %v4409_v20 = vand.u32 2147483647, %v4399_v7  ;;  %v4428_v18 = vadd.f32 1.1283791, %v4427_v32  ;;  %v5019_v5 = vadd.f32 1.0, %v5449_v46 }
0x112a   : > { %v5618_v8 = vpop.eup %5617  ;;  %v4523_v38 = vmul.f32 %v5616_v12, %v4522_v36  ;;  %vm4405_vm1 = vweird.f32 %v4399_v7  ;;  %v4412_v33 = vor.u32 1.1754944e-38, %v4411_v51  ;;  %v4451_v61 = vand.u32 2147483648, %v9157_v25  ;;  %v5509_v36 = vld [vmem:[%s9211_s4 + $0x10] sm:$0xff]  ;;  %v9469_v46 = vld [vmem:[#allocation24_spill] sm:$0xff] }
0x112b   : > { %v4401_v19 = vmul.f32 %v5618_v8, %v4399_v7  ;;  %vm4406_vm0 = vweird.f32 %v5618_v8  ;;  %v4449_v13 = vand.u32 2147483647, %v9157_v25  ;;  %v4389_v54 = vmul.f32 %v4388_v1, %v9464_v2  ;;  %v9473_v2 = vld [vmem:[#allocation3_spill] sm:$0xff] }
0x112c   : > { %v4524_v0 = vadd.f32 %v5616_v12, %v4523_v38  ;;  %v5620_v26 = vpop.eup %5619  ;;  %vm4407_vm2 = vmor %vm4405_vm1, %vm4406_vm0  ;;  %v4348_v23 = vmul.f32 0.5, %v9465_v10  ;;  %vm4410_vm9 = vcmp.eq.f32.partialorder %v4409_v20, 8.507059e+37  ;;  %vm4445_vm4 = vweird.f32 %v9157_v25  ;;  %v5070_v38 = vpop.permute.xlu0 %5069  ;;  %v9472_v20 = vld [vmem:[#allocation17_spill] sm:$0xff] }
0x112d   : > { %v4402_v53 = vsub.f32 1.0, %v4401_v19  ;;  %v4441_v28 = vmul.f32 %v5620_v26, %v9157_v25  ;;  %vm4446_vm3 = vweird.f32 %v5620_v26  ;;  %v4429_v37 = vmul.f32 %v4428_v18, %v9466_v60 }
0x112e   : > { %v4528_v3 = vsel %vm4527_vm6, %v5616_v12, %v4524_v0  ;;  %vm4447_vm5 = vmor %vm4445_vm4, %vm4446_vm3  ;;  %v4452_v50 = vor.u32 1.1754944e-38, %v4451_v61  ;;  %v5035_v55 = vmul.f32 %v5019_v5, %v4347_v41  ;;  %vm4450_vm7 = vcmp.eq.f32.partialorder %v4449_v13, 8.507059e+37 }
0x112f   : > { %v4533_v11 = vsel %vm4530_vm15, %v4532_v43, %v4528_v3  ;;  %v4403_v56 = vmul.f32 %v5618_v8, %v4402_v53  ;;  %v4442_v22 = vsub.f32 1.0, %v4441_v28  ;;  %v4345_v44 = vmul.f32 0.5, %v9467_v35  ;;  %v9471_v43 = vld [vmem:[#allocation12_spill] sm:$0xff] }
0x1130   : > { %v4534_v6 = vmul.f32 %v4533_v11, %v4509_v63  ;;  %v4346_v25 = vmul.f32 0.5, %v9468_v4 }
0x1131   : > { %v4404_v49 = vadd.f32 %v5618_v8, %v4403_v56  ;;  %v4443_v59 = vmul.f32 %v5620_v26, %v4442_v22 }
0x1132   : > { %v5450_v34 = vclamps-f32 %v4534_v6, 1.0 }
0x1133   : > { %v4408_v16 = vsel %vm4407_vm2, %v5618_v8, %v4404_v49  ;;  %v4444_v31 = vadd.f32 %v5620_v26, %v4443_v59 }
0x1134   : > { %v5020_v45 = vadd.f32 1.0, %v5450_v34  ;;  %v4413_v48 = vsel %vm4410_vm9, %v4412_v33, %v4408_v16  ;;  %v5085_v15 = vpop.permute.xlu0 %5084 }
0x1135   : > { %v4414_v9 = vmul.f32 %v4413_v48, %v4389_v54  ;;  %v4448_v21 = vsel %vm4447_vm5, %v5620_v26, %v4444_v31  ;;  %v9470_v26 = vld [vmem:[#allocation11_spill] sm:$0xff] }
0x1136   : > { %v5036_v57 = vmul.f32 %v5020_v45, %v4348_v23  ;;  %v4453_v62 = vsel %vm4450_vm7, %v4452_v50, %v4448_v21 }
0x1137   : > { %v5447_v7 = vclamps-f32 %v4414_v9, 1.0  ;;  %v4454_v29 = vmul.f32 %v4453_v62, %v4429_v37 }
0x1138   : > { %v5055_v42 = vpack.c.bf16 %v5036_v57, %v5035_v55 }
0x1139   : > { %v5448_v12 = vclamps-f32 %v4454_v29, 1.0  ;;  %v5017_v52 = vadd.f32 1.0, %v5447_v7 }
0x113a   : > { %5105 = vmatpush.bf16.msrb.mxu3 %v5055_v42 }
0x113b   : > { %v5018_v58 = vadd.f32 1.0, %v5448_v12  ;;  %v5033_v40 = vmul.f32 %v5017_v52, %v4345_v44 }
0x113d   : > { %v5034_v14 = vmul.f32 %v5018_v58, %v4346_v25  ;;  %v5186_v58 = vpop.permute.xlu1 %5185 }
0x113f   : > { %v5054_v17 = vpack.c.bf16 %v5034_v14, %v5033_v40  ;;  %v5191_v40 = vpop.permute.xlu2 %5190 }
0x1141   : > { %5106 = vmatpush.bf16.msrb.mxu3 %v5054_v17 }
0x1144   : > { %5107 = vmatmul.bf16.vlgmr.msrb.gmra.mxu3 %v5509_v36 }
0x1154   : > { %5112 = vmatmul.bf16.gmra.mxu3 %v5510_v39  ;;  %v5201_v39 = vpop.permute.xlu1 %5200 }
0x11c7   : > { %v5108_v27 = vpop.f32.mrf.mxu3 }
0x11c8   : > { %v5109_v19 = vadd.f32 %v5108_v27, %v5070_v38  ;;  %v5196_v27 = vpop.permute.xlu0 %5195 }
0x11ca   : > { %v5118_v1 = vadd.f32 %v5109_v19, %v9470_v26 }
0x11cc   : > { %v5132_v3 = vsel %vm1585_vm8, %v5118_v1, 0.0 }
0x11cf   : > { %v5110_v8 = vpop.f32.mrf.mxu3 }
0x11d0   : > { %v5111_v24 = vadd.f32 %v5110_v8, %v5075_v30  ;;  %v5210_v30 = vpop.permute.xlu2 %5209 }
0x11d2   : > { %v5119_v0 = vadd.f32 %v5111_v24, %v9469_v46 }
0x11d4   : > { %v5133_v51 = vsel %vm1585_vm8, %v5119_v0, 0.0 }
0x11d5   : > { %v5134_v56 = vadd.f32 %v5133_v51, %v5132_v3  ;;  %v5215_v51 = vpop.permute.xlu0 %5214 }
0x11d7   : > { %v5113_v41 = vpop.f32.mrf.mxu3 }
0x11d8   : > { %v5114_v32 = vadd.f32 %v5113_v41, %v5080_v47 }
0x11da   : > { %v5120_v53 = vadd.f32 %v5114_v32, %v9471_v43 }
0x11dc   : > { %v5135_v28 = vsel %vm1585_vm8, %v5120_v53, 0.0 }
0x11dd   : > { %v5136_v6 = vadd.f32 %v5135_v28, %v5134_v56 }
0x11df   : > { %v5115_v63 = vpop.f32.mrf.mxu3 }
0x11e0   : > { %v5116_v11 = vadd.f32 %v5115_v63, %v5085_v15  ;;  %v5225_v15 = vpop.permute.xlu2 %5224 }
0x11e2   : > { %v5121_v18 = vadd.f32 %v5116_v11, %v9472_v20 }
0x11e4   : > { %v5137_v5 = vsel %vm1585_vm8, %v5121_v18, 0.0 }
0x11e5   : > { %v5138_v22 = vadd.f32 %v5137_v5, %v5136_v6 }
0x11e7   : > { %v5139_v49 = vrot.slane %v5138_v22, 4 }
0x11e9   : > { %v5140_v33 = vadd.f32 %v5139_v49, %v5138_v22 }
0x11eb   : > { %v5141_v61 = vrot.slane %v5140_v33, 2 }
0x11ed   : > { %v5142_v34 = vadd.f32 %v5141_v61, %v5140_v33 }
0x11ef   : > { %v5143_v59 = vrot.slane %v5142_v34, 1 }
0x11f1   : > { %v5144_v13 = vadd.f32 %v5143_v59, %v5142_v34 }
0x11f3   : > { %v5145_v54 = vmul.f32 %v5144_v13, %v9473_v2 }
0x11f5   : > { %v5146_v10 = vsub.f32 %v5118_v1, %v5145_v54  ;;  %v5147_v23 = vsub.f32 %v5119_v0, %v5145_v54  ;;  %v5148_v16 = vsub.f32 %v5120_v53, %v5145_v54  ;;  %v5149_v45 = vsub.f32 %v5121_v18, %v5145_v54  ;;  %v5220_v53 = vpop.permute.xlu1 %5219 }
0x11f7   : > { %v5150_v48 = vmul.f32 %v5146_v10, %v5146_v10  ;;  %v5151_v31 = vmul.f32 %v5147_v23, %v5147_v23  ;;  %v5152_v60 = vmul.f32 %v5148_v16, %v5148_v16  ;;  %v5153_v37 = vmul.f32 %v5149_v45, %v5149_v45 }
0x11f9   : > { %v5154_v9 = vsel %vm1585_vm8, %v5150_v48, 0.0  ;;  %v5155_v50 = vsel %vm1585_vm8, %v5151_v31, 0.0  ;;  %v5157_v57 = vsel %vm1585_vm8, %v5152_v60, 0.0  ;;  %v5159_v7 = vsel %vm1585_vm8, %v5153_v37, 0.0 }
0x11fa   : > { %v5156_v55 = vadd.f32 %v5155_v50, %v5154_v9 }
0x11fc   : > { %v5158_v21 = vadd.f32 %v5157_v57, %v5156_v55 }
0x11fe   : > { %v5160_v62 = vadd.f32 %v5159_v7, %v5158_v21 }
0x1200   : > { %v5161_v42 = vrot.slane %v5160_v62, 4 }
0x1202   : > { %v5162_v29 = vadd.f32 %v5161_v42, %v5160_v62 }
0x1204   : > { %v5163_v12 = vrot.slane %v5162_v29, 2 }
0x1206   : > { %v5164_v52 = vadd.f32 %v5163_v12, %v5162_v29 }
0x1208   : > { %v5165_v35 = vrot.slane %v5164_v52, 1 }
0x120a   : > { %v5166_v44 = vadd.f32 %v5165_v35, %v5164_v52 }
0x120c   : > { %v5167_v4 = vmul.f32 %v5166_v44, %v9473_v2 }
0x120e   : > { %v5168_v25 = vadd.f32 1e-12, %v5167_v4 }
0x1210   : > { %5621 = vrsqrt.f32 %v5168_v25  ;;  %vm5175_vm11 = vweird.f32 %v5168_v25 }
0x1216   : > { %v5622_v14 = vpop.eup %5621 }
0x1217   : > { %v5170_v17 = vmul.f32 %v5622_v14, %v5168_v25  ;;  %vm5176_vm10 = vweird.f32 %v5622_v14 }
0x1218   : > { %vm5177_vm13 = vmor %vm5175_vm11, %vm5176_vm10 }
0x1219   : > { %v5171_v36 = vmul.f32 %v5622_v14, %v5170_v17 }
0x121b   : > { %v5172_v8 = vmul.f32 0.5, %v5171_v36 }
0x121d   : > { %v5173_v38 = vsub.f32 1.5, %v5172_v8 }
0x121f   : > { %v5174_v24 = vmul.f32 %v5622_v14, %v5173_v38 }
0x1221   : > { %v5178_v47 = vsel %vm5177_vm13, %v5622_v14, %v5174_v24 }
0x1222   : > { %v5179_v41 = vmul.f32 %v5178_v47, %v5146_v10  ;;  %v5180_v19 = vmul.f32 %v5178_v47, %v5147_v23  ;;  %v5181_v32 = vmul.f32 %v5178_v47, %v5148_v16  ;;  %v5182_v46 = vmul.f32 %v5178_v47, %v5149_v45 }
0x1224   : > { %v5203_v0 = vmul.f32 %v5186_v58, %v5179_v41  ;;  %v5204_v26 = vmul.f32 %v5191_v40, %v5180_v19  ;;  %v5205_v1 = vmul.f32 %v5196_v27, %v5181_v32  ;;  %v5206_v43 = vmul.f32 %v5201_v39, %v5182_v46 }
0x1226   : > { %v5227_v63 = vadd.f32 %v5210_v30, %v5203_v0  ;;  %v5228_v3 = vadd.f32 %v5215_v51, %v5204_v26  ;;  %v5229_v28 = vadd.f32 %v5220_v53, %v5205_v1  ;;  %v5230_v11 = vadd.f32 %v5225_v15, %v5206_v43 }
0x1228   : > { %5231 = vst.msk [vmem:[%s359_s17] sm:$0xff] %vm1585_vm8, %v5227_v63 }
0x1229   : > { %5232 = vst.msk [vmem:[%s359_s17 + $0x8] sm:$0xff] %vm1585_vm8, %v5228_v3 }
0x122a   : > { %5233 = vst.msk [vmem:[%s359_s17 + $0x10] sm:$0xff] %vm1585_vm8, %v5229_v28 }
0x122b   : > { %5234 = vst.msk [vmem:[%s359_s17 + $0x18] sm:$0xff] %vm1585_vm8, %v5230_v11 }
0x122c PF: > { %s20_s13 = sadd.s32 1, %s5637_s13  }
0x122d   : > { %p17_p4 = scmp.ge.s32.totalorder %s20_s13, 4  }
0x122f   :  { %19 = sbr.rel (!%p17_p4) target bundleno = 1 (0x1), region = 99 }

</bundles_post_ra>
